<compile_context>
chip_gen: v5e
topology: v5e:2x2
jax: 0.10.0
libtpu: 0.0.40
codegen_flags: <defaults>
</compile_context>

<pallas_src>
import functools
import math

import numpy as np

import jax
import jax.numpy as jnp
from jax.experimental import pallas as pl
from jax.experimental.pallas import tpu as pltpu


# ----------------------------- in-kernel helpers --------------------------------------------

def _softmax_lanes(s):
    """Softmax over the last (lane) axis; EUP reciprocal for the denominator."""
    m = jnp.max(s, axis=-1, keepdims=True)
    e = jnp.exp(s - m)
    return e * pl.reciprocal(jnp.sum(e, axis=-1, keepdims=True), approx=True)


def _softmax_sublanes(s):
    """Softmax over axis=1 of a (TB, N, 1) score tensor (scores live on sublanes)."""
    m = jnp.max(s, axis=1, keepdims=True)
    e = jnp.exp(s - m)
    return e * pl.reciprocal(jnp.sum(e, axis=1, keepdims=True), approx=True)


def _mhsa_block(x2d, w_qkv, tb, n, head_num, head_dim, matmul_dtype):
    """Multi-head self-attention over a (tb*n, d_in) slab with a fused QKV weight.

    The 1/sqrt(head_dim) scale is already folded into the Q columns of w_qkv (wrapper-side).
    Heads are selected with lane masks instead of 8-lane slices + concat: zeroing the
    non-head lanes of q makes the full-width q.k contraction exactly the per-head score,
    and masking the a@v output before accumulation reproduces the head concat exactly.
    """
    d = head_num * head_dim
    qkv = jnp.dot(x2d.astype(matmul_dtype), w_qkv.astype(matmul_dtype),
                  preferred_element_type=jnp.float32)                  # (tb*n, 3d)
    qkv = qkv.reshape(tb, n, 3 * d)
    q = qkv[:, :, 0 * d:1 * d]                                         # already scaled
    k = qkv[:, :, 1 * d:2 * d]
    v = qkv[:, :, 2 * d:3 * d]

    lane = jax.lax.broadcasted_iota(jnp.int32, (1, 1, d), 2)
    out = None
    for h in range(head_num):                                          # static small unroll
        hm = (lane >= h * head_dim) & (lane < (h + 1) * head_dim)
        qh = jnp.where(hm, q, 0.0)                                     # zero other heads' lanes
        s = jnp.einsum('bnd,bmd->bnm', qh, k,
                       preferred_element_type=jnp.float32)             # exact head-h scores
        a = _softmax_lanes(s)
        oh = jnp.einsum('bnm,bmd->bnd', a, v,
                        preferred_element_type=jnp.float32)
        oh = jnp.where(hm, oh, 0.0)                                    # keep only head-h lanes
        out = oh if out is None else out + oh                          # disjoint lanes -> exact concat
    return out                                                         # (tb, n, d)


# ----------------------------- Pallas kernel: block_b batch elements per grid step ----------

def pgt_kernel(his_ref, glob_ref,
               w_news_ref, b_news_ref,
               w_qkv_g_ref, w_qkv_p_ref,
               w_la_ref, b_la_ref, q_la_ref,
               w_gq_ref, b_gq_ref, w_gk_ref, b_gk_ref,
               out_ref, *, head_num, head_dim, matmul_dtype):
    tb, nh, e_dim = his_ref.shape
    _, ng, _ = glob_ref.shape
    d = head_num * head_dim
    dt = matmul_dtype

    # ---- shared news_encoder projection: one fused matmul over [global ; his] rows ----------
    x_all = jnp.concatenate([glob_ref[...], his_ref[...]], axis=1)              # (tb, ng+nh, E)
    proj = jnp.dot(x_all.reshape(tb * (ng + nh), e_dim).astype(dt),
                   w_news_ref[...].astype(dt),
                   preferred_element_type=jnp.float32) + b_news_ref[...]        # (tb*(ng+nh), nd)
    proj = proj.reshape(tb, ng + nh, -1)
    g2 = proj[:, :ng, :].reshape(tb * ng, -1)                                   # (tb*ng, news_dim)
    h2 = proj[:, ng:, :].reshape(tb * nh, -1)                                   # (tb*nh, news_dim)

    # ---- global branch: NewsSetEncoder(global_pref) -----------------------------------------
    g_sa = _mhsa_block(g2, w_qkv_g_ref[...], tb, ng, head_num, head_dim, dt)    # (tb, ng, d)

    # LinearAttn pooling (broadcast-multiply + sublane reduce; no M=1 matmul, no e.T).
    e = jnp.tanh(jnp.dot(g_sa.reshape(tb * ng, d).astype(dt), w_la_ref[...].astype(dt),
                         preferred_element_type=jnp.float32) + b_la_ref[...])   # (tb*ng, key_dim)
    e = e.reshape(tb, ng, -1)
    q_la = q_la_ref[...][None]                                                  # (1, 1, key_dim)
    sc_g = jnp.sum(e * q_la, axis=-1, keepdims=True)                            # (tb, ng, 1)
    alpha = _softmax_sublanes(sc_g)
    g_pool = jnp.sum(alpha * g_sa, axis=1)                                      # (tb, d)

    # ---- history branch ----------------------------------------------------------------------
    h_sa = _mhsa_block(h2, w_qkv_p_ref[...], tb, nh, head_num, head_dim, dt)    # (tb, nh, d)

    # ---- GlobalAttn(his, global_pref) --------------------------------------------------------
    query = jnp.tanh(jnp.dot(g_pool.astype(dt), w_gq_ref[...].astype(dt),
                             preferred_element_type=jnp.float32) + b_gq_ref[...])   # (tb, gd)
    keys = jnp.tanh(jnp.dot(h_sa.reshape(tb * nh, d).astype(dt), w_gk_ref[...].astype(dt),
                            preferred_element_type=jnp.float32) + b_gk_ref[...])    # (tb*nh, gd)
    keys = keys.reshape(tb, nh, -1)
    sc_h = jnp.sum(keys * query[:, None, :], axis=-1, keepdims=True)            # (tb, nh, 1)
    beta = _softmax_sublanes(sc_h)
    out = jnp.sum(beta * h_sa, axis=1)                                          # (tb, d)

    # Lane-dense store: pad last dim to the 128-multiple output block width (unmasked vst).
    pad = out_ref.shape[-1] - d
    if pad:
        out = jnp.concatenate([out, jnp.zeros((tb, pad), jnp.float32)], axis=-1)
    out_ref[...] = out


# ----------------------------- wrapper --------------------------------------------------------

def pgt_encoder_pallas(his, global_pref, params, *, head_num, head_dim,
                       block_b=None, matmul_dtype=jnp.float32):
    B, Nh, E = his.shape
    _, Ng, _ = global_pref.shape
    user_dim = head_num * head_dim
    key_dim = params["w_la"].shape[1]

    # block_b batch elements per grid step: target M = block_b*N ~ 128 rows for the
    # shared-weight matmuls (fills the MXU on v5e, good on v6e/v7x) while keeping >= 2
    # grid steps so v7x's second TensorCore gets work via the "parallel" batch axis.
    if block_b is None:
        block_b = min(B, max(1, 128 // max(min(Nh, Ng), 1)))
        while B % block_b != 0:
            block_b -= 1
    assert B % block_b == 0

    # Fuse the Q/K/V projection weights -> one matmul per branch.  The 1/sqrt(head_dim)
    # attention scale is folded into the Q columns here (one-time, tiny wrapper op) so the
    # kernel never multiplies the full q tensor by the scale.
    scale = 1.0 / float(math.sqrt(head_dim))
    w_qkv_g = jnp.concatenate([params["wq_g"] * scale, params["wk_g"], params["wv_g"]], axis=1)
    w_qkv_p = jnp.concatenate([params["wq_p"] * scale, params["wk_p"], params["wv_p"]], axis=1)
    q_la = params["q_la"].reshape(1, key_dim)   # row vector: lane-broadcast, not a matmul

    weights = [params["w_news"], params["b_news"],
               w_qkv_g, w_qkv_p,
               params["w_la"], params["b_la"], q_la,
               params["w_gq"], params["b_gq"], params["w_gk"], params["b_gk"]]

    # Lane-dense output: pad user_dim up to a multiple of 128.
    LANE = 128
    out_pad = ((user_dim + LANE - 1) // LANE) * LANE

    def weight_spec(w):   # constant index map -> block stays VMEM-resident across the grid
        return pl.BlockSpec(w.shape, lambda i: (0, 0))

    in_specs = ([pl.BlockSpec((block_b, Nh, E), lambda i: (i, 0, 0)),
                 pl.BlockSpec((block_b, Ng, E), lambda i: (i, 0, 0))]
                + [weight_spec(w) for w in weights])
    out_spec = pl.BlockSpec((block_b, out_pad), lambda i: (i, 0))

    kernel = functools.partial(pgt_kernel, head_num=head_num, head_dim=head_dim,
                               matmul_dtype=matmul_dtype)

    out = pl.pallas_call(
        kernel,
        out_shape=jax.ShapeDtypeStruct((B, out_pad), jnp.float32),
        grid=(B // block_b,),
        in_specs=in_specs,
        out_specs=out_spec,
        compiler_params=pltpu.CompilerParams(
            dimension_semantics=("parallel",)),   # batch axis: megacore-shardable on v7x
    )(his, global_pref, *weights)

    return out[:, :user_dim] if out_pad != user_dim else out


# ----------------------------- pure-JAX reference (original formulation) ---------------------

def _softmax_ref(x, axis=-1):
    m = jnp.max(x, axis=axis, keepdims=True)
    e = jnp.exp(x - m)
    return e / jnp.sum(e, axis=axis, keepdims=True)


def _mhsa_ref(x, wq, wk, wv, head_num, head_dim):
    q = jnp.dot(x, wq)
    k = jnp.dot(x, wk)
    v = jnp.dot(x, wv)
    scale = 1.0 / math.sqrt(head_dim)
    outs = []
    for h in range(head_num):
        lo = h * head_dim
        s = jnp.dot(q[:, lo:lo + head_dim], k[:, lo:lo + head_dim].T) * scale
        outs.append(jnp.dot(_softmax_ref(s), v[:, lo:lo + head_dim]))
    return jnp.concatenate(outs, axis=-1)


def pgt_ref_single(his1, glb1, p, head_num, head_dim):
    g = jnp.dot(glb1, p["w_news"]) + p["b_news"]
    g_sa = _mhsa_ref(g, p["wq_g"], p["wk_g"], p["wv_g"], head_num, head_dim)
    e = jnp.tanh(jnp.dot(g_sa, p["w_la"]) + p["b_la"])
    e = jnp.dot(e, p["q_la"])
    alpha = _softmax_ref(e.T)
    g_pool = jnp.dot(alpha, g_sa)

    h = jnp.dot(his1, p["w_news"]) + p["b_news"]
    h_sa = _mhsa_ref(h, p["wq_p"], p["wk_p"], p["wv_p"], head_num, head_dim)

    query = jnp.tanh(jnp.dot(g_pool, p["w_gq"]) + p["b_gq"])
    keys = jnp.tanh(jnp.dot(h_sa, p["w_gk"]) + p["b_gk"])
    beta = _softmax_ref(jnp.dot(query, keys.T))
    return jnp.dot(beta, h_sa)[0]


# ----------------------------- main -----------------------------------------------------------

if __name__ == "__main__":
    # NRMS-consistent dims: head_num*head_dim == news_dim == user_dim.
    # B=32 with Nh=8 gives block_b=16 -> M = block_b*(Nh+Ng) = 256 rows for the fused shared
    # projection and a 2-step "parallel" batch grid (one step per v7x TensorCore).
    B, Nh, Ng = 32, 8, 8
    emb_dim, news_dim = 32, 32
    head_num, head_dim = 4, 8
    user_dim = head_num * head_dim          # 32
    key_dim, global_dim = 16, 16

    key = jax.random.PRNGKey(0)
    keys = jax.random.split(key, 20)

    def init(k, shape, scale=0.1):
        return jax.random.normal(k, shape, dtype=jnp.float32) * scale

    params = {
        "w_news": init(keys[0], (emb_dim, news_dim)),
        "b_news": init(keys[1], (1, news_dim)),
        "wq_g":   init(keys[2], (news_dim, user_dim)),
        "wk_g":   init(keys[3], (news_dim, user_dim)),
        "wv_g":   init(keys[4], (news_dim, user_dim)),
        "w_la":   init(keys[5], (user_dim, key_dim)),
        "b_la":   init(keys[6], (1, key_dim)),
        "q_la":   init(keys[7], (key_dim, 1)),
        "wq_p":   init(keys[8], (news_dim, user_dim)),
        "wk_p":   init(keys[9], (news_dim, user_dim)),
        "wv_p":   init(keys[10], (news_dim, user_dim)),
        "w_gq":   init(keys[11], (user_dim, global_dim)),
        "b_gq":   init(keys[12], (1, global_dim)),
        "w_gk":   init(keys[13], (user_dim, global_dim)),
        "b_gk":   init(keys[14], (1, global_dim)),
    }

    his = jax.random.normal(keys[15], (B, Nh, emb_dim), dtype=jnp.float32)
    global_pref = jax.random.normal(keys[16], (B, Ng, emb_dim), dtype=jnp.float32)

    out = pgt_encoder_pallas(his, global_pref, params,
                             head_num=head_num, head_dim=head_dim)
    out = jax.block_until_ready(out)
    assert out.shape == (B, user_dim)

    ref = jax.vmap(lambda h1, g1: pgt_ref_single(h1, g1, params, head_num, head_dim))(
        his, global_pref)
    # Tolerance covers the approx EUP reciprocal in the three softmax stages.
    np.testing.assert_allclose(np.asarray(out), np.asarray(ref), rtol=5e-3, atol=5e-4)

    print("KERNEL_OK")
</pallas_src>

<mosaic_0001>
module attributes {stable_mosaic.version = 11 : i64} {
  func.func @pgt_kernel(%arg0: i32, %arg1: memref<16x8x32xf32, #tpu.memory_space<vmem>>, %arg2: memref<16x8x32xf32, #tpu.memory_space<vmem>>, %arg3: memref<32x32xf32, #tpu.memory_space<vmem>>, %arg4: memref<1x32xf32, #tpu.memory_space<vmem>>, %arg5: memref<32x96xf32, #tpu.memory_space<vmem>>, %arg6: memref<32x96xf32, #tpu.memory_space<vmem>>, %arg7: memref<32x16xf32, #tpu.memory_space<vmem>>, %arg8: memref<1x16xf32, #tpu.memory_space<vmem>>, %arg9: memref<1x16xf32, #tpu.memory_space<vmem>>, %arg10: memref<32x16xf32, #tpu.memory_space<vmem>>, %arg11: memref<1x16xf32, #tpu.memory_space<vmem>>, %arg12: memref<32x16xf32, #tpu.memory_space<vmem>>, %arg13: memref<1x16xf32, #tpu.memory_space<vmem>>, %arg14: memref<16x128xf32, #tpu.memory_space<vmem>>) attributes {dimension_semantics = [#tpu.dimension_semantics<parallel>], iteration_bounds = array<i64: 2>, scalar_prefetch = 0 : i64, scratch_operands = 0 : i64, tpu.core_type = #tpu.core_type<tc>, window_params = [{transform_indices = @transform_0, window_bounds = array<i64: 16, 8, 32>}, {transform_indices = @transform_1, window_bounds = array<i64: 16, 8, 32>}, {pipeline_mode = #tpu.pipeline_mode<synchronous>, transform_indices = @transform_2, window_bounds = array<i64: 32, 32>}, {pipeline_mode = #tpu.pipeline_mode<synchronous>, transform_indices = @transform_3, window_bounds = array<i64: 1, 32>}, {pipeline_mode = #tpu.pipeline_mode<synchronous>, transform_indices = @transform_4, window_bounds = array<i64: 32, 96>}, {pipeline_mode = #tpu.pipeline_mode<synchronous>, transform_indices = @transform_5, window_bounds = array<i64: 32, 96>}, {pipeline_mode = #tpu.pipeline_mode<synchronous>, transform_indices = @transform_6, window_bounds = array<i64: 32, 16>}, {pipeline_mode = #tpu.pipeline_mode<synchronous>, transform_indices = @transform_7, window_bounds = array<i64: 1, 16>}, {pipeline_mode = #tpu.pipeline_mode<synchronous>, transform_indices = @transform_8, window_bounds = array<i64: 1, 16>}, {pipeline_mode = #tpu.pipeline_mode<synchronous>, transform_indices = @transform_9, window_bounds = array<i64: 32, 16>}, {pipeline_mode = #tpu.pipeline_mode<synchronous>, transform_indices = @transform_10, window_bounds = array<i64: 1, 16>}, {pipeline_mode = #tpu.pipeline_mode<synchronous>, transform_indices = @transform_11, window_bounds = array<i64: 32, 16>}, {pipeline_mode = #tpu.pipeline_mode<synchronous>, transform_indices = @transform_12, window_bounds = array<i64: 1, 16>}, {transform_indices = @transform_13, window_bounds = array<i64: 16, 128>}]} {
    %c0 = arith.constant 0 : index
    %c0_0 = arith.constant 0 : index
    %c0_1 = arith.constant 0 : index
    %0 = vector.load %arg2[%c0, %c0_0, %c0_1] : memref<16x8x32xf32, #tpu.memory_space<vmem>>, vector<16x8x32xf32>
    %c0_2 = arith.constant 0 : index
    %c0_3 = arith.constant 0 : index
    %c0_4 = arith.constant 0 : index
    %1 = vector.load %arg1[%c0_2, %c0_3, %c0_4] : memref<16x8x32xf32, #tpu.memory_space<vmem>>, vector<16x8x32xf32>
    %2 = tpu.concatenate %0, %1 in 1 : vector<16x8x32xf32>, vector<16x8x32xf32> -> vector<16x16x32xf32>
    %3 = vector.shape_cast %2 : vector<16x16x32xf32> to vector<256x32xf32>
    %c0_5 = arith.constant 0 : index
    %c0_6 = arith.constant 0 : index
    %4 = vector.load %arg3[%c0_5, %c0_6] : memref<32x32xf32, #tpu.memory_space<vmem>>, vector<32x32xf32>
    %cst = arith.constant dense<0.000000e+00> : vector<256x32xf32>
    %5 = tpu.matmul %3, %4, %cst {dimension_numbers = #tpu.dot_dimension_numbers<[1], [0], [0], [1], [0, 0, 1, 1], [], []>} : vector<256x32xf32>, vector<32x32xf32>, vector<256x32xf32> -> vector<256x32xf32>
    %c0_7 = arith.constant 0 : index
    %c0_8 = arith.constant 0 : index
    %6 = vector.load %arg4[%c0_7, %c0_8] : memref<1x32xf32, #tpu.memory_space<vmem>>, vector<1x32xf32>
    %7 = vector.broadcast %6 : vector<1x32xf32> to vector<256x32xf32>
    %8 = arith.addf %5, %7 : vector<256x32xf32>
    %9 = vector.shape_cast %8 : vector<256x32xf32> to vector<16x16x32xf32>
    %10 = vector.extract_strided_slice %9 {offsets = [0, 0, 0], sizes = [16, 8, 32], strides = [1, 1, 1]} : vector<16x16x32xf32> to vector<16x8x32xf32>
    %11 = vector.shape_cast %10 : vector<16x8x32xf32> to vector<128x32xf32>
    %12 = vector.extract_strided_slice %9 {offsets = [0, 8, 0], sizes = [16, 8, 32], strides = [1, 1, 1]} : vector<16x16x32xf32> to vector<16x8x32xf32>
    %13 = vector.shape_cast %12 : vector<16x8x32xf32> to vector<128x32xf32>
    %c0_9 = arith.constant 0 : index
    %c0_10 = arith.constant 0 : index
    %14 = vector.load %arg5[%c0_9, %c0_10] : memref<32x96xf32, #tpu.memory_space<vmem>>, vector<32x96xf32>
    %cst_11 = arith.constant dense<0.000000e+00> : vector<128x96xf32>
    %15 = tpu.matmul %11, %14, %cst_11 {dimension_numbers = #tpu.dot_dimension_numbers<[1], [0], [0], [1], [0, 0, 1, 1], [], []>} : vector<128x32xf32>, vector<32x96xf32>, vector<128x96xf32> -> vector<128x96xf32>
    %16 = vector.shape_cast %15 : vector<128x96xf32> to vector<16x8x96xf32>
    %17 = vector.extract_strided_slice %16 {offsets = [0, 0, 0], sizes = [16, 8, 32], strides = [1, 1, 1]} : vector<16x8x96xf32> to vector<16x8x32xf32>
    %18 = vector.extract_strided_slice %16 {offsets = [0, 0, 32], sizes = [16, 8, 32], strides = [1, 1, 1]} : vector<16x8x96xf32> to vector<16x8x32xf32>
    %19 = vector.extract_strided_slice %16 {offsets = [0, 0, 64], sizes = [16, 8, 32], strides = [1, 1, 1]} : vector<16x8x96xf32> to vector<16x8x32xf32>
    %20 = tpu.iota {dimensions = array<i32: 2>} : vector<1x1x32xi32>
    %c0_i32 = arith.constant 0 : i32
    %21 = vector.broadcast %c0_i32 : i32 to vector<1x1x32xi32>
    %22 = arith.cmpi sge, %20, %21 : vector<1x1x32xi32>
    %c8_i32 = arith.constant 8 : i32
    %23 = vector.broadcast %c8_i32 : i32 to vector<1x1x32xi32>
    %24 = arith.cmpi slt, %20, %23 : vector<1x1x32xi32>
    %25 = arith.andi %22, %24 : vector<1x1x32xi1>
    %cst_12 = arith.constant 0.000000e+00 : f32
    %26 = vector.shape_cast %25 : vector<1x1x32xi1> to vector<1x1x32xi1>
    %27 = vector.broadcast %26 : vector<1x1x32xi1> to vector<16x8x32xi1>
    %28 = vector.broadcast %cst_12 : f32 to vector<16x8x32xf32>
    %29 = arith.select %27, %17, %28 : vector<16x8x32xi1>, vector<16x8x32xf32>
    "tpu.trace_start"() <{level = 10 : i32, message = "bnd,bmd->bnm"}> : () -> ()
    %cst_13 = arith.constant dense<0.000000e+00> : vector<16x8x8xf32>
    %30 = tpu.matmul %29, %18, %cst_13 {dimension_numbers = #tpu.dot_dimension_numbers<[2], [2], [1], [1], [0, 0, 0, 1, 1, 1], [0], [0]>} : vector<16x8x32xf32>, vector<16x8x32xf32>, vector<16x8x8xf32> -> vector<16x8x8xf32>
    "tpu.trace_stop"() : () -> ()
    %cst_14 = arith.constant dense<0xFF800000> : vector<16x8xf32>
    %31 = vector.multi_reduction <maximumf>, %30, %cst_14 [2] : vector<16x8x8xf32> to vector<16x8xf32>
    %32 = vector.shape_cast %31 : vector<16x8xf32> to vector<16x8x1xf32>
    %33 = vector.broadcast %32 : vector<16x8x1xf32> to vector<16x8x8xf32>
    %34 = arith.subf %30, %33 : vector<16x8x8xf32>
    %35 = math.exp %34 : vector<16x8x8xf32>
    %cst_15 = arith.constant dense<0.000000e+00> : vector<16x8xf32>
    %36 = vector.multi_reduction <add>, %35, %cst_15 [2] : vector<16x8x8xf32> to vector<16x8xf32>
    %37 = vector.shape_cast %36 : vector<16x8xf32> to vector<16x8x1xf32>
    %38 = tpu.reciprocal %37 {approx = true} : vector<16x8x1xf32> -> vector<16x8x1xf32>
    %39 = vector.broadcast %38 : vector<16x8x1xf32> to vector<16x8x8xf32>
    %40 = arith.mulf %35, %39 : vector<16x8x8xf32>
    "tpu.trace_start"() <{level = 10 : i32, message = "bnm,bmd->bnd"}> : () -> ()
    %cst_16 = arith.constant dense<0.000000e+00> : vector<16x8x32xf32>
    %41 = tpu.matmul %40, %19, %cst_16 {dimension_numbers = #tpu.dot_dimension_numbers<[2], [1], [1], [2], [0, 0, 0, 1, 1, 2], [0], [0]>} : vector<16x8x8xf32>, vector<16x8x32xf32>, vector<16x8x32xf32> -> vector<16x8x32xf32>
    %cst_17 = arith.constant 0.000000e+00 : f32
    "tpu.trace_stop"() : () -> ()
    %42 = vector.shape_cast %25 : vector<1x1x32xi1> to vector<1x1x32xi1>
    %43 = vector.broadcast %42 : vector<1x1x32xi1> to vector<16x8x32xi1>
    %44 = vector.broadcast %cst_17 : f32 to vector<16x8x32xf32>
    %45 = arith.select %43, %41, %44 : vector<16x8x32xi1>, vector<16x8x32xf32>
    %c8_i32_18 = arith.constant 8 : i32
    %46 = vector.broadcast %c8_i32_18 : i32 to vector<1x1x32xi32>
    %47 = arith.cmpi sge, %20, %46 : vector<1x1x32xi32>
    %c16_i32 = arith.constant 16 : i32
    %48 = vector.broadcast %c16_i32 : i32 to vector<1x1x32xi32>
    %49 = arith.cmpi slt, %20, %48 : vector<1x1x32xi32>
    %50 = arith.andi %47, %49 : vector<1x1x32xi1>
    %cst_19 = arith.constant 0.000000e+00 : f32
    %51 = vector.shape_cast %50 : vector<1x1x32xi1> to vector<1x1x32xi1>
    %52 = vector.broadcast %51 : vector<1x1x32xi1> to vector<16x8x32xi1>
    %53 = vector.broadcast %cst_19 : f32 to vector<16x8x32xf32>
    %54 = arith.select %52, %17, %53 : vector<16x8x32xi1>, vector<16x8x32xf32>
    "tpu.trace_start"() <{level = 10 : i32, message = "bnd,bmd->bnm"}> : () -> ()
    %cst_20 = arith.constant dense<0.000000e+00> : vector<16x8x8xf32>
    %55 = tpu.matmul %54, %18, %cst_20 {dimension_numbers = #tpu.dot_dimension_numbers<[2], [2], [1], [1], [0, 0, 0, 1, 1, 1], [0], [0]>} : vector<16x8x32xf32>, vector<16x8x32xf32>, vector<16x8x8xf32> -> vector<16x8x8xf32>
    "tpu.trace_stop"() : () -> ()
    %cst_21 = arith.constant dense<0xFF800000> : vector<16x8xf32>
    %56 = vector.multi_reduction <maximumf>, %55, %cst_21 [2] : vector<16x8x8xf32> to vector<16x8xf32>
    %57 = vector.shape_cast %56 : vector<16x8xf32> to vector<16x8x1xf32>
    %58 = vector.broadcast %57 : vector<16x8x1xf32> to vector<16x8x8xf32>
    %59 = arith.subf %55, %58 : vector<16x8x8xf32>
    %60 = math.exp %59 : vector<16x8x8xf32>
    %cst_22 = arith.constant dense<0.000000e+00> : vector<16x8xf32>
    %61 = vector.multi_reduction <add>, %60, %cst_22 [2] : vector<16x8x8xf32> to vector<16x8xf32>
    %62 = vector.shape_cast %61 : vector<16x8xf32> to vector<16x8x1xf32>
    %63 = tpu.reciprocal %62 {approx = true} : vector<16x8x1xf32> -> vector<16x8x1xf32>
    %64 = vector.broadcast %63 : vector<16x8x1xf32> to vector<16x8x8xf32>
    %65 = arith.mulf %60, %64 : vector<16x8x8xf32>
    "tpu.trace_start"() <{level = 10 : i32, message = "bnm,bmd->bnd"}> : () -> ()
    %cst_23 = arith.constant dense<0.000000e+00> : vector<16x8x32xf32>
    %66 = tpu.matmul %65, %19, %cst_23 {dimension_numbers = #tpu.dot_dimension_numbers<[2], [1], [1], [2], [0, 0, 0, 1, 1, 2], [0], [0]>} : vector<16x8x8xf32>, vector<16x8x32xf32>, vector<16x8x32xf32> -> vector<16x8x32xf32>
    %cst_24 = arith.constant 0.000000e+00 : f32
    "tpu.trace_stop"() : () -> ()
    %67 = vector.shape_cast %50 : vector<1x1x32xi1> to vector<1x1x32xi1>
    %68 = vector.broadcast %67 : vector<1x1x32xi1> to vector<16x8x32xi1>
    %69 = vector.broadcast %cst_24 : f32 to vector<16x8x32xf32>
    %70 = arith.select %68, %66, %69 : vector<16x8x32xi1>, vector<16x8x32xf32>
    %71 = arith.addf %45, %70 : vector<16x8x32xf32>
    %c16_i32_25 = arith.constant 16 : i32
    %72 = vector.broadcast %c16_i32_25 : i32 to vector<1x1x32xi32>
    %73 = arith.cmpi sge, %20, %72 : vector<1x1x32xi32>
    %c24_i32 = arith.constant 24 : i32
    %74 = vector.broadcast %c24_i32 : i32 to vector<1x1x32xi32>
    %75 = arith.cmpi slt, %20, %74 : vector<1x1x32xi32>
    %76 = arith.andi %73, %75 : vector<1x1x32xi1>
    %cst_26 = arith.constant 0.000000e+00 : f32
    %77 = vector.shape_cast %76 : vector<1x1x32xi1> to vector<1x1x32xi1>
    %78 = vector.broadcast %77 : vector<1x1x32xi1> to vector<16x8x32xi1>
    %79 = vector.broadcast %cst_26 : f32 to vector<16x8x32xf32>
    %80 = arith.select %78, %17, %79 : vector<16x8x32xi1>, vector<16x8x32xf32>
    "tpu.trace_start"() <{level = 10 : i32, message = "bnd,bmd->bnm"}> : () -> ()
    %cst_27 = arith.constant dense<0.000000e+00> : vector<16x8x8xf32>
    %81 = tpu.matmul %80, %18, %cst_27 {dimension_numbers = #tpu.dot_dimension_numbers<[2], [2], [1], [1], [0, 0, 0, 1, 1, 1], [0], [0]>} : vector<16x8x32xf32>, vector<16x8x32xf32>, vector<16x8x8xf32> -> vector<16x8x8xf32>
    "tpu.trace_stop"() : () -> ()
    %cst_28 = arith.constant dense<0xFF800000> : vector<16x8xf32>
    %82 = vector.multi_reduction <maximumf>, %81, %cst_28 [2] : vector<16x8x8xf32> to vector<16x8xf32>
    %83 = vector.shape_cast %82 : vector<16x8xf32> to vector<16x8x1xf32>
    %84 = vector.broadcast %83 : vector<16x8x1xf32> to vector<16x8x8xf32>
    %85 = arith.subf %81, %84 : vector<16x8x8xf32>
    %86 = math.exp %85 : vector<16x8x8xf32>
    %cst_29 = arith.constant dense<0.000000e+00> : vector<16x8xf32>
    %87 = vector.multi_reduction <add>, %86, %cst_29 [2] : vector<16x8x8xf32> to vector<16x8xf32>
    %88 = vector.shape_cast %87 : vector<16x8xf32> to vector<16x8x1xf32>
    %89 = tpu.reciprocal %88 {approx = true} : vector<16x8x1xf32> -> vector<16x8x1xf32>
    %90 = vector.broadcast %89 : vector<16x8x1xf32> to vector<16x8x8xf32>
    %91 = arith.mulf %86, %90 : vector<16x8x8xf32>
    "tpu.trace_start"() <{level = 10 : i32, message = "bnm,bmd->bnd"}> : () -> ()
    %cst_30 = arith.constant dense<0.000000e+00> : vector<16x8x32xf32>
    %92 = tpu.matmul %91, %19, %cst_30 {dimension_numbers = #tpu.dot_dimension_numbers<[2], [1], [1], [2], [0, 0, 0, 1, 1, 2], [0], [0]>} : vector<16x8x8xf32>, vector<16x8x32xf32>, vector<16x8x32xf32> -> vector<16x8x32xf32>
    %cst_31 = arith.constant 0.000000e+00 : f32
    "tpu.trace_stop"() : () -> ()
    %93 = vector.shape_cast %76 : vector<1x1x32xi1> to vector<1x1x32xi1>
    %94 = vector.broadcast %93 : vector<1x1x32xi1> to vector<16x8x32xi1>
    %95 = vector.broadcast %cst_31 : f32 to vector<16x8x32xf32>
    %96 = arith.select %94, %92, %95 : vector<16x8x32xi1>, vector<16x8x32xf32>
    %97 = arith.addf %71, %96 : vector<16x8x32xf32>
    %c24_i32_32 = arith.constant 24 : i32
    %98 = vector.broadcast %c24_i32_32 : i32 to vector<1x1x32xi32>
    %99 = arith.cmpi sge, %20, %98 : vector<1x1x32xi32>
    %c32_i32 = arith.constant 32 : i32
    %100 = vector.broadcast %c32_i32 : i32 to vector<1x1x32xi32>
    %101 = arith.cmpi slt, %20, %100 : vector<1x1x32xi32>
    %102 = arith.andi %99, %101 : vector<1x1x32xi1>
    %cst_33 = arith.constant 0.000000e+00 : f32
    %103 = vector.shape_cast %102 : vector<1x1x32xi1> to vector<1x1x32xi1>
    %104 = vector.broadcast %103 : vector<1x1x32xi1> to vector<16x8x32xi1>
    %105 = vector.broadcast %cst_33 : f32 to vector<16x8x32xf32>
    %106 = arith.select %104, %17, %105 : vector<16x8x32xi1>, vector<16x8x32xf32>
    "tpu.trace_start"() <{level = 10 : i32, message = "bnd,bmd->bnm"}> : () -> ()
    %cst_34 = arith.constant dense<0.000000e+00> : vector<16x8x8xf32>
    %107 = tpu.matmul %106, %18, %cst_34 {dimension_numbers = #tpu.dot_dimension_numbers<[2], [2], [1], [1], [0, 0, 0, 1, 1, 1], [0], [0]>} : vector<16x8x32xf32>, vector<16x8x32xf32>, vector<16x8x8xf32> -> vector<16x8x8xf32>
    "tpu.trace_stop"() : () -> ()
    %cst_35 = arith.constant dense<0xFF800000> : vector<16x8xf32>
    %108 = vector.multi_reduction <maximumf>, %107, %cst_35 [2] : vector<16x8x8xf32> to vector<16x8xf32>
    %109 = vector.shape_cast %108 : vector<16x8xf32> to vector<16x8x1xf32>
    %110 = vector.broadcast %109 : vector<16x8x1xf32> to vector<16x8x8xf32>
    %111 = arith.subf %107, %110 : vector<16x8x8xf32>
    %112 = math.exp %111 : vector<16x8x8xf32>
    %cst_36 = arith.constant dense<0.000000e+00> : vector<16x8xf32>
    %113 = vector.multi_reduction <add>, %112, %cst_36 [2] : vector<16x8x8xf32> to vector<16x8xf32>
    %114 = vector.shape_cast %113 : vector<16x8xf32> to vector<16x8x1xf32>
    %115 = tpu.reciprocal %114 {approx = true} : vector<16x8x1xf32> -> vector<16x8x1xf32>
    %116 = vector.broadcast %115 : vector<16x8x1xf32> to vector<16x8x8xf32>
    %117 = arith.mulf %112, %116 : vector<16x8x8xf32>
    "tpu.trace_start"() <{level = 10 : i32, message = "bnm,bmd->bnd"}> : () -> ()
    %cst_37 = arith.constant dense<0.000000e+00> : vector<16x8x32xf32>
    %118 = tpu.matmul %117, %19, %cst_37 {dimension_numbers = #tpu.dot_dimension_numbers<[2], [1], [1], [2], [0, 0, 0, 1, 1, 2], [0], [0]>} : vector<16x8x8xf32>, vector<16x8x32xf32>, vector<16x8x32xf32> -> vector<16x8x32xf32>
    %cst_38 = arith.constant 0.000000e+00 : f32
    "tpu.trace_stop"() : () -> ()
    %119 = vector.shape_cast %102 : vector<1x1x32xi1> to vector<1x1x32xi1>
    %120 = vector.broadcast %119 : vector<1x1x32xi1> to vector<16x8x32xi1>
    %121 = vector.broadcast %cst_38 : f32 to vector<16x8x32xf32>
    %122 = arith.select %120, %118, %121 : vector<16x8x32xi1>, vector<16x8x32xf32>
    %123 = arith.addf %97, %122 : vector<16x8x32xf32>
    %124 = vector.shape_cast %123 : vector<16x8x32xf32> to vector<128x32xf32>
    %c0_39 = arith.constant 0 : index
    %c0_40 = arith.constant 0 : index
    %125 = vector.load %arg7[%c0_39, %c0_40] : memref<32x16xf32, #tpu.memory_space<vmem>>, vector<32x16xf32>
    %cst_41 = arith.constant dense<0.000000e+00> : vector<128x16xf32>
    %126 = tpu.matmul %124, %125, %cst_41 {dimension_numbers = #tpu.dot_dimension_numbers<[1], [0], [0], [1], [0, 0, 1, 1], [], []>} : vector<128x32xf32>, vector<32x16xf32>, vector<128x16xf32> -> vector<128x16xf32>
    %c0_42 = arith.constant 0 : index
    %c0_43 = arith.constant 0 : index
    %127 = vector.load %arg8[%c0_42, %c0_43] : memref<1x16xf32, #tpu.memory_space<vmem>>, vector<1x16xf32>
    %128 = vector.broadcast %127 : vector<1x16xf32> to vector<128x16xf32>
    %129 = arith.addf %126, %128 : vector<128x16xf32>
    %130 = math.tanh %129 : vector<128x16xf32>
    %131 = vector.shape_cast %130 : vector<128x16xf32> to vector<16x8x16xf32>
    %c0_44 = arith.constant 0 : index
    %c0_45 = arith.constant 0 : index
    %132 = vector.load %arg9[%c0_44, %c0_45] : memref<1x16xf32, #tpu.memory_space<vmem>>, vector<1x16xf32>
    %133 = vector.shape_cast %132 : vector<1x16xf32> to vector<1x1x16xf32>
    %134 = vector.broadcast %133 : vector<1x1x16xf32> to vector<16x8x16xf32>
    %135 = arith.mulf %131, %134 : vector<16x8x16xf32>
    %cst_46 = arith.constant dense<0.000000e+00> : vector<16x8xf32>
    %136 = vector.multi_reduction <add>, %135, %cst_46 [2] : vector<16x8x16xf32> to vector<16x8xf32>
    %137 = vector.shape_cast %136 : vector<16x8xf32> to vector<16x8x1xf32>
    %cst_47 = arith.constant dense<0xFF800000> : vector<16x1xf32>
    %138 = vector.multi_reduction <maximumf>, %137, %cst_47 [1] : vector<16x8x1xf32> to vector<16x1xf32>
    %139 = vector.shape_cast %138 : vector<16x1xf32> to vector<16x1x1xf32>
    %140 = vector.broadcast %139 : vector<16x1x1xf32> to vector<16x8x1xf32>
    %141 = arith.subf %137, %140 : vector<16x8x1xf32>
    %142 = math.exp %141 : vector<16x8x1xf32>
    %cst_48 = arith.constant dense<0.000000e+00> : vector<16x1xf32>
    %143 = vector.multi_reduction <add>, %142, %cst_48 [1] : vector<16x8x1xf32> to vector<16x1xf32>
    %144 = vector.shape_cast %143 : vector<16x1xf32> to vector<16x1x1xf32>
    %145 = tpu.reciprocal %144 {approx = true} : vector<16x1x1xf32> -> vector<16x1x1xf32>
    %146 = vector.broadcast %145 : vector<16x1x1xf32> to vector<16x8x1xf32>
    %147 = arith.mulf %142, %146 : vector<16x8x1xf32>
    %148 = vector.broadcast %147 : vector<16x8x1xf32> to vector<16x8x32xf32>
    %149 = arith.mulf %148, %123 : vector<16x8x32xf32>
    %cst_49 = arith.constant dense<0.000000e+00> : vector<16x32xf32>
    %150 = vector.multi_reduction <add>, %149, %cst_49 [1] : vector<16x8x32xf32> to vector<16x32xf32>
    %c0_50 = arith.constant 0 : index
    %c0_51 = arith.constant 0 : index
    %151 = vector.load %arg6[%c0_50, %c0_51] : memref<32x96xf32, #tpu.memory_space<vmem>>, vector<32x96xf32>
    %cst_52 = arith.constant dense<0.000000e+00> : vector<128x96xf32>
    %152 = tpu.matmul %13, %151, %cst_52 {dimension_numbers = #tpu.dot_dimension_numbers<[1], [0], [0], [1], [0, 0, 1, 1], [], []>} : vector<128x32xf32>, vector<32x96xf32>, vector<128x96xf32> -> vector<128x96xf32>
    %153 = vector.shape_cast %152 : vector<128x96xf32> to vector<16x8x96xf32>
    %154 = vector.extract_strided_slice %153 {offsets = [0, 0, 0], sizes = [16, 8, 32], strides = [1, 1, 1]} : vector<16x8x96xf32> to vector<16x8x32xf32>
    %155 = vector.extract_strided_slice %153 {offsets = [0, 0, 32], sizes = [16, 8, 32], strides = [1, 1, 1]} : vector<16x8x96xf32> to vector<16x8x32xf32>
    %156 = vector.extract_strided_slice %153 {offsets = [0, 0, 64], sizes = [16, 8, 32], strides = [1, 1, 1]} : vector<16x8x96xf32> to vector<16x8x32xf32>
    %157 = tpu.iota {dimensions = array<i32: 2>} : vector<1x1x32xi32>
    %c0_i32_53 = arith.constant 0 : i32
    %158 = vector.broadcast %c0_i32_53 : i32 to vector<1x1x32xi32>
    %159 = arith.cmpi sge, %157, %158 : vector<1x1x32xi32>
    %c8_i32_54 = arith.constant 8 : i32
    %160 = vector.broadcast %c8_i32_54 : i32 to vector<1x1x32xi32>
    %161 = arith.cmpi slt, %157, %160 : vector<1x1x32xi32>
    %162 = arith.andi %159, %161 : vector<1x1x32xi1>
    %cst_55 = arith.constant 0.000000e+00 : f32
    %163 = vector.shape_cast %162 : vector<1x1x32xi1> to vector<1x1x32xi1>
    %164 = vector.broadcast %163 : vector<1x1x32xi1> to vector<16x8x32xi1>
    %165 = vector.broadcast %cst_55 : f32 to vector<16x8x32xf32>
    %166 = arith.select %164, %154, %165 : vector<16x8x32xi1>, vector<16x8x32xf32>
    "tpu.trace_start"() <{level = 10 : i32, message = "bnd,bmd->bnm"}> : () -> ()
    %cst_56 = arith.constant dense<0.000000e+00> : vector<16x8x8xf32>
    %167 = tpu.matmul %166, %155, %cst_56 {dimension_numbers = #tpu.dot_dimension_numbers<[2], [2], [1], [1], [0, 0, 0, 1, 1, 1], [0], [0]>} : vector<16x8x32xf32>, vector<16x8x32xf32>, vector<16x8x8xf32> -> vector<16x8x8xf32>
    "tpu.trace_stop"() : () -> ()
    %cst_57 = arith.constant dense<0xFF800000> : vector<16x8xf32>
    %168 = vector.multi_reduction <maximumf>, %167, %cst_57 [2] : vector<16x8x8xf32> to vector<16x8xf32>
    %169 = vector.shape_cast %168 : vector<16x8xf32> to vector<16x8x1xf32>
    %170 = vector.broadcast %169 : vector<16x8x1xf32> to vector<16x8x8xf32>
    %171 = arith.subf %167, %170 : vector<16x8x8xf32>
    %172 = math.exp %171 : vector<16x8x8xf32>
    %cst_58 = arith.constant dense<0.000000e+00> : vector<16x8xf32>
    %173 = vector.multi_reduction <add>, %172, %cst_58 [2] : vector<16x8x8xf32> to vector<16x8xf32>
    %174 = vector.shape_cast %173 : vector<16x8xf32> to vector<16x8x1xf32>
    %175 = tpu.reciprocal %174 {approx = true} : vector<16x8x1xf32> -> vector<16x8x1xf32>
    %176 = vector.broadcast %175 : vector<16x8x1xf32> to vector<16x8x8xf32>
    %177 = arith.mulf %172, %176 : vector<16x8x8xf32>
    "tpu.trace_start"() <{level = 10 : i32, message = "bnm,bmd->bnd"}> : () -> ()
    %cst_59 = arith.constant dense<0.000000e+00> : vector<16x8x32xf32>
    %178 = tpu.matmul %177, %156, %cst_59 {dimension_numbers = #tpu.dot_dimension_numbers<[2], [1], [1], [2], [0, 0, 0, 1, 1, 2], [0], [0]>} : vector<16x8x8xf32>, vector<16x8x32xf32>, vector<16x8x32xf32> -> vector<16x8x32xf32>
    %cst_60 = arith.constant 0.000000e+00 : f32
    "tpu.trace_stop"() : () -> ()
    %179 = vector.shape_cast %162 : vector<1x1x32xi1> to vector<1x1x32xi1>
    %180 = vector.broadcast %179 : vector<1x1x32xi1> to vector<16x8x32xi1>
    %181 = vector.broadcast %cst_60 : f32 to vector<16x8x32xf32>
    %182 = arith.select %180, %178, %181 : vector<16x8x32xi1>, vector<16x8x32xf32>
    %c8_i32_61 = arith.constant 8 : i32
    %183 = vector.broadcast %c8_i32_61 : i32 to vector<1x1x32xi32>
    %184 = arith.cmpi sge, %157, %183 : vector<1x1x32xi32>
    %c16_i32_62 = arith.constant 16 : i32
    %185 = vector.broadcast %c16_i32_62 : i32 to vector<1x1x32xi32>
    %186 = arith.cmpi slt, %157, %185 : vector<1x1x32xi32>
    %187 = arith.andi %184, %186 : vector<1x1x32xi1>
    %cst_63 = arith.constant 0.000000e+00 : f32
    %188 = vector.shape_cast %187 : vector<1x1x32xi1> to vector<1x1x32xi1>
    %189 = vector.broadcast %188 : vector<1x1x32xi1> to vector<16x8x32xi1>
    %190 = vector.broadcast %cst_63 : f32 to vector<16x8x32xf32>
    %191 = arith.select %189, %154, %190 : vector<16x8x32xi1>, vector<16x8x32xf32>
    "tpu.trace_start"() <{level = 10 : i32, message = "bnd,bmd->bnm"}> : () -> ()
    %cst_64 = arith.constant dense<0.000000e+00> : vector<16x8x8xf32>
    %192 = tpu.matmul %191, %155, %cst_64 {dimension_numbers = #tpu.dot_dimension_numbers<[2], [2], [1], [1], [0, 0, 0, 1, 1, 1], [0], [0]>} : vector<16x8x32xf32>, vector<16x8x32xf32>, vector<16x8x8xf32> -> vector<16x8x8xf32>
    "tpu.trace_stop"() : () -> ()
    %cst_65 = arith.constant dense<0xFF800000> : vector<16x8xf32>
    %193 = vector.multi_reduction <maximumf>, %192, %cst_65 [2] : vector<16x8x8xf32> to vector<16x8xf32>
    %194 = vector.shape_cast %193 : vector<16x8xf32> to vector<16x8x1xf32>
    %195 = vector.broadcast %194 : vector<16x8x1xf32> to vector<16x8x8xf32>
    %196 = arith.subf %192, %195 : vector<16x8x8xf32>
    %197 = math.exp %196 : vector<16x8x8xf32>
    %cst_66 = arith.constant dense<0.000000e+00> : vector<16x8xf32>
    %198 = vector.multi_reduction <add>, %197, %cst_66 [2] : vector<16x8x8xf32> to vector<16x8xf32>
    %199 = vector.shape_cast %198 : vector<16x8xf32> to vector<16x8x1xf32>
    %200 = tpu.reciprocal %199 {approx = true} : vector<16x8x1xf32> -> vector<16x8x1xf32>
    %201 = vector.broadcast %200 : vector<16x8x1xf32> to vector<16x8x8xf32>
    %202 = arith.mulf %197, %201 : vector<16x8x8xf32>
    "tpu.trace_start"() <{level = 10 : i32, message = "bnm,bmd->bnd"}> : () -> ()
    %cst_67 = arith.constant dense<0.000000e+00> : vector<16x8x32xf32>
    %203 = tpu.matmul %202, %156, %cst_67 {dimension_numbers = #tpu.dot_dimension_numbers<[2], [1], [1], [2], [0, 0, 0, 1, 1, 2], [0], [0]>} : vector<16x8x8xf32>, vector<16x8x32xf32>, vector<16x8x32xf32> -> vector<16x8x32xf32>
    %cst_68 = arith.constant 0.000000e+00 : f32
    "tpu.trace_stop"() : () -> ()
    %204 = vector.shape_cast %187 : vector<1x1x32xi1> to vector<1x1x32xi1>
    %205 = vector.broadcast %204 : vector<1x1x32xi1> to vector<16x8x32xi1>
    %206 = vector.broadcast %cst_68 : f32 to vector<16x8x32xf32>
    %207 = arith.select %205, %203, %206 : vector<16x8x32xi1>, vector<16x8x32xf32>
    %208 = arith.addf %182, %207 : vector<16x8x32xf32>
    %c16_i32_69 = arith.constant 16 : i32
    %209 = vector.broadcast %c16_i32_69 : i32 to vector<1x1x32xi32>
    %210 = arith.cmpi sge, %157, %209 : vector<1x1x32xi32>
    %c24_i32_70 = arith.constant 24 : i32
    %211 = vector.broadcast %c24_i32_70 : i32 to vector<1x1x32xi32>
    %212 = arith.cmpi slt, %157, %211 : vector<1x1x32xi32>
    %213 = arith.andi %210, %212 : vector<1x1x32xi1>
    %cst_71 = arith.constant 0.000000e+00 : f32
    %214 = vector.shape_cast %213 : vector<1x1x32xi1> to vector<1x1x32xi1>
    %215 = vector.broadcast %214 : vector<1x1x32xi1> to vector<16x8x32xi1>
    %216 = vector.broadcast %cst_71 : f32 to vector<16x8x32xf32>
    %217 = arith.select %215, %154, %216 : vector<16x8x32xi1>, vector<16x8x32xf32>
    "tpu.trace_start"() <{level = 10 : i32, message = "bnd,bmd->bnm"}> : () -> ()
    %cst_72 = arith.constant dense<0.000000e+00> : vector<16x8x8xf32>
    %218 = tpu.matmul %217, %155, %cst_72 {dimension_numbers = #tpu.dot_dimension_numbers<[2], [2], [1], [1], [0, 0, 0, 1, 1, 1], [0], [0]>} : vector<16x8x32xf32>, vector<16x8x32xf32>, vector<16x8x8xf32> -> vector<16x8x8xf32>
    "tpu.trace_stop"() : () -> ()
    %cst_73 = arith.constant dense<0xFF800000> : vector<16x8xf32>
    %219 = vector.multi_reduction <maximumf>, %218, %cst_73 [2] : vector<16x8x8xf32> to vector<16x8xf32>
    %220 = vector.shape_cast %219 : vector<16x8xf32> to vector<16x8x1xf32>
    %221 = vector.broadcast %220 : vector<16x8x1xf32> to vector<16x8x8xf32>
    %222 = arith.subf %218, %221 : vector<16x8x8xf32>
    %223 = math.exp %222 : vector<16x8x8xf32>
    %cst_74 = arith.constant dense<0.000000e+00> : vector<16x8xf32>
    %224 = vector.multi_reduction <add>, %223, %cst_74 [2] : vector<16x8x8xf32> to vector<16x8xf32>
    %225 = vector.shape_cast %224 : vector<16x8xf32> to vector<16x8x1xf32>
    %226 = tpu.reciprocal %225 {approx = true} : vector<16x8x1xf32> -> vector<16x8x1xf32>
    %227 = vector.broadcast %226 : vector<16x8x1xf32> to vector<16x8x8xf32>
    %228 = arith.mulf %223, %227 : vector<16x8x8xf32>
    "tpu.trace_start"() <{level = 10 : i32, message = "bnm,bmd->bnd"}> : () -> ()
    %cst_75 = arith.constant dense<0.000000e+00> : vector<16x8x32xf32>
    %229 = tpu.matmul %228, %156, %cst_75 {dimension_numbers = #tpu.dot_dimension_numbers<[2], [1], [1], [2], [0, 0, 0, 1, 1, 2], [0], [0]>} : vector<16x8x8xf32>, vector<16x8x32xf32>, vector<16x8x32xf32> -> vector<16x8x32xf32>
    %cst_76 = arith.constant 0.000000e+00 : f32
    "tpu.trace_stop"() : () -> ()
    %230 = vector.shape_cast %213 : vector<1x1x32xi1> to vector<1x1x32xi1>
    %231 = vector.broadcast %230 : vector<1x1x32xi1> to vector<16x8x32xi1>
    %232 = vector.broadcast %cst_76 : f32 to vector<16x8x32xf32>
    %233 = arith.select %231, %229, %232 : vector<16x8x32xi1>, vector<16x8x32xf32>
    %234 = arith.addf %208, %233 : vector<16x8x32xf32>
    %c24_i32_77 = arith.constant 24 : i32
    %235 = vector.broadcast %c24_i32_77 : i32 to vector<1x1x32xi32>
    %236 = arith.cmpi sge, %157, %235 : vector<1x1x32xi32>
    %c32_i32_78 = arith.constant 32 : i32
    %237 = vector.broadcast %c32_i32_78 : i32 to vector<1x1x32xi32>
    %238 = arith.cmpi slt, %157, %237 : vector<1x1x32xi32>
    %239 = arith.andi %236, %238 : vector<1x1x32xi1>
    %cst_79 = arith.constant 0.000000e+00 : f32
    %240 = vector.shape_cast %239 : vector<1x1x32xi1> to vector<1x1x32xi1>
    %241 = vector.broadcast %240 : vector<1x1x32xi1> to vector<16x8x32xi1>
    %242 = vector.broadcast %cst_79 : f32 to vector<16x8x32xf32>
    %243 = arith.select %241, %154, %242 : vector<16x8x32xi1>, vector<16x8x32xf32>
    "tpu.trace_start"() <{level = 10 : i32, message = "bnd,bmd->bnm"}> : () -> ()
    %cst_80 = arith.constant dense<0.000000e+00> : vector<16x8x8xf32>
    %244 = tpu.matmul %243, %155, %cst_80 {dimension_numbers = #tpu.dot_dimension_numbers<[2], [2], [1], [1], [0, 0, 0, 1, 1, 1], [0], [0]>} : vector<16x8x32xf32>, vector<16x8x32xf32>, vector<16x8x8xf32> -> vector<16x8x8xf32>
    "tpu.trace_stop"() : () -> ()
    %cst_81 = arith.constant dense<0xFF800000> : vector<16x8xf32>
    %245 = vector.multi_reduction <maximumf>, %244, %cst_81 [2] : vector<16x8x8xf32> to vector<16x8xf32>
    %246 = vector.shape_cast %245 : vector<16x8xf32> to vector<16x8x1xf32>
    %247 = vector.broadcast %246 : vector<16x8x1xf32> to vector<16x8x8xf32>
    %248 = arith.subf %244, %247 : vector<16x8x8xf32>
    %249 = math.exp %248 : vector<16x8x8xf32>
    %cst_82 = arith.constant dense<0.000000e+00> : vector<16x8xf32>
    %250 = vector.multi_reduction <add>, %249, %cst_82 [2] : vector<16x8x8xf32> to vector<16x8xf32>
    %251 = vector.shape_cast %250 : vector<16x8xf32> to vector<16x8x1xf32>
    %252 = tpu.reciprocal %251 {approx = true} : vector<16x8x1xf32> -> vector<16x8x1xf32>
    %253 = vector.broadcast %252 : vector<16x8x1xf32> to vector<16x8x8xf32>
    %254 = arith.mulf %249, %253 : vector<16x8x8xf32>
    "tpu.trace_start"() <{level = 10 : i32, message = "bnm,bmd->bnd"}> : () -> ()
    %cst_83 = arith.constant dense<0.000000e+00> : vector<16x8x32xf32>
    %255 = tpu.matmul %254, %156, %cst_83 {dimension_numbers = #tpu.dot_dimension_numbers<[2], [1], [1], [2], [0, 0, 0, 1, 1, 2], [0], [0]>} : vector<16x8x8xf32>, vector<16x8x32xf32>, vector<16x8x32xf32> -> vector<16x8x32xf32>
    %cst_84 = arith.constant 0.000000e+00 : f32
    "tpu.trace_stop"() : () -> ()
    %256 = vector.shape_cast %239 : vector<1x1x32xi1> to vector<1x1x32xi1>
    %257 = vector.broadcast %256 : vector<1x1x32xi1> to vector<16x8x32xi1>
    %258 = vector.broadcast %cst_84 : f32 to vector<16x8x32xf32>
    %259 = arith.select %257, %255, %258 : vector<16x8x32xi1>, vector<16x8x32xf32>
    %260 = arith.addf %234, %259 : vector<16x8x32xf32>
    %c0_85 = arith.constant 0 : index
    %c0_86 = arith.constant 0 : index
    %261 = vector.load %arg10[%c0_85, %c0_86] : memref<32x16xf32, #tpu.memory_space<vmem>>, vector<32x16xf32>
    %cst_87 = arith.constant dense<0.000000e+00> : vector<16x16xf32>
    %262 = tpu.matmul %150, %261, %cst_87 {dimension_numbers = #tpu.dot_dimension_numbers<[1], [0], [0], [1], [0, 0, 1, 1], [], []>} : vector<16x32xf32>, vector<32x16xf32>, vector<16x16xf32> -> vector<16x16xf32>
    %c0_88 = arith.constant 0 : index
    %c0_89 = arith.constant 0 : index
    %263 = vector.load %arg11[%c0_88, %c0_89] : memref<1x16xf32, #tpu.memory_space<vmem>>, vector<1x16xf32>
    %264 = vector.broadcast %263 : vector<1x16xf32> to vector<16x16xf32>
    %265 = arith.addf %262, %264 : vector<16x16xf32>
    %266 = math.tanh %265 : vector<16x16xf32>
    %267 = vector.shape_cast %260 : vector<16x8x32xf32> to vector<128x32xf32>
    %c0_90 = arith.constant 0 : index
    %c0_91 = arith.constant 0 : index
    %268 = vector.load %arg12[%c0_90, %c0_91] : memref<32x16xf32, #tpu.memory_space<vmem>>, vector<32x16xf32>
    %cst_92 = arith.constant dense<0.000000e+00> : vector<128x16xf32>
    %269 = tpu.matmul %267, %268, %cst_92 {dimension_numbers = #tpu.dot_dimension_numbers<[1], [0], [0], [1], [0, 0, 1, 1], [], []>} : vector<128x32xf32>, vector<32x16xf32>, vector<128x16xf32> -> vector<128x16xf32>
    %c0_93 = arith.constant 0 : index
    %c0_94 = arith.constant 0 : index
    %270 = vector.load %arg13[%c0_93, %c0_94] : memref<1x16xf32, #tpu.memory_space<vmem>>, vector<1x16xf32>
    %271 = vector.broadcast %270 : vector<1x16xf32> to vector<128x16xf32>
    %272 = arith.addf %269, %271 : vector<128x16xf32>
    %273 = math.tanh %272 : vector<128x16xf32>
    %274 = vector.shape_cast %273 : vector<128x16xf32> to vector<16x8x16xf32>
    %275 = vector.shape_cast %266 : vector<16x16xf32> to vector<16x1x16xf32>
    %276 = vector.broadcast %275 : vector<16x1x16xf32> to vector<16x8x16xf32>
    %277 = arith.mulf %274, %276 : vector<16x8x16xf32>
    %cst_95 = arith.constant dense<0.000000e+00> : vector<16x8xf32>
    %278 = vector.multi_reduction <add>, %277, %cst_95 [2] : vector<16x8x16xf32> to vector<16x8xf32>
    %279 = vector.shape_cast %278 : vector<16x8xf32> to vector<16x8x1xf32>
    %cst_96 = arith.constant dense<0xFF800000> : vector<16x1xf32>
    %280 = vector.multi_reduction <maximumf>, %279, %cst_96 [1] : vector<16x8x1xf32> to vector<16x1xf32>
    %281 = vector.shape_cast %280 : vector<16x1xf32> to vector<16x1x1xf32>
    %282 = vector.broadcast %281 : vector<16x1x1xf32> to vector<16x8x1xf32>
    %283 = arith.subf %279, %282 : vector<16x8x1xf32>
    %284 = math.exp %283 : vector<16x8x1xf32>
    %cst_97 = arith.constant dense<0.000000e+00> : vector<16x1xf32>
    %285 = vector.multi_reduction <add>, %284, %cst_97 [1] : vector<16x8x1xf32> to vector<16x1xf32>
    %286 = vector.shape_cast %285 : vector<16x1xf32> to vector<16x1x1xf32>
    %287 = tpu.reciprocal %286 {approx = true} : vector<16x1x1xf32> -> vector<16x1x1xf32>
    %288 = vector.broadcast %287 : vector<16x1x1xf32> to vector<16x8x1xf32>
    %289 = arith.mulf %284, %288 : vector<16x8x1xf32>
    %290 = vector.broadcast %289 : vector<16x8x1xf32> to vector<16x8x32xf32>
    %291 = arith.mulf %290, %260 : vector<16x8x32xf32>
    %cst_98 = arith.constant dense<0.000000e+00> : vector<16x32xf32>
    %292 = vector.multi_reduction <add>, %291, %cst_98 [1] : vector<16x8x32xf32> to vector<16x32xf32>
    %cst_99 = arith.constant 0.000000e+00 : f32
    %293 = vector.broadcast %cst_99 : f32 to vector<16x96xf32>
    %294 = tpu.concatenate %292, %293 in 1 : vector<16x32xf32>, vector<16x96xf32> -> vector<16x128xf32>
    %c0_100 = arith.constant 0 : index
    %c0_101 = arith.constant 0 : index
    %295 = vector.load %arg14[%c0_100, %c0_101] : memref<16x128xf32, #tpu.memory_space<vmem>>, vector<16x128xf32>
    tpu.vector_store %arg14[%c0_100, %c0_101], %294 {strides = array<i32>} : memref<16x128xf32, #tpu.memory_space<vmem>>, vector<16x128xf32>,
    return
  }
  func.func @transform_0(%arg0: i32) -> (i32, i32, i32) {
    %c0_i32 = arith.constant 0 : i32
    %c0_i32_0 = arith.constant 0 : i32
    %c0_i32_1 = arith.constant 0 : i32
    return %arg0, %c0_i32, %c0_i32_0 : i32, i32, i32
  }
  func.func @transform_1(%arg0: i32) -> (i32, i32, i32) {
    %c0_i32 = arith.constant 0 : i32
    %c0_i32_0 = arith.constant 0 : i32
    %c0_i32_1 = arith.constant 0 : i32
    return %arg0, %c0_i32, %c0_i32_0 : i32, i32, i32
  }
  func.func @transform_2(%arg0: i32) -> (i32, i32) {
    %c0_i32 = arith.constant 0 : i32
    %c0_i32_0 = arith.constant 0 : i32
    %c0_i32_1 = arith.constant 0 : i32
    return %c0_i32, %c0_i32_0 : i32, i32
  }
  func.func @transform_3(%arg0: i32) -> (i32, i32) {
    %c0_i32 = arith.constant 0 : i32
    %c0_i32_0 = arith.constant 0 : i32
    %c0_i32_1 = arith.constant 0 : i32
    return %c0_i32, %c0_i32_0 : i32, i32
  }
  func.func @transform_4(%arg0: i32) -> (i32, i32) {
    %c0_i32 = arith.constant 0 : i32
    %c0_i32_0 = arith.constant 0 : i32
    %c0_i32_1 = arith.constant 0 : i32
    return %c0_i32, %c0_i32_0 : i32, i32
  }
  func.func @transform_5(%arg0: i32) -> (i32, i32) {
    %c0_i32 = arith.constant 0 : i32
    %c0_i32_0 = arith.constant 0 : i32
    %c0_i32_1 = arith.constant 0 : i32
    return %c0_i32, %c0_i32_0 : i32, i32
  }
  func.func @transform_6(%arg0: i32) -> (i32, i32) {
    %c0_i32 = arith.constant 0 : i32
    %c0_i32_0 = arith.constant 0 : i32
    %c0_i32_1 = arith.constant 0 : i32
    return %c0_i32, %c0_i32_0 : i32, i32
  }
  func.func @transform_7(%arg0: i32) -> (i32, i32) {
    %c0_i32 = arith.constant 0 : i32
    %c0_i32_0 = arith.constant 0 : i32
    %c0_i32_1 = arith.constant 0 : i32
    return %c0_i32, %c0_i32_0 : i32, i32
  }
  func.func @transform_8(%arg0: i32) -> (i32, i32) {
    %c0_i32 = arith.constant 0 : i32
    %c0_i32_0 = arith.constant 0 : i32
    %c0_i32_1 = arith.constant 0 : i32
    return %c0_i32, %c0_i32_0 : i32, i32
  }
  func.func @transform_9(%arg0: i32) -> (i32, i32) {
    %c0_i32 = arith.constant 0 : i32
    %c0_i32_0 = arith.constant 0 : i32
    %c0_i32_1 = arith.constant 0 : i32
    return %c0_i32, %c0_i32_0 : i32, i32
  }
  func.func @transform_10(%arg0: i32) -> (i32, i32) {
    %c0_i32 = arith.constant 0 : i32
    %c0_i32_0 = arith.constant 0 : i32
    %c0_i32_1 = arith.constant 0 : i32
    return %c0_i32, %c0_i32_0 : i32, i32
  }
  func.func @transform_11(%arg0: i32) -> (i32, i32) {
    %c0_i32 = arith.constant 0 : i32
    %c0_i32_0 = arith.constant 0 : i32
    %c0_i32_1 = arith.constant 0 : i32
    return %c0_i32, %c0_i32_0 : i32, i32
  }
  func.func @transform_12(%arg0: i32) -> (i32, i32) {
    %c0_i32 = arith.constant 0 : i32
    %c0_i32_0 = arith.constant 0 : i32
    %c0_i32_1 = arith.constant 0 : i32
    return %c0_i32, %c0_i32_0 : i32, i32
  }
  func.func @transform_13(%arg0: i32) -> (i32, i32) {
    %c0_i32 = arith.constant 0 : i32
    %c0_i32_0 = arith.constant 0 : i32
    return %arg0, %c0_i32 : i32, i32
  }
}

</mosaic_0001>

<bundles_post_ra>
// kernel: tpu_custom_call.1
= control target key start
LH: loop header
LB: loop body
LE: loop exit
PB: predicated region body
PF: predicated region fallthrough
CT: control target
= control target key end

     0   :  { %s16286_s0 = inlined_call_operand.hbm [shape: f32[32,8,32], index: 0, kind: input, shape index: {}]   ;;  %s16287_s1 = inlined_call_operand.hbm [shape: f32[32,8,32], index: 1, kind: input, shape index: {}]   ;;  %s16288_s2 = inlined_call_operand.vmem [shape: f32[32,32], index: 2, kind: input, shape index: {}]   ;;  %s16289_s3 = inlined_call_operand.vmem [shape: f32[1,32], index: 3, kind: input, shape index: {}]   ;;  %s16290_s4 = inlined_call_operand.vmem [shape: f32[32,96], index: 4, kind: input, shape index: {}]   ;;  %s16291_s5 = inlined_call_operand.vmem [shape: f32[32,96], index: 5, kind: input, shape index: {}]   ;;  %s16292_s6 = inlined_call_operand.vmem [shape: f32[32,16], index: 6, kind: input, shape index: {}]   ;;  %s16293_s7 = inlined_call_operand.vmem [shape: f32[1,16], index: 7, kind: input, shape index: {}]   ;;  %s16294_s8 = inlined_call_operand.vmem [shape: f32[1,16], index: 8, kind: input, shape index: {}]   ;;  %s16295_s9 = inlined_call_operand.vmem [shape: f32[32,16], index: 9, kind: input, shape index: {}]   ;;  %s16296_s10 = inlined_call_operand.vmem [shape: f32[1,16], index: 10, kind: input, shape index: {}]   ;;  %s16297_s11 = inlined_call_operand.vmem [shape: f32[32,16], index: 11, kind: input, shape index: {}]   ;;  %s16298_s12 = inlined_call_operand.vmem [shape: f32[1,16], index: 12, kind: input, shape index: {}]   ;;  %s16299_s13 = inlined_call_operand.hbm [shape: f32[32,128], index: 13, kind: output, shape index: {}]  }
   0x1   :  { %16435 = sst [smem:[#allocation98_spill]] %s16286_s0 }
   0x2   :  { %16436 = sst [smem:[#allocation99_spill]] %s16296_s10 }
   0x3   :  { %16437 = sst [smem:[#allocation100_spill]] %s16298_s12 }
   0x4   :  { %16438 = sst [smem:[#allocation101_spill]] %s16299_s13 }
   0x5   :  { %18 = vsyncpa [#allocation3], 0 }
   0x6   :  { %20 = vsyncpa [#allocation3 + $0x1], 0 }
   0x7   :  { %21 = vsyncpa [#allocation6], 0 }
   0x8   :  { %23 = vsyncpa [#allocation6 + $0x1], 0 }
   0x9   :  { %24 = vsyncpa [#allocation4], 0 }
   0xa   :  { %26 = vsyncpa [#allocation4 + $0x1], 0  ;;  %s11958_s25 = smov 0   ;;  %s11960_s26 = smov 0  }
   0xb   :  { %s11962_s27 = smov 0   ;;  %s11964_s28 = smov 0  }
   0xc LB: > { %16439 = sst [smem:[#allocation11_spill]] %s11868_s25  ;;  %s11979_s29 = sadd.s32 4294967295, %s11880_s28   ;;  %s11880_s28 = sphi %s11964_s28, %s16816_s28   ;;  %s11876_s27 = sphi %s11962_s27, %s16821_s27   ;;  %s11872_s26 = sphi %s11960_s26, %s16820_s26   ;;  %s11868_s25 = sphi %s11958_s25, %s16819_s25  }
   0xd   : > { %16440 = sst [smem:[#allocation12_spill]] %s11876_s27  ;;  %s10394_s30 = sadd.s32 4294967294, %s11880_s28  }
   0xe   : > { %16441 = sst [smem:[#allocation13_spill]] %s11979_s29  ;;  %s11983_s14 = sadd.s32 1, %s11880_s28  }
   0xf   : > { %16442 = sst [smem:[#allocation14_spill]] %s11983_s14  ;;  %s39_s15 = sadd.s32 1, %s11876_s27 }
  0x10   : > { %s36_s16 = ssub.s32 %s11880_s28, %s11983_s14  ;;  %p46_p0 = scmp.ne.s32.totalorder %s11876_s27, %s11872_s26 }
  0x11   : > { %p37_p1 = scmp.eq.s32.totalorder %s36_s16, 0  ;;  %p47_p2 = scmp.eq.s32.totalorder %s11880_s28, 0 }
  0x12   : > { %p52_p3 = scmp.ne.s32.totalorder %s11872_s26, %s11868_s25  ;;  %p53_p4 = scmp.eq.s32.totalorder %s11979_s29, 0 }
  0x13   : > { %s11995_s17 = scalar_select %p37_p1, %s11876_s27, %s39_s15  }
  0x14   : > { %p11997_p5 = por %p47_p2, %p46_p0  ;;  %p12001_p6 = por %p53_p4, %p52_p3 }
  0x15   : > { %16443 = sst [smem:[#allocation15_spill]] %s11995_s17  ;;  %p333_p7 = scmp.eq.s32.totalorder %s11979_s29, 1 }
  0x16   : > { %p339_p8 = scmp.eq.s32.totalorder %s10394_s30, 1  ;;  %p10926_p10 = scmp.lt.s32.totalorder %s11880_s28, 2 }
  0x17   : > { %p12008_p11 = por %p333_p7, %p46_p0  ;;  %s12017_s22 = sand.u32 1, %s11876_s27  }
  0x18   : > { %p12012_p12 = por %p339_p8, %p52_p3  ;;  %s16308_s23 = sshll.u32 %s11880_s28, 7 }
  0x19   : > { %s16446_s20 = scalar_select %p12008_p11, 1, 0 }
  0x1a   : > { %s16448_s21 = scalar_select %p12012_p12, 1, 0 }
  0x1b   : > { %16447 = sst [smem:[#allocation16_spill]] %s16446_s20  ;;  %s16307_s24 = sshll.u32 %s12017_s22, 7 }
  0x1c   : > { %16449 = sst [smem:[#allocation17_spill]] %s16448_s21  ;;  %s396_s14 = scalar_lea.vmem [#allocation2], %s16307_s24 }
  0x1d   : > { %s16450_s0 = sld [smem:[#allocation98_spill]]  ;;  %s404_s25 = sshll.u32 %s396_s14, 4  ;;  %s405_s25 = int_to_ptr.vmem [resolvable:$true] %s404_s25 }
  0x1e   : > { %p12030_p13 = pnand %p10926_p10, %p11997_p5  ;;  %p10403_p0 = scmp.ge.s32.totalorder %s11880_s28, 1 }
  0x1f   : > { %p434_p1 = scmp.lt.s32.totalorder %s11880_s28, 3  ;;  %s393_s21 = scalar_lea.sflag [#allocation3], %s12017_s22 }
  0x20   : > { %p11754_p3 = pneg %p12030_p13 }
  0x23   : > { %s401_s16 = scalar_lea.hbm %s16450_s0, %s16308_s23  ;;  %s11757_s15 = scalar_lea.hbm %s16450_s0, 256 }
  0x24   : > { %s402_s17 = sshll.u32 %s401_s16, 4  ;;  %s403_s17 = int_to_ptr.hbm [resolvable:$true] %s402_s17 }
  0x25   : > { %s11750_s20 = sshra.s32 %s403_s17, 4  ;;  %s11751_s20 = int_to_ptr.hbm [resolvable:$true] %s11750_s20 }
  0x26   : > { %s11752_s30 = scalar_lea.hbm %s11751_s20, 128  ;;  %p11758_p5 = scmp.lt.s32.totalorder %s11751_s20, %s16450_s0 }
  0x27   : > { %p11753_p2 = scmp.ne.s32.totalorder %s11751_s20, %s11752_s30  ;;  %p11759_p8 = scmp.lt.s32.totalorder %s11757_s15, %s11752_s30 }
  0x29   : > { %p11755_p4 = pnand %p11754_p3, %p11753_p2  ;;  %p11760_p10 = por %p11759_p8, %p11758_p5 }
  0x2b   : > { %p11756_p7 = pneg %p11755_p4 }
  0x2d   : > { %p11761_p9 = pnand %p11760_p10, %p11756_p7 }
  0x2f   : > { %11764 = shalt.err (!%p11761_p9)
}
  0x30   : > { %s11882_s23 = smov 128   ;;  %s11883_s13 = smov 8  }
  0x31   : > { %10918 = dma.hbm_to_vmem [thread:$0]  (!%p12030_p13), %s403_s17, 2048, %s405_s25, %s393_s21, %s11882_s23, %s11882_s23, %s11883_s13  }
  0x32   : > { %p12054_p2 = pnand %p10403_p0, %p434_p1  ;;  %s16453_s20 = sshll.u32 %s11880_s28, 7 }
  0x33   : > { %s423_s18 = scalar_lea.hbm %s16287_s1, %s16453_s20  ;;  %s16454_s16 = sshll.u32 %s12017_s22, 7 }
  0x34   : > { %s424_s15 = sshll.u32 %s423_s18, 4  ;;  %s418_s0 = scalar_lea.vmem [#allocation5], %s16454_s16  ;;  %s425_s15 = int_to_ptr.hbm [resolvable:$true] %s424_s15 }
  0x35   : > { %s426_s29 = sshll.u32 %s418_s0, 4  ;;  %s415_s10 = scalar_lea.sflag [#allocation6], %s12017_s22  ;;  %s427_s29 = int_to_ptr.vmem [resolvable:$true] %s426_s29 }
  0x36   : > { %s11780_s12 = sshra.s32 %s425_s15, 4  ;;  %s11787_s30 = scalar_lea.hbm %s16287_s1, 256  ;;  %s11781_s12 = int_to_ptr.hbm [resolvable:$true] %s11780_s12 }
  0x37   : > { %s11782_s25 = scalar_lea.hbm %s11781_s12, 128  ;;  %p11788_p4 = scmp.lt.s32.totalorder %s11781_s12, %s16287_s1 }
  0x38   : > { %p11783_p9 = scmp.ne.s32.totalorder %s11781_s12, %s11782_s25  ;;  %p11789_p7 = scmp.lt.s32.totalorder %s11787_s30, %s11782_s25 }
  0x3a   : > { %p11785_p0 = pnand %p11783_p9, %p11754_p3  ;;  %p11790_p5 = por %p11789_p7, %p11788_p4 }
  0x3c   : > { %p11786_p1 = pneg %p11785_p0 }
  0x3e   : > { %p11791_p8 = pnand %p11790_p5, %p11786_p1 }
  0x40   : > { %11794 = shalt.err (!%p11791_p8)
}
  0x41   : > { %10921 = dma.hbm_to_vmem [thread:$0]  (!%p12030_p13), %s425_s15, 2048, %s427_s29, %s415_s10, %s11882_s23, %s11882_s23, %s11883_s13  }
  0x42   : > { %438 = sbr.rel (%p12054_p2) target bundleno = 5038 (0x13ae), region = 72 }
  0x47   : > { %s12080_s0 = sand.u32 1, %s11872_s26  }
  0x48   : > { %s10404_s22 = sshll.u32 %s12080_s0, 7  ;;  %s441_s18 = scalar_lea.sflag [#allocation3], %s12080_s0 }
  0x49   : > { %s12084_s16 = scalar_lea.vmem [#allocation2], %s10404_s22 }
  0x4a   : > { %11855 = dma.done.wait (%p12001_p6), %s441_s18, 2048  }
  0x4b   : > { %11857 = vsyncadd (%p12001_p6), %s441_s18, 4294965248  ;;  %s451_s10 = scalar_lea.sflag [#allocation6], %s12080_s0  ;;  %s12091_s12 = scalar_lea.vmem [#allocation5], %s10404_s22 }
  0x4c   : > { %11859 = dma.done.wait (%p12001_p6), %s451_s10, 2048  }
  0x4d   : > { %11861 = vsyncadd (%p12001_p6), %s451_s10, 4294965248  ;;  %v541_v0 = vld [vmem:[%s16288_s2 + $0x18] sm:$0xff]  ;;  %v540_v1 = vld [vmem:[%s16288_s2 + $0x10] sm:$0xff]  ;;  %vm546_vm0 = vcmask 261120   ;;  %s11885_s29 = smov 64   ;;  %vm1344_vm5 = vcmask 64512  }
  0x4e   : > { %655 = vmatpush.msra.mxu0 %v541_v0  ;;  %10897 = vmatpush.msra.mxu1 %v541_v0  ;;  %v539_v2 = vld [vmem:[%s16288_s2 + $0x8] sm:$0xff]  ;;  %v538_v3 = vld [vmem:[%s16288_s2] sm:$0xff]  ;;  %v508_v8 = vld [vmem:[%s12091_s12 + $0x10] sm:$0xff]  ;;  %vm5005_vm12 = vcmask 130048   ;;  %vm9547_vm13 = vcmask 1041409   ;;  %vm9549_vm14 = vcmask 1042434  }
  0x4f   : > { %10898 = vmatpush.msra.mxu2 %v541_v0  ;;  %v506_v4 = vld [vmem:[%s12091_s12] sm:$0xff]  ;;  %v507_v6 = vld [vmem:[%s12091_s12 + $0x8] sm:$0xff]  ;;  %v524_v9 = vld [vmem:[%s12084_s16 + $0x10] sm:$0xff]  ;;  %vm9551_vm15 = vcmask 1043459   ;;  %s16808_s19 = sld [smem:[#allocation100_spill]]  ;;  %s10406_s14 = sshll.u32 %s12080_s0, 4 }
  0x50   : > { %656 = vmatpush.msra.mxu0 %v540_v1  ;;  %10899 = vmatpush.msra.mxu1 %v540_v1  ;;  %v522_v5 = vld [vmem:[%s12084_s16] sm:$0xff]  ;;  %v523_v7 = vld [vmem:[%s12084_s16 + $0x8] sm:$0xff]  ;;  %v509_v10 = vld [vmem:[%s12091_s12 + $0x18] sm:$0xff]  ;;  %s16809_s21 = sld [smem:[#allocation99_spill]]  ;;  %s502_s27 = scalar_lea.vmem [#allocation7], %s10406_s14 }
  0x51   : > { %10900 = vmatpush.msra.mxu2 %v540_v1  ;;  %v525_v11 = vld [vmem:[%s12084_s16 + $0x18] sm:$0xff]  ;;  %v519_v12 = vld [vmem:[%s12091_s12 + $0x68] sm:$0xff]  ;;  %v510_v13 = vld [vmem:[%s12091_s12 + $0x20] sm:$0xff]  ;;  %s16810_s30 = sld [smem:[#allocation13_spill]]  ;;  %s10283_s23 = scalar_lea.sflag [#allocation4], %s12080_s0 }
  0x52   : > { %657 = vmatpush.msra.mxu0 %v539_v2  ;;  %10901 = vmatpush.msra.mxu1 %v539_v2  ;;  %v535_v14 = vld [vmem:[%s12084_s16 + $0x68] sm:$0xff]  ;;  %v526_v15 = vld [vmem:[%s12084_s16 + $0x20] sm:$0xff]  ;;  %v520_v16 = vld [vmem:[%s12091_s12 + $0x70] sm:$0xff]  ;;  %s16811_s10 = sld [smem:[#allocation101_spill]] }
  0x53   : > { %10902 = vmatpush.msra.mxu2 %v539_v2  ;;  %v511_v17 = vld [vmem:[%s12091_s12 + $0x28] sm:$0xff]  ;;  %v536_v18 = vld [vmem:[%s12084_s16 + $0x70] sm:$0xff]  ;;  %v521_v20 = vld [vmem:[%s12091_s12 + $0x78] sm:$0xff] }
  0x54   : > { %658 = vmatpush.msra.mxu0 %v538_v3  ;;  %10903 = vmatpush.msra.mxu1 %v538_v3  ;;  %v527_v19 = vld [vmem:[%s12084_s16 + $0x28] sm:$0xff]  ;;  %v759_v21 = vld [vmem:[%s16290_s4 + $0x18] sm:$0xff]  ;;  %v758_v22 = vld [vmem:[%s16290_s4 + $0x10] sm:$0xff] }
  0x55   : > { %10407 = vmatmul.msk.f32.vlgmr.msra.gmra.mxu0 %vm546_vm0, %v506_v4  ;;  %10904 = vmatpush.msra.mxu2 %v538_v3  ;;  %v757_v23 = vld [vmem:[%s16290_s4 + $0x8] sm:$0xff]  ;;  %v512_v24 = vld [vmem:[%s12091_s12 + $0x30] sm:$0xff]  ;;  %v756_v25 = vld [vmem:[%s16290_s4] sm:$0xff] }
  0x56   : > { %10433 = vmatmul.msk.f32.vlgmr.msra.gmra.mxu1 %vm546_vm0, %v519_v12  ;;  %v528_v26 = vld [vmem:[%s12084_s16 + $0x30] sm:$0xff]  ;;  %v513_v27 = vld [vmem:[%s12091_s12 + $0x38] sm:$0xff]  ;;  %v12166_v29 = vld [vmem:[%s16289_s3] ss:$0 sm:$0xff] }
  0x57   : > { %820 = vmatpush.msrb.mxu1 %v759_v21  ;;  %v529_v28 = vld [vmem:[%s12084_s16 + $0x38] sm:$0xff]  ;;  %v514_v31 = vld [vmem:[%s12091_s12 + $0x40] sm:$0xff]  ;;  %v515_v36 = vld [vmem:[%s12091_s12 + $0x48] sm:$0xff]  ;;  %s10896_s20 = sshll.u32 %s16810_s30, 4 }
  0x58   : > { %v530_v34 = vld [vmem:[%s12084_s16 + $0x40] sm:$0xff]  ;;  %v531_v39 = vld [vmem:[%s12084_s16 + $0x48] sm:$0xff]  ;;  %v516_v41 = vld [vmem:[%s12091_s12 + $0x50] sm:$0xff]  ;;  %s10294_s13 = scalar_lea.hbm %s16811_s10, %s10896_s20  ;;  %s11830_s17 = scalar_lea.hbm %s16811_s10, 32 }
  0x59   : > { %821 = vmatpush.msrb.mxu1 %v758_v22  ;;  %v532_v44 = vld [vmem:[%s12084_s16 + $0x50] sm:$0xff]  ;;  %v517_v46 = vld [vmem:[%s12091_s12 + $0x58] sm:$0xff]  ;;  %v518_v51 = vld [vmem:[%s12091_s12 + $0x60] sm:$0xff]  ;;  %s11884_s12 = smov 96  }
  0x5a   : > { %v533_v49 = vld [vmem:[%s12084_s16 + $0x58] sm:$0xff] }
  0x5b   : > { %822 = vmatpush.msrb.mxu1 %v757_v23  ;;  %v537_v23 = vld [vmem:[%s12084_s16 + $0x78] sm:$0xff] }
  0x5c   : > { %10438 = vmatmul.msk.f32.vlgmr.msra.gmra.mxu2 %vm546_vm0, %v537_v23 }
  0x5d   : > { %10408 = vmatmul.msk.f32.gmra.mxu0 %vm546_vm0, %v522_v5  ;;  %823 = vmatpush.msrb.mxu1 %v756_v25 }
  0x5e   : > { %10434 = vmatmul.msk.f32.gmra.mxu1 %vm546_vm0, %v535_v14 }
  0x65   : > { %10409 = vmatmul.msk.f32.gmra.mxu0 %vm546_vm0, %v507_v6 }
  0x66   : > { %10435 = vmatmul.msk.f32.gmra.mxu1 %vm546_vm0, %v520_v16 }
  0x6d   : > { %10410 = vmatmul.msk.f32.gmra.mxu0 %vm546_vm0, %v523_v7 }
  0x6e   : > { %10436 = vmatmul.msk.f32.gmra.mxu1 %vm546_vm0, %v536_v18 }
  0x75   : > { %10411 = vmatmul.msk.f32.gmra.mxu0 %vm546_vm0, %v508_v8 }
  0x76   : > { %10437 = vmatmul.msk.f32.gmra.mxu1 %vm546_vm0, %v521_v20 }
  0x7d   : > { %10412 = vmatmul.msk.f32.gmra.mxu0 %vm546_vm0, %v524_v9 }
  0x85   : > { %10413 = vmatmul.msk.f32.gmra.mxu0 %vm546_vm0, %v509_v10 }
  0x8d   : > { %10414 = vmatmul.msk.f32.gmra.mxu0 %vm546_vm0, %v525_v11 }
  0x95   : > { %10415 = vmatmul.msk.f32.gmra.mxu0 %vm546_vm0, %v510_v13 }
  0x9d   : > { %10416 = vmatmul.msk.f32.gmra.mxu0 %vm546_vm0, %v526_v15 }
  0xa5   : > { %10417 = vmatmul.msk.f32.gmra.mxu0 %vm546_vm0, %v511_v17 }
  0xad   : > { %10418 = vmatmul.msk.f32.gmra.mxu0 %vm546_vm0, %v527_v19 }
  0xb5   : > { %10419 = vmatmul.msk.f32.gmra.mxu0 %vm546_vm0, %v512_v24 }
  0xbd   : > { %10420 = vmatmul.msk.f32.gmra.mxu0 %vm546_vm0, %v528_v26 }
  0xc5   : > { %10421 = vmatmul.msk.f32.gmra.mxu0 %vm546_vm0, %v513_v27 }
  0xcd   : > { %10422 = vmatmul.msk.f32.gmra.mxu0 %vm546_vm0, %v529_v28 }
  0xd2   : > { %v660_v30 = vpop.f32.mrf.mxu0 }
  0xd3   : > { %v661_v32 = vadd.f32 %v12166_v29, %v660_v30  ;;  %v738_v54 = vpop.f32.mrf.mxu1  ;;  %v873_v30 = vlaneseq }
  0xd4   : > { %v739_v24 = vadd.f32 %v12166_v29, %v738_v54 }
  0xd5   : > { %10423 = vmatmul.msk.f32.gmra.mxu0 %vm546_vm0, %v514_v31  ;;  %10439 = vmatmul.msk.f32.vlgmr.msrb.gmra.mxu1 %vm546_vm0, %v661_v32  ;;  %v12276_v31 = vand.u32 127, %v873_v30 }
  0xd7   : > { %16471 = vst [vmem:[#allocation34_spill] sm:$0xff] %v12276_v31  ;;  %vm876_vm1 = vcmp.lt.s32.totalorder %v12276_v31, 8  ;;  %vm1953_vm2 = vcmp.ge.s32.totalorder %v12276_v31, 8  ;;  %vm1954_vm3 = vcmp.lt.s32.totalorder %v12276_v31, 16  ;;  %vm2918_vm6 = vcmp.ge.s32.totalorder %v12276_v31, 16 }
  0xd8   : > { %vm12323_vm4 = vmand %vm1953_vm2, %vm1954_vm3  ;;  %vm2919_vm7 = vcmp.lt.s32.totalorder %v12276_v31, 24  ;;  %vm3883_vm9 = vcmp.ge.s32.totalorder %v12276_v31, 24  ;;  %vm3884_vm10 = vcmp.lt.s32.totalorder %v12276_v31, 32  ;;  %vm9553_vm2 = vcmask 1044484  }
  0xd9   : > { %vm13005_vm8 = vmand %vm2918_vm6, %vm2919_vm7  ;;  %vm9555_vm3 = vcmask 1045509   ;;  %vm9559_vm6 = vcmask 1047559  }
  0xda   : > { %v12172_v33 = vpop.f32.mrf.mxu0  ;;  %vm13224_vm11 = vmand %vm3883_vm9, %vm3884_vm10 }
  0xdb   : > { %16455 = vst [vmem:[#allocation18_spill] sm:$0xff] %v12172_v33  ;;  %v12210_v58 = vpop.f32.mrf.mxu1 }
  0xdc   : > { %16461 = vst [vmem:[#allocation24_spill] sm:$0xff] %v12210_v58 }
  0xdd   : > { %10424 = vmatmul.msk.f32.gmra.mxu0 %vm546_vm0, %v530_v34 }
  0xe2   : > { %v666_v35 = vpop.f32.mrf.mxu0 }
  0xe3   : > { %v667_v37 = vadd.f32 %v12166_v29, %v666_v35  ;;  %v744_v61 = vpop.f32.mrf.mxu1 }
  0xe4   : > { %v745_v26 = vadd.f32 %v12166_v29, %v744_v61 }
  0xe5   : > { %10425 = vmatmul.msk.f32.gmra.mxu0 %vm546_vm0, %v515_v36  ;;  %10440 = vmatmul.msk.f32.gmra.mxu1 %vm546_vm0, %v667_v37 }
  0xea   : > { %v12180_v38 = vpop.f32.mrf.mxu0 }
  0xeb   : > { %16456 = vst [vmem:[#allocation19_spill] sm:$0xff] %v12180_v38  ;;  %v12216_v63 = vpop.f32.mrf.mxu1 }
  0xec   : > { %16463 = vst [vmem:[#allocation26_spill] sm:$0xff] %v12216_v63 }
  0xed   : > { %10426 = vmatmul.msk.f32.gmra.mxu0 %vm546_vm0, %v531_v39 }
  0xf2   : > { %v672_v40 = vpop.f32.mrf.mxu0 }
  0xf3   : > { %v673_v42 = vadd.f32 %v12166_v29, %v672_v40  ;;  %v750_v2 = vpop.f32.mrf.mxu1 }
  0xf4   : > { %v751_v27 = vadd.f32 %v12166_v29, %v750_v2 }
  0xf5   : > { %10427 = vmatmul.msk.f32.gmra.mxu0 %vm546_vm0, %v516_v41  ;;  %10441 = vmatmul.msk.f32.gmra.mxu1 %vm546_vm0, %v673_v42 }
  0xfa   : > { %v12188_v43 = vpop.f32.mrf.mxu0 }
  0xfb   : > { %16457 = vst [vmem:[#allocation20_spill] sm:$0xff] %v12188_v43 }
  0xfd   : > { %10428 = vmatmul.msk.f32.gmra.mxu0 %vm546_vm0, %v532_v44  ;;  %v16474_v44 = vmov 0 }
  0xfe   : > { %v16475_v44 = vsel %vm12323_vm4, 4294967295, %v16474_v44 }
  0xff   : > { %16476 = vst [vmem:[#allocation37_spill] sm:$0xff] %v16475_v44 }
 0x102   : > { %v678_v45 = vpop.f32.mrf.mxu0 }
 0x103   : > { %v679_v47 = vadd.f32 %v12166_v29, %v678_v45 }
 0x105   : > { %10429 = vmatmul.msk.f32.gmra.mxu0 %vm546_vm0, %v517_v46  ;;  %10442 = vmatmul.msk.f32.gmra.mxu1 %vm546_vm0, %v679_v47 }
 0x10a   : > { %v12196_v48 = vpop.f32.mrf.mxu0 }
 0x10b   : > { %16458 = vst [vmem:[#allocation21_spill] sm:$0xff] %v12196_v48 }
 0x10d   : > { %10430 = vmatmul.msk.f32.gmra.mxu0 %vm546_vm0, %v533_v49 }
 0x112   : > { %v684_v50 = vpop.f32.mrf.mxu0 }
 0x113   : > { %v685_v52 = vadd.f32 %v12166_v29, %v684_v50 }
 0x115   : > { %10431 = vmatmul.msk.f32.gmra.mxu0 %vm546_vm0, %v518_v51  ;;  %10443 = vmatmul.msk.f32.gmra.mxu1 %vm546_vm0, %v685_v52 }
 0x11a   : > { %v12204_v53 = vpop.f32.mrf.mxu0 }
 0x11b   : > { %16459 = vst [vmem:[#allocation22_spill] sm:$0xff] %v12204_v53 }
 0x122   : > { %v690_v55 = vpop.f32.mrf.mxu0 }
 0x123   : > { %v691_v56 = vadd.f32 %v12166_v29, %v690_v55 }
 0x125   : > { %10444 = vmatmul.msk.f32.gmra.mxu1 %vm546_vm0, %v691_v56 }
 0x12a   : > { %v12208_v57 = vpop.f32.mrf.mxu0 }
 0x12b   : > { %16460 = vst [vmem:[#allocation23_spill] sm:$0xff] %v12208_v57 }
 0x132   : > { %v696_v59 = vpop.f32.mrf.mxu0 }
 0x133   : > { %v697_v60 = vadd.f32 %v12166_v29, %v696_v59 }
 0x135   : > { %10445 = vmatmul.msk.f32.gmra.mxu1 %vm546_vm0, %v697_v60 }
 0x13a   : > { %v12214_v62 = vpop.f32.mrf.mxu0 }
 0x13b   : > { %16462 = vst [vmem:[#allocation25_spill] sm:$0xff] %v12214_v62 }
 0x142   : > { %v702_v0 = vpop.f32.mrf.mxu0 }
 0x143   : > { %v703_v1 = vadd.f32 %v12166_v29, %v702_v0 }
 0x145   : > { %10446 = vmatmul.msk.f32.gmra.mxu1 %vm546_vm0, %v703_v1 }
 0x14a   : > { %v12220_v3 = vpop.f32.mrf.mxu0 }
 0x14b   : > { %16464 = vst [vmem:[#allocation27_spill] sm:$0xff] %v12220_v3 }
 0x152   : > { %v708_v4 = vpop.f32.mrf.mxu0  ;;  %v12222_v5 = vpop.f32.mrf.mxu1 }
 0x153   : > { %v709_v6 = vadd.f32 %v12166_v29, %v708_v4  ;;  %897 = vrot.lane.b32.xlu0 %v12222_v5, %s11884_s12 }
 0x155   : > { %10447 = vmatmul.msk.f32.gmra.mxu1 %vm546_vm0, %v709_v6 }
 0x15a   : > { %v12228_v7 = vpop.f32.mrf.mxu0 }
 0x15b   : > { %16465 = vst [vmem:[#allocation28_spill] sm:$0xff] %v12228_v7 }
 0x162   : > { %v714_v8 = vpop.f32.mrf.mxu0  ;;  %v12230_v9 = vpop.f32.mrf.mxu1 }
 0x163   : > { %v715_v10 = vadd.f32 %v12166_v29, %v714_v8  ;;  %925 = vrot.lane.b32.xlu1 %v12230_v9, %s11884_s12  ;;  %v881_v37 = vsel %vm876_vm1, %v12230_v9, 0.0 }
 0x165   : > { %10448 = vmatmul.msk.f32.gmra.mxu1 %vm546_vm0, %v715_v10 }
 0x16a   : > { %v12236_v11 = vpop.f32.mrf.mxu0 }
 0x16b   : > { %16466 = vst [vmem:[#allocation29_spill] sm:$0xff] %v12236_v11 }
 0x172   : > { %v720_v12 = vpop.f32.mrf.mxu0  ;;  %v12238_v13 = vpop.f32.mrf.mxu1 }
 0x173   : > { %v721_v14 = vadd.f32 %v12166_v29, %v720_v12  ;;  %953 = vrot.lane.b32.xlu0 %v12238_v13, %s11884_s12  ;;  %v882_v45 = vsel %vm876_vm1, %v12238_v13, 0.0  ;;  %v1960_v46 = vsel %vm12323_vm4, %v12238_v13, 0.0  ;;  %v10966_v6 = vpack.i.bf16 %v12238_v13, %v12222_v5 }
 0x175   : > { %10449 = vmatmul.msk.f32.gmra.mxu1 %vm546_vm0, %v721_v14  ;;  %v12412_v14 = vpop.f32.mrf.mxu2 }
 0x176   : > { %16482 = vst [vmem:[#allocation43_spill] sm:$0xff] %v12412_v14 }
 0x17a   : > { %v12244_v15 = vpop.f32.mrf.mxu0 }
 0x17b   : > { %16467 = vst [vmem:[#allocation30_spill] sm:$0xff] %v12244_v15 }
 0x182   : > { %v726_v16 = vpop.f32.mrf.mxu0  ;;  %v12246_v17 = vpop.f32.mrf.mxu1 }
 0x183   : > { %v727_v18 = vadd.f32 %v12166_v29, %v726_v16  ;;  %981 = vrot.lane.b32.xlu2 %v12246_v17, %s11884_s12  ;;  %v883_v40 = vsel %vm876_vm1, %v12246_v17, 0.0 }
 0x185   : > { %10450 = vmatmul.msk.f32.gmra.mxu1 %vm546_vm0, %v727_v18 }
 0x18a   : > { %v12252_v19 = vpop.f32.mrf.mxu0 }
 0x18b   : > { %16468 = vst [vmem:[#allocation31_spill] sm:$0xff] %v12252_v19 }
 0x192   : > { %v732_v20 = vpop.f32.mrf.mxu0  ;;  %v12254_v21 = vpop.f32.mrf.mxu1 }
 0x193   : > { %16469 = vst [vmem:[#allocation32_spill] sm:$0xff] %v12254_v21  ;;  %v733_v22 = vadd.f32 %v12166_v29, %v732_v20  ;;  %1009 = vrot.lane.b32.xlu1 %v12254_v21, %s11884_s12  ;;  %v880_v29 = vsel %vm876_vm1, %v12222_v5, 0.0  ;;  %v884_v51 = vsel %vm876_vm1, %v12254_v21, 0.0  ;;  %v10971_v10 = vpack.i.bf16 %v12254_v21, %v12230_v9 }
 0x195   : > { %10451 = vmatmul.msk.f32.gmra.mxu1 %vm546_vm0, %v733_v22 }
 0x19d   : > { %10452 = vmatmul.msk.f32.gmra.mxu1 %vm546_vm0, %v739_v24 }
 0x1a2   : > { %v12264_v25 = vpop.f32.mrf.mxu1 }
 0x1a3   : > { %1037 = vrot.lane.b32.xlu0 %v12264_v25, %s11884_s12  ;;  %v885_v59 = vsel %vm876_vm1, %v12264_v25, 0.0  ;;  %v1963_v60 = vsel %vm12323_vm4, %v12264_v25, 0.0 }
 0x1a5   : > { %10453 = vmatmul.msk.f32.gmra.mxu1 %vm546_vm0, %v745_v26 }
 0x1ad   : > { %10454 = vmatmul.msk.f32.gmra.mxu1 %vm546_vm0, %v751_v27 }
 0x1b2   : > { %v12272_v28 = vpop.f32.mrf.mxu1 }
 0x1b3   : > { %16470 = vst [vmem:[#allocation33_spill] sm:$0xff] %v12272_v28  ;;  %1065 = vrot.lane.b32.xlu2 %v12272_v28, %s11884_s12  ;;  %v886_v54 = vsel %vm876_vm1, %v12272_v28, 0.0  ;;  %v10976_v2 = vpack.i.bf16 %v12272_v28, %v12246_v17 }
 0x1c2   : > { %v12278_v32 = vpop.f32.mrf.mxu1 }
 0x1c3   : > { %1093 = vrot.lane.b32.xlu2 %v12278_v32, %s11884_s12  ;;  %v887_v1 = vsel %vm876_vm1, %v12278_v32, 0.0 }
 0x1c5   : > { %v12282_v34 = vpop.permute.xlu0 %897 }
 0x1c6   : > { %10455 = vmatpush.xpose.msk.msrb.mxu2 %vm546_vm0, %v12282_v34 }
 0x1c9   : > { %10456 = vmatmul.msk.f32.vlgmr.msrb.gmra.mxu2 %vm546_vm0, %v880_v29 }
 0x1d2   : > { %v12291_v35 = vpop.f32.mrf.mxu1 }
 0x1d3   : > { %16472 = vst [vmem:[#allocation35_spill] sm:$0xff] %v12291_v35  ;;  %1121 = vrot.lane.b32.xlu1 %v12291_v35, %s11884_s12  ;;  %v888_v16 = vsel %vm876_vm1, %v12291_v35, 0.0  ;;  %v1966_v18 = vsel %vm12323_vm4, %v12291_v35, 0.0 }
 0x1d5   : > { %v12295_v36 = vpop.permute.xlu1 %925 }
 0x1d6   : > { %10457 = vmatpush.xpose.msk.msra.mxu3 %vm546_vm0, %v12295_v36 }
 0x1d9   : > { %10458 = vmatmul.msk.f32.vlgmr.msra.gmra.mxu3 %vm546_vm0, %v881_v37 }
 0x1dd   : > { %v12303_v39 = vpop.permute.xlu2 %981 }
 0x1de   : > { %10461 = vmatpush.xpose.msk.msrb.mxu3 %vm546_vm0, %v12303_v39 }
 0x1e1   : > { %10462 = vmatmul.msk.f32.vlgmr.msrb.gmra.mxu3 %vm546_vm0, %v883_v40 }
 0x1e2   : > { %v12311_v41 = vpop.f32.mrf.mxu1 }
 0x1e3   : > { %16473 = vst [vmem:[#allocation36_spill] sm:$0xff] %v12311_v41  ;;  %1149 = vrot.lane.b32.xlu1 %v12311_v41, %s11884_s12  ;;  %v889_v24 = vsel %vm876_vm1, %v12311_v41, 0.0 }
 0x1e5   : > { %v12317_v42 = vpop.permute.xlu0 %953 }
 0x1e6   : > { %10459 = vmatpush.xpose.msk.msra.mxu2 %vm546_vm0, %v12317_v42  ;;  %10507 = vmatpush.xpose.msk.msra.mxu1 %vm546_vm0, %v12317_v42 }
 0x1e9   : > { %10460 = vmatmul.msk.f32.vlgmr.msra.gmra.mxu2 %vm546_vm0, %v882_v45  ;;  %10508 = vmatmul.msk.f32.vlgmr.msra.gmra.mxu1 %vm546_vm0, %v1960_v46 }
 0x1f2   : > { %v12335_v47 = vpop.f32.mrf.mxu1 }
 0x1f3   : > { %1177 = vrot.lane.b32.xlu0 %v12335_v47, %s11884_s12  ;;  %v890_v40 = vsel %vm876_vm1, %v12335_v47, 0.0  ;;  %v10986_v53 = vpack.i.bf16 %v12335_v47, %v12278_v32 }
 0x202   : > { %v12339_v49 = vpop.f32.mrf.mxu1 }
 0x203   : > { %16477 = vst [vmem:[#allocation38_spill] sm:$0xff] %v12339_v49  ;;  %1205 = vrot.lane.b32.xlu0 %v12339_v49, %s11884_s12 }
 0x205   : > { %v12343_v50 = vpop.permute.xlu1 %1009 }
 0x206   : > { %10463 = vmatpush.xpose.msk.msrb.mxu2 %vm546_vm0, %v12343_v50 }
 0x209   : > { %10464 = vmatmul.msk.f32.vlgmr.msrb.gmra.mxu2 %vm546_vm0, %v884_v51 }
 0x20d   : > { %v12351_v52 = vpop.permute.xlu2 %1065 }
 0x20e   : > { %10467 = vmatpush.xpose.msk.msra.mxu2 %vm546_vm0, %v12351_v52 }
 0x211   : > { %10468 = vmatmul.msk.f32.vlgmr.msra.gmra.mxu2 %vm546_vm0, %v886_v54 }
 0x212   : > { %v12359_v55 = vpop.f32.mrf.mxu1 }
 0x213   : > { %16478 = vst [vmem:[#allocation39_spill] sm:$0xff] %v12359_v55  ;;  %1233 = vrot.lane.b32.xlu2 %v12359_v55, %s11884_s12  ;;  %v892_v54 = vsel %vm876_vm1, %v12359_v55, 0.0 }
 0x215   : > { %v12363_v56 = vpop.permute.xlu0 %1037 }
 0x216   : > { %10465 = vmatpush.xpose.msk.msra.mxu3 %vm546_vm0, %v12363_v56  ;;  %10513 = vmatpush.xpose.msk.msrb.mxu1 %vm546_vm0, %v12363_v56 }
 0x219   : > { %10466 = vmatmul.msk.f32.vlgmr.msra.gmra.mxu3 %vm546_vm0, %v885_v59  ;;  %10514 = vmatmul.msk.f32.vlgmr.msrb.gmra.mxu1 %vm546_vm0, %v1963_v60 }
 0x21a   : > { %v12377_v61 = vpop.f32.mrf.mxu1 }
 0x21b   : > { %1261 = vrot.lane.b32.xlu2 %v12377_v61, %s11884_s12 }
 0x21d   : > { %v12381_v0 = vpop.permute.xlu2 %1093 }
 0x21e   : > { %10469 = vmatpush.xpose.msk.msrb.mxu3 %vm546_vm0, %v12381_v0 }
 0x221   : > { %10470 = vmatmul.msk.f32.vlgmr.msrb.gmra.mxu3 %vm546_vm0, %v887_v1  ;;  %v891_v1 = vsel %vm876_vm1, %v12339_v49, 0.0 }
 0x222   : > { %v12391_v4 = vpop.f32.mrf.mxu1 }
 0x223   : > { %16479 = vst [vmem:[#allocation40_spill] sm:$0xff] %v12391_v4  ;;  %10977 = vrot.lane.b32.xlu2 %v10976_v2, %s11885_s29  ;;  %1289 = vrot.lane.b32.xlu1 %v12391_v4, %s11884_s12  ;;  %v1969_v2 = vsel %vm12323_vm4, %v12339_v49, 0.0 }
 0x22a   : > { %v12398_v8 = vpop.f32.mrf.mxu1 }
 0x22b   : > { %16480 = vst [vmem:[#allocation41_spill] sm:$0xff] %v12398_v8  ;;  %10967 = vrot.lane.b32.xlu1 %v10966_v6, %s11885_s29  ;;  %1317 = vrot.lane.b32.xlu0 %v12398_v8, %s11884_s12 }
 0x233   : > { %10972 = vrot.lane.b32.xlu0 %v10971_v10, %s11885_s29 }
 0x245   : > { %v12406_v12 = vpop.permute.xlu1 %1121 }
 0x246   : > { %16481 = vst [vmem:[#allocation42_spill] sm:$0xff] %v12406_v12  ;;  %10471 = vmatpush.xpose.msk.msrb.mxu2 %vm546_vm0, %v12406_v12  ;;  %10519 = vmatpush.xpose.msk.msra.mxu1 %vm546_vm0, %v12406_v12 }
 0x249   : > { %10472 = vmatmul.msk.f32.vlgmr.msrb.gmra.mxu2 %vm546_vm0, %v888_v16  ;;  %10520 = vmatmul.msk.f32.vlgmr.msra.gmra.mxu1 %vm546_vm0, %v1966_v18  ;;  %v893_v16 = vsel %vm876_vm1, %v12377_v61, 0.0 }
 0x24c   : > { %v12422_v20 = vpop.f32.mrf.mxu2 }
 0x24d   : > { %v1345_v22 = vsel %vm1344_vm5, %v12422_v20, -inf }
 0x255   : > { %v12426_v23 = vpop.permute.xlu1 %1149  ;;  %1346 = vmax.xlane.f32.xlu1 %v1345_v22 }
 0x256   : > { %10473 = vmatpush.xpose.msk.msra.mxu3 %vm546_vm0, %v12426_v23 }
 0x259   : > { %10474 = vmatmul.msk.f32.vlgmr.msra.gmra.mxu3 %vm546_vm0, %v889_v24 }
 0x25c   : > { %v12434_v26 = vpop.f32.mrf.mxu3 }
 0x25d   : > { %v1348_v27 = vsel %vm1344_vm5, %v12434_v26, -inf }
 0x25e   : > { %1349 = vmax.xlane.f32.xlu0 %v1348_v27 }
 0x264   : > { %v12438_v30 = vpop.f32.mrf.mxu3 }
 0x265   : > { %v12440_v29 = vpop.permute.xlu0 %1177  ;;  %v1354_v37 = vsel %vm1344_vm5, %v12438_v30, -inf }
 0x266   : > { %10475 = vmatpush.xpose.msk.msra.mxu2 %vm546_vm0, %v12440_v29  ;;  %1355 = vmax.xlane.f32.xlu1 %v1354_v37 }
 0x269   : > { %10476 = vmatmul.msk.f32.vlgmr.msra.gmra.mxu2 %vm546_vm0, %v890_v40  ;;  %v894_v40 = vsel %vm876_vm1, %v12391_v4, 0.0 }
 0x26c   : > { %v12450_v45 = vpop.f32.mrf.mxu2 }
 0x26d   : > { %v12452_v46 = vpop.permute.xlu2 %1233  ;;  %v1351_v51 = vsel %vm1344_vm5, %v12450_v45, -inf }
 0x26e   : > { %16483 = vst [vmem:[#allocation44_spill] sm:$0xff] %v12452_v46  ;;  %10479 = vmatpush.xpose.msk.msrb.mxu2 %vm546_vm0, %v12452_v46  ;;  %1352 = vmax.xlane.f32.xlu2 %v1351_v51  ;;  %v1972_v51 = vsel %vm12323_vm4, %v12391_v4, 0.0 }
 0x271   : > { %10480 = vmatmul.msk.f32.vlgmr.msrb.gmra.mxu2 %vm546_vm0, %v892_v54 }
 0x275   : > { %v12462_v59 = vpop.permute.xlu0 %1205  ;;  %v12464_v60 = vpop.permute.xlu2 %1261 }
 0x276   : > { %10477 = vmatpush.xpose.msk.msrb.mxu3 %vm546_vm0, %v12462_v59  ;;  %10525 = vmatpush.xpose.msk.msrb.mxu1 %vm546_vm0, %v12462_v59 }
 0x279   : > { %10478 = vmatmul.msk.f32.vlgmr.msrb.gmra.mxu3 %vm546_vm0, %v891_v1  ;;  %10526 = vmatmul.msk.f32.vlgmr.msrb.gmra.mxu1 %vm546_vm0, %v1969_v2 }
 0x27a   : > { %10481 = vmatpush.xpose.msk.msra.mxu3 %vm546_vm0, %v12464_v60 }
 0x27d   : > { %v10978_v6 = vpop.permute.xlu2 %10977 }
 0x27e   : > { %v12480_v10 = vunpack.i.h.bf16 %v10978_v6  ;;  %v12535_v58 = vunpack.i.l.bf16 %v10978_v6 }
 0x280   : > { %3639 = vmatpush.msrb.mxu0 %v12480_v10  ;;  %16490 = vst [vmem:[#allocation51_spill] sm:$0xff] %v12535_v58 }
 0x281   : > { %10482 = vmatmul.msk.f32.vlgmr.msra.gmra.mxu3 %vm546_vm0, %v893_v16 }
 0x28c   : > { %v12487_v18 = vpop.f32.mrf.mxu2 }
 0x28d   : > { %v1357_v22 = vsel %vm1344_vm5, %v12487_v18, -inf }
 0x28e   : > { %1358 = vmax.xlane.f32.xlu2 %v1357_v22 }
 0x294   : > { %v12491_v24 = vpop.f32.mrf.mxu2 }
 0x295   : > { %v12493_v27 = vpop.permute.xlu1 %1289  ;;  %v1363_v37 = vsel %vm1344_vm5, %v12491_v24, -inf }
 0x296   : > { %16484 = vst [vmem:[#allocation45_spill] sm:$0xff] %v12493_v27  ;;  %1364 = vmax.xlane.f32.xlu2 %v1363_v37  ;;  %10483 = vmatpush.xpose.msk.msra.mxu2 %vm546_vm0, %v12493_v27 }
 0x297   : > { %10531 = vmatpush.xpose.msk.msra.mxu1 %vm546_vm0, %v12493_v27 }
 0x299   : > { %10484 = vmatmul.msk.f32.vlgmr.msra.gmra.mxu2 %vm546_vm0, %v894_v40  ;;  %v895_v40 = vsel %vm876_vm1, %v12398_v8, 0.0 }
 0x29a   : > { %10532 = vmatmul.msk.f32.vlgmr.msra.gmra.mxu1 %vm546_vm0, %v1972_v51 }
 0x29c   : > { %v12509_v54 = vpop.f32.mrf.mxu3 }
 0x29d   : > { %v10968_v1 = vpop.permute.xlu1 %10967  ;;  %v12511_v2 = vpop.permute.xlu0 %1317  ;;  %v1360_v16 = vsel %vm1344_vm5, %v12509_v54, -inf }
 0x29e   : > { %16485 = vst [vmem:[#allocation46_spill] sm:$0xff] %v12511_v2  ;;  %v12515_v22 = vunpack.i.h.bf16 %v10968_v1  ;;  %v12517_v37 = vunpack.i.l.bf16 %v10968_v1  ;;  %1361 = vmax.xlane.f32.xlu0 %v1360_v16  ;;  %10485 = vmatpush.xpose.msk.msrb.mxu3 %vm546_vm0, %v12511_v2 }
 0x2a0   : > { %16486 = vst [vmem:[#allocation47_spill] sm:$0xff] %v12515_v22  ;;  %1542 = vmatpush.msrb.mxu2 %v12517_v37 }
 0x2a1   : > { %16487 = vst [vmem:[#allocation48_spill] sm:$0xff] %v12517_v37  ;;  %10486 = vmatmul.msk.f32.vlgmr.msrb.gmra.mxu3 %vm546_vm0, %v895_v40 }
 0x2a2   : > { %1594 = vmatpush.msra.mxu2 %v12515_v22 }
 0x2a4   : > { %v12527_v51 = vpop.f32.mrf.mxu3 }
 0x2a5   : > { %v10973_v14 = vpop.permute.xlu0 %10972  ;;  %v1366_v1 = vsel %vm1344_vm5, %v12527_v51, -inf }
 0x2a6   : > { %v12531_v16 = vunpack.i.h.bf16 %v10973_v14  ;;  %v12533_v63 = vunpack.i.l.bf16 %v10973_v14  ;;  %1367 = vmax.xlane.f32.xlu2 %v1366_v1 }
 0x2a8   : > { %16488 = vst [vmem:[#allocation49_spill] sm:$0xff] %v12531_v16  ;;  %1568 = vmatpush.msra.mxu3 %v12533_v63  ;;  %2559 = vmatpush.msrb.mxu1 %v12533_v63 }
 0x2a9   : > { %16489 = vst [vmem:[#allocation50_spill] sm:$0xff] %v12533_v63 }
 0x2aa   : > { %1620 = vmatpush.msrb.mxu3 %v12535_v58  ;;  %2628 = vmatpush.msra.mxu1 %v12531_v16 }
 0x2c8   : > { %v1347_v40 = vpop.xlane.xlu1 %1346 }
 0x2c9   : > { %v1393_v19 = vsub.f32 %v12422_v20, %v1347_v40 }
 0x2cb   : > { %v1409_v15 = vmul.f32 1.442695, %v1393_v19 }
 0x2cc   : > { %v12542_v11 = vpop.f32.mrf.mxu2 }
 0x2cd   : > { %11041 = vpow2.f32 %v1409_v15  ;;  %v1369_v14 = vsel %vm1344_vm5, %v12542_v11, -inf }
 0x2ce   : > { %1370 = vmax.xlane.f32.xlu1 %v1369_v14 }
 0x2d1   : > { %v1350_v6 = vpop.xlane.xlu0 %1349 }
 0x2d2   : > { %v1394_v1 = vsub.f32 %v12434_v26, %v1350_v6 }
 0x2d3   : > { %v12547_v7 = vpop.eup %11041 }
 0x2d4   : > { %v1411_v3 = vmul.f32 1.442695, %v1394_v1  ;;  %v1441_v62 = vsel %vm1344_vm5, %v12547_v7, 0.0 }
 0x2d5   : > { %1442 = vadd.xlane.f32.xlu0 %v1441_v62 }
 0x2d6   : > { %11043 = vpow2.f32 %v1411_v3 }
 0x2d9   : > { %v1356_v20 = vpop.xlane.xlu1 %1355 }
 0x2da   : > { %v1396_v19 = vsub.f32 %v12438_v30, %v1356_v20 }
 0x2dc   : > { %v12552_v40 = vpop.eup %11043  ;;  %v1415_v15 = vmul.f32 1.442695, %v1396_v19  ;;  %v12554_v57 = vpop.f32.mrf.mxu3 }
 0x2dd   : > { %v1372_v14 = vsel %vm1344_vm5, %v12554_v57, -inf  ;;  %v1444_v26 = vsel %vm1344_vm5, %v12552_v40, 0.0 }
 0x2de   : > { %11045 = vpow2.f32 %v1415_v15  ;;  %1373 = vmax.xlane.f32.xlu1 %v1372_v14  ;;  %1445 = vadd.xlane.f32.xlu0 %v1444_v26 }
 0x2e1   : > { %v1353_v6 = vpop.xlane.xlu2 %1352 }
 0x2e2   : > { %v1395_v3 = vsub.f32 %v12450_v45, %v1353_v6 }
 0x2e4   : > { %v12560_v62 = vpop.eup %11045  ;;  %v1413_v1 = vmul.f32 1.442695, %v1395_v3 }
 0x2e5   : > { %v1450_v30 = vsel %vm1344_vm5, %v12560_v62, 0.0 }
 0x2e6   : > { %1451 = vadd.xlane.f32.xlu2 %v1450_v30  ;;  %11047 = vpow2.f32 %v1413_v1 }
 0x2ec   : > { %v12565_v20 = vpop.f32.mrf.mxu2  ;;  %v12569_v15 = vpop.eup %11047 }
 0x2ed   : > { %v1375_v19 = vsel %vm1344_vm5, %v12565_v20, -inf  ;;  %v1447_v45 = vsel %vm1344_vm5, %v12569_v15, 0.0 }
 0x2ee   : > { %1376 = vmax.xlane.f32.xlu0 %v1375_v19 }
 0x2f4   : > { %v12571_v14 = vpop.f32.mrf.mxu2 }
 0x2f5   : > { %v1381_v26 = vsel %vm1344_vm5, %v12571_v14, -inf }
 0x2f6   : > { %1382 = vmax.xlane.f32.xlu2 %v1381_v26  ;;  %1448 = vadd.xlane.f32.xlu0 %v1447_v45 }
 0x2fc   : > { %v12577_v6 = vpop.f32.mrf.mxu3 }
 0x2fd   : > { %v1378_v3 = vsel %vm1344_vm5, %v12577_v6, -inf }
 0x2fe   : > { %1379 = vmax.xlane.f32.xlu1 %v1378_v3 }
 0x301   : > { %v1359_v30 = vpop.xlane.xlu2 %1358 }
 0x302   : > { %v1397_v1 = vsub.f32 %v12487_v18, %v1359_v30  ;;  %v10981_v30 = vpack.i.bf16 %v12291_v35, %v12264_v25 }
 0x304   : > { %v1417_v19 = vmul.f32 1.442695, %v1397_v1  ;;  %v12589_v38 = vpop.f32.mrf.mxu3 }
 0x305   : > { %v1384_v18 = vsel %vm1344_vm5, %v12589_v38, -inf }
 0x306   : > { %11049 = vpow2.f32 %v1417_v19 }
 0x309   : > { %v1365_v45 = vpop.xlane.xlu2 %1364 }
 0x30a   : > { %10987 = vrot.lane.b32.xlu0 %v10986_v53, %s11885_s29 }
 0x30c   : > { %v12585_v48 = vpop.eup %11049 }
 0x30d   : > { %v1453_v26 = vsel %vm1344_vm5, %v12585_v48, 0.0 }
 0x30e   : > { %1454 = vadd.xlane.f32.xlu2 %v1453_v26 }
 0x311   : > { %v1362_v43 = vpop.xlane.xlu0 %1361 }
 0x312   : > { %v1398_v3 = vsub.f32 %v12509_v54, %v1362_v43 }
 0x314   : > { %v1419_v53 = vmul.f32 1.442695, %v1398_v3 }
 0x316   : > { %1385 = vmax.xlane.f32.xlu2 %v1384_v18  ;;  %11051 = vpow2.f32 %v1419_v53 }
 0x317   : > { %10982 = vrot.lane.b32.xlu1 %v10981_v30, %s11885_s29 }
 0x319   : > { %v1368_v1 = vpop.xlane.xlu2 %1367 }
 0x31a   : > { %v1400_v19 = vsub.f32 %v12527_v51, %v1368_v1  ;;  %v1399_v51 = vsub.f32 %v12491_v24, %v1365_v45 }
 0x31c   : > { %v12598_v26 = vpop.f32.mrf.mxu2  ;;  %v1423_v43 = vmul.f32 1.442695, %v1400_v19  ;;  %v12602_v54 = vpop.eup %11051  ;;  %v1421_v1 = vmul.f32 1.442695, %v1399_v51 }
 0x31d   : > { %v1387_v33 = vsel %vm1344_vm5, %v12598_v26, -inf  ;;  %v1456_v18 = vsel %vm1344_vm5, %v12602_v54, 0.0 }
 0x31e   : > { %1388 = vmax.xlane.f32.xlu2 %v1387_v33  ;;  %11053 = vpow2.f32 %v1423_v43 }
 0x31f   : > { %11055 = vpow2.f32 %v1421_v1 }
 0x324   : > { %v12606_v30 = vpop.eup %11053  ;;  %v12611_v53 = vpop.f32.mrf.mxu3 }
 0x325   : > { %v1462_v3 = vsel %vm1344_vm5, %v12606_v30, 0.0  ;;  %v1390_v33 = vsel %vm1344_vm5, %v12611_v53, -inf  ;;  %v12615_v19 = vpop.eup %11055 }
 0x326   : > { %1457 = vadd.xlane.f32.xlu2 %v1456_v18  ;;  %v1459_v43 = vsel %vm1344_vm5, %v12615_v19, 0.0 }
 0x32e   : > { %1463 = vadd.xlane.f32.xlu2 %v1462_v3 }
 0x334   : > { %1391 = vmax.xlane.f32.xlu0 %v1390_v33 }
 0x341   : > { %1460 = vadd.xlane.f32.xlu1 %v1459_v43  ;;  %v1371_v18 = vpop.xlane.xlu1 %1370 }
 0x342   : > { %v1401_v63 = vsub.f32 %v12542_v11, %v1371_v18 }
 0x344   : > { %v1425_v3 = vmul.f32 1.442695, %v1401_v63 }
 0x346   : > { %11057 = vpow2.f32 %v1425_v3 }
 0x348   : > { %v1443_v24 = vpop.xlane.xlu0 %1442 }
 0x349   : > { %11059 = vrcp.f32 %v1443_v24 }
 0x34c   : > { %v12620_v45 = vpop.eup %11057 }
 0x34d   : > { %v1465_v51 = vsel %vm1344_vm5, %v12620_v45, 0.0 }
 0x34e   : > { %1466 = vadd.xlane.f32.xlu0 %v1465_v51 }
 0x34f   : > { %v11060_v1 = vpop.eup %11059 }
 0x350   : > { %v1505_v33 = vmul.f32 %v11060_v1, %v12547_v7 }
 0x351   : > { %v1374_v27 = vpop.xlane.xlu1 %1373  ;;  %v1446_v35 = vpop.xlane.xlu0 %1445 }
 0x352   : > { %v1402_v43 = vsub.f32 %v12554_v57, %v1374_v27  ;;  %11061 = vrcp.f32 %v1446_v35  ;;  %10487 = vmatmul.msk.f32.vlgmr.msrb.gmra.mxu2 %vm1344_vm5, %v1505_v33 }
 0x353   : > { %1646 = vmatpush.msrb.mxu2 %v12531_v16 }
 0x354   : > { %v1427_v63 = vmul.f32 1.442695, %v1402_v43 }
 0x356   : > { %11063 = vpow2.f32 %v1427_v63 }
 0x358   : > { %v11062_v11 = vpop.eup %11061 }
 0x359   : > { %v1506_v18 = vmul.f32 %v11062_v11, %v12552_v40  ;;  %v1452_v3 = vpop.xlane.xlu2 %1451 }
 0x35a   : > { %11065 = vrcp.f32 %v1452_v3 }
 0x35b   : > { %10488 = vmatmul.msk.f32.vlgmr.msra.gmra.mxu3 %vm1344_vm5, %v1506_v18 }
 0x35c   : > { %v12630_v24 = vpop.eup %11063 }
 0x35d   : > { %v1468_v7 = vsel %vm1344_vm5, %v12630_v24, 0.0 }
 0x35e   : > { %1469 = vadd.xlane.f32.xlu1 %v1468_v7 }
 0x360   : > { %v11066_v57 = vpop.eup %11065 }
 0x361   : > { %v1508_v35 = vmul.f32 %v11066_v57, %v12560_v62  ;;  %v1377_v27 = vpop.xlane.xlu0 %1376 }
 0x362   : > { %v1403_v51 = vsub.f32 %v12565_v20, %v1377_v27 }
 0x363   : > { %10490 = vmatmul.msk.f32.vlgmr.msrb.gmra.mxu3 %vm1344_vm5, %v1508_v35 }
 0x364   : > { %v1429_v1 = vmul.f32 1.442695, %v1403_v51 }
 0x366   : > { %11067 = vpow2.f32 %v1429_v1 }
 0x369   : > { %v1449_v40 = vpop.xlane.xlu0 %1448  ;;  %v1383_v11 = vpop.xlane.xlu2 %1382 }
 0x36a   : > { %11069 = vrcp.f32 %v1449_v40  ;;  %v1405_v20 = vsub.f32 %v12571_v14, %v1383_v11  ;;  %v10991_v14 = vpack.i.bf16 %v12359_v55, %v12311_v41 }
 0x36c   : > { %v12637_v33 = vpop.eup %11067  ;;  %v1433_v57 = vmul.f32 1.442695, %v1405_v20 }
 0x36d   : > { %v1471_v43 = vsel %vm1344_vm5, %v12637_v33, 0.0 }
 0x36e   : > { %1472 = vadd.xlane.f32.xlu0 %v1471_v43 }
 0x370   : > { %v11070_v63 = vpop.eup %11069 }
 0x371   : > { %v1507_v18 = vmul.f32 %v11070_v63, %v12569_v15  ;;  %v1380_v62 = vpop.xlane.xlu1 %1379 }
 0x372   : > { %v1404_v3 = vsub.f32 %v12577_v6, %v1380_v62 }
 0x373   : > { %10489 = vmatmul.msk.f32.vlgmr.msra.gmra.mxu2 %vm1344_vm5, %v1507_v18 }
 0x374   : > { %v1431_v7 = vmul.f32 1.442695, %v1404_v3  ;;  %1698 = vmatpush.msra.mxu2 %v12480_v10 }
 0x376   : > { %11071 = vpow2.f32 %v1431_v7 }
 0x377   : > { %11073 = vpow2.f32 %v1433_v57 }
 0x37c   : > { %v12646_v35 = vpop.eup %11071  ;;  %v10988_v27 = vpop.permute.xlu0 %10987 }
 0x37d   : > { %v12648_v51 = vunpack.i.h.bf16 %v10988_v27  ;;  %v1474_v15 = vsel %vm1344_vm5, %v12646_v35, 0.0  ;;  %v12655_v1 = vpop.eup %11073  ;;  %v12665_v20 = vunpack.i.l.bf16 %v10988_v27 }
 0x37e   : > { %1475 = vadd.xlane.f32.xlu2 %v1474_v15  ;;  %v1477_v40 = vsel %vm1344_vm5, %v12655_v1, 0.0  ;;  %v10996_v15 = vpack.i.bf16 %v12391_v4, %v12339_v49 }
 0x37f   : > { %16491 = vst [vmem:[#allocation52_spill] sm:$0xff] %v12648_v51  ;;  %3731 = vmatpush.msra.mxu0 %v12648_v51 }
 0x380   : > { %16493 = vst [vmem:[#allocation54_spill] sm:$0xff] %v12665_v20 }
 0x381   : > { %v1455_v6 = vpop.xlane.xlu2 %1454 }
 0x382   : > { %11075 = vrcp.f32 %v1455_v6  ;;  %10992 = vrot.lane.b32.xlu0 %v10991_v14, %s11885_s29 }
 0x386   : > { %1478 = vadd.xlane.f32.xlu2 %v1477_v40 }
 0x388   : > { %v11076_v43 = vpop.eup %11075 }
 0x389   : > { %v1509_v63 = vmul.f32 %v11076_v43, %v12585_v48  ;;  %v1386_v11 = vpop.xlane.xlu2 %1385  ;;  %v10983_v18 = vpop.permute.xlu1 %10982 }
 0x38a   : > { %v12661_v62 = vunpack.i.h.bf16 %v10983_v18  ;;  %v12663_v3 = vunpack.i.l.bf16 %v10983_v18  ;;  %v1406_v57 = vsub.f32 %v12589_v38, %v1386_v11 }
 0x38b   : > { %10491 = vmatmul.msk.f32.vlgmr.msrb.gmra.mxu2 %vm1344_vm5, %v1509_v63 }
 0x38c   : > { %16492 = vst [vmem:[#allocation53_spill] sm:$0xff] %v12663_v3  ;;  %1672 = vmatpush.msra.mxu3 %v12663_v3  ;;  %1750 = vmatpush.msrb.mxu2 %v12661_v62  ;;  %v1435_v14 = vmul.f32 1.442695, %v1406_v57 }
 0x38e   : > { %1724 = vmatpush.msrb.mxu3 %v12665_v20 }
 0x391   : > { %v1389_v7 = vpop.xlane.xlu2 %1388 }
 0x399   : > { %v1458_v48 = vpop.xlane.xlu2 %1457 }
 0x39a   : > { %11077 = vrcp.f32 %v1458_v48 }
 0x39b   : > { %11079 = vpow2.f32 %v1435_v14 }
 0x39e   : > { %10997 = vrot.lane.b32.xlu2 %v10996_v15, %s11885_s29 }
 0x3a0   : > { %v11078_v27 = vpop.eup %11077 }
 0x3a1   : > { %v1510_v6 = vmul.f32 %v11078_v27, %v12602_v54  ;;  %v1464_v40 = vpop.xlane.xlu2 %1463  ;;  %v12677_v43 = vpop.eup %11079 }
 0x3a2   : > { %11081 = vrcp.f32 %v1464_v40  ;;  %v1480_v57 = vsel %vm1344_vm5, %v12677_v43, 0.0  ;;  %v12684_v54 = vpop.f32.mrf.mxu1 }
 0x3a3   : > { %10492 = vmatmul.msk.f32.vlgmr.msra.gmra.mxu3 %vm1344_vm5, %v1510_v6  ;;  %v2348_v14 = vsel %vm1344_vm5, %v12684_v54, -inf }
 0x3a7   : > { %v1392_v63 = vpop.xlane.xlu0 %1391 }
 0x3a8   : > { %v11082_v38 = vpop.eup %11081  ;;  %v1408_v11 = vsub.f32 %v12611_v53, %v1392_v63 }
 0x3a9   : > { %v1512_v18 = vmul.f32 %v11082_v38, %v12606_v30  ;;  %v1407_v30 = vsub.f32 %v12598_v26, %v1389_v7 }
 0x3aa   : > { %v1439_v48 = vmul.f32 1.442695, %v1408_v11  ;;  %v12693_v6 = vpop.f32.mrf.mxu1 }
 0x3ab   : > { %10494 = vmatmul.msk.f32.vlgmr.msrb.gmra.mxu3 %vm1344_vm5, %v1512_v18  ;;  %v1437_v40 = vmul.f32 1.442695, %v1407_v30  ;;  %v2357_v38 = vsel %vm1344_vm5, %v12693_v6, -inf }
 0x3ac   : > { %11083 = vpow2.f32 %v1439_v48  ;;  %1481 = vadd.xlane.f32.xlu0 %v1480_v57 }
 0x3b2   : > { %v12686_v15 = vpop.eup %11083 }
 0x3b3   : > { %v1486_v53 = vsel %vm1344_vm5, %v12686_v15, 0.0 }
 0x3b4   : > { %v1461_v27 = vpop.xlane.xlu1 %1460  ;;  %2349 = vmax.xlane.f32.xlu0 %v2348_v14  ;;  %1487 = vadd.xlane.f32.xlu1 %v1486_v53 }
 0x3b5   : > { %11085 = vrcp.f32 %v1461_v27 }
 0x3b6   : > { %11087 = vpow2.f32 %v1437_v40 }
 0x3bb   : > { %v11086_v63 = vpop.eup %11085 }
 0x3bc   : > { %v1511_v11 = vmul.f32 %v11086_v63, %v12615_v19  ;;  %2358 = vmax.xlane.f32.xlu0 %v2357_v38  ;;  %v11088_v48 = vpop.eup %11087 }
 0x3bd   : > { %v1483_v26 = vsel %vm1344_vm5, %v11088_v48, 0.0 }
 0x3be   : > { %10493 = vmatmul.msk.f32.vlgmr.msra.gmra.mxu2 %vm1344_vm5, %v1511_v11 }
 0x3bf   : > { %1802 = vmatpush.msra.mxu2 %v12648_v51 }
 0x3c1   : > { %v1467_v18 = vpop.xlane.xlu0 %1466 }
 0x3c2   : > { %11089 = vrcp.f32 %v1467_v18 }
 0x3c7   : > { %1484 = vadd.xlane.f32.xlu2 %v1483_v26 }
 0x3c8   : > { %v11090_v7 = vpop.eup %11089 }
 0x3c9   : > { %v1513_v57 = vmul.f32 %v11090_v7, %v12620_v45 }
 0x3cb   : > { %10495 = vmatmul.msk.f32.vlgmr.msrb.gmra.mxu2 %vm1344_vm5, %v1513_v57 }
 0x3cd   : > { %1859 = vrot.lane.b32.xlu1 %v12377_v61, %s11885_s29 }
 0x3d1   : > { %v1470_v27 = vpop.xlane.xlu1 %1469 }
 0x3df   : > { %1911 = vrot.lane.b32.xlu2 %v12398_v8, %s11885_s29 }
 0x3e1   : > { %v1473_v19 = vpop.xlane.xlu0 %1472 }
 0x3e2   : > { %11091 = vrcp.f32 %v1473_v19 }
 0x3e3   : > { %11093 = vrcp.f32 %v1470_v27 }
 0x3e8   : > { %v11092_v14 = vpop.eup %11091 }
 0x3e9   : > { %v1515_v53 = vmul.f32 %v11092_v14, %v12637_v33  ;;  %v11094_v40 = vpop.eup %11093 }
 0x3ea   : > { %v1514_v11 = vmul.f32 %v11094_v40, %v12630_v24 }
 0x3eb   : > { %10497 = vmatmul.msk.f32.vlgmr.msra.gmra.mxu2 %vm1344_vm5, %v1515_v53 }
 0x3f1   : > { %v1476_v30 = vpop.xlane.xlu2 %1475 }
 0x3f2   : > { %11095 = vrcp.f32 %v1476_v30 }
 0x3f4   : > { %v10993_v45 = vpop.permute.xlu0 %10992 }
 0x3f5   : > { %v12709_v63 = vunpack.i.h.bf16 %v10993_v45  ;;  %v12711_v38 = vunpack.i.l.bf16 %v10993_v45 }
 0x3f7   : > { %1776 = vmatpush.msra.mxu3 %v12711_v38  ;;  %1854 = vmatpush.msrb.mxu2 %v12709_v63 }
 0x3f8   : > { %10496 = vmatmul.msk.f32.vlgmr.msra.gmra.mxu3 %vm1344_vm5, %v1514_v11  ;;  %v11096_v18 = vpop.eup %11095 }
 0x3f9   : > { %v1479_v33 = vpop.xlane.xlu2 %1478  ;;  %v1516_v24 = vmul.f32 %v11096_v18, %v12646_v35 }
 0x3fa   : > { %11097 = vrcp.f32 %v1479_v33 }
 0x400   : > { %v11098_v26 = vpop.eup %11097 }
 0x401   : > { %v1517_v7 = vmul.f32 %v11098_v26, %v12655_v1  ;;  %v10998_v57 = vpop.permute.xlu2 %10997  ;;  %v1959_v26 = vsel %vm12323_vm4, %v12230_v9, 0.0 }
 0x402   : > { %v12718_v19 = vunpack.i.h.bf16 %v10998_v57  ;;  %v12720_v14 = vunpack.i.l.bf16 %v10998_v57  ;;  %v1964_v57 = vsel %vm12323_vm4, %v12272_v28, 0.0 }
 0x403   : > { %10499 = vmatmul.msk.f32.vlgmr.msrb.gmra.mxu2 %vm1344_vm5, %v1517_v7  ;;  %v1962_v7 = vsel %vm12323_vm4, %v12254_v21, 0.0 }
 0x404   : > { %1828 = vmatpush.msrb.mxu3 %v12720_v14  ;;  %1906 = vmatpush.msra.mxu2 %v12718_v19 }
 0x405   : > { %10498 = vmatmul.msk.f32.vlgmr.msrb.gmra.mxu3 %vm1344_vm5, %v1516_v24  ;;  %v1965_v24 = vsel %vm12323_vm4, %v12278_v32, 0.0 }
 0x406   : > { %10503 = vmatpush.xpose.msk.msrb.mxu2 %vm546_vm0, %v12282_v34 }
 0x41f   : > { %v1482_v53 = vpop.xlane.xlu0 %1481 }
 0x420   : > { %11099 = vrcp.f32 %v1482_v53  ;;  %v1967_v53 = vsel %vm12323_vm4, %v12311_v41, 0.0 }
 0x426   : > { %v11100_v30 = vpop.eup %11099 }
 0x427   : > { %v1488_v1 = vpop.xlane.xlu1 %1487  ;;  %v1518_v35 = vmul.f32 %v11100_v30, %v12677_v43  ;;  %v1971_v30 = vsel %vm12323_vm4, %v12377_v61, 0.0 }
 0x43a   : > { %v1485_v27 = vpop.xlane.xlu2 %1484 }
 0x43b   : > { %11101 = vrcp.f32 %v1485_v27  ;;  %v1970_v27 = vsel %vm12323_vm4, %v12359_v55, 0.0 }
 0x43c   : > { %11103 = vrcp.f32 %v1488_v1  ;;  %v1968_v1 = vsel %vm12323_vm4, %v12335_v47, 0.0 }
 0x43f   : > { %v12730_v40 = vpop.permute.xlu1 %1859 }
 0x440   : > { %1880 = vmatpush.msra.mxu3 %v12730_v40 }
 0x441   : > { %v11102_v45 = vpop.eup %11101  ;;  %10500 = vmatmul.msk.f32.vlgmr.msra.gmra.mxu3 %vm1344_vm5, %v1518_v35  ;;  %v1973_v35 = vsel %vm12323_vm4, %v12398_v8, 0.0 }
 0x442   : > { %v1519_v11 = vmul.f32 %v11102_v45, %v11088_v48  ;;  %v12734_v33 = vpop.permute.xlu2 %1911  ;;  %v11104_v18 = vpop.eup %11103  ;;  %v1958_v48 = vsel %vm12323_vm4, %v12222_v5, 0.0 }
 0x443   : > { %1932 = vmatpush.msrb.mxu3 %v12734_v33  ;;  %v1520_v43 = vmul.f32 %v11104_v18, %v12686_v15  ;;  %v1961_v15 = vsel %vm12323_vm4, %v12246_v17, 0.0  ;;  %v12808_v45 = vpop.f32.mrf.mxu2 }
 0x444   : > { %10501 = vmatmul.msk.f32.vlgmr.msra.gmra.mxu2 %vm1344_vm5, %v1519_v11  ;;  %16494 = vst [vmem:[#allocation55_spill] sm:$0xff] %v12808_v45  ;;  %v12810_v11 = vpop.f32.mrf.mxu3 }
 0x445   : > { %10505 = vmatpush.xpose.msk.msra.mxu3 %vm546_vm0, %v12295_v36  ;;  %10509 = vmatpush.xpose.msk.msra.mxu2 %vm546_vm0, %v12303_v39  ;;  %16495 = vst [vmem:[#allocation56_spill] sm:$0xff] %v12810_v11 }
 0x449   : > { %10502 = vmatmul.msk.f32.vlgmr.msrb.gmra.mxu3 %vm1344_vm5, %v1520_v43 }
 0x44a   : > { %10511 = vmatpush.xpose.msk.msrb.mxu3 %vm546_vm0, %v12343_v50 }
 0x44b   : > { %v12812_v18 = vpop.f32.mrf.mxu2 }
 0x44c   : > { %10504 = vmatmul.msk.f32.vlgmr.msrb.gmra.mxu2 %vm546_vm0, %v1958_v48  ;;  %16496 = vst [vmem:[#allocation57_spill] sm:$0xff] %v12812_v18  ;;  %v12814_v43 = vpop.f32.mrf.mxu3 }
 0x44d   : > { %10515 = vmatpush.xpose.msk.msrb.mxu2 %vm546_vm0, %v12351_v52  ;;  %16497 = vst [vmem:[#allocation58_spill] sm:$0xff] %v12814_v43 }
 0x451   : > { %10506 = vmatmul.msk.f32.vlgmr.msra.gmra.mxu3 %vm546_vm0, %v1959_v26 }
 0x452   : > { %10517 = vmatpush.xpose.msk.msra.mxu3 %vm546_vm0, %v12381_v0 }
 0x453   : > { %v12816_v48 = vpop.f32.mrf.mxu2 }
 0x454   : > { %10510 = vmatmul.msk.f32.vlgmr.msra.gmra.mxu2 %vm546_vm0, %v1961_v15  ;;  %16498 = vst [vmem:[#allocation59_spill] sm:$0xff] %v12816_v48  ;;  %v12818_v26 = vpop.f32.mrf.mxu3 }
 0x455   : > { %10521 = vmatpush.xpose.msk.msra.mxu2 %vm546_vm0, %v12426_v23  ;;  %16499 = vst [vmem:[#allocation60_spill] sm:$0xff] %v12818_v26 }
 0x459   : > { %10512 = vmatmul.msk.f32.vlgmr.msrb.gmra.mxu3 %vm546_vm0, %v1962_v7 }
 0x45a   : > { %10523 = vmatpush.xpose.msk.msrb.mxu3 %vm546_vm0, %v12440_v29 }
 0x45b   : > { %v12820_v15 = vpop.f32.mrf.mxu2 }
 0x45c   : > { %10516 = vmatmul.msk.f32.vlgmr.msrb.gmra.mxu2 %vm546_vm0, %v1964_v57  ;;  %16500 = vst [vmem:[#allocation61_spill] sm:$0xff] %v12820_v15  ;;  %v12822_v7 = vpop.f32.mrf.mxu3 }
 0x45d   : > { %10527 = vmatpush.xpose.msk.msrb.mxu2 %vm546_vm0, %v12452_v46  ;;  %16501 = vst [vmem:[#allocation62_spill] sm:$0xff] %v12822_v7 }
 0x461   : > { %10518 = vmatmul.msk.f32.vlgmr.msra.gmra.mxu3 %vm546_vm0, %v1965_v24 }
 0x462   : > { %10529 = vmatpush.xpose.msk.msra.mxu3 %vm546_vm0, %v12464_v60 }
 0x463   : > { %v12824_v57 = vpop.f32.mrf.mxu2 }
 0x464   : > { %10522 = vmatmul.msk.f32.vlgmr.msra.gmra.mxu2 %vm546_vm0, %v1967_v53  ;;  %16502 = vst [vmem:[#allocation63_spill] sm:$0xff] %v12824_v57  ;;  %v12841_v57 = vpop.f32.mrf.mxu1 }
 0x465   : > { %10533 = vmatpush.xpose.msk.msra.mxu2 %vm546_vm0, %v12511_v2 }
 0x469   : > { %10524 = vmatmul.msk.f32.vlgmr.msrb.gmra.mxu3 %vm546_vm0, %v1968_v1 }
 0x46a   : > { %2536 = vmatpush.msrb.mxu3 %v12517_v37 }
 0x46c   : > { %10528 = vmatmul.msk.f32.vlgmr.msrb.gmra.mxu2 %vm546_vm0, %v1970_v27 }
 0x46d   : > { %2582 = vmatpush.msrb.mxu2 %v12515_v22 }
 0x46e   : > { %v12828_v53 = vpop.f32.mrf.mxu2 }
 0x46f   : > { %16504 = vst [vmem:[#allocation65_spill] sm:$0xff] %v12828_v53 }
 0x471   : > { %10530 = vmatmul.msk.f32.vlgmr.msra.gmra.mxu3 %vm546_vm0, %v1971_v30 }
 0x472   : > { %2605 = vmatpush.msra.mxu3 %v12535_v58 }
 0x474   : > { %10534 = vmatmul.msk.f32.vlgmr.msra.gmra.mxu2 %vm546_vm0, %v1973_v35 }
 0x475   : > { %2651 = vmatpush.msra.mxu2 %v12663_v3 }
 0x47b   : > { %v12826_v24 = vpop.f32.mrf.mxu3 }
 0x47c   : > { %16503 = vst [vmem:[#allocation64_spill] sm:$0xff] %v12826_v24 }
 0x486   : > { %v12832_v27 = vpop.f32.mrf.mxu2 }
 0x487   : > { %16506 = vst [vmem:[#allocation67_spill] sm:$0xff] %v12832_v27  ;;  %v2366_v27 = vsel %vm1344_vm5, %v12841_v57, -inf }
 0x488   : > { %v12830_v1 = vpop.f32.mrf.mxu3 }
 0x489   : > { %16505 = vst [vmem:[#allocation66_spill] sm:$0xff] %v12830_v1 }
 0x4c4   : > { %v12834_v30 = vpop.f32.mrf.mxu3 }
 0x4c5   : > { %16507 = vst [vmem:[#allocation68_spill] sm:$0xff] %v12834_v30  ;;  %v12852_v30 = vpop.f32.mrf.mxu1 }
 0x4c6   : > { %v2375_v1 = vsel %vm1344_vm5, %v12852_v30, -inf }
 0x4c7   : > { %v12836_v35 = vpop.f32.mrf.mxu2 }
 0x4c8   : > { %16508 = vst [vmem:[#allocation69_spill] sm:$0xff] %v12836_v35 }
 0x4cc   : > { %v12838_v48 = vpop.f32.mrf.mxu3 }
 0x4cd   : > { %16509 = vst [vmem:[#allocation70_spill] sm:$0xff] %v12838_v48  ;;  %v12862_v18 = vpop.f32.mrf.mxu1 }
 0x4cf   : > { %v1994_v26 = vpop.f32.mrf.mxu2 }
 0x4d0   : > { %v2342_v15 = vsel %vm1344_vm5, %v1994_v26, -inf }
 0x4d1   : > { %2343 = vmax.xlane.f32.xlu2 %v2342_v15 }
 0x4d4   : > { %v2017_v7 = vpop.f32.mrf.mxu3 }
 0x4d5   : > { %v2345_v24 = vsel %vm1344_vm5, %v2017_v7, -inf }
 0x4d6   : > { %2346 = vmax.xlane.f32.xlu0 %v2345_v24 }
 0x4d7   : > { %v12844_v53 = vpop.f32.mrf.mxu2 }
 0x4d8   : > { %v2351_v35 = vsel %vm1344_vm5, %v12844_v53, -inf }
 0x4d9   : > { %2367 = vmax.xlane.f32.xlu2 %v2366_v27  ;;  %2352 = vmax.xlane.f32.xlu1 %v2351_v35  ;;  %v2384_v35 = vsel %vm1344_vm5, %v12862_v18, -inf }
 0x4dc   : > { %v12850_v48 = vpop.f32.mrf.mxu3 }
 0x4dd   : > { %v2354_v11 = vsel %vm1344_vm5, %v12850_v48, -inf }
 0x4df   : > { %v12854_v15 = vpop.f32.mrf.mxu2 }
 0x4e0   : > { %v2360_v24 = vsel %vm1344_vm5, %v12854_v15, -inf }
 0x4e1   : > { %2376 = vmax.xlane.f32.xlu2 %v2375_v1  ;;  %2361 = vmax.xlane.f32.xlu0 %v2360_v24 }
 0x4e4   : > { %v12860_v43 = vpop.f32.mrf.mxu3 }
 0x4e5   : > { %v2363_v27 = vsel %vm1344_vm5, %v12860_v43, -inf }
 0x4e6   : > { %2364 = vmax.xlane.f32.xlu1 %v2363_v27  ;;  %v2350_v27 = vpop.xlane.xlu0 %2349 }
 0x4e7   : > { %v12870_v45 = vpop.f32.mrf.mxu2 }
 0x4e8   : > { %v2369_v44 = vsel %vm1344_vm5, %v12870_v45, -inf }
 0x4e9   : > { %2385 = vmax.xlane.f32.xlu2 %v2384_v35  ;;  %2355 = vmax.xlane.f32.xlu0 %v2354_v11  ;;  %v2392_v11 = vsub.f32 %v12684_v54, %v2350_v27 }
 0x4ec   : > { %v12872_v1 = vpop.f32.mrf.mxu3 }
 0x4ed   : > { %v2372_v24 = vsel %vm1344_vm5, %v12872_v1, -inf }
 0x4ee   : > { %2373 = vmax.xlane.f32.xlu1 %v2372_v24  ;;  %v2410_v24 = vmul.f32 1.442695, %v2392_v11  ;;  %v2359_v3 = vpop.xlane.xlu0 %2358 }
 0x4ef   : > { %v12878_v16 = vpop.f32.mrf.mxu2 }
 0x4f0   : > { %v2378_v35 = vsel %vm1344_vm5, %v12878_v16, -inf  ;;  %11105 = vpow2.f32 %v2410_v24 }
 0x4f1   : > { %2370 = vmax.xlane.f32.xlu0 %v2369_v44  ;;  %v2395_v44 = vsub.f32 %v12693_v6, %v2359_v3 }
 0x4f3   : > { %v2416_v2 = vmul.f32 1.442695, %v2395_v44 }
 0x4f4   : > { %v12880_v8 = vpop.f32.mrf.mxu3 }
 0x4f5   : > { %v2381_v58 = vsel %vm1344_vm5, %v12880_v8, -inf  ;;  %11107 = vpow2.f32 %v2416_v2 }
 0x4f6   : > { %2382 = vmax.xlane.f32.xlu1 %v2381_v58  ;;  %v12892_v41 = vpop.eup %11105 }
 0x4f7   : > { %v12887_v55 = vpop.f32.mrf.mxu2  ;;  %v2444_v58 = vsel %vm1344_vm5, %v12892_v41, 0.0 }
 0x4f8   : > { %v2387_v4 = vsel %vm1344_vm5, %v12887_v55, -inf }
 0x4f9   : > { %2379 = vmax.xlane.f32.xlu0 %v2378_v35 }
 0x4fb   : > { %v12896_v54 = vpop.eup %11107 }
 0x4fc   : > { %v2453_v27 = vsel %vm1344_vm5, %v12896_v54, 0.0 }
 0x501   : > { %2388 = vmax.xlane.f32.xlu0 %v2387_v4 }
 0x509   : > { %2445 = vadd.xlane.f32.xlu0 %v2444_v58 }
 0x511   : > { %2454 = vadd.xlane.f32.xlu0 %v2453_v27 }
 0x544   : > { %v2344_v11 = vpop.xlane.xlu2 %2343 }
 0x545   : > { %v2390_v3 = vsub.f32 %v1994_v26, %v2344_v11 }
 0x547   : > { %v2406_v6 = vmul.f32 1.442695, %v2390_v3 }
 0x549   : > { %11109 = vpow2.f32 %v2406_v6  ;;  %v2347_v35 = vpop.xlane.xlu0 %2346 }
 0x54a   : > { %v2391_v4 = vsub.f32 %v2017_v7, %v2347_v35 }
 0x54c   : > { %v2408_v24 = vmul.f32 1.442695, %v2391_v4  ;;  %v2368_v44 = vpop.xlane.xlu2 %2367  ;;  %v2353_v49 = vpop.xlane.xlu1 %2352 }
 0x54d   : > { %v2398_v2 = vsub.f32 %v12841_v57, %v2368_v44  ;;  %v2393_v46 = vsub.f32 %v12844_v53, %v2353_v49 }
 0x54e   : > { %11111 = vpow2.f32 %v2408_v24 }
 0x54f   : > { %v12902_v58 = vpop.eup %11109  ;;  %v2422_v28 = vmul.f32 1.442695, %v2398_v2  ;;  %v2412_v22 = vmul.f32 1.442695, %v2393_v46 }
 0x550   : > { %v2438_v27 = vsel %vm1344_vm5, %v12902_v58, 0.0 }
 0x551   : > { %11113 = vpow2.f32 %v2422_v28  ;;  %2439 = vadd.xlane.f32.xlu2 %v2438_v27 }
 0x552   : > { %11115 = vpow2.f32 %v2412_v22 }
 0x554   : > { %v2377_v26 = vpop.xlane.xlu2 %2376  ;;  %v2362_v7 = vpop.xlane.xlu0 %2361 }
 0x555   : > { %v12906_v11 = vpop.eup %11111  ;;  %v2401_v3 = vsub.f32 %v12852_v30, %v2377_v26  ;;  %v2396_v57 = vsub.f32 %v12854_v15, %v2362_v7 }
 0x556   : > { %v2441_v46 = vsel %vm1344_vm5, %v12906_v11, 0.0 }
 0x557   : > { %v12910_v49 = vpop.eup %11113  ;;  %v2428_v53 = vmul.f32 1.442695, %v2401_v3  ;;  %v2418_v6 = vmul.f32 1.442695, %v2396_v57 }
 0x558   : > { %v12912_v35 = vpop.eup %11115  ;;  %v2462_v28 = vsel %vm1344_vm5, %v12910_v49, 0.0 }
 0x559   : > { %11117 = vpow2.f32 %v2428_v53  ;;  %2442 = vadd.xlane.f32.xlu2 %v2441_v46  ;;  %2463 = vadd.xlane.f32.xlu0 %v2462_v28  ;;  %v2365_v22 = vpop.xlane.xlu1 %2364  ;;  %v2447_v30 = vsel %vm1344_vm5, %v12912_v35, 0.0 }
 0x55a   : > { %11119 = vpow2.f32 %v2418_v6  ;;  %2448 = vadd.xlane.f32.xlu1 %v2447_v30  ;;  %v2397_v3 = vsub.f32 %v12860_v43, %v2365_v22 }
 0x55c   : > { %v2386_v15 = vpop.xlane.xlu2 %2385  ;;  %v2356_v4 = vpop.xlane.xlu0 %2355 }
 0x55d   : > { %v2404_v24 = vsub.f32 %v12862_v18, %v2386_v15  ;;  %v2394_v44 = vsub.f32 %v12850_v48, %v2356_v4  ;;  %v2420_v48 = vmul.f32 1.442695, %v2397_v3 }
 0x55f   : > { %v12922_v2 = vpop.eup %11117  ;;  %v2434_v27 = vmul.f32 1.442695, %v2404_v24  ;;  %v2414_v26 = vmul.f32 1.442695, %v2394_v44 }
 0x560   : > { %v12924_v7 = vpop.eup %11119  ;;  %v2471_v57 = vsel %vm1344_vm5, %v12922_v2, 0.0 }
 0x561   : > { %11121 = vpow2.f32 %v2434_v27  ;;  %2472 = vadd.xlane.f32.xlu0 %v2471_v57  ;;  %v2456_v53 = vsel %vm1344_vm5, %v12924_v7, 0.0  ;;  %v2374_v18 = vpop.xlane.xlu1 %2373 }
 0x562   : > { %11123 = vpow2.f32 %v2414_v26  ;;  %2457 = vadd.xlane.f32.xlu1 %v2456_v53  ;;  %v2400_v43 = vsub.f32 %v12872_v1, %v2374_v18 }
 0x563   : > { %11125 = vpow2.f32 %v2420_v48 }
 0x564   : > { %v2371_v6 = vpop.xlane.xlu0 %2370  ;;  %v2426_v24 = vmul.f32 1.442695, %v2400_v43 }
 0x565   : > { %v2399_v46 = vsub.f32 %v12870_v45, %v2371_v6 }
 0x567   : > { %v12932_v28 = vpop.eup %11121  ;;  %v2424_v30 = vmul.f32 1.442695, %v2399_v46 }
 0x568   : > { %v12934_v15 = vpop.eup %11123  ;;  %v2480_v22 = vsel %vm1344_vm5, %v12932_v28, 0.0 }
 0x569   : > { %11127 = vpow2.f32 %v2424_v30  ;;  %2481 = vadd.xlane.f32.xlu0 %v2480_v22  ;;  %v2450_v4 = vsel %vm1344_vm5, %v12934_v15, 0.0  ;;  %v2383_v45 = vpop.xlane.xlu1 %2382  ;;  %v12942_v26 = vpop.eup %11125 }
 0x56a   : > { %2451 = vadd.xlane.f32.xlu2 %v2450_v4  ;;  %11129 = vpow2.f32 %v2426_v24  ;;  %v2403_v1 = vsub.f32 %v12880_v8, %v2383_v45  ;;  %v2459_v18 = vsel %vm1344_vm5, %v12942_v26, 0.0 }
 0x56c   : > { %v2380_v44 = vpop.xlane.xlu0 %2379  ;;  %v2432_v48 = vmul.f32 1.442695, %v2403_v1 }
 0x56d   : > { %v2402_v27 = vsub.f32 %v12878_v16, %v2380_v44 }
 0x56f   : > { %v12944_v3 = vpop.eup %11127  ;;  %v2430_v57 = vmul.f32 1.442695, %v2402_v27 }
 0x570   : > { %v2465_v53 = vsel %vm1344_vm5, %v12944_v3, 0.0  ;;  %v12952_v46 = vpop.eup %11129 }
 0x571   : > { %11131 = vpow2.f32 %v2430_v57  ;;  %2466 = vadd.xlane.f32.xlu1 %v2465_v53  ;;  %v2468_v22 = vsel %vm1344_vm5, %v12952_v46, 0.0 }
 0x572   : > { %2460 = vadd.xlane.f32.xlu2 %v2459_v18  ;;  %11133 = vpow2.f32 %v2432_v48 }
 0x574   : > { %v2389_v6 = vpop.xlane.xlu0 %2388 }
 0x575   : > { %v2405_v16 = vsub.f32 %v12887_v55, %v2389_v6 }
 0x577   : > { %v12954_v30 = vpop.eup %11131  ;;  %v2436_v43 = vmul.f32 1.442695, %v2405_v16 }
 0x578   : > { %v2474_v8 = vsel %vm1344_vm5, %v12954_v30, 0.0  ;;  %v12960_v24 = vpop.eup %11133 }
 0x579   : > { %11135 = vpow2.f32 %v2436_v43  ;;  %2475 = vadd.xlane.f32.xlu1 %v2474_v8  ;;  %v2477_v45 = vsel %vm1344_vm5, %v12960_v24, 0.0 }
 0x57a   : > { %2469 = vadd.xlane.f32.xlu2 %v2468_v22 }
 0x57c   : > { %v2446_v4 = vpop.xlane.xlu0 %2445 }
 0x57d   : > { %11137 = vrcp.f32 %v2446_v4 }
 0x57f   : > { %v12962_v55 = vpop.eup %11135 }
 0x580   : > { %v2483_v44 = vsel %vm1344_vm5, %v12962_v55, 0.0 }
 0x581   : > { %2484 = vadd.xlane.f32.xlu1 %v2483_v44 }
 0x582   : > { %2478 = vadd.xlane.f32.xlu2 %v2477_v45 }
 0x583   : > { %v11138_v27 = vpop.eup %11137 }
 0x584   : > { %v2504_v57 = vmul.f32 %v11138_v27, %v12892_v41  ;;  %v2455_v1 = vpop.xlane.xlu0 %2454 }
 0x585   : > { %11139 = vrcp.f32 %v2455_v1 }
 0x586   : > { %10537 = vmatmul.msk.f32.vlgmr.msrb.gmra.mxu2 %vm1344_vm5, %v2504_v57 }
 0x587   : > { %2720 = vmatpush.msrb.mxu2 %v12661_v62 }
 0x58b   : > { %v11140_v53 = vpop.eup %11139 }
 0x58c   : > { %v2507_v18 = vmul.f32 %v11140_v53, %v12896_v54 }
 0x58e   : > { %10540 = vmatmul.msk.f32.vlgmr.msra.gmra.mxu2 %vm1344_vm5, %v2507_v18 }
 0x58f   : > { %2789 = vmatpush.msra.mxu2 %v12720_v14 }
 0x5c4   : > { %v2440_v48 = vpop.xlane.xlu2 %2439 }
 0x5c5   : > { %11141 = vrcp.f32 %v2440_v48 }
 0x5cb   : > { %v11142_v6 = vpop.eup %11141 }
 0x5cc   : > { %v2502_v16 = vmul.f32 %v11142_v6, %v12902_v58  ;;  %v2443_v43 = vpop.xlane.xlu2 %2442  ;;  %v2464_v41 = vpop.xlane.xlu0 %2463 }
 0x5cd   : > { %11143 = vrcp.f32 %v2443_v43  ;;  %v2449_v8 = vpop.xlane.xlu1 %2448 }
 0x5ce   : > { %11145 = vrcp.f32 %v2464_v41  ;;  %10535 = vmatmul.msk.f32.vlgmr.msrb.gmra.mxu3 %vm1344_vm5, %v2502_v16 }
 0x5cf   : > { %11147 = vrcp.f32 %v2449_v8  ;;  %2674 = vmatpush.msrb.mxu3 %v12480_v10 }
 0x5d3   : > { %v11144_v54 = vpop.eup %11143 }
 0x5d4   : > { %v11146_v22 = vpop.eup %11145  ;;  %v2503_v4 = vmul.f32 %v11144_v54, %v12906_v11  ;;  %v2473_v44 = vpop.xlane.xlu0 %2472 }
 0x5d5   : > { %v11148_v45 = vpop.eup %11147  ;;  %v2510_v27 = vmul.f32 %v11146_v22, %v12910_v49  ;;  %11149 = vrcp.f32 %v2473_v44  ;;  %v2458_v58 = vpop.xlane.xlu1 %2457 }
 0x5d6   : > { %v2505_v57 = vmul.f32 %v11148_v45, %v12912_v35  ;;  %11151 = vrcp.f32 %v2458_v58  ;;  %10536 = vmatmul.msk.f32.vlgmr.msrb.gmra.mxu1 %vm1344_vm5, %v2503_v4  ;;  %v16510_v4 = vmov 0 }
 0x5d7   : > { %2697 = vmatpush.msrb.mxu1 %v12665_v20  ;;  %10543 = vmatmul.msk.f32.vlgmr.msrb.gmra.mxu2 %vm1344_vm5, %v2510_v27  ;;  %v16511_v4 = vsel %vm13005_vm8, 4294967295, %v16510_v4 }
 0x5d8   : > { %10538 = vmatmul.msk.f32.vlgmr.msra.gmra.mxu3 %vm1344_vm5, %v2505_v57  ;;  %2858 = vmatpush.msrb.mxu2 %v12718_v19  ;;  %16512 = vst [vmem:[#allocation71_spill] sm:$0xff] %v16511_v4 }
 0x5d9   : > { %2743 = vmatpush.msra.mxu3 %v12711_v38 }
 0x5db   : > { %v11150_v11 = vpop.eup %11149 }
 0x5dc   : > { %v11152_v1 = vpop.eup %11151  ;;  %v2513_v49 = vmul.f32 %v11150_v11, %v12922_v2  ;;  %v2482_v53 = vpop.xlane.xlu0 %2481  ;;  %v2927_v11 = vsel %vm13005_vm8, %v12254_v21, 0.0 }
 0x5dd   : > { %v2508_v35 = vmul.f32 %v11152_v1, %v12924_v7  ;;  %v2452_v18 = vpop.xlane.xlu2 %2451  ;;  %11153 = vrcp.f32 %v2482_v53  ;;  %v2930_v53 = vsel %vm13005_vm8, %v12278_v32, 0.0 }
 0x5de   : > { %11155 = vrcp.f32 %v2452_v18  ;;  %v2928_v18 = vsel %vm13005_vm8, %v12264_v25, 0.0 }
 0x5df   : > { %10546 = vmatmul.msk.f32.vlgmr.msra.gmra.mxu2 %vm1344_vm5, %v2513_v49 }
 0x5e0   : > { %10541 = vmatmul.msk.f32.vlgmr.msrb.gmra.mxu3 %vm1344_vm5, %v2508_v35  ;;  %10553 = vmatpush.xpose.msk.msra.mxu2 %vm546_vm0, %v12295_v36  ;;  %v2933_v35 = vsel %vm13005_vm8, %v12335_v47, 0.0 }
 0x5e1   : > { %2812 = vmatpush.msrb.mxu3 %v12709_v63 }
 0x5e3   : > { %v11154_v48 = vpop.eup %11153 }
 0x5e4   : > { %v11156_v6 = vpop.eup %11155  ;;  %v2516_v16 = vmul.f32 %v11154_v48, %v12932_v28  ;;  %v2467_v2 = vpop.xlane.xlu1 %2466  ;;  %v2926_v48 = vsel %vm13005_vm8, %v12246_v17, 0.0 }
 0x5e5   : > { %v2506_v43 = vmul.f32 %v11156_v6, %v12934_v15  ;;  %v2461_v7 = vpop.xlane.xlu2 %2460  ;;  %11157 = vrcp.f32 %v2467_v2  ;;  %v2936_v6 = vsel %vm13005_vm8, %v12377_v61, 0.0  ;;  %v16514_v2 = vld [vmem:[#allocation35_spill] sm:$0xff] }
 0x5e6   : > { %11159 = vrcp.f32 %v2461_v7  ;;  %v16515_v7 = vld [vmem:[#allocation33_spill] sm:$0xff] }
 0x5e7   : > { %10539 = vmatmul.msk.f32.vlgmr.msra.gmra.mxu1 %vm1344_vm5, %v2506_v43  ;;  %10549 = vmatmul.msk.f32.vlgmr.msrb.gmra.mxu2 %vm1344_vm5, %v2516_v16  ;;  %v16513_v16 = vld [vmem:[#allocation47_spill] sm:$0xff]  ;;  %v2931_v43 = vsel %vm13005_vm8, %v16514_v2, 0.0 }
 0x5e8   : > { %2766 = vmatpush.msra.mxu1 %v12648_v51  ;;  %10559 = vmatpush.xpose.msk.msrb.mxu2 %vm546_vm0, %v12343_v50 }
 0x5eb   : > { %v11158_v41 = vpop.eup %11157 }
 0x5ec   : > { %v11160_v28 = vpop.eup %11159  ;;  %v2511_v15 = vmul.f32 %v11158_v41, %v12944_v3  ;;  %v2476_v8 = vpop.xlane.xlu1 %2475  ;;  %v2924_v3 = vsel %vm13005_vm8, %v12230_v9, 0.0  ;;  %v2929_v41 = vsel %vm13005_vm8, %v16515_v7, 0.0 }
 0x5ed   : > { %v2509_v54 = vmul.f32 %v11160_v28, %v12942_v26  ;;  %v2470_v22 = vpop.xlane.xlu2 %2469  ;;  %11161 = vrcp.f32 %v2476_v8  ;;  %v16516_v28 = vld [vmem:[#allocation45_spill] sm:$0xff]  ;;  %v16518_v8 = vld [vmem:[#allocation38_spill] sm:$0xff] }
 0x5ee   : > { %11163 = vrcp.f32 %v2470_v22  ;;  %10544 = vmatmul.msk.f32.vlgmr.msra.gmra.mxu3 %vm1344_vm5, %v2511_v15  ;;  %v16517_v15 = vld [vmem:[#allocation44_spill] sm:$0xff] }
 0x5ef   : > { %10542 = vmatmul.msk.f32.vlgmr.msrb.gmra.mxu1 %vm1344_vm5, %v2509_v54  ;;  %2881 = vmatpush.msra.mxu3 %v12734_v33  ;;  %v2934_v54 = vsel %vm13005_vm8, %v16518_v8, 0.0  ;;  %v16519_v22 = vld [vmem:[#allocation36_spill] sm:$0xff] }
 0x5f0   : > { %2835 = vmatpush.msrb.mxu1 %v12730_v40  ;;  %10554 = vmatmul.msk.f32.vlgmr.msra.gmra.mxu2 %vm546_vm0, %v2924_v3  ;;  %v2932_v3 = vsel %vm13005_vm8, %v16519_v22, 0.0 }
 0x5f1   : > { %10565 = vmatpush.xpose.msk.msra.mxu2 %vm546_vm0, %v12381_v0 }
 0x5f3   : > { %v11162_v26 = vpop.eup %11161 }
 0x5f4   : > { %v11164_v44 = vpop.eup %11163  ;;  %v2514_v45 = vmul.f32 %v11162_v26, %v12954_v30  ;;  %v2485_v27 = vpop.xlane.xlu1 %2484  ;;  %v16520_v26 = vld [vmem:[#allocation50_spill] sm:$0xff] }
 0x5f5   : > { %v2512_v58 = vmul.f32 %v11164_v44, %v12952_v46  ;;  %v2479_v57 = vpop.xlane.xlu2 %2478  ;;  %11165 = vrcp.f32 %v2485_v27  ;;  %v16521_v44 = vld [vmem:[#allocation46_spill] sm:$0xff] }
 0x5f6   : > { %11167 = vrcp.f32 %v2479_v57  ;;  %10547 = vmatmul.msk.f32.vlgmr.msrb.gmra.mxu3 %vm1344_vm5, %v2514_v45  ;;  %v16522_v45 = vld [vmem:[#allocation40_spill] sm:$0xff] }
 0x5f7   : > { %10545 = vmatmul.msk.f32.vlgmr.msra.gmra.mxu1 %vm1344_vm5, %v2512_v58  ;;  %10555 = vmatpush.xpose.msk.msrb.mxu3 %vm546_vm0, %v12317_v42  ;;  %v2937_v27 = vsel %vm13005_vm8, %v16522_v45, 0.0  ;;  %v16523_v58 = vld [vmem:[#allocation39_spill] sm:$0xff] }
 0x5f8   : > { %10551 = vmatpush.xpose.msk.msra.mxu1 %vm546_vm0, %v12282_v34  ;;  %10560 = vmatmul.msk.f32.vlgmr.msrb.gmra.mxu2 %vm546_vm0, %v2927_v11  ;;  %v2935_v57 = vsel %vm13005_vm8, %v16523_v58, 0.0  ;;  %v16524_v11 = vld [vmem:[#allocation53_spill] sm:$0xff] }
 0x5f9   : > { %10571 = vmatpush.xpose.msk.msrb.mxu2 %vm546_vm0, %v12440_v29 }
 0x5fb   : > { %v11166_v46 = vpop.eup %11165 }
 0x5fc   : > { %v11168_v30 = vpop.eup %11167  ;;  %v2517_v1 = vmul.f32 %v11166_v46, %v12962_v55  ;;  %v2923_v55 = vsel %vm13005_vm8, %v12222_v5, 0.0  ;;  %v16525_v46 = vld [vmem:[#allocation51_spill] sm:$0xff] }
 0x5fd   : > { %v2515_v49 = vmul.f32 %v11168_v30, %v12960_v24  ;;  %v2925_v24 = vsel %vm13005_vm8, %v12238_v13, 0.0  ;;  %v16526_v30 = vld [vmem:[#allocation41_spill] sm:$0xff] }
 0x5fe   : > { %10550 = vmatmul.msk.f32.vlgmr.msra.gmra.mxu3 %vm1344_vm5, %v2517_v1  ;;  %v2938_v1 = vsel %vm13005_vm8, %v16526_v30, 0.0 }
 0x5ff   : > { %10548 = vmatmul.msk.f32.vlgmr.msrb.gmra.mxu1 %vm1344_vm5, %v2515_v49  ;;  %10561 = vmatpush.xpose.msk.msra.mxu3 %vm546_vm0, %v12363_v56 }
 0x600   : > { %10557 = vmatpush.xpose.msk.msrb.mxu1 %vm546_vm0, %v12303_v39  ;;  %10566 = vmatmul.msk.f32.vlgmr.msra.gmra.mxu2 %vm546_vm0, %v2930_v53 }
 0x601   : > { %10577 = vmatpush.xpose.msk.msra.mxu2 %vm546_vm0, %v12464_v60 }
 0x606   : > { %10556 = vmatmul.msk.f32.vlgmr.msrb.gmra.mxu3 %vm546_vm0, %v2925_v24 }
 0x607   : > { %10552 = vmatmul.msk.f32.vlgmr.msra.gmra.mxu1 %vm546_vm0, %v2923_v55  ;;  %10567 = vmatpush.xpose.msk.msrb.mxu3 %vm546_vm0, %v12406_v12 }
 0x608   : > { %10563 = vmatpush.xpose.msk.msra.mxu1 %vm546_vm0, %v12351_v52  ;;  %10572 = vmatmul.msk.f32.vlgmr.msrb.gmra.mxu2 %vm546_vm0, %v2933_v35 }
 0x609   : > { %3501 = vmatpush.msrb.mxu2 %v12517_v37  ;;  %v13118_v49 = vpop.f32.mrf.mxu2 }
 0x60a   : > { %16527 = vst [vmem:[#allocation47_spill] sm:$0xff] %v13118_v49 }
 0x60e   : > { %10562 = vmatmul.msk.f32.vlgmr.msra.gmra.mxu3 %vm546_vm0, %v2928_v18 }
 0x60f   : > { %10558 = vmatmul.msk.f32.vlgmr.msrb.gmra.mxu1 %vm546_vm0, %v2926_v48  ;;  %10573 = vmatpush.xpose.msk.msra.mxu3 %vm546_vm0, %v12462_v59 }
 0x610   : > { %10569 = vmatpush.xpose.msk.msrb.mxu1 %vm546_vm0, %v12426_v23  ;;  %10578 = vmatmul.msk.f32.vlgmr.msra.gmra.mxu2 %vm546_vm0, %v2936_v6 }
 0x611   : > { %3547 = vmatpush.msra.mxu2 %v16513_v16  ;;  %v13120_v53 = vpop.f32.mrf.mxu2 }
 0x612   : > { %16528 = vst [vmem:[#allocation33_spill] sm:$0xff] %v13120_v53 }
 0x616   : > { %10568 = vmatmul.msk.f32.vlgmr.msrb.gmra.mxu3 %vm546_vm0, %v2931_v43 }
 0x617   : > { %10564 = vmatmul.msk.f32.vlgmr.msra.gmra.mxu1 %vm546_vm0, %v2929_v41  ;;  %10579 = vmatpush.xpose.msk.msrb.mxu3 %vm546_vm0, %v16516_v28 }
 0x618   : > { %10575 = vmatpush.xpose.msk.msra.mxu1 %vm546_vm0, %v16517_v15 }
 0x61e   : > { %10574 = vmatmul.msk.f32.vlgmr.msra.gmra.mxu3 %vm546_vm0, %v2934_v54 }
 0x61f   : > { %10570 = vmatmul.msk.f32.vlgmr.msrb.gmra.mxu1 %vm546_vm0, %v2932_v3  ;;  %3524 = vmatpush.msra.mxu3 %v16520_v26 }
 0x620   : > { %10581 = vmatpush.xpose.msk.msrb.mxu1 %vm546_vm0, %v16521_v44 }
 0x626   : > { %10580 = vmatmul.msk.f32.vlgmr.msrb.gmra.mxu3 %vm546_vm0, %v2937_v27 }
 0x627   : > { %10576 = vmatmul.msk.f32.vlgmr.msra.gmra.mxu1 %vm546_vm0, %v2935_v57  ;;  %3616 = vmatpush.msrb.mxu3 %v16524_v11 }
 0x628   : > { %3570 = vmatpush.msra.mxu1 %v16525_v46 }
 0x62f   : > { %10582 = vmatmul.msk.f32.vlgmr.msrb.gmra.mxu1 %vm546_vm0, %v2938_v1 }
 0x630   : > { %3662 = vmatpush.msrb.mxu1 %v12665_v20 }
 0x651   : > { %v13122_v24 = vpop.f32.mrf.mxu3 }
 0x652   : > { %16529 = vst [vmem:[#allocation45_spill] sm:$0xff] %v13122_v24 }
 0x653   : > { %v13126_v35 = vpop.f32.mrf.mxu1 }
 0x654   : > { %16531 = vst [vmem:[#allocation36_spill] sm:$0xff] %v13126_v35 }
 0x65a   : > { %v13124_v55 = vpop.f32.mrf.mxu2 }
 0x65b   : > { %16530 = vst [vmem:[#allocation38_spill] sm:$0xff] %v13124_v55  ;;  %v13128_v18 = vpop.f32.mrf.mxu3 }
 0x65c   : > { %16532 = vst [vmem:[#allocation50_spill] sm:$0xff] %v13128_v18 }
 0x662   : > { %v13130_v48 = vpop.f32.mrf.mxu2 }
 0x663   : > { %16533 = vst [vmem:[#allocation46_spill] sm:$0xff] %v13130_v48  ;;  %v13134_v43 = vpop.f32.mrf.mxu3 }
 0x664   : > { %v13132_v6 = vpop.f32.mrf.mxu1  ;;  %16535 = vst [vmem:[#allocation53_spill] sm:$0xff] %v13134_v43 }
 0x665   : > { %16534 = vst [vmem:[#allocation40_spill] sm:$0xff] %v13132_v6 }
 0x66a   : > { %v13136_v41 = vpop.f32.mrf.mxu2 }
 0x66b   : > { %16536 = vst [vmem:[#allocation72_spill] sm:$0xff] %v13136_v41 }
 0x66c   : > { %v13138_v54 = vpop.f32.mrf.mxu1 }
 0x66d   : > { %16537 = vst [vmem:[#allocation73_spill] sm:$0xff] %v13138_v54 }
 0x671   : > { %v13140_v3 = vpop.f32.mrf.mxu3 }
 0x672   : > { %16538 = vst [vmem:[#allocation74_spill] sm:$0xff] %v13140_v3 }
 0x673   : > { %v2982_v27 = vpop.f32.mrf.mxu2 }
 0x674   : > { %v13142_v57 = vpop.f32.mrf.mxu1 }
 0x675   : > { %16539 = vst [vmem:[#allocation75_spill] sm:$0xff] %v13142_v57 }
 0x679   : > { %v13144_v1 = vpop.f32.mrf.mxu3 }
 0x67a   : > { %16540 = vst [vmem:[#allocation76_spill] sm:$0xff] %v13144_v1 }
 0x67b   : > { %v13146_v55 = vpop.f32.mrf.mxu2 }
 0x67c   : > { %v13148_v53 = vpop.f32.mrf.mxu1 }
 0x67d   : > { %16541 = vst [vmem:[#allocation77_spill] sm:$0xff] %v13148_v53 }
 0x681   : > { %v13150_v48 = vpop.f32.mrf.mxu3 }
 0x682   : > { %16542 = vst [vmem:[#allocation78_spill] sm:$0xff] %v13150_v48  ;;  %v3310_v48 = vsel %vm1344_vm5, %v2982_v27, -inf }
 0x683   : > { %v13152_v6 = vpop.f32.mrf.mxu2 }
 0x684   : > { %v13154_v43 = vpop.f32.mrf.mxu1 }
 0x689   : > { %v13156_v41 = vpop.f32.mrf.mxu3 }
 0x68b   : > { %v3189_v54 = vpop.f32.mrf.mxu2 }
 0x68c   : > { %v3337_v3 = vsel %vm1344_vm5, %v3189_v54, -inf  ;;  %v13159_v18 = vpop.f32.mrf.mxu1 }
 0x68d   : > { %3338 = vmax.xlane.f32.xlu1 %v3337_v3 }
 0x691   : > { %v3074_v57 = vpop.f32.mrf.mxu3 }
 0x692   : > { %v3322_v51 = vsel %vm1344_vm5, %v3074_v57, -inf }
 0x693   : > { %v3258_v21 = vpop.f32.mrf.mxu2 }
 0x694   : > { %v3097_v1 = vpop.f32.mrf.mxu1 }
 0x695   : > { %v3325_v49 = vsel %vm1344_vm5, %v3097_v1, -inf }
 0x696   : > { %3326 = vmax.xlane.f32.xlu0 %v3325_v49 }
 0x699   : > { %v13162_v53 = vpop.f32.mrf.mxu3 }
 0x69e   : > { %3311 = vmax.xlane.f32.xlu0 %v3310_v48 }
 0x6a1   : > { %v13165_v35 = vpop.f32.mrf.mxu3 }
 0x6a9   : > { %v3281_v4 = vpop.f32.mrf.mxu3 }
 0x6aa   : > { %v3349_v24 = vsel %vm1344_vm5, %v3281_v4, -inf }
 0x6ab   : > { %3350 = vmax.xlane.f32.xlu2 %v3349_v24 }
 0x6b3   : > { %3323 = vmax.xlane.f32.xlu2 %v3322_v51  ;;  %v3346_v51 = vsel %vm1344_vm5, %v3258_v21, -inf }
 0x700   : > { %v3339_v3 = vpop.xlane.xlu1 %3338 }
 0x701   : > { %v3365_v58 = vsub.f32 %v3189_v54, %v3339_v3 }
 0x703   : > { %v3391_v37 = vmul.f32 1.442695, %v3365_v58 }
 0x705   : > { %11169 = vpow2.f32 %v3391_v37 }
 0x709   : > { %v3327_v2 = vpop.xlane.xlu0 %3326 }
 0x70a   : > { %v3361_v49 = vsub.f32 %v3097_v1, %v3327_v2  ;;  %v3166_v2 = vpop.f32.mrf.mxu1 }
 0x70b   : > { %v13169_v15 = vpop.eup %11169  ;;  %v3334_v54 = vsel %vm1344_vm5, %v3166_v2, -inf }
 0x70c   : > { %v3383_v20 = vmul.f32 1.442695, %v3361_v49  ;;  %v3433_v48 = vsel %vm1344_vm5, %v13169_v15, 0.0 }
 0x70d   : > { %3434 = vadd.xlane.f32.xlu0 %v3433_v48 }
 0x70e   : > { %11171 = vpow2.f32 %v3383_v20 }
 0x711   : > { %v3312_v30 = vpop.xlane.xlu0 %3311 }
 0x712   : > { %v3356_v12 = vsub.f32 %v2982_v27, %v3312_v30 }
 0x714   : > { %v11172_v24 = vpop.eup %11171  ;;  %v3373_v37 = vmul.f32 1.442695, %v3356_v12 }
 0x715   : > { %3347 = vmax.xlane.f32.xlu0 %v3346_v51  ;;  %v3421_v58 = vsel %vm1344_vm5, %v11172_v24, 0.0 }
 0x716   : > { %3422 = vadd.xlane.f32.xlu1 %v3421_v58  ;;  %11173 = vpow2.f32 %v3373_v37  ;;  %v3307_v37 = vsel %vm1344_vm5, %v13154_v43, -inf }
 0x71c   : > { %v11174_v20 = vpop.eup %11173 }
 0x71d   : > { %v3406_v48 = vsel %vm1344_vm5, %v11174_v20, 0.0 }
 0x71e   : > { %3335 = vmax.xlane.f32.xlu1 %v3334_v54  ;;  %v3351_v1 = vpop.xlane.xlu2 %3350  ;;  %v3328_v54 = vsel %vm1344_vm5, %v13152_v6, -inf }
 0x71f   : > { %v3369_v3 = vsub.f32 %v3281_v4, %v3351_v1 }
 0x721   : > { %v3399_v49 = vmul.f32 1.442695, %v3369_v3 }
 0x723   : > { %11175 = vpow2.f32 %v3399_v49 }
 0x726   : > { %3407 = vadd.xlane.f32.xlu1 %v3406_v48  ;;  %v3324_v30 = vpop.xlane.xlu2 %3323 }
 0x727   : > { %v3360_v27 = vsub.f32 %v3074_v57, %v3324_v30  ;;  %v3331_v57 = vsel %vm1344_vm5, %v13162_v53, -inf }
 0x729   : > { %v11176_v51 = vpop.eup %11175  ;;  %v3381_v46 = vmul.f32 1.442695, %v3360_v27 }
 0x72a   : > { %v3445_v12 = vsel %vm1344_vm5, %v11176_v51, 0.0 }
 0x72b   : > { %11177 = vpow2.f32 %v3381_v46  ;;  %3446 = vadd.xlane.f32.xlu2 %v3445_v12  ;;  %v534_v46 = vld [vmem:[%s12084_s16 + $0x60] sm:$0xff]  ;;  %s10297_s16 = sshll.u32 %s10294_s13, 4  ;;  %s10298_s16 = int_to_ptr.hbm [resolvable:$true] %s10297_s16 }
 0x72c   : > { %10432 = vmatmul.msk.f32.gmra.mxu0 %vm546_vm0, %v534_v46  ;;  %s11824_s24 = sshra.s32 %s10298_s16, 4  ;;  %s11825_s24 = int_to_ptr.hbm [resolvable:$true] %s11824_s24 }
 0x72d   : > { %s11826_s15 = scalar_lea.hbm %s11825_s24, 16  ;;  %p11831_p10 = scmp.lt.s32.totalorder %s11825_s24, %s16811_s10 }
 0x72e   : > { %p11827_p6 = scmp.ne.s32.totalorder %s11825_s24, %s11826_s15  ;;  %p11832_p2 = scmp.lt.s32.totalorder %s11830_s17, %s11826_s15 }
 0x730   : > { %p11828_p13 = pnand %p11827_p6, %p12008_p11  ;;  %p11833_p9 = por %p11832_p2, %p11831_p10 }
 0x731   : > { %v13178_v58 = vpop.eup %11177 }
 0x732   : > { %v3418_v4 = vsel %vm1344_vm5, %v13178_v58, 0.0  ;;  %p11829_p3 = pneg %p11828_p13 }
 0x733   : > { %3419 = vadd.xlane.f32.xlu2 %v3418_v4 }
 0x734   : > { %p11834_p0 = pnand %p11833_p9, %p11829_p3 }
 0x73b   : > { %3308 = vmax.xlane.f32.xlu2 %v3307_v37 }
 0x743   : > { %3329 = vmax.xlane.f32.xlu2 %v3328_v54 }
 0x74b   : > { %3332 = vmax.xlane.f32.xlu2 %v3331_v57 }
 0x780   : > { %v3435_v1 = vpop.xlane.xlu0 %3434 }
 0x788   : > { %v3348_v3 = vpop.xlane.xlu0 %3347 }
 0x789   : > { %v3368_v49 = vsub.f32 %v3258_v21, %v3348_v3  ;;  %v3423_v48 = vpop.xlane.xlu1 %3422 }
 0x78a   : > { %11179 = vrcp.f32 %v3423_v48 }
 0x78b   : > { %v3397_v30 = vmul.f32 1.442695, %v3368_v49 }
 0x78d   : > { %11181 = vpow2.f32 %v3397_v30 }
 0x78e   : > { %11183 = vrcp.f32 %v3435_v1 }
 0x790   : > { %v11180_v27 = vpop.eup %11179 }
 0x791   : > { %v3473_v12 = vmul.f32 %v11180_v27, %v11172_v24  ;;  %v3336_v4 = vpop.xlane.xlu1 %3335  ;;  %v3340_v27 = vsel %vm1344_vm5, %v13165_v35, -inf }
 0x792   : > { %v3364_v37 = vsub.f32 %v3166_v2, %v3336_v4  ;;  %v3313_v2 = vsel %vm1344_vm5, %v13156_v41, -inf }
 0x793   : > { %v13190_v54 = vpop.eup %11181  ;;  %10589 = vmatmul.msk.f32.vlgmr.msrb.gmra.mxu0 %vm1344_vm5, %v3473_v12  ;;  %v3316_v12 = vsel %vm1344_vm5, %v13159_v18, -inf }
 0x794   : > { %v3389_v57 = vmul.f32 1.442695, %v3364_v37  ;;  %3823 = vmatpush.msrb.mxu0 %v12718_v19  ;;  %v3442_v46 = vsel %vm1344_vm5, %v13190_v54, 0.0  ;;  %v11184_v21 = vpop.eup %11183 }
 0x795   : > { %3443 = vadd.xlane.f32.xlu1 %v3442_v46  ;;  %v3477_v3 = vmul.f32 %v11184_v21, %v13169_v15 }
 0x796   : > { %11185 = vpow2.f32 %v3389_v57  ;;  %v13212_v57 = vpop.f32.mrf.mxu1 }
 0x799   : > { %v3408_v49 = vpop.xlane.xlu1 %3407 }
 0x79a   : > { %11187 = vrcp.f32 %v3408_v49  ;;  %v16543_v49 = vmov 0 }
 0x79b   : > { %10593 = vmatmul.msk.f32.vlgmr.msra.gmra.mxu0 %vm1344_vm5, %v3477_v3  ;;  %v16544_v49 = vsel %vm13224_vm11, 4294967295, %v16543_v49 }
 0x79c   : > { %v13198_v24 = vpop.eup %11185  ;;  %10603 = vmatpush.xpose.msk.msra.mxu0 %vm546_vm0, %v12317_v42  ;;  %16545 = vst [vmem:[#allocation79_spill] sm:$0xff] %v16544_v49 }
 0x79d   : > { %3314 = vmax.xlane.f32.xlu1 %v3313_v2  ;;  %v3430_v1 = vsel %vm1344_vm5, %v13198_v24, 0.0  ;;  %v3890_v2 = vsel %vm13224_vm11, %v12238_v13, 0.0  ;;  %v3894_v13 = vsel %vm13224_vm11, %v16515_v7, 0.0  ;;  %v3902_v7 = vsel %vm13224_vm11, %v16522_v45, 0.0 }
 0x79e   : > { %3431 = vadd.xlane.f32.xlu0 %v3430_v1  ;;  %v3447_v48 = vpop.xlane.xlu2 %3446 }
 0x79f   : > { %11189 = vrcp.f32 %v3447_v48 }
 0x7a0   : > { %v11188_v15 = vpop.eup %11187 }
 0x7a1   : > { %v3468_v30 = vmul.f32 %v11188_v15, %v11174_v20  ;;  %v3343_v20 = vsel %vm1344_vm5, %v13212_v57, -inf  ;;  %v3898_v15 = vsel %vm13224_vm11, %v12335_v47, 0.0 }
 0x7a3   : > { %10584 = vmatmul.msk.f32.vlgmr.msra.gmra.mxu3 %vm1344_vm5, %v3468_v30 }
 0x7a4   : > { %3708 = vmatpush.msra.mxu3 %v12711_v38 }
 0x7a5   : > { %v11190_v42 = vpop.eup %11189  ;;  %3341 = vmax.xlane.f32.xlu1 %v3340_v27 }
 0x7a6   : > { %v3481_v4 = vmul.f32 %v11190_v42, %v11176_v51  ;;  %3317 = vmax.xlane.f32.xlu0 %v3316_v12  ;;  %v3420_v37 = vpop.xlane.xlu2 %3419  ;;  %v3319_v51 = vsel %vm1344_vm5, %v13146_v55, -inf }
 0x7a7   : > { %11191 = vrcp.f32 %v3420_v37 }
 0x7a8   : > { %10597 = vmatmul.msk.f32.vlgmr.msrb.gmra.mxu0 %vm1344_vm5, %v3481_v4 }
 0x7a9   : > { %10611 = vmatpush.xpose.msk.msrb.mxu0 %vm546_vm0, %v12351_v52  ;;  %v13261_v30 = vpop.f32.mrf.mxu0 }
 0x7ad   : > { %v11192_v46 = vpop.eup %11191  ;;  %3344 = vmax.xlane.f32.xlu1 %v3343_v20 }
 0x7ae   : > { %v3472_v21 = vmul.f32 %v11192_v46, %v13178_v58  ;;  %3320 = vmax.xlane.f32.xlu0 %v3319_v51  ;;  %v3309_v3 = vpop.xlane.xlu2 %3308  ;;  %v13237_v58 = vpop.f32.mrf.mxu1 }
 0x7af   : > { %v3355_v52 = vsub.f32 %v13154_v43, %v3309_v3  ;;  %v3352_v43 = vsel %vm1344_vm5, %v13237_v58, -inf }
 0x7b0   : > { %10588 = vmatmul.msk.f32.vlgmr.msrb.gmra.mxu3 %vm1344_vm5, %v3472_v21  ;;  %10604 = vmatmul.msk.f32.vlgmr.msra.gmra.mxu0 %vm546_vm0, %v3890_v2 }
 0x7b1   : > { %v3371_v1 = vmul.f32 1.442695, %v3355_v52  ;;  %3800 = vmatpush.msrb.mxu3 %v12730_v40  ;;  %10619 = vmatpush.xpose.msk.msra.mxu0 %vm546_vm0, %v12440_v29 }
 0x7b3   : > { %11193 = vpow2.f32 %v3371_v1 }
 0x7b6   : > { %3353 = vmax.xlane.f32.xlu0 %v3352_v43 }
 0x7b8   : > { %10612 = vmatmul.msk.f32.vlgmr.msrb.gmra.mxu0 %vm546_vm0, %v3894_v13 }
 0x7b9   : > { %10627 = vmatpush.xpose.msk.msrb.mxu0 %vm546_vm0, %v16516_v28  ;;  %v13247_v48 = vpop.eup %11193 }
 0x7ba   : > { %v3403_v29 = vsel %vm1344_vm5, %v13247_v48, 0.0 }
 0x7be   : > { %3404 = vadd.xlane.f32.xlu0 %v3403_v29 }
 0x7c0   : > { %10620 = vmatmul.msk.f32.vlgmr.msra.gmra.mxu0 %vm546_vm0, %v3898_v15 }
 0x7c1   : > { %4512 = vmatpush.msra.mxu0 %v16513_v16  ;;  %v3330_v16 = vpop.xlane.xlu2 %3329 }
 0x7c8   : > { %10628 = vmatmul.msk.f32.vlgmr.msrb.gmra.mxu0 %vm546_vm0, %v3902_v7 }
 0x7c9   : > { %4604 = vmatpush.msrb.mxu0 %v12480_v10 }
 0x808   : > { %v3444_v28 = vpop.xlane.xlu1 %3443 }
 0x810   : > { %v3315_v27 = vpop.xlane.xlu1 %3314  ;;  %v13264_v4 = vpop.f32.mrf.mxu0 }
 0x811   : > { %v3357_v42 = vsub.f32 %v13156_v41, %v3315_v27  ;;  %v3432_v12 = vpop.xlane.xlu0 %3431  ;;  %v3362_v41 = vsub.f32 %v13152_v6, %v3330_v16 }
 0x812   : > { %11195 = vrcp.f32 %v3432_v12 }
 0x813   : > { %v3375_v47 = vmul.f32 1.442695, %v3357_v42  ;;  %v3385_v52 = vmul.f32 1.442695, %v3362_v41 }
 0x815   : > { %11197 = vpow2.f32 %v3375_v47 }
 0x816   : > { %11199 = vrcp.f32 %v3444_v28 }
 0x818   : > { %v11196_v37 = vpop.eup %11195  ;;  %v13276_v3 = vpop.f32.mrf.mxu0 }
 0x819   : > { %v3476_v45 = vmul.f32 %v11196_v37, %v13198_v24  ;;  %v3318_v20 = vpop.xlane.xlu0 %3317  ;;  %v3342_v1 = vpop.xlane.xlu1 %3341 }
 0x81a   : > { %v3358_v10 = vsub.f32 %v13159_v18, %v3318_v20  ;;  %v3333_v18 = vpop.xlane.xlu2 %3332  ;;  %v3366_v29 = vsub.f32 %v13165_v35, %v3342_v1  ;;  %v3889_v35 = vsel %vm13224_vm11, %v12230_v9, 0.0 }
 0x81b   : > { %v13268_v46 = vpop.eup %11197  ;;  %10592 = vmatmul.msk.f32.vlgmr.msra.gmra.mxu3 %vm1344_vm5, %v3476_v45  ;;  %v3363_v13 = vsub.f32 %v13162_v53, %v3333_v18  ;;  %v3897_v18 = vsel %vm13224_vm11, %v16519_v22, 0.0 }
 0x81c   : > { %v3377_v51 = vmul.f32 1.442695, %v3358_v10  ;;  %10601 = vmatpush.xpose.msk.msra.mxu3 %vm546_vm0, %v12295_v36  ;;  %v3409_v21 = vsel %vm1344_vm5, %v13268_v46, 0.0  ;;  %v11200_v24 = vpop.eup %11199  ;;  %v3393_v53 = vmul.f32 1.442695, %v3366_v29 }
 0x81d   : > { %3410 = vadd.xlane.f32.xlu0 %v3409_v21  ;;  %v3480_v2 = vmul.f32 %v11200_v24, %v13190_v54 }
 0x81e   : > { %11201 = vpow2.f32 %v3377_v51 }
 0x81f   : > { %11203 = vpow2.f32 %v3385_v52 }
 0x821   : > { %v3321_v43 = vpop.xlane.xlu0 %3320 }
 0x822   : > { %v3359_v6 = vsub.f32 %v13146_v55, %v3321_v43  ;;  %v3387_v55 = vmul.f32 1.442695, %v3363_v13  ;;  %v3901_v13 = vsel %vm13224_vm11, %v12377_v61, 0.0 }
 0x823   : > { %10596 = vmatmul.msk.f32.vlgmr.msrb.gmra.mxu3 %vm1344_vm5, %v3480_v2  ;;  %v16546_v2 = vld [vmem:[#allocation49_spill] sm:$0xff] }
 0x824   : > { %v13282_v36 = vpop.eup %11201  ;;  %v3379_v15 = vmul.f32 1.442695, %v3359_v6  ;;  %10609 = vmatpush.xpose.msk.msrb.mxu3 %vm546_vm0, %v12363_v56 }
 0x825   : > { %v13287_v7 = vpop.f32.mrf.mxu0  ;;  %v3412_v54 = vsel %vm1344_vm5, %v13282_v36, 0.0  ;;  %v13291_v27 = vpop.eup %11203 }
 0x826   : > { %11205 = vpow2.f32 %v3379_v15  ;;  %3413 = vadd.xlane.f32.xlu1 %v3412_v54  ;;  %v3424_v47 = vsel %vm1344_vm5, %v13291_v27, 0.0  ;;  %v13358_v54 = vpop.f32.mrf.mxu3 }
 0x827   : > { %11207 = vpow2.f32 %v3387_v55 }
 0x828   : > { %11209 = vpow2.f32 %v3393_v53 }
 0x829   : > { %v3354_v28 = vpop.xlane.xlu0 %3353 }
 0x82a   : > { %v3370_v42 = vsub.f32 %v13237_v58, %v3354_v28 }
 0x82b   : > { %10602 = vmatmul.msk.f32.vlgmr.msra.gmra.mxu3 %vm546_vm0, %v3889_v35 }
 0x82c   : > { %v13297_v56 = vpop.eup %11205  ;;  %10617 = vmatpush.xpose.msk.msra.mxu3 %vm546_vm0, %v12426_v23  ;;  %v3401_v37 = vmul.f32 1.442695, %v3370_v42  ;;  %v3893_v23 = vsel %vm13224_vm11, %v12264_v25, 0.0 }
 0x82d   : > { %v13302_v12 = vpop.f32.mrf.mxu0  ;;  %v3415_v16 = vsel %vm1344_vm5, %v13297_v56, 0.0  ;;  %v13310_v45 = vpop.eup %11207 }
 0x82e   : > { %3425 = vadd.xlane.f32.xlu1 %v3424_v47  ;;  %3416 = vadd.xlane.f32.xlu0 %v3415_v16  ;;  %v4278_v9 = vsel %vm1344_vm5, %v13302_v12, -inf  ;;  %v13312_v20 = vpop.eup %11209  ;;  %v3427_v41 = vsel %vm1344_vm5, %v13310_v45, 0.0 }
 0x82f   : > { %4279 = vmax.xlane.f32.xlu2 %v4278_v9  ;;  %v3436_v51 = vsel %vm1344_vm5, %v13312_v20, 0.0 }
 0x831   : > { %v3405_v58 = vpop.xlane.xlu0 %3404 }
 0x832   : > { %11211 = vrcp.f32 %v3405_v58 }
 0x833   : > { %10610 = vmatmul.msk.f32.vlgmr.msrb.gmra.mxu3 %vm546_vm0, %v3893_v23  ;;  %11213 = vpow2.f32 %v3401_v37  ;;  %v13360_v55 = vpop.f32.mrf.mxu3 }
 0x834   : > { %10625 = vmatpush.xpose.msk.msrb.mxu3 %vm546_vm0, %v12464_v60  ;;  %v3345_v60 = vpop.xlane.xlu1 %3344 }
 0x835   : > { %v13320_v10 = vpop.f32.mrf.mxu0  ;;  %v3367_v1 = vsub.f32 %v13212_v57, %v3345_v60 }
 0x836   : > { %3428 = vadd.xlane.f32.xlu0 %v3427_v41  ;;  %3437 = vadd.xlane.f32.xlu1 %v3436_v51  ;;  %v4290_v21 = vsel %vm1344_vm5, %v13320_v10, -inf }
 0x837   : > { %4291 = vmax.xlane.f32.xlu2 %v4290_v21  ;;  %v3395_v22 = vmul.f32 1.442695, %v3367_v1 }
 0x838   : > { %v11212_v25 = vpop.eup %11211 }
 0x839   : > { %v3467_v24 = vmul.f32 %v11212_v25, %v13247_v48  ;;  %v13329_v52 = vpop.eup %11213  ;;  %11215 = vpow2.f32 %v3395_v22 }
 0x83a   : > { %v3448_v48 = vsel %vm1344_vm5, %v13329_v52, 0.0 }
 0x83b   : > { %10583 = vmatmul.msk.f32.vlgmr.msrb.gmra.mxu2 %vm1344_vm5, %v3467_v24  ;;  %10618 = vmatmul.msk.f32.vlgmr.msra.gmra.mxu3 %vm546_vm0, %v3897_v18 }
 0x83c   : > { %3593 = vmatpush.msrb.mxu2 %v16546_v2  ;;  %4489 = vmatpush.msra.mxu3 %v16520_v26 }
 0x83d   : > { %v13339_v43 = vpop.f32.mrf.mxu0 }
 0x83e   : > { %3449 = vadd.xlane.f32.xlu1 %v3448_v48  ;;  %v4302_v6 = vsel %vm1344_vm5, %v13339_v43, -inf }
 0x83f   : > { %4303 = vmax.xlane.f32.xlu2 %v4302_v6  ;;  %v13354_v29 = vpop.eup %11215 }
 0x840   : > { %v3439_v15 = vsel %vm1344_vm5, %v13354_v29, 0.0 }
 0x843   : > { %10626 = vmatmul.msk.f32.vlgmr.msrb.gmra.mxu3 %vm546_vm0, %v3901_v13 }
 0x844   : > { %4581 = vmatpush.msrb.mxu3 %v16524_v11 }
 0x845   : > { %v13350_v26 = vpop.f32.mrf.mxu0 }
 0x846   : > { %v4314_v57 = vsel %vm1344_vm5, %v13350_v26, -inf }
 0x847   : > { %4315 = vmax.xlane.f32.xlu2 %v4314_v57 }
 0x84f   : > { %3440 = vadd.xlane.f32.xlu2 %v3439_v15 }
 0x890   : > { %v3411_v61 = vpop.xlane.xlu0 %3410 }
 0x891   : > { %11217 = vrcp.f32 %v3411_v61 }
 0x897   : > { %v11218_v11 = vpop.eup %11217 }
 0x898   : > { %v3469_v53 = vmul.f32 %v11218_v11, %v13268_v46 }
 0x899   : > { %v3414_v28 = vpop.xlane.xlu1 %3413 }
 0x89a   : > { %10585 = vmatmul.msk.f32.vlgmr.msra.gmra.mxu2 %vm1344_vm5, %v3469_v53  ;;  %11219 = vrcp.f32 %v3414_v28 }
 0x89b   : > { %3685 = vmatpush.msra.mxu2 %v12661_v62 }
 0x89e   : > { %v13365_v35 = vpop.f32.mrf.mxu3 }
 0x8a0   : > { %v11220_v42 = vpop.eup %11219 }
 0x8a1   : > { %v3470_v47 = vmul.f32 %v11220_v42, %v13282_v36  ;;  %v3417_v16 = vpop.xlane.xlu0 %3416  ;;  %v3426_v9 = vpop.xlane.xlu1 %3425 }
 0x8a2   : > { %11221 = vrcp.f32 %v3417_v16  ;;  %v4280_v37 = vpop.xlane.xlu2 %4279 }
 0x8a3   : > { %11223 = vrcp.f32 %v3426_v9  ;;  %v4322_v58 = vsub.f32 %v13302_v12, %v4280_v37  ;;  %10586 = vmatmul.msk.f32.vlgmr.msra.gmra.mxu1 %vm1344_vm5, %v3470_v47 }
 0x8a4   : > { %3754 = vmatpush.msra.mxu1 %v12720_v14 }
 0x8a5   : > { %v4340_v46 = vmul.f32 1.442695, %v4322_v58 }
 0x8a6   : > { %v13371_v23 = vpop.f32.mrf.mxu3 }
 0x8a7   : > { %11225 = vpow2.f32 %v4340_v46 }
 0x8a8   : > { %v11222_v41 = vpop.eup %11221 }
 0x8a9   : > { %v11224_v51 = vpop.eup %11223  ;;  %v3471_v21 = vmul.f32 %v11222_v41, %v13297_v56  ;;  %v3429_v36 = vpop.xlane.xlu0 %3428 }
 0x8aa   : > { %v3438_v25 = vpop.xlane.xlu1 %3437  ;;  %v3474_v24 = vmul.f32 %v11224_v51, %v13291_v27  ;;  %11227 = vrcp.f32 %v3429_v36  ;;  %v4292_v60 = vpop.xlane.xlu2 %4291  ;;  %v3899_v36 = vsel %vm13224_vm11, %v16518_v8, 0.0 }
 0x8ab   : > { %11229 = vrcp.f32 %v3438_v25  ;;  %v4326_v12 = vsub.f32 %v13320_v10, %v4292_v60  ;;  %10587 = vmatmul.msk.f32.vlgmr.msrb.gmra.mxu2 %vm1344_vm5, %v3471_v21  ;;  %v16548_v25 = vld [vmem:[#allocation42_spill] sm:$0xff]  ;;  %v16552_v60 = vld [vmem:[#allocation44_spill] sm:$0xff] }
 0x8ac   : > { %10590 = vmatmul.msk.f32.vlgmr.msrb.gmra.mxu1 %vm1344_vm5, %v3474_v24  ;;  %3777 = vmatpush.msrb.mxu2 %v12709_v63  ;;  %v16550_v24 = vld [vmem:[#allocation32_spill] sm:$0xff] }
 0x8ad   : > { %v13379_v18 = vpop.eup %11225  ;;  %v4348_v1 = vmul.f32 1.442695, %v4326_v12  ;;  %3846 = vmatpush.msrb.mxu1 %v12734_v33  ;;  %v3892_v8 = vsel %vm13224_vm11, %v16550_v24, 0.0  ;;  %v16553_v12 = vld [vmem:[#allocation35_spill] sm:$0xff] }
 0x8ae   : > { %v13382_v56 = vpop.f32.mrf.mxu3  ;;  %v4374_v27 = vsel %vm1344_vm5, %v13379_v18, 0.0 }
 0x8af   : > { %11231 = vpow2.f32 %v4348_v1  ;;  %4375 = vadd.xlane.f32.xlu0 %v4374_v27  ;;  %v4275_v10 = vsel %vm1344_vm5, %v13382_v56, -inf  ;;  %v3896_v1 = vsel %vm13224_vm11, %v16553_v12, 0.0  ;;  %v16554_v27 = vld [vmem:[#allocation48_spill] sm:$0xff] }
 0x8b0   : > { %v11228_v48 = vpop.eup %11227  ;;  %4276 = vmax.xlane.f32.xlu2 %v4275_v10  ;;  %v16555_v10 = vld [vmem:[#allocation39_spill] sm:$0xff] }
 0x8b1   : > { %v11230_v6 = vpop.eup %11229  ;;  %v3475_v22 = vmul.f32 %v11228_v48, %v13310_v45  ;;  %v3900_v48 = vsel %vm13224_vm11, %v16555_v10, 0.0 }
 0x8b2   : > { %v3450_v13 = vpop.xlane.xlu1 %3449  ;;  %v3478_v57 = vmul.f32 %v11230_v6, %v13312_v20  ;;  %v4304_v15 = vpop.xlane.xlu2 %4303 }
 0x8b3   : > { %11233 = vrcp.f32 %v3450_v13  ;;  %v4330_v61 = vsub.f32 %v13339_v43, %v4304_v15  ;;  %10591 = vmatmul.msk.f32.vlgmr.msra.gmra.mxu2 %vm1344_vm5, %v3475_v22 }
 0x8b4   : > { %10594 = vmatmul.msk.f32.vlgmr.msra.gmra.mxu1 %vm1344_vm5, %v3478_v57  ;;  %10599 = vmatpush.xpose.msk.msra.mxu2 %vm546_vm0, %v12282_v34 }
 0x8b5   : > { %v13395_v11 = vpop.eup %11231  ;;  %v4356_v53 = vmul.f32 1.442695, %v4330_v61  ;;  %10605 = vmatpush.xpose.msk.msra.mxu1 %vm546_vm0, %v12303_v39 }
 0x8b6   : > { %v13399_v45 = vpop.f32.mrf.mxu3  ;;  %v4386_v20 = vsel %vm1344_vm5, %v13395_v11, 0.0 }
 0x8b7   : > { %11235 = vpow2.f32 %v4356_v53  ;;  %4387 = vadd.xlane.f32.xlu1 %v4386_v20  ;;  %v4287_v37 = vsel %vm1344_vm5, %v13399_v45, -inf }
 0x8b9   : > { %v11234_v43 = vpop.eup %11233 }
 0x8ba   : > { %v3482_v28 = vmul.f32 %v11234_v43, %v13329_v52  ;;  %v4316_v42 = vpop.xlane.xlu2 %4315 }
 0x8bb   : > { %v4334_v47 = vsub.f32 %v13350_v26, %v4316_v42  ;;  %v3891_v26 = vsel %vm13224_vm11, %v12246_v17, 0.0 }
 0x8bc   : > { %10598 = vmatmul.msk.f32.vlgmr.msrb.gmra.mxu1 %vm1344_vm5, %v3482_v28 }
 0x8bd   : > { %v13406_v34 = vpop.eup %11235  ;;  %v4364_v16 = vmul.f32 1.442695, %v4334_v47  ;;  %10613 = vmatpush.xpose.msk.msrb.mxu1 %vm546_vm0, %v12381_v0 }
 0x8be   : > { %v13410_v39 = vpop.f32.mrf.mxu3  ;;  %v4398_v9 = vsel %vm1344_vm5, %v13406_v34, 0.0  ;;  %v13481_v28 = vpop.f32.mrf.mxu2 }
 0x8bf   : > { %11237 = vpow2.f32 %v4364_v16  ;;  %4399 = vadd.xlane.f32.xlu0 %v4398_v9  ;;  %4288 = vmax.xlane.f32.xlu1 %v4287_v37  ;;  %v4299_v46 = vsel %vm1344_vm5, %v13410_v39, -inf }
 0x8c2   : > { %v3441_v52 = vpop.xlane.xlu2 %3440 }
 0x8c3   : > { %11239 = vrcp.f32 %v3441_v52 }
 0x8c4   : > { %10606 = vmatmul.msk.f32.vlgmr.msra.gmra.mxu1 %vm546_vm0, %v3891_v26 }
 0x8c5   : > { %v13420_v0 = vpop.eup %11237  ;;  %10621 = vmatpush.xpose.msk.msra.mxu1 %vm546_vm0, %v12462_v59  ;;  %v3895_v59 = vsel %vm13224_vm11, %v12278_v32, 0.0  ;;  %v16547_v32 = vld [vmem:[#allocation51_spill] sm:$0xff] }
 0x8c6   : > { %v13424_v58 = vpop.f32.mrf.mxu3  ;;  %v4410_v41 = vsel %vm1344_vm5, %v13420_v0, 0.0 }
 0x8c7   : > { %4300 = vmax.xlane.f32.xlu0 %v4299_v46  ;;  %v4311_v51 = vsel %vm1344_vm5, %v13424_v58, -inf  ;;  %4411 = vadd.xlane.f32.xlu2 %v4410_v41 }
 0x8c8   : > { %4312 = vmax.xlane.f32.xlu1 %v4311_v51 }
 0x8c9   : > { %v11240_v17 = vpop.eup %11239 }
 0x8ca   : > { %v3479_v21 = vmul.f32 %v11240_v17, %v13354_v29  ;;  %v3888_v29 = vsel %vm13224_vm11, %v12222_v5, 0.0  ;;  %v16551_v5 = vld [vmem:[#allocation54_spill] sm:$0xff] }
 0x8cc   : > { %10614 = vmatmul.msk.f32.vlgmr.msrb.gmra.mxu1 %vm546_vm0, %v3895_v59  ;;  %10595 = vmatmul.msk.f32.vlgmr.msrb.gmra.mxu2 %vm1344_vm5, %v3479_v21  ;;  %v13502_v59 = vld [vmem:[%s16291_s5 + $0x18] sm:$0xff] }
 0x8cd   : > { %10629 = vmatpush.xpose.msk.msrb.mxu1 %vm546_vm0, %v16521_v44  ;;  %10607 = vmatpush.xpose.msk.msrb.mxu2 %vm546_vm0, %v12343_v50  ;;  %v16549_v44 = vld [vmem:[#allocation41_spill] sm:$0xff] }
 0x8ce   : > { %v3903_v50 = vsel %vm13224_vm11, %v16549_v44, 0.0 }
 0x8d4   : > { %10622 = vmatmul.msk.f32.vlgmr.msra.gmra.mxu1 %vm546_vm0, %v3899_v36  ;;  %10600 = vmatmul.msk.f32.vlgmr.msra.gmra.mxu2 %vm546_vm0, %v3888_v29 }
 0x8d5   : > { %4535 = vmatpush.msra.mxu1 %v16547_v32  ;;  %10615 = vmatpush.xpose.msk.msra.mxu2 %vm546_vm0, %v16548_v25 }
 0x8dc   : > { %10630 = vmatmul.msk.f32.vlgmr.msrb.gmra.mxu1 %vm546_vm0, %v3903_v50  ;;  %10608 = vmatmul.msk.f32.vlgmr.msrb.gmra.mxu2 %vm546_vm0, %v3892_v8  ;;  %v13528_v50 = vld [vmem:[%s16291_s5] sm:$0xff] }
 0x8dd   : > { %4627 = vmatpush.msrb.mxu1 %v16551_v5  ;;  %10623 = vmatpush.xpose.msk.msrb.mxu2 %vm546_vm0, %v16552_v60 }
 0x8e4   : > { %10616 = vmatmul.msk.f32.vlgmr.msra.gmra.mxu2 %vm546_vm0, %v3896_v1 }
 0x8e5   : > { %4466 = vmatpush.msra.mxu2 %v16554_v27 }
 0x8ec   : > { %10624 = vmatmul.msk.f32.vlgmr.msrb.gmra.mxu2 %vm546_vm0, %v3900_v48 }
 0x8ed   : > { %4558 = vmatpush.msrb.mxu2 %v16546_v2  ;;  %v16556_v2 = vld [vmem:[#allocation52_spill] sm:$0xff] }
 0x91d   : > { %v13493_v26 = vpop.f32.mrf.mxu2 }
 0x920   : > { %v13474_v6 = vpop.f32.mrf.mxu1 }
 0x922   : > { %v4376_v22 = vpop.xlane.xlu0 %4375 }
 0x923   : > { %11241 = vrcp.f32 %v4376_v22  ;;  %v4277_v13 = vpop.xlane.xlu2 %4276  ;;  %v13553_v22 = vld [vmem:[%s16289_s3] ss:$0 sm:$0xff] }
 0x924   : > { %v4321_v57 = vsub.f32 %v13382_v56, %v4277_v13  ;;  %v16557_v13 = vld [vmem:[#allocation18_spill] sm:$0xff] }
 0x926   : > { %v4338_v15 = vmul.f32 1.442695, %v4321_v57  ;;  %v664_v57 = vadd.f32 %v13553_v22, %v16557_v13 }
 0x928   : > { %11243 = vpow2.f32 %v4338_v15 }
 0x929   : > { %v11242_v61 = vpop.eup %11241  ;;  %v13477_v53 = vpop.f32.mrf.mxu1 }
 0x92a   : > { %v4434_v20 = vmul.f32 %v11242_v61, %v13379_v18  ;;  %v4388_v43 = vpop.xlane.xlu1 %4387 }
 0x92b   : > { %11245 = vrcp.f32 %v4388_v43  ;;  %v16558_v43 = vld [vmem:[#allocation19_spill] sm:$0xff] }
 0x92c   : > { %10633 = vmatmul.msk.f32.vlgmr.msra.gmra.mxu0 %vm1344_vm5, %v4434_v20 }
 0x92d   : > { %4696 = vmatpush.msra.mxu0 %v16556_v2  ;;  %v670_v2 = vadd.f32 %v13553_v22, %v16558_v43 }
 0x92e   : > { %v13484_v42 = vpop.eup %11243  ;;  %v13514_v32 = vpop.f32.mrf.mxu2 }
 0x92f   : > { %v4371_v56 = vsel %vm1344_vm5, %v13484_v42, 0.0 }
 0x930   : > { %4372 = vadd.xlane.f32.xlu2 %v4371_v56 }
 0x931   : > { %v11246_v47 = vpop.eup %11245  ;;  %v13488_v16 = vpop.f32.mrf.mxu1 }
 0x932   : > { %v4438_v9 = vmul.f32 %v11246_v47, %v13395_v11  ;;  %v4400_v18 = vpop.xlane.xlu0 %4399  ;;  %v4289_v37 = vpop.xlane.xlu1 %4288 }
 0x933   : > { %11247 = vrcp.f32 %v4400_v18  ;;  %v4325_v52 = vsub.f32 %v13399_v45, %v4289_v37  ;;  %v16559_v37 = vld [vmem:[#allocation20_spill] sm:$0xff] }
 0x934   : > { %10637 = vmatmul.msk.f32.vlgmr.msrb.gmra.mxu0 %vm1344_vm5, %v4438_v9 }
 0x935   : > { %v4346_v46 = vmul.f32 1.442695, %v4325_v52  ;;  %4788 = vmatpush.msrb.mxu0 %v12718_v19  ;;  %v13510_v19 = vld [vmem:[%s16291_s5 + $0x10] sm:$0xff]  ;;  %v676_v52 = vadd.f32 %v13553_v22, %v16559_v37 }
 0x936   : > { %v13544_v10 = vpop.f32.mrf.mxu2 }
 0x937   : > { %11249 = vpow2.f32 %v4346_v46 }
 0x939   : > { %v11248_v41 = vpop.eup %11247  ;;  %v13496_v51 = vpop.f32.mrf.mxu1 }
 0x93a   : > { %v4442_v17 = vmul.f32 %v11248_v41, %v13406_v34  ;;  %v4301_v21 = vpop.xlane.xlu0 %4300  ;;  %v4412_v11 = vpop.xlane.xlu2 %4411 }
 0x93b   : > { %v4329_v45 = vsub.f32 %v13410_v39, %v4301_v21  ;;  %11251 = vrcp.f32 %v4412_v11  ;;  %v4313_v36 = vpop.xlane.xlu1 %4312  ;;  %v16560_v21 = vld [vmem:[#allocation21_spill] sm:$0xff] }
 0x93c   : > { %v4333_v29 = vsub.f32 %v13424_v58, %v4313_v36  ;;  %10641 = vmatmul.msk.f32.vlgmr.msra.gmra.mxu0 %vm1344_vm5, %v4442_v17  ;;  %v13522_v58 = vld [vmem:[%s16291_s5 + $0x8] sm:$0xff]  ;;  %v682_v11 = vadd.f32 %v13553_v22, %v16560_v21 }
 0x93d   : > { %v13512_v34 = vpop.eup %11249  ;;  %v4354_v25 = vmul.f32 1.442695, %v4329_v45  ;;  %5518 = vmatpush.msra.mxu0 %v13502_v59  ;;  %v16561_v45 = vld [vmem:[#allocation22_spill] sm:$0xff] }
 0x93e   : > { %v4362_v44 = vmul.f32 1.442695, %v4333_v29  ;;  %v4383_v39 = vsel %vm1344_vm5, %v13512_v34, 0.0  ;;  %v688_v36 = vadd.f32 %v13553_v22, %v16561_v45  ;;  %v16562_v29 = vld [vmem:[#allocation23_spill] sm:$0xff] }
 0x93f   : > { %11253 = vpow2.f32 %v4354_v25  ;;  %4384 = vadd.xlane.f32.xlu0 %v4383_v39  ;;  %5519 = vmatpush.msra.mxu0 %v13510_v19  ;;  %v694_v25 = vadd.f32 %v13553_v22, %v16562_v29 }
 0x940   : > { %11255 = vpow2.f32 %v4362_v44  ;;  %v16563_v44 = vld [vmem:[#allocation25_spill] sm:$0xff] }
 0x941   : > { %v11252_v24 = vpop.eup %11251  ;;  %v13530_v8 = vpop.f32.mrf.mxu1  ;;  %5520 = vmatpush.msra.mxu0 %v13522_v58  ;;  %v700_v39 = vadd.f32 %v13553_v22, %v16563_v44 }
 0x942   : > { %v4446_v5 = vmul.f32 %v11252_v24, %v13420_v0  ;;  %v4281_v27 = vsel %vm1344_vm5, %v13530_v8, -inf  ;;  %v16564_v24 = vld [vmem:[#allocation27_spill] sm:$0xff] }
 0x943   : > { %5521 = vmatpush.msra.mxu0 %v13528_v50 }
 0x944   : > { %10645 = vmatmul.msk.f32.vlgmr.msrb.gmra.mxu0 %vm1344_vm5, %v4446_v5  ;;  %v706_v5 = vadd.f32 %v13553_v22, %v16564_v24 }
 0x945   : > { %v13536_v60 = vpop.eup %11253 }
 0x946   : > { %v13538_v12 = vpop.eup %11255  ;;  %v4395_v1 = vsel %vm1344_vm5, %v13536_v60, 0.0 }
 0x947   : > { %4396 = vadd.xlane.f32.xlu1 %v4395_v1  ;;  %4282 = vmax.xlane.f32.xlu0 %v4281_v27  ;;  %v4407_v0 = vsel %vm1344_vm5, %v13538_v12, 0.0  ;;  %v16565_v1 = vld [vmem:[#allocation28_spill] sm:$0xff] }
 0x948   : > { %4408 = vadd.xlane.f32.xlu2 %v4407_v0  ;;  %v712_v27 = vadd.f32 %v13553_v22, %v16565_v1  ;;  %v16566_v0 = vld [vmem:[#allocation29_spill] sm:$0xff] }
 0x949   : > { %v13548_v48 = vpop.f32.mrf.mxu1  ;;  %v718_v13 = vadd.f32 %v13553_v22, %v16566_v0 }
 0x94a   : > { %v4293_v15 = vsel %vm1344_vm5, %v13548_v48, -inf }
 0x94c   : > { %10663 = vmatmul.msk.f32.vlgmr.msra.gmra.mxu0 %vm546_vm0, %v664_v57  ;;  %v16567_v57 = vld [vmem:[#allocation30_spill] sm:$0xff] }
 0x94f   : > { %v13560_v61 = vpop.f32.mrf.mxu2  ;;  %4294 = vmax.xlane.f32.xlu1 %v4293_v15  ;;  %v724_v15 = vadd.f32 %v13553_v22, %v16567_v57 }
 0x951   : > { %v13562_v20 = vpop.f32.mrf.mxu1 }
 0x952   : > { %v4305_v56 = vsel %vm1344_vm5, %v13562_v20, -inf }
 0x953   : > { %4306 = vmax.xlane.f32.xlu0 %v4305_v56 }
 0x954   : > { %10664 = vmatmul.msk.f32.gmra.mxu0 %vm546_vm0, %v670_v2 }
 0x957   : > { %v13569_v47 = vpop.f32.mrf.mxu2 }
 0x958   : > { %v4272_v9 = vsel %vm1344_vm5, %v13569_v47, -inf }
 0x959   : > { %v13573_v18 = vpop.f32.mrf.mxu1  ;;  %4273 = vmax.xlane.f32.xlu2 %v4272_v9 }
 0x95a   : > { %v4317_v46 = vsel %vm1344_vm5, %v13573_v18, -inf }
 0x95b   : > { %4318 = vmax.xlane.f32.xlu1 %v4317_v46 }
 0x95c   : > { %10665 = vmatmul.msk.f32.gmra.mxu0 %vm546_vm0, %v676_v52 }
 0x95f   : > { %v13580_v41 = vpop.f32.mrf.mxu2 }
 0x960   : > { %v4284_v17 = vsel %vm1344_vm5, %v13580_v41, -inf }
 0x961   : > { %4285 = vmax.xlane.f32.xlu2 %v4284_v17 }
 0x964   : > { %10666 = vmatmul.msk.f32.gmra.mxu0 %vm546_vm0, %v682_v11 }
 0x96c   : > { %10667 = vmatmul.msk.f32.gmra.mxu0 %vm546_vm0, %v688_v36 }
 0x974   : > { %10668 = vmatmul.msk.f32.gmra.mxu0 %vm546_vm0, %v694_v25 }
 0x97c   : > { %10669 = vmatmul.msk.f32.gmra.mxu0 %vm546_vm0, %v700_v39 }
 0x984   : > { %10670 = vmatmul.msk.f32.gmra.mxu0 %vm546_vm0, %v706_v5 }
 0x98c   : > { %10671 = vmatmul.msk.f32.gmra.mxu0 %vm546_vm0, %v712_v27 }
 0x994   : > { %10672 = vmatmul.msk.f32.gmra.mxu0 %vm546_vm0, %v718_v13 }
 0x99c   : > { %10673 = vmatmul.msk.f32.gmra.mxu0 %vm546_vm0, %v724_v15 }
 0x9a3   : > { %v4373_v43 = vpop.xlane.xlu2 %4372 }
 0x9a4   : > { %11257 = vrcp.f32 %v4373_v43 }
 0x9a9   : > { %v13608_v2 = vpop.f32.mrf.mxu0 }
 0x9aa   : > { %v11258_v56 = vpop.eup %11257 }
 0x9ab   : > { %v4433_v9 = vmul.f32 %v11258_v56, %v13484_v42  ;;  %v16570_v56 = vld [vmem:[#allocation31_spill] sm:$0xff] }
 0x9ad   : > { %10632 = vmatmul.msk.f32.vlgmr.msra.gmra.mxu3 %vm1344_vm5, %v4433_v9  ;;  %v730_v9 = vadd.f32 %v13553_v22, %v16570_v56 }
 0x9ae   : > { %4673 = vmatpush.msra.mxu3 %v12711_v38 }
 0x9b1   : > { %v13613_v37 = vpop.f32.mrf.mxu0 }
 0x9b2   : > { %v4385_v52 = vpop.xlane.xlu0 %4384 }
 0x9b3   : > { %11259 = vrcp.f32 %v4385_v52 }
 0x9b9   : > { %v11260_v46 = vpop.eup %11259  ;;  %v13615_v17 = vpop.f32.mrf.mxu0 }
 0x9ba   : > { %v4437_v21 = vmul.f32 %v11260_v46, %v13512_v34  ;;  %v4283_v11 = vpop.xlane.xlu0 %4282  ;;  %v4397_v45 = vpop.xlane.xlu1 %4396 }
 0x9bb   : > { %v4323_v36 = vsub.f32 %v13530_v8, %v4283_v11  ;;  %11261 = vrcp.f32 %v4397_v45  ;;  %v4409_v38 = vpop.xlane.xlu2 %4408  ;;  %v736_v11 = vadd.f32 %v13553_v22, %v13261_v30 }
 0x9bc   : > { %10636 = vmatmul.msk.f32.vlgmr.msrb.gmra.mxu3 %vm1344_vm5, %v4437_v21 }
 0x9bd   : > { %v4342_v42 = vmul.f32 1.442695, %v4323_v36  ;;  %4765 = vmatpush.msrb.mxu3 %v12730_v40  ;;  %v13666_v36 = vpop.f32.mrf.mxu2 }
 0x9bf   : > { %11263 = vpow2.f32 %v4342_v42  ;;  %v4296_v42 = vsel %vm1344_vm5, %v13666_v36, -inf }
 0x9c0   : > { %11265 = vrcp.f32 %v4409_v38 }
 0x9c1   : > { %v11262_v29 = vpop.eup %11261  ;;  %v13621_v25 = vpop.f32.mrf.mxu0 }
 0x9c2   : > { %v4441_v44 = vmul.f32 %v11262_v29, %v13536_v60  ;;  %v4295_v39 = vpop.xlane.xlu1 %4294  ;;  %v16572_v29 = vld [vmem:[#allocation24_spill] sm:$0xff] }
 0x9c3   : > { %v4327_v34 = vsub.f32 %v13548_v48, %v4295_v39 }
 0x9c4   : > { %10640 = vmatmul.msk.f32.vlgmr.msra.gmra.mxu3 %vm1344_vm5, %v4441_v44  ;;  %v742_v44 = vadd.f32 %v13553_v22, %v16572_v29 }
 0x9c5   : > { %v13626_v8 = vpop.eup %11263  ;;  %v4350_v24 = vmul.f32 1.442695, %v4327_v34  ;;  %10905 = vmatpush.msra.mxu3 %v13502_v59  ;;  %v13676_v30 = vpop.f32.mrf.mxu2 }
 0x9c6   : > { %v4307_v5 = vpop.xlane.xlu0 %4306  ;;  %v4377_v40 = vsel %vm1344_vm5, %v13626_v8, 0.0  ;;  %v11266_v1 = vpop.eup %11265  ;;  %v4308_v39 = vsel %vm1344_vm5, %v13676_v30, -inf }
 0x9c7   : > { %11267 = vpow2.f32 %v4350_v24  ;;  %v4331_v27 = vsub.f32 %v13562_v20, %v4307_v5  ;;  %4378 = vadd.xlane.f32.xlu0 %v4377_v40  ;;  %10906 = vmatpush.msra.mxu3 %v13510_v19  ;;  %v4445_v0 = vmul.f32 %v11266_v1, %v13538_v12  ;;  %v16573_v24 = vld [vmem:[#allocation26_spill] sm:$0xff]  ;;  %v16574_v1 = vld [vmem:[#allocation43_spill] sm:$0xff] }
 0x9c8   : > { %v748_v5 = vadd.f32 %v13553_v22, %v16573_v24 }
 0x9c9   : > { %v4358_v60 = vmul.f32 1.442695, %v4331_v27  ;;  %v13633_v48 = vpop.f32.mrf.mxu0  ;;  %10907 = vmatpush.msra.mxu3 %v13522_v58  ;;  %v754_v27 = vadd.f32 %v13553_v22, %v16574_v1 }
 0x9ca   : > { %16568 = vst [vmem:[#allocation49_spill] sm:$0xff] %v13633_v48 }
 0x9cb   : > { %11269 = vpow2.f32 %v4358_v60  ;;  %10908 = vmatpush.msra.mxu3 %v13528_v50 }
 0x9cc   : > { %v4274_v59 = vpop.xlane.xlu2 %4273  ;;  %10644 = vmatmul.msk.f32.vlgmr.msrb.gmra.mxu3 %vm1344_vm5, %v4445_v0 }
 0x9cd   : > { %v13639_v13 = vpop.eup %11267  ;;  %v4320_v20 = vsub.f32 %v13569_v47, %v4274_v59 }
 0x9ce   : > { %v4319_v57 = vpop.xlane.xlu1 %4318  ;;  %v4389_v19 = vsel %vm1344_vm5, %v13639_v13, 0.0 }
 0x9cf   : > { %v4336_v15 = vmul.f32 1.442695, %v4320_v20  ;;  %v4335_v43 = vsub.f32 %v13573_v18, %v4319_v57  ;;  %4390 = vadd.xlane.f32.xlu1 %v4389_v19 }
 0x9d1   : > { %v13645_v58 = vpop.eup %11269  ;;  %11271 = vpow2.f32 %v4336_v15  ;;  %v4366_v12 = vmul.f32 1.442695, %v4335_v43  ;;  %v13647_v50 = vpop.f32.mrf.mxu0 }
 0x9d2   : > { %16569 = vst [vmem:[#allocation51_spill] sm:$0xff] %v13647_v50  ;;  %v4401_v47 = vsel %vm1344_vm5, %v13645_v58, 0.0 }
 0x9d3   : > { %11273 = vpow2.f32 %v4366_v12  ;;  %4402 = vadd.xlane.f32.xlu0 %v4401_v47 }
 0x9d4   : > { %10674 = vmatmul.msk.f32.vlgmr.msra.gmra.mxu3 %vm546_vm0, %v730_v9  ;;  %v4286_v0 = vpop.xlane.xlu2 %4285 }
 0x9d5   : > { %v4324_v59 = vsub.f32 %v13580_v41, %v4286_v0 }
 0x9d7   : > { %v13654_v52 = vpop.eup %11271  ;;  %v4344_v57 = vmul.f32 1.442695, %v4324_v59 }
 0x9d8   : > { %v4368_v18 = vsel %vm1344_vm5, %v13654_v52, 0.0 }
 0x9d9   : > { %v13658_v46 = vpop.eup %11273  ;;  %v13660_v21 = vpop.f32.mrf.mxu0  ;;  %4369 = vadd.xlane.f32.xlu2 %v4368_v18  ;;  %11275 = vpow2.f32 %v4344_v57 }
 0x9da   : > { %v4413_v45 = vsel %vm1344_vm5, %v13658_v46, 0.0 }
 0x9db   : > { %4414 = vadd.xlane.f32.xlu1 %v4413_v45 }
 0x9dc   : > { %10675 = vmatmul.msk.f32.gmra.mxu3 %vm546_vm0, %v736_v11 }
 0x9df   : > { %v13711_v19 = vpop.eup %11275 }
 0x9e0   : > { %v4380_v41 = vsel %vm1344_vm5, %v13711_v19, 0.0 }
 0x9e1   : > { %v13671_v38 = vpop.f32.mrf.mxu0  ;;  %4297 = vmax.xlane.f32.xlu2 %v4296_v42 }
 0x9e2   : > { %16571 = vst [vmem:[#allocation42_spill] sm:$0xff] %v13671_v38 }
 0x9e4   : > { %10676 = vmatmul.msk.f32.gmra.mxu3 %vm546_vm0, %v742_v44 }
 0x9e7   : > { %5588 = vrot.lane.b32.xlu0 %v13633_v48, %s11884_s12 }
 0x9e9   : > { %v13682_v34 = vpop.f32.mrf.mxu0  ;;  %4309 = vmax.xlane.f32.xlu2 %v4308_v39 }
 0x9ec   : > { %10677 = vmatmul.msk.f32.gmra.mxu3 %vm546_vm0, %v748_v5 }
 0x9f1   : > { %v13687_v40 = vpop.f32.mrf.mxu0 }
 0x9f4   : > { %5616 = vrot.lane.b32.xlu1 %v13647_v50, %s11884_s12  ;;  %10678 = vmatmul.msk.f32.gmra.mxu3 %vm546_vm0, %v754_v27 }
 0x9f9   : > { %v13694_v60 = vpop.f32.mrf.mxu0 }
 0x9fa   : > { %16575 = vst [vmem:[#allocation41_spill] sm:$0xff] %v13694_v60 }
 0x9fc   : > { %5700 = vrot.lane.b32.xlu1 %v13682_v34, %s11884_s12 }
 0xa01   : > { %v13699_v20 = vpop.f32.mrf.mxu0  ;;  %5644 = vrot.lane.b32.xlu2 %v13660_v21, %s11884_s12 }
 0xa02   : > { %16576 = vst [vmem:[#allocation32_spill] sm:$0xff] %v13699_v20 }
 0xa04   : > { %5756 = vrot.lane.b32.xlu1 %v13694_v60, %s11884_s12 }
 0xa09   : > { %v13705_v22 = vpop.f32.mrf.mxu0  ;;  %5672 = vrot.lane.b32.xlu2 %v13671_v38, %s11884_s12 }
 0xa0c   : > { %5784 = vrot.lane.b32.xlu1 %v13699_v20, %s11884_s12 }
 0xa11   : > { %4381 = vadd.xlane.f32.xlu0 %v4380_v41  ;;  %v13715_v15 = vpop.f32.mrf.mxu0  ;;  %5728 = vrot.lane.b32.xlu2 %v13687_v40, %s11884_s12 }
 0xa14   : > { %5812 = vrot.lane.b32.xlu1 %v13705_v22, %s11884_s12 }
 0xa19   : > { %v13721_v43 = vpop.f32.mrf.mxu0 }
 0xa1a   : > { %16577 = vst [vmem:[#allocation54_spill] sm:$0xff] %v13721_v43 }
 0xa1c   : > { %5868 = vrot.lane.b32.xlu1 %v13721_v43, %s11884_s12 }
 0xa25   : > { %5840 = vrot.lane.b32.xlu0 %v13715_v15, %s11884_s12 }
 0xa30   : > { %v13727_v12 = vpop.f32.mrf.mxu3 }
 0xa3a   : > { %v4379_v56 = vpop.xlane.xlu0 %4378 }
 0xa3b   : > { %11277 = vrcp.f32 %v4379_v56 }
 0xa3f   : > { %v13729_v9 = vpop.f32.mrf.mxu3 }
 0xa41   : > { %v11278_v47 = vpop.eup %11277 }
 0xa42   : > { %v4435_v18 = vmul.f32 %v11278_v47, %v13626_v8  ;;  %v4391_v11 = vpop.xlane.xlu1 %4390 }
 0xa43   : > { %11279 = vrcp.f32 %v4391_v11 }
 0xa44   : > { %10634 = vmatmul.msk.f32.vlgmr.msra.gmra.mxu1 %vm1344_vm5, %v4435_v18 }
 0xa45   : > { %4719 = vmatpush.msra.mxu1 %v12720_v14 }
 0xa46   : > { %v4403_v45 = vpop.xlane.xlu0 %4402 }
 0xa47   : > { %v13734_v42 = vpop.f32.mrf.mxu3  ;;  %11281 = vrcp.f32 %v4403_v45  ;;  %v5573_v45 = vsel %vm876_vm1, %v13660_v21, 0.0 }
 0xa49   : > { %v11280_v29 = vpop.eup %11279 }
 0xa4a   : > { %v4439_v44 = vmul.f32 %v11280_v29, %v13639_v13  ;;  %v5572_v29 = vsel %vm876_vm1, %v13647_v50, 0.0 }
 0xa4c   : > { %v4370_v39 = vpop.xlane.xlu2 %4369  ;;  %10638 = vmatmul.msk.f32.vlgmr.msrb.gmra.mxu1 %vm1344_vm5, %v4439_v44 }
 0xa4d   : > { %11283 = vrcp.f32 %v4370_v39  ;;  %4811 = vmatpush.msrb.mxu1 %v12734_v33  ;;  %v11282_v24 = vpop.eup %11281  ;;  %v6644_v39 = vsel %vm12323_vm4, %v13647_v50, 0.0 }
 0xa4e   : > { %v4415_v8 = vpop.xlane.xlu1 %4414  ;;  %v4443_v14 = vmul.f32 %v11282_v24, %v13645_v58 }
 0xa4f   : > { %v13739_v5 = vpop.f32.mrf.mxu3  ;;  %11285 = vrcp.f32 %v4415_v8 }
 0xa53   : > { %v11284_v1 = vpop.eup %11283 }
 0xa54   : > { %v4432_v27 = vmul.f32 %v11284_v1, %v13654_v52  ;;  %v4298_v0 = vpop.xlane.xlu2 %4297  ;;  %10642 = vmatmul.msk.f32.vlgmr.msra.gmra.mxu1 %vm1344_vm5, %v4443_v14  ;;  %v5574_v1 = vsel %vm876_vm1, %v13671_v38, 0.0 }
 0xa55   : > { %v4328_v13 = vsub.f32 %v13666_v36, %v4298_v0  ;;  %v11286_v59 = vpop.eup %11285  ;;  %v5571_v36 = vsel %vm876_vm1, %v13633_v48, 0.0 }
 0xa56   : > { %10631 = vmatmul.msk.f32.vlgmr.msra.gmra.mxu2 %vm1344_vm5, %v4432_v27  ;;  %v4447_v52 = vmul.f32 %v11286_v59, %v13658_v46  ;;  %v5575_v27 = vsel %vm876_vm1, %v13682_v34, 0.0 }
 0xa57   : > { %v4352_v57 = vmul.f32 1.442695, %v4328_v13  ;;  %4650 = vmatpush.msra.mxu2 %v12661_v62  ;;  %v13747_v33 = vpop.f32.mrf.mxu3 }
 0xa58   : > { %16578 = vst [vmem:[#allocation44_spill] sm:$0xff] %v13747_v33  ;;  %5896 = vrot.lane.b32.xlu0 %v13747_v33, %s11884_s12 }
 0xa59   : > { %11287 = vpow2.f32 %v4352_v57  ;;  %v13751_v58 = vpop.permute.xlu0 %5588 }
 0xa5a   : > { %16579 = vst [vmem:[#allocation35_spill] sm:$0xff] %v13751_v58  ;;  %10679 = vmatpush.xpose.msk.msrb.mxu0 %vm546_vm0, %v13751_v58 }
 0xa5c   : > { %v4310_v41 = vpop.xlane.xlu2 %4309  ;;  %10646 = vmatmul.msk.f32.vlgmr.msrb.gmra.mxu1 %vm1344_vm5, %v4447_v52  ;;  %v6648_v52 = vsel %vm12323_vm4, %v13687_v40, 0.0 }
 0xa5d   : > { %10680 = vmatmul.msk.f32.vlgmr.msrb.gmra.mxu0 %vm546_vm0, %v5571_v36  ;;  %v4332_v59 = vsub.f32 %v13676_v30, %v4310_v41  ;;  %v5576_v36 = vsel %vm876_vm1, %v13687_v40, 0.0  ;;  %v5577_v30 = vsel %vm876_vm1, %v13694_v60, 0.0 }
 0xa5f   : > { %v13761_v62 = vpop.eup %11287  ;;  %v13763_v56 = vpop.f32.mrf.mxu3  ;;  %v4360_v41 = vmul.f32 1.442695, %v4332_v59  ;;  %v5579_v59 = vsel %vm876_vm1, %v13705_v22, 0.0 }
 0xa60   : > { %16580 = vst [vmem:[#allocation48_spill] sm:$0xff] %v13763_v56  ;;  %5924 = vrot.lane.b32.xlu2 %v13763_v56, %s11884_s12  ;;  %v4392_v46 = vsel %vm1344_vm5, %v13761_v62, 0.0 }
 0xa61   : > { %4393 = vadd.xlane.f32.xlu1 %v4392_v46  ;;  %11289 = vpow2.f32 %v4360_v41  ;;  %v5581_v41 = vsel %vm876_vm1, %v13721_v43, 0.0 }
 0xa64   : > { %v13769_v47 = vpop.permute.xlu2 %5644 }
 0xa65   : > { %16581 = vst [vmem:[#allocation39_spill] sm:$0xff] %v13769_v47  ;;  %10683 = vmatpush.xpose.msk.msra.mxu0 %vm546_vm0, %v13769_v47 }
 0xa66   : > { %v13773_v18 = vpop.permute.xlu1 %5616 }
 0xa67   : > { %16582 = vst [vmem:[#allocation52_spill] sm:$0xff] %v13773_v18  ;;  %10681 = vmatpush.xpose.msk.msra.mxu1 %vm546_vm0, %v13773_v18  ;;  %10729 = vmatpush.xpose.msk.msrb.mxu3 %vm546_vm0, %v13773_v18  ;;  %v13779_v11 = vpop.f32.mrf.mxu3 }
 0xa68   : > { %16583 = vst [vmem:[#allocation18_spill] sm:$0xff] %v13779_v11  ;;  %10684 = vmatmul.msk.f32.vlgmr.msra.gmra.mxu0 %vm546_vm0, %v5573_v45  ;;  %5952 = vrot.lane.b32.xlu0 %v13779_v11, %s11884_s12  ;;  %v5578_v45 = vsel %vm876_vm1, %v13699_v20, 0.0  ;;  %v6656_v18 = vsel %vm12323_vm4, %v13779_v11, 0.0 }
 0xa6a   : > { %10682 = vmatmul.msk.f32.vlgmr.msra.gmra.mxu1 %vm546_vm0, %v5572_v29  ;;  %10730 = vmatmul.msk.f32.vlgmr.msrb.gmra.mxu3 %vm546_vm0, %v6644_v39  ;;  %v13850_v39 = vpop.eup %11289 }
 0xa6c   : > { %v13795_v8 = vpop.permute.xlu2 %5672 }
 0xa6d   : > { %16585 = vst [vmem:[#allocation19_spill] sm:$0xff] %v13795_v8  ;;  %10685 = vmatpush.xpose.msk.msrb.mxu1 %vm546_vm0, %v13795_v8 }
 0xa6e   : > { %v13799_v24 = vpop.permute.xlu1 %5700 }
 0xa6f   : > { %10687 = vmatpush.xpose.msk.msrb.mxu0 %vm546_vm0, %v13799_v24  ;;  %v13803_v14 = vpop.f32.mrf.mxu3 }
 0xa70   : > { %16586 = vst [vmem:[#allocation20_spill] sm:$0xff] %v13803_v14  ;;  %5980 = vrot.lane.b32.xlu0 %v13803_v14, %s11884_s12 }
 0xa72   : > { %10686 = vmatmul.msk.f32.vlgmr.msrb.gmra.mxu1 %vm546_vm0, %v5574_v1  ;;  %10688 = vmatmul.msk.f32.vlgmr.msrb.gmra.mxu0 %vm546_vm0, %v5575_v27  ;;  %v4404_v27 = vsel %vm1344_vm5, %v13850_v39, 0.0 }
 0xa74   : > { %v13815_v0 = vpop.permute.xlu2 %5728 }
 0xa75   : > { %16587 = vst [vmem:[#allocation21_spill] sm:$0xff] %v13815_v0  ;;  %10689 = vmatpush.xpose.msk.msra.mxu1 %vm546_vm0, %v13815_v0  ;;  %10737 = vmatpush.xpose.msk.msra.mxu3 %vm546_vm0, %v13815_v0 }
 0xa76   : > { %v13821_v13 = vpop.permute.xlu1 %5756 }
 0xa77   : > { %16588 = vst [vmem:[#allocation22_spill] sm:$0xff] %v13821_v13  ;;  %10691 = vmatpush.xpose.msk.msra.mxu0 %vm546_vm0, %v13821_v13  ;;  %v13826_v57 = vpop.f32.mrf.mxu3 }
 0xa78   : > { %16589 = vst [vmem:[#allocation23_spill] sm:$0xff] %v13826_v57  ;;  %6008 = vrot.lane.b32.xlu0 %v13826_v57, %s11884_s12  ;;  %10738 = vmatmul.msk.f32.vlgmr.msra.gmra.mxu3 %vm546_vm0, %v6648_v52  ;;  %s10295_s12 = sshll.u32 %s502_s27, 4  ;;  %s10296_s12 = int_to_ptr.vmem [resolvable:$true] %s10295_s12 }
 0xa7a   : > { %10690 = vmatmul.msk.f32.vlgmr.msra.gmra.mxu1 %vm546_vm0, %v5576_v36  ;;  %10692 = vmatmul.msk.f32.vlgmr.msra.gmra.mxu0 %vm546_vm0, %v5577_v30 }
 0xa7e   : > { %v13842_v46 = vpop.permute.xlu1 %5784 }
 0xa7f   : > { %16590 = vst [vmem:[#allocation25_spill] sm:$0xff] %v13842_v46  ;;  %10693 = vmatpush.xpose.msk.msrb.mxu1 %vm546_vm0, %v13842_v46 }
 0xa82   : > { %10694 = vmatmul.msk.f32.vlgmr.msrb.gmra.mxu1 %vm546_vm0, %v5578_v45 }
 0xa84   : > { %v4382_v29 = vpop.xlane.xlu0 %4381 }
 0xa85   : > { %11291 = vrcp.f32 %v4382_v29  ;;  %v11001_v29 = vpack.i.bf16 %v13647_v50, %v13633_v48  ;;  %v16604_v48 = vld [vmem:[#allocation36_spill] sm:$0xff] }
 0xa86   : > { %v13852_v1 = vpop.permute.xlu1 %5812 }
 0xa87   : > { %16591 = vst [vmem:[#allocation27_spill] sm:$0xff] %v13852_v1  ;;  %10695 = vmatpush.xpose.msk.msrb.mxu0 %vm546_vm0, %v13852_v1 }
 0xa89   : > { %4405 = vadd.xlane.f32.xlu2 %v4404_v27 }
 0xa8a   : > { %10696 = vmatmul.msk.f32.vlgmr.msrb.gmra.mxu0 %vm546_vm0, %v5579_v59  ;;  %v5583_v59 = vsel %vm876_vm1, %v13763_v56, 0.0 }
 0xa8b   : > { %v11292_v52 = vpop.eup %11291 }
 0xa8c   : > { %v4436_v36 = vmul.f32 %v11292_v52, %v13711_v19  ;;  %v6652_v19 = vsel %vm12323_vm4, %v13715_v15, 0.0 }
 0xa8e   : > { %10635 = vmatmul.msk.f32.vlgmr.msrb.gmra.mxu2 %vm1344_vm5, %v4436_v36  ;;  %v13864_v30 = vpop.permute.xlu1 %5868 }
 0xa8f   : > { %16592 = vst [vmem:[#allocation28_spill] sm:$0xff] %v13864_v30  ;;  %4742 = vmatpush.msrb.mxu2 %v12709_v63  ;;  %10699 = vmatpush.xpose.msk.msra.mxu0 %vm546_vm0, %v13864_v30  ;;  %v5580_v63 = vsel %vm876_vm1, %v13715_v15, 0.0 }
 0xa92   : > { %10700 = vmatmul.msk.f32.vlgmr.msra.gmra.mxu0 %vm546_vm0, %v5581_v41 }
 0xa97   : > { %v13873_v45 = vpop.permute.xlu0 %5840 }
 0xa98   : > { %16593 = vst [vmem:[#allocation29_spill] sm:$0xff] %v13873_v45  ;;  %10697 = vmatpush.xpose.msk.msra.mxu1 %vm546_vm0, %v13873_v45  ;;  %10745 = vmatpush.xpose.msk.msrb.mxu3 %vm546_vm0, %v13873_v45 }
 0xa9b   : > { %10698 = vmatmul.msk.f32.vlgmr.msra.gmra.mxu1 %vm546_vm0, %v5580_v63  ;;  %10746 = vmatmul.msk.f32.vlgmr.msrb.gmra.mxu3 %vm546_vm0, %v6652_v19  ;;  %v5582_v63 = vsel %vm876_vm1, %v13747_v33, 0.0 }
 0xaa1   : > { %11002 = vrot.lane.b32.xlu2 %v11001_v29, %s11885_s29 }
 0xaba   : > { %v13890_v27 = vpop.permute.xlu2 %5924 }
 0xabb   : > { %16594 = vst [vmem:[#allocation30_spill] sm:$0xff] %v13890_v27  ;;  %10703 = vmatpush.xpose.msk.msrb.mxu0 %vm546_vm0, %v13890_v27 }
 0xabe   : > { %10704 = vmatmul.msk.f32.vlgmr.msrb.gmra.mxu0 %vm546_vm0, %v5583_v59 }
 0xac1   : > { %v13898_v52 = vpop.f32.mrf.mxu1 }
 0xac9   : > { %v13902_v41 = vpop.f32.mrf.mxu1 }
 0xaca   : > { %v13900_v36 = vpop.permute.xlu0 %5896 }
 0xacb   : > { %16595 = vst [vmem:[#allocation31_spill] sm:$0xff] %v13900_v36  ;;  %10701 = vmatpush.xpose.msk.msrb.mxu1 %vm546_vm0, %v13900_v36 }
 0xace   : > { %10702 = vmatmul.msk.f32.vlgmr.msrb.gmra.mxu1 %vm546_vm0, %v5582_v63 }
 0xad1   : > { %v13910_v29 = vpop.f32.mrf.mxu1 }
 0xad4   : > { %v4394_v19 = vpop.xlane.xlu1 %4393 }
 0xad5   : > { %11293 = vrcp.f32 %v4394_v19  ;;  %v5584_v19 = vsel %vm876_vm1, %v13779_v11, 0.0 }
 0xad9   : > { %v13931_v30 = vpop.f32.mrf.mxu1  ;;  %v4468_v27 = vpop.f32.mrf.mxu2 }
 0xada   : > { %v13912_v59 = vpop.f32.mrf.mxu0  ;;  %v13914_v45 = vpop.permute.xlu0 %5952 }
 0xadb   : > { %16596 = vst [vmem:[#allocation24_spill] sm:$0xff] %v13914_v45  ;;  %v11294_v50 = vpop.eup %11293  ;;  %v6035_v0 = vsel %vm1344_vm5, %v13912_v59, -inf  ;;  %10705 = vmatpush.xpose.msk.msra.mxu1 %vm546_vm0, %v13914_v45  ;;  %10753 = vmatpush.xpose.msk.msra.mxu3 %vm546_vm0, %v13914_v45 }
 0xadc   : > { %v4440_v63 = vmul.f32 %v11294_v50, %v13761_v62  ;;  %6036 = vmax.xlane.f32.xlu1 %v6035_v0  ;;  %v4851_v50 = vld [vmem:[%s16292_s6 + $0x18] sm:$0xff]  ;;  %v4850_v0 = vld [vmem:[%s16292_s6 + $0x10] sm:$0xff] }
 0xade   : > { %10639 = vmatmul.msk.f32.vlgmr.msra.gmra.mxu2 %vm1344_vm5, %v4440_v63  ;;  %10706 = vmatmul.msk.f32.vlgmr.msra.gmra.mxu1 %vm546_vm0, %v5584_v19  ;;  %v4849_v63 = vld [vmem:[%s16292_s6 + $0x8] sm:$0xff]  ;;  %v5585_v19 = vsel %vm876_vm1, %v13803_v14, 0.0 }
 0xadf   : > { %10754 = vmatmul.msk.f32.vlgmr.msra.gmra.mxu3 %vm546_vm0, %v6656_v18  ;;  %4916 = vmatpush.msra.mxu2 %v4851_v50  ;;  %v4848_v50 = vld [vmem:[%s16292_s6] sm:$0xff] }
 0xae1   : > { %4917 = vmatpush.msra.mxu2 %v4850_v0 }
 0xae2   : > { %v13937_v62 = vpop.permute.xlu0 %5980 }
 0xae3   : > { %16597 = vst [vmem:[#allocation26_spill] sm:$0xff] %v13937_v62  ;;  %10707 = vmatpush.xpose.msk.msra.mxu0 %vm546_vm0, %v13937_v62  ;;  %4918 = vmatpush.msra.mxu2 %v4849_v63 }
 0xae5   : > { %v13947_v18 = vpop.f32.mrf.mxu0  ;;  %4919 = vmatpush.msra.mxu2 %v4848_v50 }
 0xae6   : > { %10708 = vmatmul.msk.f32.vlgmr.msra.gmra.mxu0 %vm546_vm0, %v5585_v19  ;;  %v6041_v45 = vsel %vm1344_vm5, %v13947_v18, -inf  ;;  %v5586_v19 = vsel %vm876_vm1, %v13826_v57, 0.0  ;;  %v16599_v57 = vld [vmem:[#allocation45_spill] sm:$0xff] }
 0xae7   : > { %v13958_v0 = vpop.f32.mrf.mxu1  ;;  %6042 = vmax.xlane.f32.xlu1 %v6041_v45  ;;  %v2886_v11 = vsel %vm12323_vm4, %v16599_v57, 0.0 }
 0xae8   : > { %v6038_v62 = vsel %vm1344_vm5, %v13958_v0, -inf }
 0xae9   : > { %6039 = vmax.xlane.f32.xlu0 %v6038_v62 }
 0xaea   : > { %v13962_v13 = vpop.permute.xlu0 %6008 }
 0xaeb   : > { %16598 = vst [vmem:[#allocation43_spill] sm:$0xff] %v13962_v13  ;;  %10709 = vmatpush.xpose.msk.msrb.mxu1 %vm546_vm0, %v13962_v13 }
 0xaee   : > { %10710 = vmatmul.msk.f32.vlgmr.msrb.gmra.mxu1 %vm546_vm0, %v5586_v19 }
 0xaef   : > { %v13970_v63 = vpop.f32.mrf.mxu1  ;;  %v13972_v36 = vpop.f32.mrf.mxu0 }
 0xaf0   : > { %v6044_v45 = vsel %vm1344_vm5, %v13970_v63, -inf  ;;  %v6047_v50 = vsel %vm1344_vm5, %v13972_v36, -inf }
 0xaf1   : > { %6045 = vmax.xlane.f32.xlu1 %v6044_v45 }
 0xaf7   : > { %v13976_v62 = vpop.f32.mrf.mxu0  ;;  %v13982_v47 = vpop.f32.mrf.mxu1 }
 0xaf8   : > { %v6053_v13 = vsel %vm1344_vm5, %v13976_v62, -inf  ;;  %v6050_v46 = vsel %vm1344_vm5, %v13982_v47, -inf }
 0xaf9   : > { %6048 = vmax.xlane.f32.xlu1 %v6047_v50  ;;  %6054 = vmax.xlane.f32.xlu2 %v6053_v13 }
 0xafc   : > { %v4406_v19 = vpop.xlane.xlu2 %4405 }
 0xafd   : > { %11295 = vrcp.f32 %v4406_v19  ;;  %v16601_v19 = vld [vmem:[#allocation55_spill] sm:$0xff] }
 0xaff   : > { %v13990_v56 = vpop.f32.mrf.mxu1 }
 0xb00   : > { %v6056_v57 = vsel %vm1344_vm5, %v13990_v56, -inf }
 0xb01   : > { %6051 = vmax.xlane.f32.xlu1 %v6050_v46  ;;  %v1937_v46 = vsel %vm876_vm1, %v16601_v19, 0.0 }
 0xb03   : > { %v11296_v8 = vpop.eup %11295 }
 0xb04   : > { %v4444_v45 = vmul.f32 %v11296_v8, %v13850_v39  ;;  %v11003_v14 = vpop.permute.xlu2 %11002  ;;  %v3851_v39 = vsel %vm13005_vm8, %v13481_v28, 0.0  ;;  %v4816_v28 = vsel %vm13224_vm11, %v4468_v27, 0.0  ;;  %v3852_v27 = vsel %vm13005_vm8, %v13358_v54, 0.0 }
 0xb05   : > { %v13992_v50 = vunpack.i.h.bf16 %v11003_v14  ;;  %v13994_v13 = vunpack.i.l.bf16 %v11003_v14  ;;  %v2902_v14 = vadd.f32 %v2886_v11, %v1937_v46  ;;  %v2887_v11 = vsel %vm12323_vm4, %v16604_v48, 0.0  ;;  %v16605_v46 = vld [vmem:[#allocation56_spill] sm:$0xff] }
 0xb06   : > { %10643 = vmatmul.msk.f32.vlgmr.msrb.gmra.mxu2 %vm1344_vm5, %v4444_v45  ;;  %v4817_v48 = vsel %vm13224_vm11, %v13727_v12, 0.0  ;;  %v3853_v12 = vsel %vm13005_vm8, %v13493_v26, 0.0 }
 0xb07   : > { %16600 = vst [vmem:[#allocation45_spill] sm:$0xff] %v13992_v50  ;;  %v14003_v1 = vpop.f32.mrf.mxu0  ;;  %10727 = vmatpush.xpose.msk.msrb.mxu2 %vm546_vm0, %v13751_v58  ;;  %6258 = vmatpush.msra.mxu1 %v13992_v50  ;;  %v3867_v19 = vadd.f32 %v3851_v39, %v2902_v14  ;;  %v11016_v39 = vpack.i.bf16 %v13699_v20, %v13694_v60 }
 0xb08   : > { %7244 = vmatpush.msrb.mxu3 %v13992_v50  ;;  %v6059_v45 = vsel %vm1344_vm5, %v14003_v1, -inf  ;;  %6232 = vmatpush.msrb.mxu0 %v13994_v13  ;;  %v1938_v50 = vsel %vm876_vm1, %v16605_v46, 0.0 }
 0xb09   : > { %6057 = vmax.xlane.f32.xlu1 %v6056_v57  ;;  %6060 = vmax.xlane.f32.xlu0 %v6059_v45  ;;  %v14016_v58 = vadd.f32 %v4816_v28, %v3867_v19  ;;  %v2903_v14 = vadd.f32 %v2887_v11, %v1938_v50  ;;  %v16607_v28 = vld [vmem:[#allocation47_spill] sm:$0xff]  ;;  %v16608_v19 = vld [vmem:[#allocation57_spill] sm:$0xff]  ;;  %v11021_v11 = vpack.i.bf16 %v13715_v15, %v13705_v22 }
 0xb0a   : > { %v2888_v54 = vsel %vm12323_vm4, %v16607_v28, 0.0  ;;  %v1939_v50 = vsel %vm876_vm1, %v16608_v19, 0.0  ;;  %v16611_v28 = vld [vmem:[#allocation58_spill] sm:$0xff] }
 0xb0b   : > { %16603 = vst [vmem:[#allocation55_spill] sm:$0xff] %v14016_v58  ;;  %v3868_v57 = vadd.f32 %v3852_v27, %v2903_v14  ;;  %v2904_v46 = vadd.f32 %v2888_v54, %v1939_v50  ;;  %v4818_v27 = vsel %vm13224_vm11, %v13608_v2, 0.0  ;;  %v11006_v14 = vpack.i.bf16 %v13671_v38, %v13660_v21 }
 0xb0c   : > { %v1940_v2 = vsel %vm876_vm1, %v16611_v28, 0.0  ;;  %v3854_v54 = vsel %vm13005_vm8, %v13474_v6, 0.0  ;;  %v11011_v50 = vpack.i.bf16 %v13687_v40, %v13682_v34  ;;  %v16614_v6 = vld [vmem:[#allocation59_spill] sm:$0xff] }
 0xb0d   : > { %v14037_v45 = vadd.f32 %v4817_v48, %v3868_v57  ;;  %v16610_v57 = vld [vmem:[#allocation50_spill] sm:$0xff] }
 0xb0e   : > { %10647 = vmatmul.msk.f32.vlgmr.msra.gmra.mxu2 %vm546_vm0, %v14016_v58  ;;  %v2889_v26 = vsel %vm12323_vm4, %v16610_v57, 0.0  ;;  %v1941_v57 = vsel %vm876_vm1, %v16614_v6, 0.0 }
 0xb0f   : > { %10735 = vmatpush.xpose.msk.msra.mxu2 %vm546_vm0, %v13799_v24  ;;  %16606 = vst [vmem:[#allocation71_spill] sm:$0xff] %v14037_v45  ;;  %v2905_v19 = vadd.f32 %v2889_v26, %v1940_v2 }
 0xb11   : > { %11017 = vrot.lane.b32.xlu2 %v11016_v39, %s11885_s29  ;;  %v3869_v39 = vadd.f32 %v3853_v12, %v2904_v46  ;;  %v4819_v12 = vsel %vm13224_vm11, %v13898_v52, 0.0  ;;  %v3855_v52 = vsel %vm13005_vm8, %v13514_v32, 0.0  ;;  %v3856_v32 = vsel %vm13005_vm8, %v13360_v55, 0.0 }
 0xb12   : > { %v3857_v55 = vsel %vm13005_vm8, %v13264_v4, 0.0  ;;  %v16623_v4 = vld [vmem:[#allocation62_spill] sm:$0xff] }
 0xb13   : > { %v14058_v48 = vadd.f32 %v4818_v27, %v3869_v39  ;;  %v16613_v27 = vld [vmem:[#allocation40_spill] sm:$0xff] }
 0xb14   : > { %v2890_v39 = vsel %vm12323_vm4, %v16613_v27, 0.0 }
 0xb15   : > { %16609 = vst [vmem:[#allocation36_spill] sm:$0xff] %v14058_v48  ;;  %v2906_v26 = vadd.f32 %v2890_v39, %v1941_v57  ;;  %v4821_v39 = vsel %vm13224_vm11, %v13729_v9, 0.0  ;;  %v16619_v57 = vld [vmem:[#allocation53_spill] sm:$0xff]  ;;  %v4822_v9 = vsel %vm13224_vm11, %v13613_v37, 0.0  ;;  %v3858_v37 = vsel %vm13005_vm8, %v13477_v53, 0.0 }
 0xb16   : > { %10648 = vmatmul.msk.f32.gmra.mxu2 %vm546_vm0, %v14037_v45 }
 0xb17   : > { %v3871_v2 = vadd.f32 %v3855_v52, %v2906_v26  ;;  %v2892_v52 = vsel %vm12323_vm4, %v16619_v57, 0.0  ;;  %v16620_v26 = vld [vmem:[#allocation61_spill] sm:$0xff]  ;;  %v4823_v57 = vsel %vm13224_vm11, %v13902_v41, 0.0 }
 0xb19   : > { %11022 = vrot.lane.b32.xlu2 %v11021_v11, %s11885_s29  ;;  %v3870_v11 = vadd.f32 %v3854_v54, %v2905_v19  ;;  %v16616_v19 = vld [vmem:[#allocation33_spill] sm:$0xff] }
 0xb1b   : > { %v14078_v46 = vadd.f32 %v4819_v12, %v3870_v11  ;;  %v16617_v12 = vld [vmem:[#allocation60_spill] sm:$0xff] }
 0xb1c   : > { %v1942_v11 = vsel %vm876_vm1, %v16617_v12, 0.0  ;;  %v16622_v12 = vld [vmem:[#allocation73_spill] sm:$0xff] }
 0xb1d   : > { %11007 = vrot.lane.b32.xlu0 %v11006_v14, %s11885_s29  ;;  %16612 = vst [vmem:[#allocation56_spill] sm:$0xff] %v14078_v46  ;;  %v4560_v14 = vpop.f32.mrf.mxu2 }
 0xb1e   : > { %10649 = vmatmul.msk.f32.gmra.mxu2 %vm546_vm0, %v14058_v48  ;;  %v4820_v28 = vsel %vm13224_vm11, %v4560_v14, 0.0 }
 0xb1f   : > { %v14093_v54 = vadd.f32 %v4820_v28, %v3871_v2  ;;  %v1943_v28 = vsel %vm876_vm1, %v16620_v26, 0.0 }
 0xb20   : > { %v2908_v2 = vadd.f32 %v2892_v52, %v1943_v28 }
 0xb21   : > { %16615 = vst [vmem:[#allocation47_spill] sm:$0xff] %v14093_v54 }
 0xb22   : > { %11012 = vrot.lane.b32.xlu1 %v11011_v50, %s11885_s29  ;;  %v2891_v50 = vsel %vm12323_vm4, %v16616_v19, 0.0  ;;  %v3873_v19 = vadd.f32 %v3857_v55, %v2908_v2 }
 0xb23   : > { %v2907_v27 = vadd.f32 %v2891_v50, %v1942_v11  ;;  %v2893_v11 = vsel %vm12323_vm4, %v16622_v12, 0.0 }
 0xb24   : > { %v14125_v50 = vadd.f32 %v4822_v9, %v3873_v19 }
 0xb25   : > { %v3872_v14 = vadd.f32 %v3856_v32, %v2907_v27  ;;  %v14130_v32 = vpop.f32.mrf.mxu0  ;;  %v14132_v27 = vpop.f32.mrf.mxu1 }
 0xb26   : > { %10650 = vmatmul.msk.f32.gmra.mxu2 %vm546_vm0, %v14078_v46  ;;  %16621 = vst [vmem:[#allocation50_spill] sm:$0xff] %v14125_v50  ;;  %v6062_v52 = vsel %vm1344_vm5, %v14132_v27, -inf  ;;  %v6065_v2 = vsel %vm1344_vm5, %v14130_v32, -inf }
 0xb27   : > { %v14109_v6 = vadd.f32 %v4821_v39, %v3872_v14  ;;  %v1944_v39 = vsel %vm876_vm1, %v16623_v4, 0.0 }
 0xb28   : > { %v2909_v14 = vadd.f32 %v2893_v11, %v1944_v39  ;;  %v16625_v39 = vld [vmem:[#allocation38_spill] sm:$0xff] }
 0xb29   : > { %16618 = vst [vmem:[#allocation57_spill] sm:$0xff] %v14109_v6 }
 0xb2a   : > { %v3874_v26 = vadd.f32 %v3858_v37, %v2909_v14  ;;  %v2894_v37 = vsel %vm12323_vm4, %v16625_v39, 0.0 }
 0xb2c   : > { %v14147_v28 = vadd.f32 %v4823_v57, %v3874_v26 }
 0xb2e   : > { %10651 = vmatmul.msk.f32.gmra.mxu2 %vm546_vm0, %v14093_v54  ;;  %16624 = vst [vmem:[#allocation58_spill] sm:$0xff] %v14147_v28 }
 0xb36   : > { %10652 = vmatmul.msk.f32.gmra.mxu2 %vm546_vm0, %v14109_v6 }
 0xb3b   : > { %v14149_v55 = vpop.f32.mrf.mxu0 }
 0xb3c   : > { %v6071_v53 = vsel %vm1344_vm5, %v14149_v55, -inf }
 0xb3e   : > { %10653 = vmatmul.msk.f32.gmra.mxu2 %vm546_vm0, %v14125_v50 }
 0xb42   : > { %6063 = vmax.xlane.f32.xlu2 %v6062_v52  ;;  %v16626_v52 = vld [vmem:[#allocation63_spill] sm:$0xff] }
 0xb43   : > { %v1945_v26 = vsel %vm876_vm1, %v16626_v52, 0.0 }
 0xb46   : > { %10654 = vmatmul.msk.f32.gmra.mxu2 %vm546_vm0, %v14147_v28 }
 0xb4a   : > { %6072 = vmax.xlane.f32.xlu2 %v6071_v53  ;;  %v3859_v53 = vsel %vm13005_vm8, %v13544_v10, 0.0 }
 0xb4b   : > { %v14157_v41 = vpop.f32.mrf.mxu1 }
 0xb4c   : > { %6066 = vmax.xlane.f32.xlu1 %v6065_v2  ;;  %v6068_v9 = vsel %vm1344_vm5, %v14157_v41, -inf }
 0xb4d   : > { %6069 = vmax.xlane.f32.xlu0 %v6068_v9 }
 0xb4f   : > { %v6037_v19 = vpop.xlane.xlu1 %6036 }
 0xb50   : > { %v6083_v39 = vsub.f32 %v13912_v59, %v6037_v19  ;;  %v16629_v59 = vld [vmem:[#allocation64_spill] sm:$0xff] }
 0xb51   : > { %v1946_v19 = vsel %vm876_vm1, %v16629_v59, 0.0 }
 0xb5a   : > { %v6043_v12 = vpop.xlane.xlu1 %6042 }
 0xb5b   : > { %v6085_v11 = vsub.f32 %v13947_v18, %v6043_v12  ;;  %v14162_v4 = vpop.f32.mrf.mxu1  ;;  %v2910_v18 = vadd.f32 %v2894_v37, %v1945_v26  ;;  %v3860_v26 = vsel %vm13005_vm8, %v13365_v35, 0.0  ;;  %v16631_v35 = vld [vmem:[#allocation75_spill] sm:$0xff] }
 0xb5c   : > { %v6074_v14 = vsel %vm1344_vm5, %v14162_v4, -inf  ;;  %v2896_v59 = vsel %vm12323_vm4, %v16631_v35, 0.0  ;;  %v16634_v35 = vld [vmem:[#allocation46_spill] sm:$0xff] }
 0xb5d   : > { %v6103_v57 = vmul.f32 1.442695, %v6085_v11  ;;  %6075 = vmax.xlane.f32.xlu0 %v6074_v14  ;;  %v3875_v2 = vadd.f32 %v3859_v53, %v2910_v18  ;;  %v16628_v14 = vld [vmem:[#allocation74_spill] sm:$0xff] }
 0xb5e   : > { %v2895_v52 = vsel %vm12323_vm4, %v16628_v14, 0.0 }
 0xb5f   : > { %11297 = vpow2.f32 %v6103_v57  ;;  %v2911_v18 = vadd.f32 %v2895_v52, %v1946_v19 }
 0xb61   : > { %v4652_v9 = vpop.f32.mrf.mxu2 }
 0xb62   : > { %v4824_v12 = vsel %vm13224_vm11, %v4652_v9, 0.0 }
 0xb63   : > { %v14178_v6 = vadd.f32 %v4824_v12, %v3875_v2  ;;  %v14180_v11 = vpop.f32.mrf.mxu0  ;;  %v6099_v2 = vmul.f32 1.442695, %v6083_v39  ;;  %v6040_v12 = vpop.xlane.xlu0 %6039 }
 0xb64   : > { %v6046_v28 = vpop.xlane.xlu1 %6045  ;;  %v6077_v10 = vsel %vm1344_vm5, %v14180_v11, -inf  ;;  %v6084_v39 = vsub.f32 %v13958_v0, %v6040_v12  ;;  %v4826_v0 = vsel %vm13224_vm11, %v13615_v17, 0.0 }
 0xb65   : > { %16627 = vst [vmem:[#allocation40_spill] sm:$0xff] %v14178_v6  ;;  %v14187_v37 = vpop.eup %11297  ;;  %v6086_v57 = vsub.f32 %v13970_v63, %v6046_v28  ;;  %6078 = vmax.xlane.f32.xlu2 %v6077_v10  ;;  %10655 = vmatmul.msk.f32.gmra.mxu2 %vm546_vm0, %v14178_v6  ;;  %v4825_v63 = vsel %vm13224_vm11, %v13734_v42, 0.0  ;;  %v3876_v28 = vadd.f32 %v3860_v26, %v2911_v18  ;;  %v16632_v42 = vld [vmem:[#allocation65_spill] sm:$0xff]  ;;  %v3861_v26 = vsel %vm13005_vm8, %v13276_v3, 0.0 }
 0xb66   : > { %v6137_v53 = vsel %vm1344_vm5, %v14187_v37, 0.0  ;;  %v1947_v19 = vsel %vm876_vm1, %v16632_v42, 0.0  ;;  %v2897_v3 = vsel %vm12323_vm4, %v16634_v35, 0.0 }
 0xb67   : > { %v6105_v9 = vmul.f32 1.442695, %v6086_v57  ;;  %6138 = vadd.xlane.f32.xlu0 %v6137_v53  ;;  %v14203_v14 = vadd.f32 %v4825_v63, %v3876_v28  ;;  %v2912_v18 = vadd.f32 %v2896_v59, %v1947_v19  ;;  %v3862_v19 = vsel %vm13005_vm8, %v13488_v16, 0.0 }
 0xb69   : > { %11299 = vpow2.f32 %v6105_v9  ;;  %16630 = vst [vmem:[#allocation59_spill] sm:$0xff] %v14203_v14  ;;  %v3877_v28 = vadd.f32 %v3861_v26, %v2912_v18 }
 0xb6a   : > { %11301 = vpow2.f32 %v6099_v2  ;;  %v6101_v2 = vmul.f32 1.442695, %v6084_v39  ;;  %v16635_v39 = vld [vmem:[#allocation66_spill] sm:$0xff] }
 0xb6b   : > { %v14205_v10 = vpop.f32.mrf.mxu1  ;;  %v14230_v12 = vadd.f32 %v4826_v0, %v3877_v28  ;;  %v1948_v42 = vsel %vm876_vm1, %v16635_v39, 0.0 }
 0xb6c   : > { %v6049_v52 = vpop.xlane.xlu1 %6048  ;;  %v6080_v57 = vsel %vm1344_vm5, %v14205_v10, -inf  ;;  %11303 = vpow2.f32 %v6101_v2  ;;  %v2913_v26 = vadd.f32 %v2897_v3, %v1948_v42  ;;  %v16637_v42 = vld [vmem:[#allocation76_spill] sm:$0xff] }
 0xb6d   : > { %6081 = vmax.xlane.f32.xlu1 %v6080_v57  ;;  %10656 = vmatmul.msk.f32.gmra.mxu2 %vm546_vm0, %v14203_v14  ;;  %16633 = vst [vmem:[#allocation33_spill] sm:$0xff] %v14230_v12  ;;  %v6087_v59 = vsub.f32 %v13972_v36, %v6049_v52  ;;  %v4827_v36 = vsel %vm13224_vm11, %v13910_v29, 0.0 }
 0xb6e   : > { %v3878_v18 = vadd.f32 %v3862_v19, %v2913_v26  ;;  %v16638_v26 = vld [vmem:[#allocation67_spill] sm:$0xff] }
 0xb6f   : > { %v14221_v53 = vpop.eup %11299  ;;  %v6107_v52 = vmul.f32 1.442695, %v6087_v59 }
 0xb70   : > { %v6140_v9 = vsel %vm1344_vm5, %v14221_v53, 0.0  ;;  %v14228_v63 = vpop.eup %11301  ;;  %v14251_v2 = vadd.f32 %v4827_v36, %v3878_v18  ;;  %v3863_v36 = vsel %vm13005_vm8, %v13560_v61, 0.0 }
 0xb71   : > { %6141 = vadd.xlane.f32.xlu0 %v6140_v9  ;;  %v6131_v17 = vsel %vm1344_vm5, %v14228_v63, 0.0  ;;  %v11026_v9 = vpack.i.bf16 %v13747_v33, %v13721_v43  ;;  %11305 = vpow2.f32 %v6107_v52 }
 0xb72   : > { %v14249_v0 = vpop.eup %11303  ;;  %16636 = vst [vmem:[#allocation60_spill] sm:$0xff] %v14251_v2 }
 0xb73   : > { %v6134_v16 = vsel %vm1344_vm5, %v14249_v0, 0.0 }
 0xb74   : > { %v6052_v57 = vpop.xlane.xlu1 %6051 }
 0xb75   : > { %10657 = vmatmul.msk.f32.gmra.mxu2 %vm546_vm0, %v14230_v12  ;;  %6132 = vadd.xlane.f32.xlu1 %v6131_v17  ;;  %v6088_v28 = vsub.f32 %v13982_v47, %v6052_v57  ;;  %v2898_v47 = vsel %vm12323_vm4, %v16637_v42, 0.0  ;;  %v16641_v42 = vld [vmem:[#allocation68_spill] sm:$0xff] }
 0xb77   : > { %v6109_v3 = vmul.f32 1.442695, %v6088_v28  ;;  %v14262_v39 = vpop.eup %11305 }
 0xb78   : > { %v6143_v19 = vsel %vm1344_vm5, %v14262_v39, 0.0 }
 0xb7c   : > { %v6058_v35 = vpop.xlane.xlu1 %6057  ;;  %v6061_v17 = vpop.xlane.xlu0 %6060 }
 0xb7d   : > { %11027 = vrot.lane.b32.xlu2 %v11026_v9, %s11885_s29  ;;  %10658 = vmatmul.msk.f32.gmra.mxu2 %vm546_vm0, %v14251_v2  ;;  %v6090_v29 = vsub.f32 %v13990_v56, %v6058_v35  ;;  %v6091_v57 = vsub.f32 %v14003_v1, %v6061_v17  ;;  %v1949_v56 = vsel %vm876_vm1, %v16638_v26, 0.0 }
 0xb7e   : > { %6135 = vadd.xlane.f32.xlu1 %v6134_v16  ;;  %v2914_v52 = vadd.f32 %v2898_v47, %v1949_v56  ;;  %v1950_v47 = vsel %vm876_vm1, %v16641_v42, 0.0  ;;  %v4829_v56 = vsel %vm13224_vm11, %v13739_v5, 0.0  ;;  %v16646_v42 = vld [vmem:[#allocation69_spill] sm:$0xff] }
 0xb7f   : > { %v6113_v59 = vmul.f32 1.442695, %v6090_v29  ;;  %v6115_v9 = vmul.f32 1.442695, %v6091_v57  ;;  %v3864_v57 = vsel %vm13005_vm8, %v13371_v23, 0.0 }
 0xb80   : > { %v3879_v28 = vadd.f32 %v3863_v36, %v2914_v52 }
 0xb81   : > { %11307 = vpow2.f32 %v6113_v59  ;;  %v16640_v59 = vld [vmem:[#allocation77_spill] sm:$0xff] }
 0xb82   : > { %11309 = vpow2.f32 %v6109_v3  ;;  %v2899_v61 = vsel %vm12323_vm4, %v16640_v59, 0.0 }
 0xb83   : > { %11311 = vpow2.f32 %v6115_v9 }
 0xb86   : > { %6144 = vadd.xlane.f32.xlu1 %v6143_v19  ;;  %v2915_v19 = vadd.f32 %v2899_v61, %v1950_v47  ;;  %v1951_v47 = vsel %vm876_vm1, %v16646_v42, 0.0 }
 0xb87   : > { %v14276_v18 = vpop.eup %11307 }
 0xb88   : > { %v6152_v1 = vsel %vm1344_vm5, %v14276_v18, 0.0  ;;  %v14280_v16 = vpop.eup %11309  ;;  %v3880_v9 = vadd.f32 %v3864_v57, %v2915_v19  ;;  %v3865_v57 = vsel %vm13005_vm8, %v13287_v7, 0.0  ;;  %v16650_v7 = vld [vmem:[#allocation70_spill] sm:$0xff] }
 0xb89   : > { %v4744_v35 = vpop.f32.mrf.mxu2  ;;  %6153 = vadd.xlane.f32.xlu0 %v6152_v1  ;;  %v6146_v17 = vsel %vm1344_vm5, %v14280_v16, 0.0  ;;  %v14306_v1 = vpop.eup %11311 }
 0xb8a   : > { %v4828_v29 = vsel %vm13224_vm11, %v4744_v35, 0.0  ;;  %v14310_v23 = vadd.f32 %v4829_v56, %v3880_v9  ;;  %v16645_v35 = vld [vmem:[#allocation72_spill] sm:$0xff] }
 0xb8b   : > { %v14284_v3 = vadd.f32 %v4828_v29, %v3879_v28  ;;  %v6055_v28 = vpop.xlane.xlu2 %6054  ;;  %v2900_v29 = vsel %vm12323_vm4, %v16645_v35, 0.0 }
 0xb8c   : > { %16644 = vst [vmem:[#allocation62_spill] sm:$0xff] %v14310_v23  ;;  %v6089_v5 = vsub.f32 %v13976_v62, %v6055_v28  ;;  %v2916_v19 = vadd.f32 %v2900_v29, %v1951_v47  ;;  %v4830_v62 = vsel %vm13224_vm11, %v13621_v25, 0.0  ;;  %v16648_v28 = vld [vmem:[#allocation78_spill] sm:$0xff]  ;;  %v1952_v29 = vsel %vm876_vm1, %v16650_v7, 0.0 }
 0xb8d   : > { %16639 = vst [vmem:[#allocation53_spill] sm:$0xff] %v14284_v3  ;;  %10659 = vmatmul.msk.f32.gmra.mxu2 %vm546_vm0, %v14284_v3  ;;  %v2901_v35 = vsel %vm12323_vm4, %v16648_v28, 0.0  ;;  %v3866_v25 = vsel %vm13005_vm8, %v13496_v51, 0.0  ;;  %v16653_v51 = vld [vmem:[#allocation49_spill] sm:$0xff] }
 0xb8e   : > { %6147 = vadd.xlane.f32.xlu1 %v6146_v17  ;;  %v6155_v17 = vsel %vm1344_vm5, %v14306_v1, 0.0  ;;  %v3881_v56 = vadd.f32 %v3865_v57, %v2916_v19 }
 0xb8f   : > { %v11008_v26 = vpop.permute.xlu0 %11007 }
 0xb90   : > { %v14302_v36 = vunpack.i.h.bf16 %v11008_v26  ;;  %v14304_v52 = vunpack.i.l.bf16 %v11008_v26  ;;  %v6111_v26 = vmul.f32 1.442695, %v6089_v5  ;;  %v14332_v9 = vadd.f32 %v4830_v62, %v3881_v56 }
 0xb91   : > { %v14337_v42 = vpop.f32.mrf.mxu2  ;;  %v2917_v5 = vadd.f32 %v2901_v35, %v1952_v29  ;;  %v16654_v35 = vld [vmem:[#allocation27_spill] sm:$0xff]  ;;  %v6647_v29 = vsel %vm12323_vm4, %v13682_v34, 0.0 }
 0xb92   : > { %16642 = vst [vmem:[#allocation61_spill] sm:$0xff] %v14302_v36  ;;  %6284 = vmatpush.msra.mxu0 %v14304_v52  ;;  %6310 = vmatpush.msrb.mxu1 %v14302_v36  ;;  %11313 = vpow2.f32 %v6111_v26 }
 0xb93   : > { %16643 = vst [vmem:[#allocation73_spill] sm:$0xff] %v14304_v52  ;;  %v3882_v47 = vadd.f32 %v3866_v25, %v2917_v5  ;;  %v14354_v62 = vpop.permute.xlu2 %11017 }
 0xb94   : > { %v11013_v59 = vpop.permute.xlu1 %11012  ;;  %16647 = vst [vmem:[#allocation38_spill] sm:$0xff] %v14332_v9 }
 0xb95   : > { %v14316_v61 = vunpack.i.h.bf16 %v11013_v59  ;;  %10660 = vmatmul.msk.f32.gmra.mxu2 %vm546_vm0, %v14310_v23  ;;  %16649 = vst [vmem:[#allocation63_spill] sm:$0xff] %v14337_v42 }
 0xb96   : > { %6156 = vadd.xlane.f32.xlu1 %v6155_v17  ;;  %v4831_v17 = vsel %vm13224_vm11, %v13931_v30, 0.0  ;;  %v6643_v30 = vsel %vm12323_vm4, %v16653_v51, 0.0 }
 0xb97   : > { %7336 = vmatpush.msra.mxu3 %v14316_v61  ;;  %v14352_v19 = vadd.f32 %v4831_v17, %v3882_v47  ;;  %v16656_v17 = vld [vmem:[#allocation30_spill] sm:$0xff] }
 0xb98   : > { %v14350_v57 = vpop.eup %11313 }
 0xb99   : > { %16651 = vst [vmem:[#allocation74_spill] sm:$0xff] %v14352_v19  ;;  %v6149_v26 = vsel %vm1344_vm5, %v14350_v57, 0.0  ;;  %v14360_v56 = vpop.f32.mrf.mxu2 }
 0xb9a   : > { %16652 = vst [vmem:[#allocation64_spill] sm:$0xff] %v14360_v56 }
 0xb9b   : > { %v14365_v28 = vpop.permute.xlu2 %11022 }
 0xb9d   : > { %10661 = vmatmul.msk.f32.gmra.mxu2 %vm546_vm0, %v14332_v9  ;;  %v16658_v9 = vld [vmem:[#allocation48_spill] sm:$0xff] }
 0xba1   : > { %v14370_v7 = vpop.f32.mrf.mxu2 }
 0xba2   : > { %16655 = vst [vmem:[#allocation75_spill] sm:$0xff] %v14370_v7 }
 0xba5   : > { %10662 = vmatmul.msk.f32.gmra.mxu2 %vm546_vm0, %v14352_v19  ;;  %v16659_v19 = vld [vmem:[#allocation18_spill] sm:$0xff] }
 0xba6   : > { %6150 = vadd.xlane.f32.xlu2 %v6149_v26  ;;  %v11031_v2 = vpack.i.bf16 %v16659_v19, %v16658_v9 }
 0xba9   : > { %v14379_v26 = vpop.f32.mrf.mxu2 }
 0xbaa   : > { %16657 = vst [vmem:[#allocation65_spill] sm:$0xff] %v14379_v26 }
 0xbad   : > { %10728 = vmatmul.msk.f32.vlgmr.msrb.gmra.mxu2 %vm546_vm0, %v6643_v30  ;;  %v6651_v30 = vsel %vm12323_vm4, %v13705_v22, 0.0 }
 0xbae   : > { %10743 = vmatpush.xpose.msk.msrb.mxu2 %vm546_vm0, %v16654_v35 }
 0xbb5   : > { %v6064_v25 = vpop.xlane.xlu2 %6063  ;;  %10736 = vmatmul.msk.f32.vlgmr.msra.gmra.mxu2 %vm546_vm0, %v6647_v29 }
 0xbb6   : > { %v6092_v5 = vsub.f32 %v14132_v27, %v6064_v25  ;;  %10751 = vmatpush.xpose.msk.msra.mxu2 %vm546_vm0, %v16656_v17 }
 0xbb8   : > { %v6117_v47 = vmul.f32 1.442695, %v6092_v5 }
 0xbba   : > { %11315 = vpow2.f32 %v6117_v47 }
 0xbbd   : > { %v6073_v23 = vpop.xlane.xlu2 %6072  ;;  %10744 = vmatmul.msk.f32.vlgmr.msrb.gmra.mxu2 %vm546_vm0, %v6651_v30 }
 0xbbe   : > { %v6095_v29 = vsub.f32 %v14149_v55, %v6073_v23  ;;  %7221 = vmatpush.msrb.mxu2 %v13994_v13  ;;  %11032 = vrot.lane.b32.xlu2 %v11031_v2, %s11885_s29  ;;  %v14396_v55 = vunpack.i.l.bf16 %v11013_v59  ;;  %v14398_v23 = vpop.f32.mrf.mxu2  ;;  %v6655_v2 = vsel %vm12323_vm4, %v16658_v9, 0.0 }
 0xbbf   : > { %v6067_v27 = vpop.xlane.xlu1 %6066  ;;  %16660 = vst [vmem:[#allocation46_spill] sm:$0xff] %v14398_v23 }
 0xbc0   : > { %v14390_v25 = vpop.eup %11315  ;;  %v6123_v5 = vmul.f32 1.442695, %v6095_v29  ;;  %v6093_v47 = vsub.f32 %v14130_v32, %v6067_v27  ;;  %v6070_v3 = vpop.xlane.xlu0 %6069  ;;  %v16661_v29 = vld [vmem:[#allocation23_spill] sm:$0xff] }
 0xbc1   : > { %v6158_v6 = vsel %vm1344_vm5, %v14390_v25, 0.0  ;;  %v6094_v30 = vsub.f32 %v14157_v41, %v6070_v3 }
 0xbc2   : > { %11317 = vpow2.f32 %v6123_v5  ;;  %v6119_v14 = vmul.f32 1.442695, %v6093_v47  ;;  %6159 = vadd.xlane.f32.xlu0 %v6158_v6 }
 0xbc3   : > { %v6121_v32 = vmul.f32 1.442695, %v6094_v30 }
 0xbc4   : > { %11319 = vpow2.f32 %v6119_v14 }
 0xbc5   : > { %10752 = vmatmul.msk.f32.vlgmr.msra.gmra.mxu2 %vm546_vm0, %v6655_v2  ;;  %11321 = vpow2.f32 %v6121_v32 }
 0xbc6   : > { %7313 = vmatpush.msra.mxu2 %v14396_v55  ;;  %6601 = vrot.lane.b32.xlu2 %v16661_v29, %s11885_s29  ;;  %v14415_v3 = vpop.f32.mrf.mxu2 }
 0xbc7   : > { %16662 = vst [vmem:[#allocation66_spill] sm:$0xff] %v14415_v3 }
 0xbc8   : > { %v14407_v27 = vpop.eup %11317 }
 0xbc9   : > { %v6167_v6 = vsel %vm1344_vm5, %v14407_v27, 0.0 }
 0xbca   : > { %v14411_v41 = vpop.eup %11319  ;;  %6168 = vadd.xlane.f32.xlu1 %v6167_v6 }
 0xbcb   : > { %v6161_v14 = vsel %vm1344_vm5, %v14411_v41, 0.0  ;;  %v14417_v59 = vpop.eup %11321 }
 0xbcc   : > { %6162 = vadd.xlane.f32.xlu0 %v6161_v14  ;;  %v6164_v2 = vsel %vm1344_vm5, %v14417_v59, 0.0 }
 0xbce   : > { %v14422_v50 = vpop.f32.mrf.mxu2 }
 0xbcf   : > { %16663 = vst [vmem:[#allocation76_spill] sm:$0xff] %v14422_v50 }
 0xbd0   : > { %v6076_v5 = vpop.xlane.xlu0 %6075 }
 0xbd1   : > { %v6096_v47 = vsub.f32 %v14162_v4, %v6076_v5 }
 0xbd3   : > { %v6125_v30 = vmul.f32 1.442695, %v6096_v47 }
 0xbd4   : > { %6165 = vadd.xlane.f32.xlu0 %v6164_v2 }
 0xbd5   : > { %11323 = vpow2.f32 %v6125_v30 }
 0xbd6   : > { %v14430_v47 = vpop.f32.mrf.mxu2 }
 0xbd7   : > { %16664 = vst [vmem:[#allocation67_spill] sm:$0xff] %v14430_v47 }
 0xbd8   : > { %v6079_v32 = vpop.xlane.xlu2 %6078 }
 0xbd9   : > { %v6097_v6 = vsub.f32 %v14180_v11, %v6079_v32 }
 0xbdb   : > { %v14425_v48 = vpop.eup %11323  ;;  %v6127_v14 = vmul.f32 1.442695, %v6097_v6 }
 0xbdc   : > { %v6170_v12 = vsel %vm1344_vm5, %v14425_v48, 0.0 }
 0xbdd   : > { %11325 = vpow2.f32 %v6127_v14  ;;  %6171 = vadd.xlane.f32.xlu0 %v6170_v12  ;;  %v14440_v12 = vpop.f32.mrf.mxu3  ;;  %v6139_v14 = vpop.xlane.xlu0 %6138 }
 0xbe0   : > { %v6082_v4 = vpop.xlane.xlu1 %6081 }
 0xbe1   : > { %v6098_v5 = vsub.f32 %v14205_v10, %v6082_v4  ;;  %v7030_v4 = vsel %vm1344_vm5, %v14440_v12, -inf }
 0xbe3   : > { %v14432_v2 = vpop.eup %11325  ;;  %v6129_v30 = vmul.f32 1.442695, %v6098_v5 }
 0xbe4   : > { %v6173_v46 = vsel %vm1344_vm5, %v14432_v2, 0.0 }
 0xbe5   : > { %11327 = vpow2.f32 %v6129_v30  ;;  %6174 = vadd.xlane.f32.xlu1 %v6173_v46  ;;  %v6142_v58 = vpop.xlane.xlu0 %6141 }
 0xbe8   : > { %v6133_v11 = vpop.xlane.xlu1 %6132  ;;  %v14436_v32 = vpop.f32.mrf.mxu2 }
 0xbe9   : > { %11329 = vrcp.f32 %v6133_v11  ;;  %16665 = vst [vmem:[#allocation77_spill] sm:$0xff] %v14436_v32  ;;  %v14453_v32 = vunpack.i.l.bf16 %v14354_v62 }
 0xbea   : > { %11331 = vrcp.f32 %v6139_v14 }
 0xbeb   : > { %v14438_v6 = vpop.eup %11327  ;;  %16667 = vst [vmem:[#allocation72_spill] sm:$0xff] %v14453_v32 }
 0xbec   : > { %v6176_v10 = vsel %vm1344_vm5, %v14438_v6, 0.0 }
 0xbed   : > { %6177 = vadd.xlane.f32.xlu0 %v6176_v10 }
 0xbef   : > { %v11330_v5 = vpop.eup %11329  ;;  %7031 = vmax.xlane.f32.xlu2 %v7030_v4 }
 0xbf0   : > { %v6195_v46 = vmul.f32 %v11330_v5, %v14228_v63  ;;  %v14449_v11 = vpop.f32.mrf.mxu2  ;;  %v11332_v54 = vpop.eup %11331 }
 0xbf1   : > { %v6136_v30 = vpop.xlane.xlu1 %6135  ;;  %16666 = vst [vmem:[#allocation68_spill] sm:$0xff] %v14449_v11  ;;  %v6197_v10 = vmul.f32 %v11332_v54, %v14187_v37 }
 0xbf2   : > { %11333 = vrcp.f32 %v6136_v30  ;;  %10711 = vmatmul.msk.f32.vlgmr.msrb.gmra.mxu0 %vm1344_vm5, %v6195_v46  ;;  %v14467_v46 = vunpack.i.h.bf16 %v14354_v62  ;;  %v14470_v30 = vunpack.i.l.bf16 %v14365_v28 }
 0xbf3   : > { %6336 = vmatpush.msrb.mxu0 %v14396_v55  ;;  %11335 = vrcp.f32 %v6142_v58  ;;  %v16669_v58 = vld [vmem:[#allocation20_spill] sm:$0xff] }
 0xbf4   : > { %16670 = vst [vmem:[#allocation78_spill] sm:$0xff] %v14467_v46 }
 0xbf8   : > { %v11334_v45 = vpop.eup %11333  ;;  %v14460_v5 = vpop.f32.mrf.mxu2 }
 0xbf9   : > { %v6196_v14 = vmul.f32 %v11334_v45, %v14249_v0  ;;  %v6145_v63 = vpop.xlane.xlu1 %6144  ;;  %v11336_v4 = vpop.eup %11335  ;;  %16668 = vst [vmem:[#allocation69_spill] sm:$0xff] %v14460_v5 }
 0xbfa   : > { %11337 = vrcp.f32 %v6145_v63  ;;  %10713 = vmatmul.msk.f32.vlgmr.msra.gmra.mxu0 %vm1344_vm5, %v6197_v10  ;;  %v6198_v37 = vmul.f32 %v11336_v4, %v14221_v53  ;;  %v11028_v4 = vpop.permute.xlu2 %11027 }
 0xbfb   : > { %10712 = vmatmul.msk.f32.vlgmr.msra.gmra.mxu1 %vm1344_vm5, %v6196_v14  ;;  %6388 = vmatpush.msra.mxu0 %v14453_v32  ;;  %v14480_v14 = vunpack.i.h.bf16 %v14365_v28 }
 0xbfc   : > { %6362 = vmatpush.msra.mxu1 %v14316_v61  ;;  %v6154_v10 = vpop.xlane.xlu0 %6153 }
 0xbfe   : > { %6575 = vrot.lane.b32.xlu1 %v16669_v58, %s11885_s29 }
 0xc00   : > { %v11338_v54 = vpop.eup %11337 }
 0xc01   : > { %v6199_v45 = vmul.f32 %v11338_v54, %v14262_v39  ;;  %v6148_v0 = vpop.xlane.xlu1 %6147  ;;  %v14476_v39 = vpop.f32.mrf.mxu2 }
 0xc02   : > { %11339 = vrcp.f32 %v6148_v0  ;;  %16671 = vst [vmem:[#allocation70_spill] sm:$0xff] %v14476_v39  ;;  %v14496_v39 = vunpack.i.l.bf16 %v11028_v4 }
 0xc03   : > { %10714 = vmatmul.msk.f32.vlgmr.msrb.gmra.mxu1 %vm1344_vm5, %v6198_v37  ;;  %10715 = vmatmul.msk.f32.vlgmr.msrb.gmra.mxu0 %vm1344_vm5, %v6199_v45  ;;  %11341 = vrcp.f32 %v6154_v10  ;;  %v14487_v45 = vunpack.i.h.bf16 %v11028_v4 }
 0xc04   : > { %6414 = vmatpush.msrb.mxu1 %v14467_v46  ;;  %6440 = vmatpush.msrb.mxu0 %v14470_v30 }
 0xc08   : > { %v11340_v53 = vpop.eup %11339 }
 0xc09   : > { %v6200_v62 = vmul.f32 %v11340_v53, %v14280_v16  ;;  %v11342_v63 = vpop.eup %11341  ;;  %v6157_v0 = vpop.xlane.xlu1 %6156 }
 0xc0a   : > { %v6202_v37 = vmul.f32 %v11342_v63, %v14276_v18 }
 0xc0b   : > { %10716 = vmatmul.msk.f32.vlgmr.msra.gmra.mxu1 %vm1344_vm5, %v6200_v62 }
 0xc0c   : > { %6466 = vmatpush.msra.mxu1 %v14480_v14 }
 0xc10   : > { %v14484_v54 = vpop.f32.mrf.mxu2 }
 0xc11   : > { %16672 = vst [vmem:[#allocation49_spill] sm:$0xff] %v14484_v54 }
 0xc13   : > { %10718 = vmatmul.msk.f32.vlgmr.msrb.gmra.mxu1 %vm1344_vm5, %v6202_v37 }
 0xc14   : > { %6518 = vmatpush.msrb.mxu1 %v14487_v45 }
 0xc18   : > { %v14491_v16 = vpop.f32.mrf.mxu2 }
 0xc19   : > { %16673 = vst [vmem:[#allocation27_spill] sm:$0xff] %v14491_v16  ;;  %v6151_v28 = vpop.xlane.xlu2 %6150 }
 0xc1a   : > { %11343 = vrcp.f32 %v6151_v28 }
 0xc1b   : > { %11345 = vrcp.f32 %v6157_v0 }
 0xc20   : > { %v11344_v10 = vpop.eup %11343  ;;  %v14493_v53 = vpop.f32.mrf.mxu2 }
 0xc21   : > { %16674 = vst [vmem:[#allocation30_spill] sm:$0xff] %v14493_v53  ;;  %v6201_v62 = vmul.f32 %v11344_v10, %v14350_v57  ;;  %v11346_v18 = vpop.eup %11345  ;;  %v11033_v63 = vpop.permute.xlu2 %11032 }
 0xc22   : > { %v6203_v54 = vmul.f32 %v11346_v18, %v14306_v1  ;;  %v14503_v28 = vunpack.i.l.bf16 %v11033_v63  ;;  %v14518_v53 = vunpack.i.h.bf16 %v11033_v63 }
 0xc23   : > { %10717 = vmatmul.msk.f32.vlgmr.msra.gmra.mxu0 %vm1344_vm5, %v6201_v62 }
 0xc24   : > { %6492 = vmatpush.msra.mxu0 %v14496_v39 }
 0xc28   : > { %v14500_v37 = vpop.f32.mrf.mxu2 }
 0xc29   : > { %16675 = vst [vmem:[#allocation48_spill] sm:$0xff] %v14500_v37 }
 0xc2b   : > { %10719 = vmatmul.msk.f32.vlgmr.msrb.gmra.mxu0 %vm1344_vm5, %v6203_v54  ;;  %v14516_v54 = vpop.f32.mrf.mxu3 }
 0xc2c   : > { %6544 = vmatpush.msrb.mxu0 %v14503_v28 }
 0xc30   : > { %v14507_v0 = vpop.f32.mrf.mxu2 }
 0xc31   : > { %v7027_v57 = vsel %vm1344_vm5, %v14507_v0, -inf }
 0xc32   : > { %7028 = vmax.xlane.f32.xlu0 %v7027_v57 }
 0xc33   : > { %v14528_v63 = vpop.f32.mrf.mxu3 }
 0xc34   : > { %v7054_v16 = vsel %vm1344_vm5, %v14528_v63, -inf }
 0xc35   : > { %v6160_v4 = vpop.xlane.xlu0 %6159 }
 0xc36   : > { %11347 = vrcp.f32 %v6160_v4  ;;  %v7042_v4 = vsel %vm1344_vm5, %v14516_v54, -inf }
 0xc38   : > { %v14511_v10 = vpop.f32.mrf.mxu2 }
 0xc39   : > { %v7039_v62 = vsel %vm1344_vm5, %v14511_v10, -inf }
 0xc3a   : > { %7040 = vmax.xlane.f32.xlu0 %v7039_v62 }
 0xc3c   : > { %v11348_v1 = vpop.eup %11347 }
 0xc3d   : > { %v6204_v18 = vmul.f32 %v11348_v1, %v14390_v25  ;;  %v6169_v25 = vpop.xlane.xlu1 %6168 }
 0xc3f   : > { %v6163_v37 = vpop.xlane.xlu0 %6162  ;;  %10720 = vmatmul.msk.f32.vlgmr.msra.gmra.mxu1 %vm1344_vm5, %v6204_v18 }
 0xc40   : > { %11349 = vrcp.f32 %v6163_v37  ;;  %6570 = vmatpush.msra.mxu1 %v14518_v53  ;;  %v14522_v57 = vpop.f32.mrf.mxu2 }
 0xc41   : > { %v7051_v62 = vsel %vm1344_vm5, %v14522_v57, -inf  ;;  %11351 = vrcp.f32 %v6169_v25  ;;  %v14538_v25 = vpop.permute.xlu2 %6601 }
 0xc42   : > { %7043 = vmax.xlane.f32.xlu0 %v7042_v4  ;;  %7052 = vmax.xlane.f32.xlu1 %v7051_v62 }
 0xc46   : > { %v11350_v1 = vpop.eup %11349 }
 0xc47   : > { %v6205_v18 = vmul.f32 %v11350_v1, %v14411_v41  ;;  %v6166_v37 = vpop.xlane.xlu0 %6165  ;;  %v11352_v11 = vpop.eup %11351 }
 0xc48   : > { %11353 = vrcp.f32 %v6166_v37  ;;  %v14534_v5 = vpop.f32.mrf.mxu2  ;;  %v6207_v4 = vmul.f32 %v11352_v11, %v14407_v27 }
 0xc49   : > { %10721 = vmatmul.msk.f32.vlgmr.msra.gmra.mxu0 %vm1344_vm5, %v6205_v18  ;;  %v7063_v41 = vsel %vm1344_vm5, %v14534_v5, -inf }
 0xc4a   : > { %7055 = vmax.xlane.f32.xlu0 %v7054_v16  ;;  %v14545_v16 = vpop.f32.mrf.mxu3 }
 0xc4e   : > { %v11354_v3 = vpop.eup %11353 }
 0xc4f   : > { %v6206_v62 = vmul.f32 %v11354_v3, %v14417_v59  ;;  %v7066_v3 = vsel %vm1344_vm5, %v14545_v16, -inf  ;;  %v16676_v59 = vld [vmem:[#allocation19_spill] sm:$0xff] }
 0xc50   : > { %v6172_v50 = vpop.xlane.xlu0 %6171 }
 0xc51   : > { %10722 = vmatmul.msk.f32.vlgmr.msrb.gmra.mxu1 %vm1344_vm5, %v6206_v62  ;;  %10723 = vmatmul.msk.f32.vlgmr.msrb.gmra.mxu0 %vm1344_vm5, %v6207_v4  ;;  %11355 = vrcp.f32 %v6172_v50  ;;  %v16677_v4 = vld [vmem:[#allocation25_spill] sm:$0xff] }
 0xc52   : > { %6622 = vmatpush.msrb.mxu1 %v14538_v25  ;;  %7064 = vmax.xlane.f32.xlu0 %v7063_v41 }
 0xc57   : > { %v11356_v1 = vpop.eup %11355 }
 0xc58   : > { %v6208_v27 = vmul.f32 %v11356_v1, %v14425_v48  ;;  %v6175_v11 = vpop.xlane.xlu1 %6174  ;;  %v6646_v1 = vsel %vm12323_vm4, %v13671_v38, 0.0 }
 0xc5a   : > { %10724 = vmatmul.msk.f32.vlgmr.msra.gmra.mxu1 %vm1344_vm5, %v6208_v27  ;;  %7067 = vmax.xlane.f32.xlu0 %v7066_v3  ;;  %v16679_v27 = vld [vmem:[#allocation31_spill] sm:$0xff]  ;;  %v16680_v3 = vld [vmem:[#allocation22_spill] sm:$0xff] }
 0xc5b   : > { %10733 = vmatpush.xpose.msk.msra.mxu1 %vm546_vm0, %v16676_v59 }
 0xc60   : > { %v6178_v50 = vpop.xlane.xlu0 %6177 }
 0xc61   : > { %11357 = vrcp.f32 %v6178_v50  ;;  %v6650_v50 = vsel %vm12323_vm4, %v13699_v20, 0.0 }
 0xc62   : > { %11359 = vrcp.f32 %v6175_v11  ;;  %v16681_v11 = vld [vmem:[#allocation28_spill] sm:$0xff] }
 0xc67   : > { %v11358_v18 = vpop.eup %11357 }
 0xc68   : > { %v6210_v37 = vmul.f32 %v11358_v18, %v14438_v6  ;;  %v11360_v48 = vpop.eup %11359  ;;  %v16678_v6 = vld [vmem:[#allocation39_spill] sm:$0xff] }
 0xc69   : > { %v6209_v62 = vmul.f32 %v11360_v48, %v14432_v2  ;;  %v6645_v2 = vsel %vm12323_vm4, %v13660_v21, 0.0  ;;  %v16682_v18 = vld [vmem:[#allocation43_spill] sm:$0xff]  ;;  %v6654_v48 = vsel %vm12323_vm4, %v13747_v33, 0.0 }
 0xc6a   : > { %10726 = vmatmul.msk.f32.vlgmr.msrb.gmra.mxu1 %vm1344_vm5, %v6210_v37  ;;  %v6649_v37 = vsel %vm12323_vm4, %v13694_v60, 0.0 }
 0xc6b   : > { %10741 = vmatpush.xpose.msk.msrb.mxu1 %vm546_vm0, %v16677_v4 }
 0xc70   : > { %v14558_v41 = vpop.permute.xlu1 %6575 }
 0xc71   : > { %6596 = vmatpush.msra.mxu0 %v14558_v41 }
 0xc72   : > { %10725 = vmatmul.msk.f32.vlgmr.msra.gmra.mxu0 %vm1344_vm5, %v6209_v62  ;;  %10734 = vmatmul.msk.f32.vlgmr.msra.gmra.mxu1 %vm546_vm0, %v6646_v1  ;;  %v16683_v62 = vld [vmem:[#allocation26_spill] sm:$0xff]  ;;  %v6653_v1 = vsel %vm12323_vm4, %v13721_v43, 0.0 }
 0xc73   : > { %10731 = vmatpush.xpose.msk.msrb.mxu0 %vm546_vm0, %v16678_v6  ;;  %10749 = vmatpush.xpose.msk.msra.mxu1 %vm546_vm0, %v16679_v27 }
 0xc77   : > { %10739 = vmatpush.xpose.msk.msra.mxu0 %vm546_vm0, %v16680_v3 }
 0xc7a   : > { %10732 = vmatmul.msk.f32.vlgmr.msrb.gmra.mxu0 %vm546_vm0, %v6645_v2  ;;  %10742 = vmatmul.msk.f32.vlgmr.msrb.gmra.mxu1 %vm546_vm0, %v6650_v50  ;;  %v6658_v2 = vsel %vm12323_vm4, %v16661_v29, 0.0  ;;  %v6657_v50 = vsel %vm12323_vm4, %v16669_v58, 0.0 }
 0xc7b   : > { %10747 = vmatpush.xpose.msk.msrb.mxu0 %vm546_vm0, %v16681_v11  ;;  %10757 = vmatpush.xpose.msk.msrb.mxu1 %vm546_vm0, %v16682_v18 }
 0xc82   : > { %10740 = vmatmul.msk.f32.vlgmr.msra.gmra.mxu0 %vm546_vm0, %v6649_v37  ;;  %10750 = vmatmul.msk.f32.vlgmr.msra.gmra.mxu1 %vm546_vm0, %v6654_v48  ;;  %v14610_v37 = vpop.f32.mrf.mxu1  ;;  %v14612_v48 = vpop.f32.mrf.mxu0 }
 0xc83   : > { %10755 = vmatpush.xpose.msk.msra.mxu0 %vm546_vm0, %v16683_v62  ;;  %7290 = vmatpush.msra.mxu1 %v14302_v36  ;;  %16684 = vst [vmem:[#allocation18_spill] sm:$0xff] %v14610_v37 }
 0xc84   : > { %16685 = vst [vmem:[#allocation19_spill] sm:$0xff] %v14612_v48 }
 0xc8a   : > { %10748 = vmatmul.msk.f32.vlgmr.msrb.gmra.mxu0 %vm546_vm0, %v6653_v1  ;;  %10758 = vmatmul.msk.f32.vlgmr.msrb.gmra.mxu1 %vm546_vm0, %v6658_v2  ;;  %v14614_v7 = vpop.f32.mrf.mxu1  ;;  %v14616_v1 = vpop.f32.mrf.mxu0 }
 0xc8b   : > { %7267 = vmatpush.msrb.mxu0 %v14304_v52  ;;  %7382 = vmatpush.msrb.mxu1 %v14467_v46  ;;  %16686 = vst [vmem:[#allocation25_spill] sm:$0xff] %v14614_v7  ;;  %v7032_v46 = vpop.xlane.xlu2 %7031 }
 0xc8c   : > { %16687 = vst [vmem:[#allocation39_spill] sm:$0xff] %v14616_v1 }
 0xc92   : > { %10756 = vmatmul.msk.f32.vlgmr.msra.gmra.mxu0 %vm546_vm0, %v6657_v50  ;;  %v14618_v2 = vpop.f32.mrf.mxu1  ;;  %v14620_v47 = vpop.f32.mrf.mxu0 }
 0xc93   : > { %7359 = vmatpush.msra.mxu0 %v14453_v32  ;;  %16688 = vst [vmem:[#allocation22_spill] sm:$0xff] %v14618_v2 }
 0xc94   : > { %16689 = vst [vmem:[#allocation80_spill] sm:$0xff] %v14620_v47 }
 0xc9a   : > { %v14622_v26 = vpop.f32.mrf.mxu1 }
 0xc9b   : > { %16690 = vst [vmem:[#allocation81_spill] sm:$0xff] %v14622_v26 }
 0xca0   : > { %v14624_v23 = vpop.f32.mrf.mxu0 }
 0xca1   : > { %16691 = vst [vmem:[#allocation82_spill] sm:$0xff] %v14624_v23 }
 0xca5   : > { %v7029_v50 = vpop.xlane.xlu0 %7028 }
 0xca8   : > { %v14628_v56 = vpop.f32.mrf.mxu0 }
 0xca9   : > { %16693 = vst [vmem:[#allocation84_spill] sm:$0xff] %v14628_v56 }
 0xcad   : > { %v7041_v31 = vpop.xlane.xlu0 %7040 }
 0xcb5   : > { %v7044_v1 = vpop.xlane.xlu0 %7043  ;;  %v7053_v29 = vpop.xlane.xlu1 %7052 }
 0xcbc   : > { %v14626_v42 = vpop.f32.mrf.mxu1 }
 0xcbd   : > { %16692 = vst [vmem:[#allocation83_spill] sm:$0xff] %v14626_v42  ;;  %v7056_v56 = vpop.xlane.xlu0 %7055 }
 0xcc5   : > { %v7065_v49 = vpop.xlane.xlu0 %7064 }
 0xcc6   : > { %v14632_v48 = vpop.f32.mrf.mxu0 }
 0xcc7   : > { %16695 = vst [vmem:[#allocation86_spill] sm:$0xff] %v14632_v48 }
 0xcce   : > { %v14630_v37 = vpop.f32.mrf.mxu1  ;;  %v14636_v2 = vpop.f32.mrf.mxu0 }
 0xccf   : > { %16694 = vst [vmem:[#allocation85_spill] sm:$0xff] %v14630_v37  ;;  %v7075_v37 = vsub.f32 %v14507_v0, %v7029_v50  ;;  %v7076_v0 = vsub.f32 %v14440_v12, %v7032_v46  ;;  %v7068_v12 = vpop.xlane.xlu0 %7067 }
 0xcd0   : > { %16697 = vst [vmem:[#allocation88_spill] sm:$0xff] %v14636_v2 }
 0xcd1   : > { %v7091_v2 = vmul.f32 1.442695, %v7075_v37 }
 0xcd3   : > { %11361 = vpow2.f32 %v7091_v2  ;;  %v7080_v2 = vsub.f32 %v14516_v54, %v7044_v1 }
 0xcd7   : > { %v14634_v7 = vpop.f32.mrf.mxu1 }
 0xcd8   : > { %16696 = vst [vmem:[#allocation87_spill] sm:$0xff] %v14634_v7  ;;  %v7079_v7 = vsub.f32 %v14511_v10, %v7041_v31  ;;  %v7083_v31 = vsub.f32 %v14522_v57, %v7053_v29  ;;  %v7088_v29 = vsub.f32 %v14545_v16, %v7068_v12  ;;  %v7084_v16 = vsub.f32 %v14528_v63, %v7056_v56 }
 0xcd9   : > { %v14666_v37 = vpop.eup %11361 }
 0xcda   : > { %v7123_v57 = vsel %vm1344_vm5, %v14666_v37, 0.0 }
 0xce7   : > { %v14638_v47 = vpop.f32.mrf.mxu1 }
 0xce8   : > { %16698 = vst [vmem:[#allocation89_spill] sm:$0xff] %v14638_v47 }
 0xcef   : > { %v14640_v26 = vpop.f32.mrf.mxu0  ;;  %v14642_v23 = vpop.f32.mrf.mxu1 }
 0xcf0   : > { %16699 = vst [vmem:[#allocation90_spill] sm:$0xff] %v14640_v26  ;;  %v7036_v42 = vsel %vm1344_vm5, %v14642_v23, -inf }
 0xcf1   : > { %7037 = vmax.xlane.f32.xlu0 %v7036_v42  ;;  %v7099_v42 = vmul.f32 1.442695, %v7079_v7  ;;  %v7093_v7 = vmul.f32 1.442695, %v7076_v0 }
 0xcf3   : > { %11363 = vpow2.f32 %v7099_v42 }
 0xcf4   : > { %11365 = vpow2.f32 %v7093_v7  ;;  %v7087_v7 = vsub.f32 %v14534_v5, %v7065_v49 }
 0xcf6   : > { %v7115_v56 = vmul.f32 1.442695, %v7087_v7 }
 0xcf7   : > { %v14647_v44 = vpop.f32.mrf.mxu0  ;;  %v14649_v48 = vpop.f32.mrf.mxu1 }
 0xcf8   : > { %v7033_v47 = vsel %vm1344_vm5, %v14647_v44, -inf  ;;  %v7048_v26 = vsel %vm1344_vm5, %v14649_v48, -inf }
 0xcf9   : > { %7034 = vmax.xlane.f32.xlu2 %v7033_v47  ;;  %7049 = vmax.xlane.f32.xlu0 %v7048_v26  ;;  %v7107_v47 = vmul.f32 1.442695, %v7083_v31  ;;  %v14668_v46 = vpop.eup %11363 }
 0xcfa   : > { %v7135_v31 = vsel %vm1344_vm5, %v14668_v46, 0.0  ;;  %v14680_v54 = vpop.eup %11365 }
 0xcfb   : > { %11367 = vpow2.f32 %v7107_v47  ;;  %v7126_v12 = vsel %vm1344_vm5, %v14680_v54, 0.0 }
 0xcff   : > { %v14657_v50 = vpop.f32.mrf.mxu0  ;;  %v14659_v32 = vpop.f32.mrf.mxu1 }
 0xd00   : > { %v7045_v10 = vsel %vm1344_vm5, %v14657_v50, -inf  ;;  %v7060_v26 = vsel %vm1344_vm5, %v14659_v32, -inf }
 0xd01   : > { %7046 = vmax.xlane.f32.xlu2 %v7045_v10  ;;  %7061 = vmax.xlane.f32.xlu0 %v7060_v26  ;;  %v7101_v10 = vmul.f32 1.442695, %v7080_v2  ;;  %v7117_v26 = vmul.f32 1.442695, %v7088_v29  ;;  %v14682_v1 = vpop.eup %11367  ;;  %v7109_v29 = vmul.f32 1.442695, %v7084_v16 }
 0xd02   : > { %v7147_v2 = vsel %vm1344_vm5, %v14682_v1, 0.0 }
 0xd03   : > { %11369 = vpow2.f32 %v7101_v10 }
 0xd04   : > { %11371 = vpow2.f32 %v7117_v26 }
 0xd05   : > { %11373 = vpow2.f32 %v7109_v29 }
 0xd06   : > { %11375 = vpow2.f32 %v7115_v56 }
 0xd07   : > { %v14671_v42 = vpop.f32.mrf.mxu0  ;;  %v14696_v49 = vpop.f32.mrf.mxu1 }
 0xd08   : > { %v7057_v0 = vsel %vm1344_vm5, %v14671_v42, -inf }
 0xd09   : > { %7124 = vadd.xlane.f32.xlu2 %v7123_v57  ;;  %7058 = vmax.xlane.f32.xlu1 %v7057_v0  ;;  %v14694_v63 = vpop.eup %11369 }
 0xd0a   : > { %7136 = vadd.xlane.f32.xlu0 %v7135_v31  ;;  %v14698_v5 = vpop.eup %11371  ;;  %v7138_v0 = vsel %vm1344_vm5, %v14694_v63, 0.0  ;;  %v7072_v31 = vsel %vm1344_vm5, %v14696_v49, -inf }
 0xd0b   : > { %v7162_v10 = vsel %vm1344_vm5, %v14698_v5, 0.0  ;;  %v14706_v26 = vpop.eup %11373 }
 0xd0c   : > { %v14708_v16 = vpop.eup %11375  ;;  %v7150_v7 = vsel %vm1344_vm5, %v14706_v26, 0.0 }
 0xd0f   : > { %v14686_v47 = vpop.f32.mrf.mxu0 }
 0xd10   : > { %v7069_v57 = vsel %vm1344_vm5, %v14686_v47, -inf }
 0xd11   : > { %7127 = vadd.xlane.f32.xlu2 %v7126_v12  ;;  %7070 = vmax.xlane.f32.xlu1 %v7069_v57  ;;  %v7159_v12 = vsel %vm1344_vm5, %v14708_v16, 0.0 }
 0xd12   : > { %7148 = vadd.xlane.f32.xlu0 %v7147_v2 }
 0xd19   : > { %7139 = vadd.xlane.f32.xlu2 %v7138_v0  ;;  %7073 = vmax.xlane.f32.xlu1 %v7072_v31 }
 0xd1a   : > { %7163 = vadd.xlane.f32.xlu0 %v7162_v10 }
 0xd21   : > { %7151 = vadd.xlane.f32.xlu1 %v7150_v7  ;;  %7160 = vadd.xlane.f32.xlu2 %v7159_v12 }
 0xd64   : > { %v7038_v57 = vpop.xlane.xlu0 %7037 }
 0xd65   : > { %v7078_v2 = vsub.f32 %v14642_v23, %v7038_v57 }
 0xd67   : > { %v7097_v29 = vmul.f32 1.442695, %v7078_v2 }
 0xd69   : > { %11377 = vpow2.f32 %v7097_v29 }
 0xd6c   : > { %v7035_v56 = vpop.xlane.xlu2 %7034  ;;  %v7050_v0 = vpop.xlane.xlu0 %7049 }
 0xd6d   : > { %v7077_v31 = vsub.f32 %v14647_v44, %v7035_v56  ;;  %v7082_v58 = vsub.f32 %v14649_v48, %v7050_v0 }
 0xd6f   : > { %v14716_v10 = vpop.eup %11377  ;;  %v7095_v36 = vmul.f32 1.442695, %v7077_v31  ;;  %v7105_v7 = vmul.f32 1.442695, %v7082_v58 }
 0xd70   : > { %v7132_v33 = vsel %vm1344_vm5, %v14716_v10, 0.0 }
 0xd71   : > { %11379 = vpow2.f32 %v7095_v36  ;;  %7133 = vadd.xlane.f32.xlu2 %v7132_v33 }
 0xd72   : > { %11381 = vpow2.f32 %v7105_v7 }
 0xd74   : > { %v7047_v12 = vpop.xlane.xlu2 %7046  ;;  %v7062_v52 = vpop.xlane.xlu0 %7061 }
 0xd75   : > { %v7081_v23 = vsub.f32 %v14657_v50, %v7047_v12  ;;  %v7086_v44 = vsub.f32 %v14659_v32, %v7062_v52 }
 0xd77   : > { %v14722_v57 = vpop.eup %11379  ;;  %v7103_v2 = vmul.f32 1.442695, %v7081_v23  ;;  %v7113_v48 = vmul.f32 1.442695, %v7086_v44 }
 0xd78   : > { %v7129_v29 = vsel %vm1344_vm5, %v14722_v57, 0.0  ;;  %v14727_v33 = vpop.eup %11381 }
 0xd79   : > { %11383 = vpow2.f32 %v7103_v2  ;;  %7130 = vadd.xlane.f32.xlu1 %v7129_v29  ;;  %v7144_v32 = vsel %vm1344_vm5, %v14727_v33, 0.0 }
 0xd7c   : > { %v7125_v56 = vpop.xlane.xlu2 %7124  ;;  %v7059_v36 = vpop.xlane.xlu1 %7058 }
 0xd7d   : > { %11385 = vrcp.f32 %v7125_v56  ;;  %v7085_v58 = vsub.f32 %v14671_v42, %v7059_v36  ;;  %v7137_v50 = vpop.xlane.xlu0 %7136 }
 0xd7e   : > { %11387 = vpow2.f32 %v7113_v48 }
 0xd7f   : > { %v14730_v0 = vpop.eup %11383  ;;  %v7111_v31 = vmul.f32 1.442695, %v7085_v58 }
 0xd80   : > { %v7141_v52 = vsel %vm1344_vm5, %v14730_v0, 0.0 }
 0xd81   : > { %11389 = vpow2.f32 %v7111_v31  ;;  %7142 = vadd.xlane.f32.xlu0 %v7141_v52  ;;  %7145 = vadd.xlane.f32.xlu1 %v7144_v32 }
 0xd82   : > { %11391 = vrcp.f32 %v7137_v50 }
 0xd83   : > { %v11386_v7 = vpop.eup %11385 }
 0xd84   : > { %v7187_v12 = vmul.f32 %v11386_v7, %v14666_v37  ;;  %v7128_v23 = vpop.xlane.xlu2 %7127  ;;  %v7071_v42 = vpop.xlane.xlu1 %7070 }
 0xd85   : > { %v14737_v2 = vpop.eup %11387  ;;  %11393 = vrcp.f32 %v7128_v23  ;;  %v7089_v44 = vsub.f32 %v14686_v47, %v7071_v42  ;;  %v7149_v56 = vpop.xlane.xlu0 %7148 }
 0xd86   : > { %10759 = vmatmul.msk.f32.vlgmr.msrb.gmra.mxu2 %vm1344_vm5, %v7187_v12  ;;  %v7156_v37 = vsel %vm1344_vm5, %v14737_v2, 0.0 }
 0xd87   : > { %v14741_v29 = vpop.eup %11389  ;;  %v7119_v48 = vmul.f32 1.442695, %v7089_v44  ;;  %7405 = vmatpush.msrb.mxu2 %v14470_v30 }
 0xd88   : > { %v7153_v36 = vsel %vm1344_vm5, %v14741_v29, 0.0  ;;  %v11392_v58 = vpop.eup %11391 }
 0xd89   : > { %11395 = vpow2.f32 %v7119_v48  ;;  %7154 = vadd.xlane.f32.xlu2 %v7153_v36  ;;  %7157 = vadd.xlane.f32.xlu0 %v7156_v37  ;;  %v7191_v47 = vmul.f32 %v11392_v58, %v14668_v46  ;;  %v16700_v37 = vld [vmem:[#allocation35_spill] sm:$0xff] }
 0xd8a   : > { %11397 = vrcp.f32 %v7149_v56 }
 0xd8b   : > { %v11394_v50 = vpop.eup %11393 }
 0xd8c   : > { %v7188_v31 = vmul.f32 %v11394_v50, %v14680_v54  ;;  %v7140_v52 = vpop.xlane.xlu2 %7139  ;;  %v7074_v32 = vpop.xlane.xlu1 %7073 }
 0xd8d   : > { %11399 = vrcp.f32 %v7140_v52  ;;  %v7090_v7 = vsub.f32 %v14696_v49, %v7074_v32  ;;  %v7164_v58 = vpop.xlane.xlu0 %7163  ;;  %v16701_v52 = vld [vmem:[#allocation52_spill] sm:$0xff] }
 0xd8e   : > { %10760 = vmatmul.msk.f32.vlgmr.msrb.gmra.mxu3 %vm1344_vm5, %v7188_v31  ;;  %10763 = vmatmul.msk.f32.vlgmr.msra.gmra.mxu2 %vm1344_vm5, %v7191_v47 }
 0xd8f   : > { %v14753_v12 = vpop.eup %11395  ;;  %v7121_v23 = vmul.f32 1.442695, %v7090_v7  ;;  %7428 = vmatpush.msrb.mxu3 %v14480_v14  ;;  %7497 = vmatpush.msra.mxu2 %v14503_v28 }
 0xd90   : > { %v7165_v46 = vsel %vm1344_vm5, %v14753_v12, 0.0  ;;  %v11398_v54 = vpop.eup %11397 }
 0xd91   : > { %11401 = vpow2.f32 %v7121_v23  ;;  %7166 = vadd.xlane.f32.xlu1 %v7165_v46  ;;  %v7195_v49 = vmul.f32 %v11398_v54, %v14682_v1  ;;  %v16703_v23 = vld [vmem:[#allocation51_spill] sm:$0xff]  ;;  %v16704_v54 = vld [vmem:[#allocation29_spill] sm:$0xff] }
 0xd92   : > { %v7604_v46 = vsel %vm13005_vm8, %v16703_v23, 0.0 }
 0xd93   : > { %v11400_v42 = vpop.eup %11399 }
 0xd94   : > { %v7192_v44 = vmul.f32 %v11400_v42, %v14694_v63  ;;  %v7152_v48 = vpop.xlane.xlu1 %7151  ;;  %v7161_v56 = vpop.xlane.xlu2 %7160  ;;  %v7608_v42 = vsel %vm13005_vm8, %v13687_v40, 0.0 }
 0xd95   : > { %11403 = vrcp.f32 %v7152_v48  ;;  %v7612_v48 = vsel %vm13005_vm8, %v13715_v15, 0.0 }
 0xd96   : > { %11405 = vrcp.f32 %v7161_v56  ;;  %10764 = vmatmul.msk.f32.vlgmr.msra.gmra.mxu3 %vm1344_vm5, %v7192_v44  ;;  %10767 = vmatmul.msk.f32.vlgmr.msrb.gmra.mxu2 %vm1344_vm5, %v7195_v49  ;;  %v7611_v49 = vsel %vm13005_vm8, %v13705_v22, 0.0  ;;  %v16705_v44 = vld [vmem:[#allocation24_spill] sm:$0xff]  ;;  %v7615_v56 = vsel %vm13005_vm8, %v16658_v9, 0.0 }
 0xd97   : > { %v14763_v36 = vpop.eup %11401  ;;  %7520 = vmatpush.msra.mxu3 %v14518_v53  ;;  %10775 = vmatpush.xpose.msk.msrb.mxu2 %vm546_vm0, %v16700_v37  ;;  %11407 = vrcp.f32 %v7164_v58  ;;  %v16706_v58 = vld [vmem:[#allocation45_spill] sm:$0xff] }
 0xd98   : > { %v7168_v1 = vsel %vm1344_vm5, %v14763_v36, 0.0 }
 0xd99   : > { %7169 = vadd.xlane.f32.xlu2 %v7168_v1  ;;  %v7616_v1 = vsel %vm13005_vm8, %v16659_v19, 0.0 }
 0xd9b   : > { %v11404_v63 = vpop.eup %11403 }
 0xd9c   : > { %v11406_v50 = vpop.eup %11405  ;;  %v7196_v47 = vmul.f32 %v11404_v63, %v14706_v26  ;;  %v7603_v26 = vsel %vm13005_vm8, %v16653_v51, 0.0 }
 0xd9d   : > { %v7199_v31 = vmul.f32 %v11406_v50, %v14708_v16  ;;  %v11408_v32 = vpop.eup %11407  ;;  %v16702_v16 = vld [vmem:[#allocation21_spill] sm:$0xff] }
 0xd9e   : > { %10768 = vmatmul.msk.f32.vlgmr.msrb.gmra.mxu3 %vm1344_vm5, %v7196_v47  ;;  %v7200_v7 = vmul.f32 %v11408_v32, %v14698_v5  ;;  %v7607_v5 = vsel %vm13005_vm8, %v13682_v34, 0.0 }
 0xd9f   : > { %10771 = vmatmul.msk.f32.vlgmr.msra.gmra.mxu2 %vm1344_vm5, %v7199_v31  ;;  %10777 = vmatpush.xpose.msk.msrb.mxu3 %vm546_vm0, %v16701_v52 }
 0xda0   : > { %10783 = vmatpush.xpose.msk.msra.mxu2 %vm546_vm0, %v13799_v24 }
 0xda6   : > { %10772 = vmatmul.msk.f32.vlgmr.msra.gmra.mxu3 %vm1344_vm5, %v7200_v7 }
 0xda7   : > { %10776 = vmatmul.msk.f32.vlgmr.msrb.gmra.mxu2 %vm546_vm0, %v7603_v26  ;;  %10785 = vmatpush.xpose.msk.msra.mxu3 %vm546_vm0, %v16702_v16 }
 0xda8   : > { %10791 = vmatpush.xpose.msk.msrb.mxu2 %vm546_vm0, %v16654_v35 }
 0xdae   : > { %10778 = vmatmul.msk.f32.vlgmr.msrb.gmra.mxu3 %vm546_vm0, %v7604_v46 }
 0xdaf   : > { %10784 = vmatmul.msk.f32.vlgmr.msra.gmra.mxu2 %vm546_vm0, %v7607_v5  ;;  %10793 = vmatpush.xpose.msk.msrb.mxu3 %vm546_vm0, %v16704_v54 }
 0xdb0   : > { %10799 = vmatpush.xpose.msk.msra.mxu2 %vm546_vm0, %v16656_v17 }
 0xdb6   : > { %10786 = vmatmul.msk.f32.vlgmr.msra.gmra.mxu3 %vm546_vm0, %v7608_v42 }
 0xdb7   : > { %10792 = vmatmul.msk.f32.vlgmr.msrb.gmra.mxu2 %vm546_vm0, %v7611_v49  ;;  %10801 = vmatpush.xpose.msk.msra.mxu3 %vm546_vm0, %v16705_v44 }
 0xdb8   : > { %8181 = vmatpush.msrb.mxu2 %v13994_v13 }
 0xdbe   : > { %10794 = vmatmul.msk.f32.vlgmr.msrb.gmra.mxu3 %vm546_vm0, %v7612_v48 }
 0xdbf   : > { %10800 = vmatmul.msk.f32.vlgmr.msra.gmra.mxu2 %vm546_vm0, %v7615_v56  ;;  %8204 = vmatpush.msrb.mxu3 %v16706_v58 }
 0xdc0   : > { %8273 = vmatpush.msra.mxu2 %v14396_v55 }
 0xdc6   : > { %10802 = vmatmul.msk.f32.vlgmr.msra.gmra.mxu3 %vm546_vm0, %v7616_v1 }
 0xdc7   : > { %8296 = vmatpush.msra.mxu3 %v14316_v61 }
 0xde4   : > { %v7134_v63 = vpop.xlane.xlu2 %7133 }
 0xde5   : > { %11409 = vrcp.f32 %v7134_v63 }
 0xdeb   : > { %v11410_v50 = vpop.eup %11409 }
 0xdec   : > { %v7190_v47 = vmul.f32 %v11410_v50, %v14716_v10  ;;  %v7131_v31 = vpop.xlane.xlu1 %7130 }
 0xded   : > { %11411 = vrcp.f32 %v7131_v31 }
 0xdee   : > { %10762 = vmatmul.msk.f32.vlgmr.msra.gmra.mxu1 %vm1344_vm5, %v7190_v47 }
 0xdef   : > { %7474 = vmatpush.msra.mxu1 %v14487_v45 }
 0xdf3   : > { %v11412_v32 = vpop.eup %11411 }
 0xdf4   : > { %v7189_v7 = vmul.f32 %v11412_v32, %v14722_v57  ;;  %v7146_v26 = vpop.xlane.xlu1 %7145  ;;  %v7143_v46 = vpop.xlane.xlu0 %7142 }
 0xdf5   : > { %11413 = vrcp.f32 %v7146_v26 }
 0xdf6   : > { %11415 = vrcp.f32 %v7143_v46  ;;  %10761 = vmatmul.msk.f32.vlgmr.msrb.gmra.mxu0 %vm1344_vm5, %v7189_v7 }
 0xdf7   : > { %7451 = vmatpush.msrb.mxu0 %v14496_v39 }
 0xdfb   : > { %v11414_v5 = vpop.eup %11413 }
 0xdfc   : > { %v11416_v42 = vpop.eup %11415  ;;  %v7194_v10 = vmul.f32 %v11414_v5, %v14727_v33  ;;  %v7155_v49 = vpop.xlane.xlu2 %7154 }
 0xdfd   : > { %v7158_v48 = vpop.xlane.xlu0 %7157  ;;  %v7193_v56 = vmul.f32 %v11416_v42, %v14730_v0  ;;  %11417 = vrcp.f32 %v7155_v49  ;;  %v7609_v42 = vsel %vm13005_vm8, %v13694_v60, 0.0 }
 0xdfe   : > { %11419 = vrcp.f32 %v7158_v48  ;;  %10766 = vmatmul.msk.f32.vlgmr.msrb.gmra.mxu1 %vm1344_vm5, %v7194_v10  ;;  %v7610_v48 = vsel %vm13005_vm8, %v13699_v20, 0.0 }
 0xdff   : > { %10765 = vmatmul.msk.f32.vlgmr.msra.gmra.mxu0 %vm1344_vm5, %v7193_v56  ;;  %7566 = vmatpush.msrb.mxu1 %v14538_v25  ;;  %v7613_v56 = vsel %vm13005_vm8, %v13721_v43, 0.0 }
 0xe00   : > { %7543 = vmatpush.msra.mxu0 %v14558_v41 }
 0xe03   : > { %v11418_v57 = vpop.eup %11417 }
 0xe04   : > { %v11420_v1 = vpop.eup %11419  ;;  %v7197_v63 = vmul.f32 %v11418_v57, %v14741_v29  ;;  %v7167_v50 = vpop.xlane.xlu1 %7166  ;;  %v16712_v57 = vld [vmem:[#allocation73_spill] sm:$0xff] }
 0xe05   : > { %v7198_v33 = vmul.f32 %v11420_v1, %v14737_v2  ;;  %11421 = vrcp.f32 %v7167_v50 }
 0xe07   : > { %10769 = vmatmul.msk.f32.vlgmr.msrb.gmra.mxu0 %vm1344_vm5, %v7197_v63  ;;  %10770 = vmatmul.msk.f32.vlgmr.msra.gmra.mxu1 %vm1344_vm5, %v7198_v33  ;;  %v16714_v33 = vld [vmem:[#allocation44_spill] sm:$0xff] }
 0xe08   : > { %10779 = vmatpush.xpose.msk.msrb.mxu0 %vm546_vm0, %v16678_v6  ;;  %10781 = vmatpush.xpose.msk.msra.mxu1 %vm546_vm0, %v16676_v59 }
 0xe09   : > { %v14846_v0 = vpop.f32.mrf.mxu2 }
 0xe0b   : > { %v11422_v47 = vpop.eup %11421 }
 0xe0c   : > { %v7201_v31 = vmul.f32 %v11422_v47, %v14753_v12  ;;  %v7170_v29 = vpop.xlane.xlu2 %7169  ;;  %v7605_v12 = vsel %vm13005_vm8, %v13660_v21, 0.0  ;;  %v7614_v47 = vsel %vm13005_vm8, %v16714_v33, 0.0 }
 0xe0d   : > { %11423 = vrcp.f32 %v7170_v29 }
 0xe0f   : > { %10773 = vmatmul.msk.f32.vlgmr.msra.gmra.mxu0 %vm1344_vm5, %v7201_v31  ;;  %v16715_v31 = vld [vmem:[#allocation20_spill] sm:$0xff] }
 0xe10   : > { %10787 = vmatpush.xpose.msk.msra.mxu0 %vm546_vm0, %v16680_v3  ;;  %v7617_v29 = vsel %vm13005_vm8, %v16715_v31, 0.0 }
 0xe11   : > { %v14852_v2 = vpop.f32.mrf.mxu3  ;;  %v14854_v32 = vpop.f32.mrf.mxu2 }
 0xe12   : > { %16707 = vst [vmem:[#allocation35_spill] sm:$0xff] %v14852_v2 }
 0xe13   : > { %v11424_v7 = vpop.eup %11423 }
 0xe14   : > { %v7202_v26 = vmul.f32 %v11424_v7, %v14763_v36  ;;  %v7606_v36 = vsel %vm13005_vm8, %v13671_v38, 0.0  ;;  %v16716_v7 = vld [vmem:[#allocation61_spill] sm:$0xff] }
 0xe16   : > { %10774 = vmatmul.msk.f32.vlgmr.msrb.gmra.mxu1 %vm1344_vm5, %v7202_v26  ;;  %v16717_v26 = vld [vmem:[#allocation72_spill] sm:$0xff] }
 0xe17   : > { %10780 = vmatmul.msk.f32.vlgmr.msrb.gmra.mxu0 %vm546_vm0, %v7605_v12  ;;  %10789 = vmatpush.xpose.msk.msrb.mxu1 %vm546_vm0, %v16677_v4 }
 0xe18   : > { %10795 = vmatpush.xpose.msk.msrb.mxu0 %vm546_vm0, %v16681_v11 }
 0xe19   : > { %v14866_v46 = vpop.f32.mrf.mxu3  ;;  %v14868_v5 = vpop.f32.mrf.mxu2 }
 0xe1a   : > { %16708 = vst [vmem:[#allocation52_spill] sm:$0xff] %v14866_v46 }
 0xe1b   : > { %16709 = vst [vmem:[#allocation21_spill] sm:$0xff] %v14868_v5 }
 0xe1e   : > { %10782 = vmatmul.msk.f32.vlgmr.msra.gmra.mxu1 %vm546_vm0, %v7606_v36 }
 0xe1f   : > { %10788 = vmatmul.msk.f32.vlgmr.msra.gmra.mxu0 %vm546_vm0, %v7609_v42  ;;  %10797 = vmatpush.xpose.msk.msra.mxu1 %vm546_vm0, %v16679_v27 }
 0xe20   : > { %10803 = vmatpush.xpose.msk.msra.mxu0 %vm546_vm0, %v16683_v62 }
 0xe21   : > { %v14882_v10 = vpop.f32.mrf.mxu3 }
 0xe22   : > { %16710 = vst [vmem:[#allocation51_spill] sm:$0xff] %v14882_v10  ;;  %v14884_v49 = vpop.f32.mrf.mxu2 }
 0xe23   : > { %16711 = vst [vmem:[#allocation29_spill] sm:$0xff] %v14884_v49 }
 0xe26   : > { %10790 = vmatmul.msk.f32.vlgmr.msrb.gmra.mxu1 %vm546_vm0, %v7610_v48 }
 0xe27   : > { %10796 = vmatmul.msk.f32.vlgmr.msrb.gmra.mxu0 %vm546_vm0, %v7613_v56  ;;  %10805 = vmatpush.xpose.msk.msrb.mxu1 %vm546_vm0, %v16682_v18  ;;  %v16718_v56 = vld [vmem:[#allocation23_spill] sm:$0xff] }
 0xe28   : > { %8227 = vmatpush.msrb.mxu0 %v16712_v57 }
 0xe29   : > { %v14897_v1 = vpop.f32.mrf.mxu3 }
 0xe2a   : > { %16713 = vst [vmem:[#allocation24_spill] sm:$0xff] %v14897_v1  ;;  %v7639_v63 = vpop.f32.mrf.mxu2 }
 0xe2b   : > { %v7987_v50 = vsel %vm1344_vm5, %v7639_v63, -inf }
 0xe2c   : > { %7988 = vmax.xlane.f32.xlu0 %v7987_v50  ;;  %v7618_v50 = vsel %vm13005_vm8, %v16718_v56, 0.0 }
 0xe2e   : > { %10798 = vmatmul.msk.f32.vlgmr.msra.gmra.mxu1 %vm546_vm0, %v7614_v47  ;;  %v16719_v47 = vld [vmem:[#allocation78_spill] sm:$0xff] }
 0xe2f   : > { %10804 = vmatmul.msk.f32.vlgmr.msra.gmra.mxu0 %vm546_vm0, %v7617_v29  ;;  %8250 = vmatpush.msra.mxu1 %v16716_v7 }
 0xe30   : > { %8319 = vmatpush.msra.mxu0 %v16717_v26 }
 0xe31   : > { %v7662_v12 = vpop.f32.mrf.mxu3 }
 0xe32   : > { %v7731_v36 = vpop.f32.mrf.mxu2  ;;  %v7990_v42 = vsel %vm1344_vm5, %v7662_v12, -inf }
 0xe33   : > { %v7999_v48 = vsel %vm1344_vm5, %v7731_v36, -inf  ;;  %7991 = vmax.xlane.f32.xlu1 %v7990_v42 }
 0xe34   : > { %8000 = vmax.xlane.f32.xlu2 %v7999_v48 }
 0xe36   : > { %10806 = vmatmul.msk.f32.vlgmr.msrb.gmra.mxu1 %vm546_vm0, %v7618_v50 }
 0xe37   : > { %8342 = vmatpush.msrb.mxu1 %v16719_v47 }
 0xe39   : > { %v14917_v29 = vpop.f32.mrf.mxu3 }
 0xe3a   : > { %v14919_v1 = vpop.f32.mrf.mxu2  ;;  %v8002_v10 = vsel %vm1344_vm5, %v14917_v29, -inf }
 0xe3b   : > { %v8011_v46 = vsel %vm1344_vm5, %v14919_v1, -inf  ;;  %8003 = vmax.xlane.f32.xlu0 %v8002_v10 }
 0xe3c   : > { %8012 = vmax.xlane.f32.xlu1 %v8011_v46 }
 0xe41   : > { %v14925_v42 = vpop.f32.mrf.mxu3 }
 0xe42   : > { %v14927_v48 = vpop.f32.mrf.mxu2  ;;  %v8014_v50 = vsel %vm1344_vm5, %v14925_v42, -inf }
 0xe43   : > { %v8023_v2 = vsel %vm1344_vm5, %v14927_v48, -inf  ;;  %8015 = vmax.xlane.f32.xlu2 %v8014_v50 }
 0xe44   : > { %8024 = vmax.xlane.f32.xlu0 %v8023_v2 }
 0xe49   : > { %v14933_v47 = vpop.f32.mrf.mxu3 }
 0xe4a   : > { %v8026_v56 = vsel %vm1344_vm5, %v14933_v47, -inf }
 0xe4b   : > { %8027 = vmax.xlane.f32.xlu2 %v8026_v56 }
 0xe6b   : > { %v14939_v46 = vpop.f32.mrf.mxu1 }
 0xe6c   : > { %16721 = vst [vmem:[#allocation91_spill] sm:$0xff] %v14939_v46 }
 0xe73   : > { %v14937_v10 = vpop.f32.mrf.mxu0 }
 0xe74   : > { %16720 = vst [vmem:[#allocation45_spill] sm:$0xff] %v14937_v10 }
 0xe7b   : > { %v14943_v7 = vpop.f32.mrf.mxu1 }
 0xe7c   : > { %v14941_v26 = vpop.f32.mrf.mxu0  ;;  %16723 = vst [vmem:[#allocation93_spill] sm:$0xff] %v14943_v7 }
 0xe7d   : > { %16722 = vst [vmem:[#allocation92_spill] sm:$0xff] %v14941_v26 }
 0xe84   : > { %v14945_v31 = vpop.f32.mrf.mxu0  ;;  %v14947_v33 = vpop.f32.mrf.mxu1 }
 0xe85   : > { %16724 = vst [vmem:[#allocation94_spill] sm:$0xff] %v14945_v31 }
 0xe86   : > { %16725 = vst [vmem:[#allocation95_spill] sm:$0xff] %v14947_v33 }
 0xe8c   : > { %v14949_v50 = vpop.f32.mrf.mxu0 }
 0xe8d   : > { %16726 = vst [vmem:[#allocation96_spill] sm:$0xff] %v14949_v50 }
 0xe93   : > { %v14951_v2 = vpop.f32.mrf.mxu1 }
 0xe94   : > { %16727 = vst [vmem:[#allocation97_spill] sm:$0xff] %v14951_v2  ;;  %v14953_v57 = vpop.f32.mrf.mxu0 }
 0xe95   : > { %v7993_v56 = vsel %vm1344_vm5, %v14953_v57, -inf }
 0xe96   : > { %7994 = vmax.xlane.f32.xlu1 %v7993_v56 }
 0xe9b   : > { %v14957_v10 = vpop.f32.mrf.mxu1 }
 0xe9c   : > { %v14959_v46 = vpop.f32.mrf.mxu0  ;;  %v7996_v7 = vsel %vm1344_vm5, %v14957_v10, -inf }
 0xe9d   : > { %v8005_v33 = vsel %vm1344_vm5, %v14959_v46, -inf  ;;  %7997 = vmax.xlane.f32.xlu0 %v7996_v7 }
 0xe9e   : > { %8006 = vmax.xlane.f32.xlu1 %v8005_v33 }
 0xe9f   : > { %v7989_v50 = vpop.xlane.xlu0 %7988 }
 0xea0   : > { %v8035_v2 = vsub.f32 %v7639_v63, %v7989_v50 }
 0xea2   : > { %v8051_v31 = vmul.f32 1.442695, %v8035_v2 }
 0xea3   : > { %v14965_v26 = vpop.f32.mrf.mxu1 }
 0xea4   : > { %11425 = vpow2.f32 %v8051_v31  ;;  %v14967_v49 = vpop.f32.mrf.mxu0  ;;  %v8008_v56 = vsel %vm1344_vm5, %v14965_v26, -inf }
 0xea5   : > { %v8017_v18 = vsel %vm1344_vm5, %v14967_v49, -inf  ;;  %8009 = vmax.xlane.f32.xlu2 %v8008_v56 }
 0xea6   : > { %8018 = vmax.xlane.f32.xlu0 %v8017_v18  ;;  %v7992_v43 = vpop.xlane.xlu1 %7991 }
 0xea7   : > { %v8001_v20 = vpop.xlane.xlu2 %8000  ;;  %v8036_v7 = vsub.f32 %v7662_v12, %v7992_v43 }
 0xea8   : > { %v8039_v33 = vsub.f32 %v7731_v36, %v8001_v20 }
 0xea9   : > { %v8053_v62 = vmul.f32 1.442695, %v8036_v7 }
 0xeaa   : > { %v14973_v63 = vpop.eup %11425  ;;  %v8059_v50 = vmul.f32 1.442695, %v8039_v33 }
 0xeab   : > { %11427 = vpow2.f32 %v8053_v62  ;;  %v14975_v31 = vpop.f32.mrf.mxu1  ;;  %v8083_v20 = vsel %vm1344_vm5, %v14973_v63, 0.0 }
 0xeac   : > { %11429 = vpow2.f32 %v8059_v50  ;;  %v14977_v2 = vpop.f32.mrf.mxu0  ;;  %v8020_v5 = vsel %vm1344_vm5, %v14975_v31, -inf }
 0xead   : > { %v8029_v18 = vsel %vm1344_vm5, %v14977_v2, -inf  ;;  %8021 = vmax.xlane.f32.xlu1 %v8020_v5 }
 0xeae   : > { %8030 = vmax.xlane.f32.xlu2 %v8029_v18  ;;  %8084 = vadd.xlane.f32.xlu0 %v8083_v20  ;;  %v8004_v43 = vpop.xlane.xlu0 %8003 }
 0xeaf   : > { %v8013_v12 = vpop.xlane.xlu1 %8012  ;;  %v8040_v62 = vsub.f32 %v14917_v29, %v8004_v43 }
 0xeb0   : > { %v8043_v36 = vsub.f32 %v14919_v1, %v8013_v12 }
 0xeb1   : > { %v14987_v56 = vpop.eup %11427  ;;  %v8061_v7 = vmul.f32 1.442695, %v8040_v62 }
 0xeb2   : > { %v14989_v33 = vpop.eup %11429  ;;  %v8067_v50 = vmul.f32 1.442695, %v8043_v36  ;;  %v8086_v18 = vsel %vm1344_vm5, %v14987_v56, 0.0 }
 0xeb3   : > { %11431 = vpow2.f32 %v8061_v7  ;;  %v14991_v27 = vpop.f32.mrf.mxu1  ;;  %v8095_v1 = vsel %vm1344_vm5, %v14989_v33, 0.0 }
 0xeb4   : > { %11433 = vpow2.f32 %v8067_v50  ;;  %v8032_v5 = vsel %vm1344_vm5, %v14991_v27, -inf }
 0xeb5   : > { %8033 = vmax.xlane.f32.xlu1 %v8032_v5 }
 0xeb6   : > { %8087 = vadd.xlane.f32.xlu2 %v8086_v18  ;;  %8096 = vadd.xlane.f32.xlu0 %v8095_v1  ;;  %v8016_v29 = vpop.xlane.xlu2 %8015 }
 0xeb7   : > { %v8044_v20 = vsub.f32 %v14925_v42, %v8016_v29  ;;  %v8025_v43 = vpop.xlane.xlu0 %8024 }
 0xeb8   : > { %v8047_v12 = vsub.f32 %v14927_v48, %v8025_v43 }
 0xeb9   : > { %v15001_v62 = vpop.eup %11431  ;;  %v8069_v36 = vmul.f32 1.442695, %v8044_v20 }
 0xeba   : > { %v15003_v7 = vpop.eup %11433  ;;  %v8075_v50 = vmul.f32 1.442695, %v8047_v12  ;;  %v8098_v5 = vsel %vm1344_vm5, %v15001_v62, 0.0 }
 0xebb   : > { %11435 = vpow2.f32 %v8069_v36  ;;  %v8107_v18 = vsel %vm1344_vm5, %v15003_v7, 0.0 }
 0xebc   : > { %11437 = vpow2.f32 %v8075_v50 }
 0xebd   : > { %8099 = vadd.xlane.f32.xlu1 %v8098_v5 }
 0xebe   : > { %8108 = vadd.xlane.f32.xlu2 %v8107_v18  ;;  %v8028_v42 = vpop.xlane.xlu2 %8027 }
 0xebf   : > { %v8048_v1 = vsub.f32 %v14933_v47, %v8028_v42 }
 0xec1   : > { %v15010_v48 = vpop.eup %11435  ;;  %v8077_v29 = vmul.f32 1.442695, %v8048_v1 }
 0xec2   : > { %v15012_v20 = vpop.eup %11437  ;;  %v8110_v43 = vsel %vm1344_vm5, %v15010_v48, 0.0 }
 0xec3   : > { %11439 = vpow2.f32 %v8077_v29  ;;  %8111 = vadd.xlane.f32.xlu0 %v8110_v43  ;;  %v8119_v12 = vsel %vm1344_vm5, %v15012_v20, 0.0 }
 0xec5   : > { %8120 = vadd.xlane.f32.xlu1 %v8119_v12 }
 0xec9   : > { %v15018_v36 = vpop.eup %11439 }
 0xeca   : > { %v8122_v50 = vsel %vm1344_vm5, %v15018_v36, 0.0 }
 0xecb   : > { %8123 = vadd.xlane.f32.xlu0 %v8122_v50 }
 0xf09   : > { %v7995_v47 = vpop.xlane.xlu1 %7994 }
 0xf0a   : > { %v8037_v5 = vsub.f32 %v14953_v57, %v7995_v47 }
 0xf0c   : > { %v8055_v18 = vmul.f32 1.442695, %v8037_v5 }
 0xf0e   : > { %11441 = vpow2.f32 %v8055_v18 }
 0xf10   : > { %v7998_v42 = vpop.xlane.xlu0 %7997 }
 0xf11   : > { %v8007_v1 = vpop.xlane.xlu1 %8006  ;;  %v8038_v29 = vsub.f32 %v14957_v10, %v7998_v42 }
 0xf12   : > { %v8041_v43 = vsub.f32 %v14959_v46, %v8007_v1 }
 0xf13   : > { %v8057_v60 = vmul.f32 1.442695, %v8038_v29 }
 0xf14   : > { %v15025_v38 = vpop.eup %11441  ;;  %v8063_v12 = vmul.f32 1.442695, %v8041_v43 }
 0xf15   : > { %11443 = vpow2.f32 %v8057_v60  ;;  %v8089_v11 = vsel %vm1344_vm5, %v15025_v38, 0.0 }
 0xf16   : > { %11445 = vpow2.f32 %v8063_v12  ;;  %8090 = vadd.xlane.f32.xlu2 %v8089_v11 }
 0xf18   : > { %v8010_v50 = vpop.xlane.xlu2 %8009 }
 0xf19   : > { %v8042_v57 = vsub.f32 %v14965_v26, %v8010_v50  ;;  %v8019_v47 = vpop.xlane.xlu0 %8018 }
 0xf1a   : > { %v8045_v5 = vsub.f32 %v14967_v49, %v8019_v47 }
 0xf1b   : > { %v15031_v18 = vpop.eup %11443  ;;  %v8065_v10 = vmul.f32 1.442695, %v8042_v57 }
 0xf1c   : > { %v15033_v46 = vpop.eup %11445  ;;  %v8071_v42 = vmul.f32 1.442695, %v8045_v5  ;;  %v8092_v60 = vsel %vm1344_vm5, %v15031_v18, 0.0 }
 0xf1d   : > { %11447 = vpow2.f32 %v8065_v10  ;;  %v8101_v1 = vsel %vm1344_vm5, %v15033_v46, 0.0  ;;  %8093 = vadd.xlane.f32.xlu1 %v8092_v60 }
 0xf1e   : > { %11449 = vpow2.f32 %v8071_v42  ;;  %8102 = vadd.xlane.f32.xlu2 %v8101_v1 }
 0xf20   : > { %v8022_v11 = vpop.xlane.xlu1 %8021 }
 0xf21   : > { %v8031_v26 = vpop.xlane.xlu2 %8030  ;;  %v8046_v49 = vsub.f32 %v14975_v31, %v8022_v11  ;;  %v8085_v29 = vpop.xlane.xlu0 %8084 }
 0xf22   : > { %v8049_v43 = vsub.f32 %v14977_v2, %v8031_v26  ;;  %11451 = vrcp.f32 %v8085_v29 }
 0xf23   : > { %v15041_v12 = vpop.eup %11447  ;;  %v8073_v50 = vmul.f32 1.442695, %v8046_v49 }
 0xf24   : > { %v15043_v57 = vpop.eup %11449  ;;  %v8079_v47 = vmul.f32 1.442695, %v8049_v43  ;;  %v8104_v5 = vsel %vm1344_vm5, %v15041_v12, 0.0 }
 0xf25   : > { %11453 = vpow2.f32 %v8073_v50  ;;  %8105 = vadd.xlane.f32.xlu0 %v8104_v5  ;;  %v8113_v10 = vsel %vm1344_vm5, %v15043_v57, 0.0 }
 0xf26   : > { %11455 = vpow2.f32 %v8079_v47  ;;  %8114 = vadd.xlane.f32.xlu1 %v8113_v10 }
 0xf28   : > { %v11452_v31 = vpop.eup %11451  ;;  %v8034_v42 = vpop.xlane.xlu1 %8033 }
 0xf29   : > { %v8147_v2 = vmul.f32 %v11452_v31, %v14973_v63  ;;  %v8088_v60 = vpop.xlane.xlu2 %8087  ;;  %v8050_v1 = vsub.f32 %v14991_v27, %v8034_v42  ;;  %v8097_v11 = vpop.xlane.xlu0 %8096 }
 0xf2a   : > { %11457 = vrcp.f32 %v8088_v60 }
 0xf2b   : > { %v15051_v26 = vpop.eup %11453  ;;  %v8081_v49 = vmul.f32 1.442695, %v8050_v1  ;;  %11459 = vrcp.f32 %v8097_v11  ;;  %10807 = vmatmul.msk.f32.vlgmr.msrb.gmra.mxu2 %vm1344_vm5, %v8147_v2 }
 0xf2c   : > { %v15054_v29 = vpop.eup %11455  ;;  %8365 = vmatpush.msrb.mxu2 %v14470_v30  ;;  %v8116_v43 = vsel %vm1344_vm5, %v15051_v26, 0.0 }
 0xf2d   : > { %11461 = vpow2.f32 %v8081_v49  ;;  %8117 = vadd.xlane.f32.xlu2 %v8116_v43  ;;  %v8125_v27 = vsel %vm1344_vm5, %v15054_v29, 0.0 }
 0xf2e   : > { %8126 = vadd.xlane.f32.xlu0 %v8125_v27 }
 0xf30   : > { %v11458_v63 = vpop.eup %11457  ;;  %v8100_v50 = vpop.xlane.xlu1 %8099 }
 0xf31   : > { %v11460_v47 = vpop.eup %11459  ;;  %v8148_v5 = vmul.f32 %v11458_v63, %v14987_v56  ;;  %v8109_v10 = vpop.xlane.xlu2 %8108  ;;  %11463 = vrcp.f32 %v8100_v50 }
 0xf32   : > { %v8151_v31 = vmul.f32 %v11460_v47, %v14989_v33  ;;  %11465 = vrcp.f32 %v8109_v10  ;;  %v8563_v47 = vsel %vm13224_vm11, %v16653_v51, 0.0  ;;  %v8568_v51 = vsel %vm13224_vm11, %v13687_v40, 0.0 }
 0xf33   : > { %v15063_v42 = vpop.eup %11461  ;;  %10808 = vmatmul.msk.f32.vlgmr.msrb.gmra.mxu3 %vm1344_vm5, %v8148_v5  ;;  %v8575_v40 = vsel %vm13224_vm11, %v16658_v9, 0.0 }
 0xf34   : > { %10811 = vmatmul.msk.f32.vlgmr.msra.gmra.mxu2 %vm1344_vm5, %v8151_v31  ;;  %8388 = vmatpush.msrb.mxu3 %v14480_v14  ;;  %v8128_v2 = vsel %vm1344_vm5, %v15063_v42, 0.0 }
 0xf35   : > { %8457 = vmatpush.msra.mxu2 %v14503_v28  ;;  %8129 = vadd.xlane.f32.xlu1 %v8128_v2 }
 0xf36   : > { %v8112_v56 = vpop.xlane.xlu0 %8111 }
 0xf37   : > { %v11464_v60 = vpop.eup %11463  ;;  %11467 = vrcp.f32 %v8112_v56  ;;  %v7571_v56 = vsel %vm12323_vm4, %v14846_v0, 0.0 }
 0xf38   : > { %v11466_v1 = vpop.eup %11465  ;;  %v8152_v33 = vmul.f32 %v11464_v60, %v15001_v62  ;;  %v8121_v11 = vpop.xlane.xlu1 %8120 }
 0xf39   : > { %v8155_v49 = vmul.f32 %v11466_v1, %v15003_v7  ;;  %11469 = vrcp.f32 %v8121_v11 }
 0xf3b   : > { %10812 = vmatmul.msk.f32.vlgmr.msra.gmra.mxu3 %vm1344_vm5, %v8152_v33 }
 0xf3c   : > { %10815 = vmatmul.msk.f32.vlgmr.msrb.gmra.mxu2 %vm1344_vm5, %v8155_v49  ;;  %8480 = vmatpush.msra.mxu3 %v14518_v53 }
 0xf3d   : > { %10823 = vmatpush.xpose.msk.msrb.mxu2 %vm546_vm0, %v16700_v37  ;;  %v11468_v43 = vpop.eup %11467 }
 0xf3e   : > { %v8124_v27 = vpop.xlane.xlu0 %8123  ;;  %v8156_v62 = vmul.f32 %v11468_v43, %v15010_v48  ;;  %v16732_v43 = vld [vmem:[#allocation28_spill] sm:$0xff] }
 0xf3f   : > { %v11470_v63 = vpop.eup %11469  ;;  %11471 = vrcp.f32 %v8124_v27 }
 0xf40   : > { %v8159_v50 = vmul.f32 %v11470_v63, %v15012_v20  ;;  %v11040_v20 = vld [vmem:[%s16809_s21] ss:$0 sm:$0xff] }
 0xf43   : > { %10816 = vmatmul.msk.f32.vlgmr.msrb.gmra.mxu3 %vm1344_vm5, %v8156_v62 }
 0xf44   : > { %10819 = vmatmul.msk.f32.vlgmr.msra.gmra.mxu2 %vm1344_vm5, %v8159_v50  ;;  %10825 = vmatpush.xpose.msk.msrb.mxu3 %vm546_vm0, %v16701_v52  ;;  %v8567_v52 = vsel %vm13224_vm11, %v13682_v34, 0.0  ;;  %v8572_v34 = vsel %vm13224_vm11, %v13715_v15, 0.0 }
 0xf45   : > { %10831 = vmatpush.xpose.msk.msra.mxu2 %vm546_vm0, %v13799_v24  ;;  %v11472_v7 = vpop.eup %11471  ;;  %v8564_v24 = vsel %vm13224_vm11, %v16703_v23, 0.0 }
 0xf46   : > { %v8160_v37 = vmul.f32 %v11472_v7, %v15018_v36 }
 0xf4b   : > { %10820 = vmatmul.msk.f32.vlgmr.msra.gmra.mxu3 %vm1344_vm5, %v8160_v37  ;;  %v16735_v37 = vld [vmem:[#allocation41_spill] sm:$0xff] }
 0xf4c   : > { %10824 = vmatmul.msk.f32.vlgmr.msrb.gmra.mxu2 %vm546_vm0, %v8563_v47  ;;  %10833 = vmatpush.xpose.msk.msra.mxu3 %vm546_vm0, %v16702_v16  ;;  %v8569_v47 = vsel %vm13224_vm11, %v16735_v37, 0.0 }
 0xf4d   : > { %10839 = vmatpush.xpose.msk.msrb.mxu2 %vm546_vm0, %v16654_v35  ;;  %v8571_v35 = vsel %vm13224_vm11, %v13705_v22, 0.0  ;;  %v8576_v22 = vsel %vm13224_vm11, %v16659_v19, 0.0 }
 0xf53   : > { %10826 = vmatmul.msk.f32.vlgmr.msrb.gmra.mxu3 %vm546_vm0, %v8564_v24  ;;  %v16736_v24 = vld [vmem:[#allocation31_spill] sm:$0xff] }
 0xf54   : > { %10832 = vmatmul.msk.f32.vlgmr.msra.gmra.mxu2 %vm546_vm0, %v8567_v52  ;;  %10841 = vmatpush.xpose.msk.msrb.mxu3 %vm546_vm0, %v16704_v54  ;;  %v16737_v52 = vld [vmem:[#allocation21_spill] sm:$0xff] }
 0xf55   : > { %10847 = vmatpush.xpose.msk.msra.mxu2 %vm546_vm0, %v16656_v17 }
 0xf5b   : > { %10834 = vmatmul.msk.f32.vlgmr.msra.gmra.mxu3 %vm546_vm0, %v8568_v51  ;;  %v7579_v51 = vsel %vm12323_vm4, %v16737_v52, 0.0  ;;  %v16754_v52 = vld [vmem:[#allocation91_spill] sm:$0xff] }
 0xf5c   : > { %10840 = vmatmul.msk.f32.vlgmr.msrb.gmra.mxu2 %vm546_vm0, %v8571_v35  ;;  %10849 = vmatpush.xpose.msk.msra.mxu3 %vm546_vm0, %v16705_v44  ;;  %v16738_v35 = vld [vmem:[#allocation26_spill] sm:$0xff] }
 0xf5d   : > { %9141 = vmatpush.msrb.mxu2 %v13994_v13 }
 0xf63   : > { %10842 = vmatmul.msk.f32.vlgmr.msrb.gmra.mxu3 %vm546_vm0, %v8572_v34  ;;  %v16739_v34 = vld [vmem:[#allocation84_spill] sm:$0xff] }
 0xf64   : > { %10848 = vmatmul.msk.f32.vlgmr.msra.gmra.mxu2 %vm546_vm0, %v8575_v40  ;;  %9164 = vmatpush.msrb.mxu3 %v16706_v58  ;;  %v6635_v40 = vsel %vm876_vm1, %v16739_v34, 0.0 }
 0xf65   : > { %9233 = vmatpush.msra.mxu2 %v14396_v55 }
 0xf6b   : > { %10850 = vmatmul.msk.f32.vlgmr.msra.gmra.mxu3 %vm546_vm0, %v8576_v22 }
 0xf6c   : > { %9256 = vmatpush.msra.mxu3 %v14316_v61 }
 0xf89   : > { %v8091_v15 = vpop.xlane.xlu2 %8090 }
 0xf8a   : > { %11473 = vrcp.f32 %v8091_v15  ;;  %v7595_v15 = vadd.f32 %v7579_v51, %v6635_v40  ;;  %v7574_v51 = vsel %vm12323_vm4, %v16754_v52, 0.0  ;;  %v16756_v40 = vld [vmem:[#allocation25_spill] sm:$0xff] }
 0xf90   : > { %v11474_v13 = vpop.eup %11473  ;;  %v8094_v17 = vpop.xlane.xlu1 %8093 }
 0xf91   : > { %v8149_v9 = vmul.f32 %v11474_v13, %v15025_v38  ;;  %v8103_v16 = vpop.xlane.xlu2 %8102  ;;  %11475 = vrcp.f32 %v8094_v17 }
 0xf92   : > { %11477 = vrcp.f32 %v8103_v16  ;;  %v16740_v16 = vld [vmem:[#allocation32_spill] sm:$0xff] }
 0xf93   : > { %10809 = vmatmul.msk.f32.vlgmr.msrb.gmra.mxu0 %vm1344_vm5, %v8149_v9 }
 0xf94   : > { %8411 = vmatpush.msrb.mxu0 %v14496_v39 }
 0xf97   : > { %v11476_v55 = vpop.eup %11475 }
 0xf98   : > { %v11478_v23 = vpop.eup %11477  ;;  %v8150_v19 = vmul.f32 %v11476_v55, %v15031_v18  ;;  %v8106_v54 = vpop.xlane.xlu0 %8105  ;;  %v8570_v55 = vsel %vm13224_vm11, %v16740_v16, 0.0 }
 0xf99   : > { %v8153_v61 = vmul.f32 %v11478_v23, %v15033_v46  ;;  %v8115_v44 = vpop.xlane.xlu1 %8114  ;;  %11479 = vrcp.f32 %v8106_v54  ;;  %v16741_v23 = vld [vmem:[#allocation54_spill] sm:$0xff]  ;;  %v16742_v54 = vld [vmem:[#allocation43_spill] sm:$0xff] }
 0xf9a   : > { %11481 = vrcp.f32 %v8115_v44  ;;  %10810 = vmatmul.msk.f32.vlgmr.msra.gmra.mxu1 %vm1344_vm5, %v8150_v19  ;;  %v8573_v19 = vsel %vm13224_vm11, %v16741_v23, 0.0 }
 0xf9b   : > { %10813 = vmatmul.msk.f32.vlgmr.msra.gmra.mxu0 %vm1344_vm5, %v8153_v61  ;;  %8434 = vmatpush.msra.mxu1 %v14487_v45  ;;  %v16743_v61 = vld [vmem:[#allocation29_spill] sm:$0xff] }
 0xf9c   : > { %8503 = vmatpush.msra.mxu0 %v14558_v41  ;;  %v7583_v44 = vsel %vm12323_vm4, %v16743_v61, 0.0 }
 0xf9f   : > { %v11480_v38 = vpop.eup %11479 }
 0xfa0   : > { %v11482_v58 = vpop.eup %11481  ;;  %v8154_v48 = vmul.f32 %v11480_v38, %v15041_v12  ;;  %v8118_v36 = vpop.xlane.xlu2 %8117  ;;  %v16744_v38 = vld [vmem:[#allocation73_spill] sm:$0xff] }
 0xfa1   : > { %v8157_v18 = vmul.f32 %v11482_v58, %v15043_v57  ;;  %11483 = vrcp.f32 %v8118_v36  ;;  %v8127_v46 = vpop.xlane.xlu0 %8126  ;;  %v16745_v58 = vld [vmem:[#allocation88_spill] sm:$0xff] }
 0xfa2   : > { %11485 = vrcp.f32 %v8127_v46  ;;  %10814 = vmatmul.msk.f32.vlgmr.msrb.gmra.mxu1 %vm1344_vm5, %v8154_v48  ;;  %v6639_v48 = vsel %vm876_vm1, %v16745_v58, 0.0  ;;  %v16758_v58 = vld [vmem:[#allocation93_spill] sm:$0xff] }
 0xfa3   : > { %10817 = vmatmul.msk.f32.vlgmr.msrb.gmra.mxu0 %vm1344_vm5, %v8157_v18  ;;  %8526 = vmatpush.msrb.mxu1 %v14538_v25  ;;  %v7599_v18 = vadd.f32 %v7583_v44, %v6639_v48  ;;  %v7578_v48 = vsel %vm12323_vm4, %v16758_v58, 0.0 }
 0xfa4   : > { %10827 = vmatpush.xpose.msk.msrb.mxu0 %vm546_vm0, %v16678_v6  ;;  %v16730_v6 = vld [vmem:[#allocation19_spill] sm:$0xff] }
 0xfa5   : > { %v6627_v60 = vsel %vm876_vm1, %v16730_v6, 0.0  ;;  %v16748_v6 = vld [vmem:[#allocation61_spill] sm:$0xff] }
 0xfa7   : > { %v11484_v5 = vpop.eup %11483 }
 0xfa8   : > { %v11486_v10 = vpop.eup %11485  ;;  %v8158_v31 = vmul.f32 %v11484_v5, %v15051_v26  ;;  %v8130_v12 = vpop.xlane.xlu1 %8129 }
 0xfa9   : > { %v8161_v2 = vmul.f32 %v11486_v10, %v15054_v29  ;;  %11487 = vrcp.f32 %v8130_v12  ;;  %v7587_v29 = vadd.f32 %v7571_v56, %v6627_v60  ;;  %v16749_v60 = vld [vmem:[#allocation72_spill] sm:$0xff] }
 0xfaa   : > { %10818 = vmatmul.msk.f32.vlgmr.msra.gmra.mxu1 %vm1344_vm5, %v8158_v31  ;;  %v16746_v31 = vld [vmem:[#allocation44_spill] sm:$0xff] }
 0xfab   : > { %10821 = vmatmul.msk.f32.vlgmr.msra.gmra.mxu0 %vm1344_vm5, %v8161_v2  ;;  %10829 = vmatpush.xpose.msk.msra.mxu1 %vm546_vm0, %v16676_v59  ;;  %v8565_v59 = vsel %vm13224_vm11, %v13660_v21, 0.0  ;;  %v8574_v12 = vsel %vm13224_vm11, %v16746_v31, 0.0  ;;  %v16747_v2 = vld [vmem:[#allocation20_spill] sm:$0xff] }
 0xfac   : > { %10835 = vmatpush.xpose.msk.msra.mxu0 %vm546_vm0, %v16680_v3  ;;  %v7575_v3 = vsel %vm12323_vm4, %v14854_v32, 0.0  ;;  %v8577_v56 = vsel %vm13224_vm11, %v16747_v2, 0.0 }
 0xfae   : > { %v8183_v1 = vpop.f32.mrf.mxu2 }
 0xfaf   : > { %v11488_v33 = vpop.eup %11487  ;;  %v8531_v11 = vsel %vm13005_vm8, %v8183_v1, 0.0 }
 0xfb0   : > { %v8162_v0 = vmul.f32 %v11488_v33, %v15063_v42  ;;  %v15167_v49 = vadd.f32 %v8531_v11, %v7587_v29  ;;  %v16733_v42 = vld [vmem:[#allocation80_spill] sm:$0xff]  ;;  %v16750_v11 = vld [vmem:[#allocation23_spill] sm:$0xff] }
 0xfb1   : > { %v6631_v27 = vsel %vm876_vm1, %v16733_v42, 0.0 }
 0xfb2   : > { %10822 = vmatmul.msk.f32.vlgmr.msrb.gmra.mxu1 %vm1344_vm5, %v8162_v0  ;;  %v7591_v50 = vadd.f32 %v7575_v3, %v6631_v27  ;;  %v8578_v0 = vsel %vm13224_vm11, %v16750_v11, 0.0 }
 0xfb3   : > { %10828 = vmatmul.msk.f32.vlgmr.msrb.gmra.mxu0 %vm546_vm0, %v8565_v59  ;;  %10837 = vmatpush.xpose.msk.msrb.mxu1 %vm546_vm0, %v16677_v4  ;;  %v16734_v4 = vld [vmem:[#allocation42_spill] sm:$0xff] }
 0xfb4   : > { %10843 = vmatpush.xpose.msk.msrb.mxu0 %vm546_vm0, %v16732_v43  ;;  %v8566_v32 = vsel %vm13224_vm11, %v16734_v4, 0.0  ;;  %v16751_v59 = vld [vmem:[#allocation78_spill] sm:$0xff] }
 0xfb6   : > { %v15184_v63 = vpop.f32.mrf.mxu3 }
 0xfb7   : > { %v8275_v21 = vpop.f32.mrf.mxu2 }
 0xfb8   : > { %v8535_v62 = vsel %vm13005_vm8, %v8275_v21, 0.0 }
 0xfb9   : > { %v15188_v7 = vadd.f32 %v8535_v62, %v7591_v50  ;;  %v16752_v50 = vld [vmem:[#allocation45_spill] sm:$0xff]  ;;  %v16753_v62 = vld [vmem:[#allocation39_spill] sm:$0xff] }
 0xfba   : > { %10830 = vmatmul.msk.f32.vlgmr.msra.gmra.mxu1 %vm546_vm0, %v8566_v32  ;;  %v7573_v21 = vsel %vm12323_vm4, %v16752_v50, 0.0  ;;  %v6629_v4 = vsel %vm876_vm1, %v16753_v62, 0.0 }
 0xfbb   : > { %10836 = vmatmul.msk.f32.vlgmr.msra.gmra.mxu0 %vm546_vm0, %v8569_v47  ;;  %10845 = vmatpush.xpose.msk.msra.mxu1 %vm546_vm0, %v16736_v24  ;;  %v7589_v32 = vadd.f32 %v7573_v21, %v6629_v4  ;;  %v16763_v21 = vld [vmem:[#allocation96_spill] sm:$0xff]  ;;  %v16764_v4 = vld [vmem:[#allocation85_spill] sm:$0xff] }
 0xfbc   : > { %10851 = vmatpush.xpose.msk.msra.mxu0 %vm546_vm0, %v16738_v35  ;;  %v16755_v35 = vld [vmem:[#allocation92_spill] sm:$0xff]  ;;  %v7585_v62 = vsel %vm12323_vm4, %v16763_v21, 0.0 }
 0xfbd   : > { %v7577_v34 = vsel %vm12323_vm4, %v16755_v35, 0.0 }
 0xfbe   : > { %v15208_v22 = vpop.f32.mrf.mxu3 }
 0xfbf   : > { %v8367_v13 = vpop.f32.mrf.mxu2 }
 0xfc0   : > { %v8539_v17 = vsel %vm13005_vm8, %v8367_v13, 0.0  ;;  %v16757_v13 = vld [vmem:[#allocation82_spill] sm:$0xff] }
 0xfc1   : > { %v15212_v9 = vadd.f32 %v8539_v17, %v7595_v15  ;;  %v6630_v15 = vsel %vm876_vm1, %v16756_v40, 0.0  ;;  %v6633_v17 = vsel %vm876_vm1, %v16757_v13, 0.0 }
 0xfc2   : > { %10838 = vmatmul.msk.f32.vlgmr.msrb.gmra.mxu1 %vm546_vm0, %v8570_v55  ;;  %v7590_v16 = vadd.f32 %v7574_v51, %v6630_v15  ;;  %v7593_v23 = vadd.f32 %v7577_v34, %v6633_v17 }
 0xfc3   : > { %10844 = vmatmul.msk.f32.vlgmr.msrb.gmra.mxu0 %vm546_vm0, %v8573_v19  ;;  %10853 = vmatpush.xpose.msk.msrb.mxu1 %vm546_vm0, %v16742_v54 }
 0xfc4   : > { %9187 = vmatpush.msrb.mxu0 %v16744_v38 }
 0xfc6   : > { %v15231_v36 = vpop.f32.mrf.mxu3 }
 0xfc7   : > { %v8459_v46 = vpop.f32.mrf.mxu2 }
 0xfc8   : > { %v8543_v5 = vsel %vm13005_vm8, %v8459_v46, 0.0 }
 0xfc9   : > { %v15235_v10 = vadd.f32 %v8543_v5, %v7599_v18  ;;  %v16759_v18 = vld [vmem:[#allocation94_spill] sm:$0xff]  ;;  %v16760_v5 = vld [vmem:[#allocation81_spill] sm:$0xff] }
 0xfca   : > { %10846 = vmatmul.msk.f32.vlgmr.msra.gmra.mxu1 %vm546_vm0, %v8574_v12  ;;  %v7581_v46 = vsel %vm12323_vm4, %v16759_v18, 0.0  ;;  %v6634_v31 = vsel %vm876_vm1, %v16760_v5, 0.0  ;;  %v16761_v12 = vld [vmem:[#allocation86_spill] sm:$0xff] }
 0xfcb   : > { %10852 = vmatmul.msk.f32.vlgmr.msra.gmra.mxu0 %vm546_vm0, %v8577_v56  ;;  %9210 = vmatpush.msra.mxu1 %v16748_v6  ;;  %v6637_v2 = vsel %vm876_vm1, %v16761_v12, 0.0  ;;  %v7594_v56 = vadd.f32 %v7578_v48, %v6634_v31 }
 0xfcc   : > { %9279 = vmatpush.msra.mxu0 %v16749_v60  ;;  %v7597_v60 = vadd.f32 %v7581_v46, %v6637_v2 }
 0xfce   : > { %v15247_v29 = vpop.f32.mrf.mxu3 }
 0xfcf   : > { %v15249_v1 = vpop.f32.mrf.mxu2 }
 0xfd0   : > { %v8947_v33 = vsel %vm1344_vm5, %v15249_v1, -inf }
 0xfd1   : > { %8948 = vmax.xlane.f32.xlu2 %v8947_v33 }
 0xfd2   : > { %10854 = vmatmul.msk.f32.vlgmr.msrb.gmra.mxu1 %vm546_vm0, %v8578_v0 }
 0xfd3   : > { %9302 = vmatpush.msrb.mxu1 %v16751_v59 }
 0xfd6   : > { %v15258_v3 = vpop.f32.mrf.mxu3 }
 0xfd7   : > { %v8950_v43 = vsel %vm1344_vm5, %v15258_v3, -inf  ;;  %v15262_v42 = vpop.f32.mrf.mxu2 }
 0xfd8   : > { %8951 = vmax.xlane.f32.xlu0 %v8950_v43  ;;  %v8959_v27 = vsel %vm1344_vm5, %v15262_v42, -inf }
 0xfde   : > { %v8714_v5 = vpop.f32.mrf.mxu3 }
 0xfe0   : > { %8960 = vmax.xlane.f32.xlu0 %v8959_v27  ;;  %v16762_v27 = vld [vmem:[#allocation95_spill] sm:$0xff] }
 0xfe1   : > { %v7582_v50 = vsel %vm12323_vm4, %v16762_v27, 0.0 }
0x1010   : > { %v8229_v37 = vpop.f32.mrf.mxu0 }
0x1011   : > { %v8533_v47 = vsel %vm13005_vm8, %v8229_v37, 0.0  ;;  %v16765_v37 = vld [vmem:[#allocation90_spill] sm:$0xff] }
0x1012   : > { %v15274_v24 = vadd.f32 %v8533_v47, %v7589_v32  ;;  %v6638_v32 = vsel %vm876_vm1, %v16764_v4, 0.0  ;;  %v6641_v47 = vsel %vm876_vm1, %v16765_v37, 0.0 }
0x1013   : > { %v7598_v52 = vadd.f32 %v7582_v50, %v6638_v32  ;;  %v7601_v35 = vadd.f32 %v7585_v62, %v6641_v47 }
0x1017   : > { %v8252_v55 = vpop.f32.mrf.mxu1 }
0x1018   : > { %v8534_v19 = vsel %vm13005_vm8, %v8252_v55, 0.0  ;;  %v8321_v54 = vpop.f32.mrf.mxu0 }
0x1019   : > { %v15290_v61 = vadd.f32 %v8534_v19, %v7590_v16  ;;  %v8537_v44 = vsel %vm13005_vm8, %v8321_v54, 0.0  ;;  %v16766_v16 = vld [vmem:[#allocation97_spill] sm:$0xff] }
0x101a   : > { %v15294_v38 = vadd.f32 %v8537_v44, %v7593_v23  ;;  %v7586_v55 = vsel %vm12323_vm4, %v16766_v16, 0.0  ;;  %v16767_v23 = vld [vmem:[#allocation89_spill] sm:$0xff] }
0x101b   : > { %v6642_v19 = vsel %vm876_vm1, %v16767_v23, 0.0 }
0x101c   : > { %v7602_v54 = vadd.f32 %v7586_v55, %v6642_v19 }
0x101f   : > { %v8344_v6 = vpop.f32.mrf.mxu1 }
0x1020   : > { %v8538_v33 = vsel %vm13005_vm8, %v8344_v6, 0.0  ;;  %v8413_v11 = vpop.f32.mrf.mxu0 }
0x1021   : > { %v15310_v0 = vadd.f32 %v8538_v33, %v7594_v56  ;;  %v8541_v59 = vsel %vm13005_vm8, %v8413_v11, 0.0  ;;  %v8962_v56 = vsel %vm1344_vm5, %v8714_v5, -inf }
0x1022   : > { %v15314_v43 = vadd.f32 %v8541_v59, %v7597_v60  ;;  %v15350_v60 = vpop.f32.mrf.mxu2 }
0x1023   : > { %v8971_v33 = vsel %vm1344_vm5, %v15350_v60, -inf }
0x1027   : > { %v8436_v51 = vpop.f32.mrf.mxu1 }
0x1028   : > { %v8542_v34 = vsel %vm13005_vm8, %v8436_v51, 0.0  ;;  %v8505_v40 = vpop.f32.mrf.mxu0 }
0x1029   : > { %v15330_v15 = vadd.f32 %v8542_v34, %v7598_v52  ;;  %v8545_v13 = vsel %vm13005_vm8, %v8505_v40, 0.0  ;;  %v15369_v34 = vpop.f32.mrf.mxu3 }
0x102a   : > { %v15334_v17 = vadd.f32 %v8545_v13, %v7601_v35  ;;  %v8974_v40 = vsel %vm1344_vm5, %v15369_v34, -inf }
0x102f   : > { %v8528_v44 = vpop.f32.mrf.mxu1 }
0x1030   : > { %v8546_v58 = vsel %vm13005_vm8, %v8528_v44, 0.0  ;;  %v8645_v48 = vpop.f32.mrf.mxu0 }
0x1031   : > { %v15344_v18 = vadd.f32 %v8546_v58, %v7602_v54  ;;  %v8953_v46 = vsel %vm1344_vm5, %v8645_v48, -inf }
0x1032   : > { %8954 = vmax.xlane.f32.xlu1 %v8953_v46 }
0x1037   : > { %v8668_v31 = vpop.f32.mrf.mxu1 }
0x1038   : > { %v8737_v12 = vpop.f32.mrf.mxu0  ;;  %v8956_v2 = vsel %vm1344_vm5, %v8668_v31, -inf }
0x1039   : > { %8957 = vmax.xlane.f32.xlu2 %v8956_v2  ;;  %v8965_v6 = vsel %vm1344_vm5, %v8737_v12, -inf }
0x103a   : > { %8963 = vmax.xlane.f32.xlu1 %v8962_v56  ;;  %8966 = vmax.xlane.f32.xlu0 %v8965_v6 }
0x103f   : > { %v15360_v47 = vpop.f32.mrf.mxu1 }
0x1042   : > { %8972 = vmax.xlane.f32.xlu0 %v8971_v33 }
0x1044   : > { %v8949_v11 = vpop.xlane.xlu2 %8948 }
0x1045   : > { %v8995_v59 = vsub.f32 %v15249_v1, %v8949_v11 }
0x1047   : > { %v9011_v27 = vmul.f32 1.442695, %v8995_v59  ;;  %v15377_v16 = vpop.f32.mrf.mxu1 }
0x1048   : > { %v8980_v55 = vsel %vm1344_vm5, %v15377_v16, -inf }
0x1049   : > { %11489 = vpow2.f32 %v9011_v27 }
0x104b   : > { %v8952_v50 = vpop.xlane.xlu0 %8951 }
0x104c   : > { %v8996_v21 = vsub.f32 %v15258_v3, %v8952_v50  ;;  %v8968_v3 = vsel %vm1344_vm5, %v15360_v47, -inf }
0x104e   : > { %v9013_v62 = vmul.f32 1.442695, %v8996_v21 }
0x104f   : > { %v15356_v4 = vpop.eup %11489 }
0x1050   : > { %11491 = vpow2.f32 %v9013_v62  ;;  %v9043_v32 = vsel %vm1344_vm5, %v15356_v4, 0.0 }
0x1051   : > { %9044 = vadd.xlane.f32.xlu2 %v9043_v32 }
0x1053   : > { %v8961_v37 = vpop.xlane.xlu0 %8960 }
0x1054   : > { %v8999_v1 = vsub.f32 %v15262_v42, %v8961_v37 }
0x1056   : > { %v15362_v52 = vpop.eup %11491  ;;  %v9019_v35 = vmul.f32 1.442695, %v8999_v1  ;;  %v15399_v1 = vpop.f32.mrf.mxu2 }
0x1057   : > { %v9046_v51 = vsel %vm1344_vm5, %v15362_v52, 0.0 }
0x1058   : > { %9047 = vadd.xlane.f32.xlu1 %v9046_v51  ;;  %11493 = vpow2.f32 %v9019_v35 }
0x1059   : > { %8969 = vmax.xlane.f32.xlu2 %v8968_v3 }
0x105e   : > { %v15373_v13 = vpop.eup %11493 }
0x105f   : > { %v9055_v42 = vsel %vm1344_vm5, %v15373_v13, 0.0 }
0x1060   : > { %8975 = vmax.xlane.f32.xlu1 %v8974_v40  ;;  %v8983_v40 = vsel %vm1344_vm5, %v15399_v1, -inf }
0x1068   : > { %9056 = vadd.xlane.f32.xlu1 %v9055_v42 }
0x1070   : > { %8981 = vmax.xlane.f32.xlu1 %v8980_v55 }
0x10a5   : > { %v8955_v23 = vpop.xlane.xlu1 %8954 }
0x10a6   : > { %v8997_v19 = vsub.f32 %v8645_v48, %v8955_v23  ;;  %v15385_v48 = vpop.f32.mrf.mxu0 }
0x10a8   : > { %v9015_v54 = vmul.f32 1.442695, %v8997_v19  ;;  %v15410_v19 = vpop.f32.mrf.mxu3 }
0x10aa   : > { %11495 = vpow2.f32 %v9015_v54 }
0x10ac   : > { %v8958_v44 = vpop.xlane.xlu2 %8957 }
0x10ad   : > { %v8998_v58 = vsub.f32 %v8668_v31, %v8958_v44  ;;  %v8964_v46 = vpop.xlane.xlu1 %8963  ;;  %v8967_v2 = vpop.xlane.xlu0 %8966 }
0x10ae   : > { %v9001_v56 = vsub.f32 %v8737_v12, %v8967_v2  ;;  %v9000_v33 = vsub.f32 %v8714_v5, %v8964_v46  ;;  %v8977_v5 = vsel %vm1344_vm5, %v15385_v48, -inf  ;;  %v15401_v51 = vpop.f32.mrf.mxu0 }
0x10af   : > { %v9017_v6 = vmul.f32 1.442695, %v8998_v58  ;;  %v8989_v42 = vsel %vm1344_vm5, %v15401_v51, -inf }
0x10b0   : > { %v15381_v11 = vpop.eup %11495  ;;  %v9023_v59 = vmul.f32 1.442695, %v9001_v56  ;;  %v9021_v50 = vmul.f32 1.442695, %v9000_v33 }
0x10b1   : > { %11497 = vpow2.f32 %v9017_v6  ;;  %v9049_v27 = vsel %vm1344_vm5, %v15381_v11, 0.0 }
0x10b2   : > { %9050 = vadd.xlane.f32.xlu2 %v9049_v27  ;;  %11499 = vpow2.f32 %v9023_v59 }
0x10b3   : > { %11501 = vpow2.f32 %v9021_v50 }
0x10b5   : > { %v8973_v32 = vpop.xlane.xlu0 %8972 }
0x10b6   : > { %v9003_v3 = vsub.f32 %v15350_v60, %v8973_v32  ;;  %v8986_v60 = vsel %vm1344_vm5, %v15410_v19, -inf }
0x10b7   : > { %v15387_v21 = vpop.eup %11497 }
0x10b8   : > { %v9052_v31 = vsel %vm1344_vm5, %v15387_v21, 0.0  ;;  %v15391_v12 = vpop.eup %11499  ;;  %v9027_v55 = vmul.f32 1.442695, %v9003_v3 }
0x10b9   : > { %9053 = vadd.xlane.f32.xlu0 %v9052_v31  ;;  %v9061_v62 = vsel %vm1344_vm5, %v15391_v12, 0.0  ;;  %v15397_v37 = vpop.eup %11501  ;;  %v15424_v31 = vpop.f32.mrf.mxu1 }
0x10ba   : > { %8978 = vmax.xlane.f32.xlu2 %v8977_v5  ;;  %9062 = vadd.xlane.f32.xlu1 %v9061_v62  ;;  %v9058_v35 = vsel %vm1344_vm5, %v15397_v37, 0.0  ;;  %v8992_v62 = vsel %vm1344_vm5, %v15424_v31, -inf }
0x10c1   : > { %9059 = vadd.xlane.f32.xlu0 %v9058_v35 }
0x10c2   : > { %8984 = vmax.xlane.f32.xlu2 %v8983_v40  ;;  %8990 = vmax.xlane.f32.xlu1 %v8989_v42 }
0x10c4   : > { %v9045_v23 = vpop.xlane.xlu2 %9044 }
0x10c5   : > { %11503 = vrcp.f32 %v9045_v23 }
0x10c6   : > { %11505 = vpow2.f32 %v9027_v55 }
0x10c9   : > { %8987 = vmax.xlane.f32.xlu0 %v8986_v60 }
0x10cb   : > { %v11504_v54 = vpop.eup %11503  ;;  %v9048_v44 = vpop.xlane.xlu1 %9047 }
0x10cc   : > { %v9107_v58 = vmul.f32 %v11504_v54, %v15356_v4  ;;  %v8970_v46 = vpop.xlane.xlu2 %8969  ;;  %11507 = vrcp.f32 %v9048_v44  ;;  %v15415_v2 = vpop.eup %11505 }
0x10cd   : > { %v9002_v56 = vsub.f32 %v15360_v47, %v8970_v46  ;;  %v9067_v33 = vsel %vm1344_vm5, %v15415_v2, 0.0 }
0x10ce   : > { %10855 = vmatmul.msk.f32.vlgmr.msrb.gmra.mxu2 %vm1344_vm5, %v9107_v58 }
0x10cf   : > { %v9025_v6 = vmul.f32 1.442695, %v9002_v56  ;;  %9325 = vmatpush.msrb.mxu2 %v14470_v30 }
0x10d1   : > { %11509 = vpow2.f32 %v9025_v6  ;;  %9068 = vadd.xlane.f32.xlu0 %v9067_v33 }
0x10d2   : > { %v11508_v59 = vpop.eup %11507 }
0x10d3   : > { %v9108_v27 = vmul.f32 %v11508_v59, %v15362_v52  ;;  %v8976_v4 = vpop.xlane.xlu1 %8975 }
0x10d4   : > { %v9004_v50 = vsub.f32 %v15369_v34, %v8976_v4 }
0x10d5   : > { %10856 = vmatmul.msk.f32.vlgmr.msrb.gmra.mxu3 %vm1344_vm5, %v9108_v27 }
0x10d6   : > { %v9029_v47 = vmul.f32 1.442695, %v9004_v50  ;;  %9348 = vmatpush.msrb.mxu3 %v14480_v14  ;;  %v15457_v50 = vld [vmem:[%s16293_s7] ss:$0 sm:$0xff] }
0x10d7   : > { %v15428_v5 = vpop.eup %11509 }
0x10d8   : > { %11511 = vpow2.f32 %v9029_v47  ;;  %v9064_v30 = vsel %vm1344_vm5, %v15428_v5, 0.0 }
0x10d9   : > { %9065 = vadd.xlane.f32.xlu2 %v9064_v30  ;;  %8993 = vmax.xlane.f32.xlu0 %v8992_v62 }
0x10db   : > { %v9057_v52 = vpop.xlane.xlu1 %9056 }
0x10dc   : > { %11513 = vrcp.f32 %v9057_v52 }
0x10de   : > { %v15434_v34 = vpop.eup %11511 }
0x10df   : > { %v9070_v32 = vsel %vm1344_vm5, %v15434_v34, 0.0 }
0x10e1   : > { %9071 = vadd.xlane.f32.xlu2 %v9070_v32 }
0x10e2   : > { %v11514_v14 = vpop.eup %11513 }
0x10e3   : > { %v9111_v3 = vmul.f32 %v11514_v14, %v15373_v13  ;;  %v8982_v35 = vpop.xlane.xlu1 %8981  ;;  %v16769_v14 = vld [vmem:[#allocation63_spill] sm:$0xff] }
0x10e4   : > { %v9006_v40 = vsub.f32 %v15377_v16, %v8982_v35 }
0x10e5   : > { %10859 = vmatmul.msk.f32.vlgmr.msra.gmra.mxu2 %vm1344_vm5, %v9111_v3  ;;  %v4922_v3 = vadd.f32 %v15457_v50, %v16769_v14 }
0x10e6   : > { %v9033_v42 = vmul.f32 1.442695, %v9006_v40  ;;  %9417 = vmatpush.msra.mxu2 %v14503_v28  ;;  %v16770_v40 = vld [vmem:[#allocation46_spill] sm:$0xff] }
0x10e8   : > { %11515 = vpow2.f32 %v9033_v42  ;;  %v4934_v42 = vadd.f32 %v15457_v50, %v16770_v40 }
0x10ee   : > { %v15442_v55 = vpop.eup %11515 }
0x10ef   : > { %v9076_v23 = vsel %vm1344_vm5, %v15442_v55, 0.0 }
0x10f0   : > { %9077 = vadd.xlane.f32.xlu2 %v9076_v23 }
0x1125   : > { %v9051_v60 = vpop.xlane.xlu2 %9050 }
0x1126   : > { %11517 = vrcp.f32 %v9051_v60 }
0x112c   : > { %v11518_v54 = vpop.eup %11517  ;;  %v9054_v44 = vpop.xlane.xlu0 %9053 }
0x112d   : > { %v9109_v13 = vmul.f32 %v11518_v54, %v15381_v11  ;;  %v8979_v58 = vpop.xlane.xlu2 %8978  ;;  %11519 = vrcp.f32 %v9054_v44  ;;  %v9063_v46 = vpop.xlane.xlu1 %9062  ;;  %v15488_v54 = vld [vmem:[%s16294_s8] ss:$0 sm:$0xff] }
0x112e   : > { %v9005_v16 = vsub.f32 %v15385_v48, %v8979_v58  ;;  %11521 = vrcp.f32 %v9063_v46  ;;  %v16771_v58 = vld [vmem:[#allocation65_spill] sm:$0xff]  ;;  %v16772_v46 = vld [vmem:[#allocation67_spill] sm:$0xff] }
0x112f   : > { %10857 = vmatmul.msk.f32.vlgmr.msrb.gmra.mxu0 %vm1344_vm5, %v9109_v13 }
0x1130   : > { %v9031_v28 = vmul.f32 1.442695, %v9005_v16  ;;  %9371 = vmatpush.msrb.mxu0 %v14496_v39  ;;  %v4931_v16 = vadd.f32 %v15457_v50, %v16771_v58  ;;  %v16777_v58 = vld [vmem:[#allocation68_spill] sm:$0xff] }
0x1132   : > { %11523 = vpow2.f32 %v9031_v28  ;;  %v4943_v28 = vadd.f32 %v15457_v50, %v16772_v46 }
0x1133   : > { %v11520_v56 = vpop.eup %11519 }
0x1134   : > { %v9110_v6 = vmul.f32 %v11520_v56, %v15387_v21  ;;  %v9060_v33 = vpop.xlane.xlu0 %9059  ;;  %v11522_v59 = vpop.eup %11521 }
0x1135   : > { %v8985_v27 = vpop.xlane.xlu2 %8984  ;;  %11525 = vrcp.f32 %v9060_v33  ;;  %v9113_v11 = vmul.f32 %v11522_v59, %v15391_v12  ;;  %v8991_v48 = vpop.xlane.xlu1 %8990  ;;  %v16768_v12 = vld [vmem:[#allocation64_spill] sm:$0xff] }
0x1136   : > { %v9007_v4 = vsub.f32 %v15399_v1, %v8985_v27  ;;  %10858 = vmatmul.msk.f32.vlgmr.msra.gmra.mxu1 %vm1344_vm5, %v9110_v6  ;;  %v9009_v39 = vsub.f32 %v15401_v51, %v8991_v48  ;;  %v4925_v1 = vadd.f32 %v15457_v50, %v16768_v12  ;;  %v16773_v12 = vld [vmem:[#allocation75_spill] sm:$0xff] }
0x1137   : > { %9394 = vmatpush.msra.mxu1 %v14487_v45  ;;  %10861 = vmatmul.msk.f32.vlgmr.msra.gmra.mxu0 %vm1344_vm5, %v9113_v11 }
0x1138   : > { %v15461_v21 = vpop.eup %11523  ;;  %v9035_v47 = vmul.f32 1.442695, %v9007_v4  ;;  %v9039_v30 = vmul.f32 1.442695, %v9009_v39  ;;  %9463 = vmatpush.msra.mxu0 %v14558_v41 }
0x1139   : > { %v9073_v62 = vsel %vm1344_vm5, %v15461_v21, 0.0 }
0x113a   : > { %11527 = vpow2.f32 %v9035_v47  ;;  %9074 = vadd.xlane.f32.xlu1 %v9073_v62  ;;  %v16774_v62 = vld [vmem:[#allocation76_spill] sm:$0xff] }
0x113b   : > { %v11526_v52 = vpop.eup %11525  ;;  %11529 = vpow2.f32 %v9039_v30 }
0x113c   : > { %v9112_v45 = vmul.f32 %v11526_v52, %v15397_v37  ;;  %v8988_v51 = vpop.xlane.xlu0 %8987  ;;  %11531 = vtanh.f32 %v4925_v1  ;;  %v4928_v1 = vadd.f32 %v15457_v50, %v16773_v12  ;;  %v4940_v52 = vadd.f32 %v15457_v50, %v16774_v62 }
0x113d   : > { %v9008_v32 = vsub.f32 %v15410_v19, %v8988_v51  ;;  %v16775_v51 = vld [vmem:[#allocation69_spill] sm:$0xff] }
0x113e   : > { %10860 = vmatmul.msk.f32.vlgmr.msra.gmra.mxu3 %vm1344_vm5, %v9112_v45 }
0x113f   : > { %v9037_v35 = vmul.f32 1.442695, %v9008_v32  ;;  %9440 = vmatpush.msra.mxu3 %v14518_v53 }
0x1140   : > { %v15475_v41 = vpop.eup %11527 }
0x1141   : > { %v15479_v23 = vpop.eup %11529  ;;  %11533 = vpow2.f32 %v9037_v35  ;;  %v9079_v37 = vsel %vm1344_vm5, %v15475_v41, 0.0 }
0x1142   : > { %v9085_v19 = vsel %vm1344_vm5, %v15479_v23, 0.0  ;;  %9080 = vadd.xlane.f32.xlu0 %v9079_v37  ;;  %v11532_v60 = vpop.eup %11531  ;;  %11535 = vtanh.f32 %v4922_v3 }
0x1143   : > { %9086 = vadd.xlane.f32.xlu2 %v9085_v19  ;;  %11537 = vtanh.f32 %v4934_v42  ;;  %v4990_v44 = vmul.f32 %v11532_v60, %v15488_v54  ;;  %v16776_v19 = vld [vmem:[#allocation66_spill] sm:$0xff] }
0x1144   : > { %v9069_v53 = vpop.xlane.xlu0 %9068  ;;  %v4937_v60 = vadd.f32 %v15457_v50, %v16776_v19 }
0x1145   : > { %11539 = vrcp.f32 %v9069_v53  ;;  %v5009_v59 = vsel %vm5005_vm12, %v4990_v44, 0.0 }
0x1146   : > { %11541 = vtanh.f32 %v4931_v16  ;;  %v4949_v16 = vadd.f32 %v15457_v50, %v16777_v58 }
0x1147   : > { %v15491_v13 = vpop.eup %11533  ;;  %11543 = vtanh.f32 %v4943_v28 }
0x1148   : > { %v9082_v56 = vsel %vm1344_vm5, %v15491_v13, 0.0  ;;  %v11536_v6 = vpop.eup %11535 }
0x1149   : > { %9083 = vadd.xlane.f32.xlu1 %v9082_v56  ;;  %v11538_v33 = vpop.eup %11537  ;;  %v4989_v39 = vmul.f32 %v11536_v6, %v15488_v54  ;;  %v16778_v6 = vld [vmem:[#allocation27_spill] sm:$0xff] }
0x114a   : > { %v4993_v30 = vmul.f32 %v11538_v33, %v15488_v54  ;;  %v4961_v33 = vadd.f32 %v15457_v50, %v16778_v6  ;;  %v16783_v6 = vld [vmem:[#allocation30_spill] sm:$0xff] }
0x114b   : > { %v11540_v27 = vpop.eup %11539  ;;  %5010 = vadd.xlane.f32.xlu2 %v5009_v59  ;;  %v5006_v32 = vsel %vm5005_vm12, %v4989_v39, 0.0  ;;  %v16779_v39 = vld [vmem:[#allocation77_spill] sm:$0xff] }
0x114c   : > { %v9115_v11 = vmul.f32 %v11540_v27, %v15415_v2  ;;  %v9066_v4 = vpop.xlane.xlu2 %9065  ;;  %v8994_v48 = vpop.xlane.xlu0 %8993  ;;  %v4952_v2 = vadd.f32 %v15457_v50, %v16775_v51  ;;  %v5018_v3 = vsel %vm5005_vm12, %v4993_v30, 0.0 }
0x114d   : > { %11545 = vrcp.f32 %v9066_v4  ;;  %v9010_v47 = vsub.f32 %v15424_v31, %v8994_v48  ;;  %v11542_v14 = vpop.eup %11541 }
0x114e   : > { %10863 = vmatmul.msk.f32.vlgmr.msrb.gmra.mxu2 %vm1344_vm5, %v9115_v11  ;;  %v11544_v31 = vpop.eup %11543  ;;  %v4992_v37 = vmul.f32 %v11542_v14, %v15488_v54 }
0x114f   : > { %v9041_v45 = vmul.f32 1.442695, %v9010_v47  ;;  %v4996_v53 = vmul.f32 %v11544_v31, %v15488_v54  ;;  %v4946_v47 = vadd.f32 %v15457_v50, %v16779_v39 }
0x1151   : > { %11547 = vpow2.f32 %v9041_v45  ;;  %5007 = vadd.xlane.f32.xlu1 %v5006_v32  ;;  %v5027_v27 = vsel %vm5005_vm12, %v4996_v53, 0.0 }
0x1152   : > { %11549 = vtanh.f32 %v4928_v1  ;;  %v16780_v1 = vld [vmem:[#allocation49_spill] sm:$0xff] }
0x1153   : > { %v11546_v35 = vpop.eup %11545  ;;  %11551 = vtanh.f32 %v4940_v52  ;;  %5019 = vadd.xlane.f32.xlu2 %v5018_v3  ;;  %v4958_v30 = vadd.f32 %v15457_v50, %v16780_v1  ;;  %v16781_v3 = vld [vmem:[#allocation70_spill] sm:$0xff]  ;;  %v9600_v1 = vld [vmem:[%s16297_s11 + $0x18] sm:$0xff] }
0x1154   : > { %11553 = vtanh.f32 %v4952_v2  ;;  %v9114_v40 = vmul.f32 %v11546_v35, %v15428_v5  ;;  %v9072_v42 = vpop.xlane.xlu2 %9071  ;;  %v5015_v5 = vsel %vm5005_vm12, %v4992_v37, 0.0  ;;  %v4955_v35 = vadd.f32 %v15457_v50, %v16781_v3 }
0x1155   : > { %11555 = vrcp.f32 %v9072_v42  ;;  %v16782_v42 = vld [vmem:[#allocation48_spill] sm:$0xff] }
0x1156   : > { %10862 = vmatmul.msk.f32.vlgmr.msrb.gmra.mxu1 %vm1344_vm5, %v9114_v40  ;;  %11557 = vtanh.f32 %v4937_v60  ;;  %v4967_v37 = vadd.f32 %v15457_v50, %v16782_v42 }
0x1157   : > { %v15519_v44 = vpop.eup %11547  ;;  %9486 = vmatpush.msrb.mxu1 %v14538_v25  ;;  %11559 = vtanh.f32 %v4949_v16 }
0x1158   : > { %v11550_v46 = vpop.eup %11549  ;;  %v9088_v28 = vsel %vm1344_vm5, %v15519_v44, 0.0  ;;  %11561 = vtanh.f32 %v4961_v33  ;;  %v4964_v33 = vadd.f32 %v15457_v50, %v16783_v6  ;;  %v16784_v6 = vld [vmem:[#allocation35_spill] sm:$0xff] }
0x1159   : > { %v11552_v56 = vpop.eup %11551  ;;  %5016 = vadd.xlane.f32.xlu1 %v5015_v5  ;;  %9089 = vadd.xlane.f32.xlu0 %v9088_v28  ;;  %v4991_v48 = vmul.f32 %v11550_v46, %v15488_v54  ;;  %11563 = vtanh.f32 %v4946_v47 }
0x115a   : > { %v11554_v59 = vpop.eup %11553  ;;  %v4995_v4 = vmul.f32 %v11552_v56, %v15488_v54  ;;  %11565 = vtanh.f32 %v4958_v30  ;;  %v9599_v30 = vld [vmem:[%s16297_s11 + $0x10] sm:$0xff] }
0x115b   : > { %v11556_v11 = vpop.eup %11555  ;;  %5028 = vadd.xlane.f32.xlu2 %v5027_v27  ;;  %v4999_v12 = vmul.f32 %v11554_v59, %v15488_v54 }
0x115c   : > { %v9116_v25 = vmul.f32 %v11556_v11, %v15434_v34  ;;  %v11558_v62 = vpop.eup %11557  ;;  %v5024_v52 = vsel %vm5005_vm12, %v4995_v4, 0.0  ;;  %v5012_v34 = vsel %vm5005_vm12, %v4991_v48, 0.0 }
0x115d   : > { %v11560_v45 = vpop.eup %11559  ;;  %v5036_v51 = vsel %vm5005_vm12, %v4999_v12, 0.0  ;;  %v4994_v31 = vmul.f32 %v11558_v62, %v15488_v54 }
0x115e   : > { %10864 = vmatmul.msk.f32.vlgmr.msrb.gmra.mxu3 %vm1344_vm5, %v9116_v25  ;;  %v11562_v2 = vpop.eup %11561  ;;  %v4998_v14 = vmul.f32 %v11560_v45, %v15488_v54 }
0x115f   : > { %v5002_v40 = vmul.f32 %v11562_v2, %v15488_v54  ;;  %v11564_v19 = vpop.eup %11563  ;;  %v5021_v53 = vsel %vm5005_vm12, %v4994_v31, 0.0  ;;  %9665 = vmatpush.msrb.mxu3 %v9600_v1  ;;  %v16789_v1 = vld [vmem:[#allocation83_spill] sm:$0xff] }
0x1160   : > { %v5033_v60 = vsel %vm5005_vm12, %v4998_v14, 0.0  ;;  %v11566_v58 = vpop.eup %11565  ;;  %v4997_v56 = vmul.f32 %v11564_v19, %v15488_v54 }
0x1161   : > { %5025 = vadd.xlane.f32.xlu1 %v5024_v52  ;;  %5013 = vadd.xlane.f32.xlu0 %v5012_v34  ;;  %v5045_v46 = vsel %vm5005_vm12, %v5002_v40, 0.0  ;;  %v5001_v28 = vmul.f32 %v11566_v58, %v15488_v54  ;;  %v9598_v52 = vld [vmem:[%s16297_s11 + $0x8] sm:$0xff]  ;;  %v9143_v58 = vpop.f32.mrf.mxu2 }
0x1162   : > { %v5030_v11 = vsel %vm5005_vm12, %v4997_v56, 0.0  ;;  %9666 = vmatpush.msrb.mxu3 %v9599_v30  ;;  %v6636_v30 = vsel %vm876_vm1, %v16789_v1, 0.0 }
0x1163   : > { %5037 = vadd.xlane.f32.xlu2 %v5036_v51  ;;  %v9078_v32 = vpop.xlane.xlu2 %9077  ;;  %v5042_v27 = vsel %vm5005_vm12, %v5001_v28, 0.0 }
0x1164   : > { %11567 = vrcp.f32 %v9078_v32  ;;  %9667 = vmatpush.msrb.mxu3 %v9598_v52  ;;  %v9166_v52 = vpop.f32.mrf.mxu3 }
0x1165   : > { %11569 = vtanh.f32 %v4955_v35 }
0x1166   : > { %11571 = vtanh.f32 %v4967_v37 }
0x1167   : > { %11573 = vtanh.f32 %v4964_v33  ;;  %v16785_v33 = vld [vmem:[#allocation52_spill] sm:$0xff] }
0x1169   : > { %5034 = vadd.xlane.f32.xlu1 %v5033_v60  ;;  %5022 = vadd.xlane.f32.xlu0 %v5021_v53 }
0x116a   : > { %v11568_v16 = vpop.eup %11567 }
0x116b   : > { %v9118_v5 = vmul.f32 %v11568_v16, %v15442_v55  ;;  %5046 = vadd.xlane.f32.xlu2 %v5045_v46  ;;  %v11570_v59 = vpop.eup %11569 }
0x116c   : > { %v11572_v25 = vpop.eup %11571  ;;  %v5000_v55 = vmul.f32 %v11570_v59, %v15488_v54  ;;  %v7576_v59 = vsel %vm12323_vm4, %v16785_v33, 0.0 }
0x116d   : > { %10866 = vmatmul.msk.f32.vlgmr.msra.gmra.mxu1 %vm1344_vm5, %v9118_v5  ;;  %v5004_v4 = vmul.f32 %v11572_v25, %v15488_v54  ;;  %v11574_v47 = vpop.eup %11573  ;;  %v9491_v25 = vsel %vm13224_vm11, %v9143_v58, 0.0 }
0x116e   : > { %v5039_v48 = vsel %vm5005_vm12, %v5000_v55, 0.0  ;;  %v5003_v50 = vmul.f32 %v11574_v47, %v15488_v54  ;;  %v9597_v54 = vld [vmem:[%s16297_s11] sm:$0xff] }
0x116f   : > { %v5051_v39 = vsel %vm5005_vm12, %v5004_v4, 0.0  ;;  %9668 = vmatpush.msrb.mxu3 %v9597_v54 }
0x1170   : > { %v5048_v12 = vsel %vm5005_vm12, %v5003_v50, 0.0  ;;  %v16788_v50 = vld [vmem:[#allocation22_spill] sm:$0xff] }
0x1171   : > { %5043 = vadd.xlane.f32.xlu1 %v5042_v27  ;;  %5031 = vadd.xlane.f32.xlu0 %v5030_v11  ;;  %v16786_v27 = vld [vmem:[#allocation51_spill] sm:$0xff] }
0x1172   : > { %v7580_v11 = vsel %vm12323_vm4, %v16786_v27, 0.0 }
0x1179   : > { %5040 = vadd.xlane.f32.xlu0 %v5039_v48  ;;  %5052 = vadd.xlane.f32.xlu1 %v5051_v39  ;;  %v16787_v39 = vld [vmem:[#allocation18_spill] sm:$0xff] }
0x117a   : > { %v6628_v47 = vsel %vm876_vm1, %v16787_v39, 0.0 }
0x1181   : > { %5049 = vadd.xlane.f32.xlu0 %v5048_v12  ;;  %v6632_v12 = vsel %vm876_vm1, %v16788_v50, 0.0 }
0x11ad   : > { %v9075_v62 = vpop.xlane.xlu1 %9074 }
0x11ae   : > { %11575 = vrcp.f32 %v9075_v62 }
0x11b4   : > { %v11576_v34 = vpop.eup %11575 }
0x11b5   : > { %v9117_v45 = vmul.f32 %v11576_v34, %v15461_v21  ;;  %v9081_v51 = vpop.xlane.xlu0 %9080 }
0x11b6   : > { %v9087_v2 = vpop.xlane.xlu2 %9086  ;;  %11577 = vrcp.f32 %v9081_v51  ;;  %v7592_v51 = vadd.f32 %v7576_v59, %v6632_v12 }
0x11b7   : > { %11579 = vrcp.f32 %v9087_v2  ;;  %10865 = vmatmul.msk.f32.vlgmr.msrb.gmra.mxu0 %vm1344_vm5, %v9117_v45  ;;  %v7596_v2 = vadd.f32 %v7580_v11, %v6636_v30 }
0x11bc   : > { %v11578_v32 = vpop.eup %11577  ;;  %v9084_v14 = vpop.xlane.xlu1 %9083 }
0x11bd   : > { %v11580_v31 = vpop.eup %11579  ;;  %v9119_v3 = vmul.f32 %v11578_v32, %v15475_v41  ;;  %11581 = vrcp.f32 %v9084_v14  ;;  %v8532_v32 = vsel %vm13005_vm8, %v15184_v63, 0.0  ;;  %v15618_v14 = vadd.f32 %v9491_v25, %v15167_v49 }
0x11be   : > { %v9121_v35 = vmul.f32 %v11580_v31, %v15479_v23  ;;  %v5011_v40 = vpop.xlane.xlu2 %5010  ;;  %v9189_v23 = vpop.f32.mrf.mxu0  ;;  %v8540_v63 = vsel %vm13005_vm8, %v15231_v36, 0.0  ;;  %v9492_v49 = vsel %vm13224_vm11, %v9166_v52, 0.0 }
0x11bf   : > { %v5060_v42 = vrot.slane %v5011_v40, 4  ;;  %10867 = vmatmul.msk.f32.vlgmr.msra.gmra.mxu2 %vm1344_vm5, %v9119_v3  ;;  %v9493_v36 = vsel %vm13224_vm11, %v9189_v23, 0.0  ;;  %v15645_v25 = vadd.f32 %v8540_v63, %v7596_v2 }
0x11c0   : > { %10869 = vmatmul.msk.f32.vlgmr.msra.gmra.mxu0 %vm1344_vm5, %v9121_v35  ;;  %v9235_v35 = vpop.f32.mrf.mxu2  ;;  %v15654_v1 = vadd.f32 %v9493_v36, %v15274_v24 }
0x11c1   : > { %v5061_v21 = vmax.f32 %v5011_v40, %v5060_v42  ;;  %v9258_v23 = vpop.f32.mrf.mxu3 }
0x11c3   : > { %v11582_v37 = vpop.eup %11581  ;;  %v5062_v19 = vrot.slane %v5061_v21, 2 }
0x11c4   : > { %v9120_v60 = vmul.f32 %v11582_v37, %v15491_v13  ;;  %v15585_v53 = vpop.xlane.xlu1 %5007  ;;  %v7572_v13 = vsel %vm12323_vm4, %v16784_v6, 0.0 }
0x11c5   : > { %v5063_v16 = vmax.f32 %v5061_v21, %v5062_v19  ;;  %v5054_v41 = vrot.slane %v15585_v53, 4  ;;  %v7588_v62 = vadd.f32 %v7572_v13, %v6628_v47  ;;  %v8536_v19 = vsel %vm13005_vm8, %v15208_v22, 0.0 }
0x11c6   : > { %v15588_v46 = vpop.xlane.xlu2 %5019  ;;  %10868 = vmatmul.msk.f32.vlgmr.msra.gmra.mxu3 %vm1344_vm5, %v9120_v60  ;;  %v9212_v60 = vpop.f32.mrf.mxu1  ;;  %v8552_v11 = vadd.f32 %v8536_v19, %v7592_v51 }
0x11c7   : > { %v5064_v5 = vrot.slane %v5063_v16, 1  ;;  %v5078_v28 = vrot.slane %v15588_v46, 4  ;;  %v5055_v56 = vmax.f32 %v15585_v53, %v5054_v41  ;;  %v8548_v22 = vadd.f32 %v8532_v32, %v7588_v62  ;;  %v9281_v13 = vpop.f32.mrf.mxu0 }
0x11c8   : > { %v9494_v6 = vsel %vm13224_vm11, %v9212_v60, 0.0  ;;  %v9497_v30 = vsel %vm13224_vm11, %v9281_v13, 0.0 }
0x11c9   : > { %v5065_v55 = vmax.f32 %v5063_v16, %v5064_v5  ;;  %v5079_v4 = vmax.f32 %v15588_v46, %v5078_v28  ;;  %v5056_v48 = vrot.slane %v5055_v56, 2  ;;  %v9495_v28 = vsel %vm13224_vm11, %v9235_v35, 0.0 }
0x11cb   : > { %v5151_v54 = vsub.f32 %v5011_v40, %v5065_v55  ;;  %v5080_v34 = vrot.slane %v5079_v4, 2  ;;  %v5057_v45 = vmax.f32 %v5055_v56, %v5056_v48  ;;  %v15647_v55 = vadd.f32 %v9492_v49, %v8548_v22 }
0x11cc   : > { %v15620_v31 = vpop.xlane.xlu1 %5016  ;;  %v9090_v3 = vpop.xlane.xlu0 %9089  ;;  %v15650_v48 = vadd.f32 %v9495_v28, %v15188_v7 }
0x11cd   : > { %v5168_v42 = vmul.f32 1.442695, %v5151_v54  ;;  %v5081_v21 = vmax.f32 %v5079_v4, %v5080_v34  ;;  %v5058_v37 = vrot.slane %v5057_v45, 1  ;;  %v5072_v40 = vrot.slane %v15620_v31, 4 }
0x11ce   : > { %v15631_v58 = vpop.xlane.xlu2 %5028  ;;  %11583 = vrcp.f32 %v9090_v3  ;;  %10873 = vmatmul.msk.f32.vlgmr.msrb.gmra.mxu3 %vm546_vm0, %v15618_v14 }
0x11cf   : > { %11585 = vpow2.f32 %v5168_v42  ;;  %v5082_v16 = vrot.slane %v5081_v21, 1  ;;  %v5059_v41 = vmax.f32 %v5057_v45, %v5058_v37  ;;  %v5096_v5 = vrot.slane %v15631_v58, 4 }
0x11d0   : > { %v5073_v56 = vmax.f32 %v15620_v31, %v5072_v40 }
0x11d1   : > { %v5083_v33 = vmax.f32 %v5081_v21, %v5082_v16  ;;  %v5150_v59 = vsub.f32 %v15585_v53, %v5059_v41  ;;  %v5097_v27 = vmax.f32 %v15631_v58, %v5096_v5  ;;  %v15657_v53 = vadd.f32 %v9494_v6, %v15290_v61  ;;  %v15676_v35 = vpop.f32.mrf.mxu2 }
0x11d2   : > { %v5074_v4 = vrot.slane %v5073_v56, 2  ;;  %v9496_v61 = vsel %vm13224_vm11, %v9258_v23, 0.0  ;;  %v15682_v21 = vadd.f32 %v9497_v30, %v15294_v38  ;;  %v9499_v38 = vsel %vm13224_vm11, %v15676_v35, 0.0 }
0x11d3   : > { %v5154_v39 = vsub.f32 %v15588_v46, %v5083_v33  ;;  %v5166_v47 = vmul.f32 1.442695, %v5150_v59  ;;  %v5098_v50 = vrot.slane %v5097_v27, 2  ;;  %v15685_v19 = vpop.f32.mrf.mxu1  ;;  %v15688_v49 = vadd.f32 %v9496_v61, %v8552_v11 }
0x11d4   : > { %v11584_v12 = vpop.eup %11583  ;;  %v5075_v62 = vmax.f32 %v5073_v56, %v5074_v4  ;;  %v15661_v52 = vpop.xlane.xlu1 %5025  ;;  %v9498_v6 = vsel %vm13224_vm11, %v15685_v19, 0.0 }
0x11d5   : > { %v15663_v7 = vpop.xlane.xlu0 %5013  ;;  %v15665_v54 = vpop.eup %11585  ;;  %v5174_v46 = vmul.f32 1.442695, %v5154_v39  ;;  %11587 = vpow2.f32 %v5166_v47  ;;  %v5099_v34 = vmax.f32 %v5097_v27, %v5098_v50  ;;  %v9122_v45 = vmul.f32 %v11584_v12, %v15519_v44 }
0x11d6   : > { %v5204_v24 = vrot.slane %v15665_v54, 4  ;;  %v5076_v51 = vrot.slane %v5075_v62, 1  ;;  %v15671_v2 = vpop.xlane.xlu2 %5037  ;;  %v5090_v32 = vrot.slane %v15661_v52, 4  ;;  %10874 = vmatmul.msk.f32.gmra.mxu3 %vm546_vm0, %v15647_v55  ;;  %v5066_v44 = vrot.slane %v15663_v7, 4 }
0x11d7   : > { %11589 = vpow2.f32 %v5174_v46  ;;  %v5100_v3 = vrot.slane %v5099_v34, 1  ;;  %v5114_v42 = vrot.slane %v15671_v2, 4  ;;  %10870 = vmatmul.msk.f32.vlgmr.msrb.gmra.mxu1 %vm1344_vm5, %v9122_v45  ;;  %vm9557_vm5 = vcmask 1046534  }
0x11d8   : > { %v5205_v37 = vadd.f32 %v15665_v54, %v5204_v24  ;;  %v5077_v40 = vmax.f32 %v5075_v62, %v5076_v51  ;;  %v5091_v63 = vmax.f32 %v15661_v52, %v5090_v32  ;;  %v5067_v41 = vmax.f32 %v15663_v7, %v5066_v44 }
0x11d9   : > { %v5101_v60 = vmax.f32 %v5099_v34, %v5100_v3  ;;  %v5115_v16 = vmax.f32 %v15671_v2, %v5114_v42 }
0x11da   : > { %v5206_v5 = vrot.slane %v5205_v37, 2  ;;  %v5153_v22 = vsub.f32 %v15620_v31, %v5077_v40  ;;  %v5092_v28 = vrot.slane %v5091_v63, 2  ;;  %v5068_v33 = vrot.slane %v5067_v41, 2 }
0x11db   : > { %v15696_v36 = vpop.eup %11587  ;;  %v5157_v56 = vsub.f32 %v15631_v58, %v5101_v60  ;;  %v5116_v13 = vrot.slane %v5115_v16, 2 }
0x11dc   : > { %v5207_v59 = vadd.f32 %v5206_v5, %v5205_v37  ;;  %v5198_v27 = vrot.slane %v15696_v36, 4  ;;  %v5172_v11 = vmul.f32 1.442695, %v5153_v22  ;;  %v5093_v31 = vmax.f32 %v5091_v63, %v5092_v28  ;;  %v15703_v4 = vpop.xlane.xlu1 %5034 }
0x11dd   : > { %v15705_v23 = vpop.eup %11589  ;;  %v5180_v39 = vmul.f32 1.442695, %v5157_v56  ;;  %v5117_v47 = vmax.f32 %v5115_v16, %v5116_v13  ;;  %v5069_v50 = vmax.f32 %v5067_v41, %v5068_v33  ;;  %v5108_v58 = vrot.slane %v15703_v4, 4  ;;  %v15717_v63 = vpop.xlane.xlu0 %5022 }
0x11de   : > { %v5208_v12 = vrot.slane %v5207_v59, 1  ;;  %v5222_v30 = vrot.slane %v15705_v23, 4  ;;  %v5199_v62 = vadd.f32 %v15696_v36, %v5198_v27  ;;  %11591 = vpow2.f32 %v5172_v11  ;;  %v15710_v46 = vpop.xlane.xlu2 %5046  ;;  %10875 = vmatmul.msk.f32.gmra.mxu3 %vm546_vm0, %v15654_v1 }
0x11df   : > { %11593 = vpow2.f32 %v5180_v39  ;;  %v5118_v34 = vrot.slane %v5117_v47, 1  ;;  %v5094_v45 = vrot.slane %v5093_v31, 1  ;;  %v5070_v24 = vrot.slane %v5069_v50, 1 }
0x11e0   : > { %v5209_v61 = vadd.f32 %v5208_v12, %v5207_v59  ;;  %v5223_v51 = vadd.f32 %v15705_v23, %v5222_v30  ;;  %v5200_v32 = vrot.slane %v5199_v62, 2  ;;  %v5132_v3 = vrot.slane %v15710_v46, 4 }
0x11e1   : > { %v5119_v42 = vmax.f32 %v5117_v47, %v5118_v34  ;;  %v5095_v44 = vmax.f32 %v5093_v31, %v5094_v45  ;;  %v5071_v37 = vmax.f32 %v5069_v50, %v5070_v24  ;;  %v5109_v40 = vmax.f32 %v15703_v4, %v5108_v58 }
0x11e2   : > { %11595 = vrcp.f32 %v5209_v61  ;;  %v5224_v60 = vrot.slane %v5223_v51, 2  ;;  %v5201_v16 = vadd.f32 %v5200_v32, %v5199_v62  ;;  %v5133_v41 = vmax.f32 %v15710_v46, %v5132_v3 }
0x11e3   : > { %v5160_v5 = vsub.f32 %v15671_v2, %v5119_v42  ;;  %v5156_v22 = vsub.f32 %v15661_v52, %v5095_v44  ;;  %v5152_v28 = vsub.f32 %v15663_v7, %v5071_v37  ;;  %v5110_v56 = vrot.slane %v5109_v40, 2 }
0x11e4   : > { %v15723_v13 = vpop.eup %11591  ;;  %v5225_v33 = vadd.f32 %v5224_v60, %v5223_v51  ;;  %v5202_v59 = vrot.slane %v5201_v16, 1  ;;  %v5134_v27 = vrot.slane %v5133_v41, 2  ;;  %v5084_v11 = vrot.slane %v15717_v63, 4  ;;  %v16790_v60 = vld [vmem:[#allocation71_spill] sm:$0xff] }
0x11e5   : > { %v15726_v31 = vpop.eup %11593  ;;  %v5216_v39 = vrot.slane %v15723_v13, 4  ;;  %v5186_v47 = vmul.f32 1.442695, %v5160_v5  ;;  %v5178_v50 = vmul.f32 1.442695, %v5156_v22  ;;  %v5111_v58 = vmax.f32 %v5109_v40, %v5110_v56 }
0x11e6   : > { %v5226_v2 = vrot.slane %v5225_v33, 1  ;;  %v5203_v12 = vadd.f32 %v5202_v59, %v5201_v16  ;;  %v5240_v52 = vrot.slane %v15726_v31, 4  ;;  %v5170_v7 = vmul.f32 1.442695, %v5152_v28  ;;  %10876 = vmatmul.msk.f32.gmra.mxu3 %vm546_vm0, %v15657_v53 }
0x11e7   : > { %v5217_v30 = vadd.f32 %v15723_v13, %v5216_v39  ;;  %11597 = vpow2.f32 %v5186_v47  ;;  %v5135_v62 = vmax.f32 %v5133_v41, %v5134_v27  ;;  %v5112_v34 = vrot.slane %v5111_v58, 1 }
0x11e8   : > { %v11596_v45 = vpop.eup %11595  ;;  %v5227_v24 = vadd.f32 %v5226_v2, %v5225_v33  ;;  %11599 = vrcp.f32 %v5203_v12  ;;  %v5241_v61 = vadd.f32 %v15726_v31, %v5240_v52  ;;  %v5085_v51 = vmax.f32 %v15717_v63, %v5084_v11  ;;  %v9350_v12 = vpop.f32.mrf.mxu3 }
0x11e9   : > { %v5311_v32 = vmul.f32 %v11596_v45, %v15665_v54  ;;  %v5218_v3 = vrot.slane %v5217_v30, 2  ;;  %11601 = vpow2.f32 %v5178_v50  ;;  %v5136_v42 = vrot.slane %v5135_v62, 1  ;;  %v15757_v50 = vpop.xlane.xlu0 %5031 }
0x11ea   : > { %11603 = vrcp.f32 %v5227_v24  ;;  %v5242_v44 = vrot.slane %v5241_v61, 2  ;;  %v5113_v37 = vmax.f32 %v5111_v58, %v5112_v34  ;;  %v5086_v40 = vrot.slane %v5085_v51, 2  ;;  %v16791_v24 = vld [vmem:[#allocation55_spill] sm:$0xff] }
0x11eb   : > { %v5327_v16 = vmul.f32 %v5311_v32, %v16790_v60  ;;  %v5219_v41 = vadd.f32 %v5218_v3, %v5217_v30  ;;  %11605 = vpow2.f32 %v5170_v7  ;;  %v5137_v5 = vmax.f32 %v5135_v62, %v5136_v42  ;;  %v16792_v42 = vld [vmem:[#allocation47_spill] sm:$0xff] }
0x11ec   : > { %v5243_v22 = vadd.f32 %v5242_v44, %v5241_v61  ;;  %v15742_v28 = vadd.f32 %v9499_v38, %v15212_v9  ;;  %v5159_v54 = vsub.f32 %v15703_v4, %v5113_v37  ;;  %v5087_v56 = vmax.f32 %v5085_v51, %v5086_v40 }
0x11ed   : > { %v15745_v33 = vpop.eup %11597  ;;  %v5349_v59 = vsel %vm546_vm0, %v5327_v16, 0.0  ;;  %v5220_v27 = vrot.slane %v5219_v41, 1  ;;  %v15753_v11 = vadd.f32 %v9498_v6, %v15310_v0  ;;  %v5163_v39 = vsub.f32 %v15710_v46, %v5137_v5  ;;  %v15776_v5 = vpop.xlane.xlu1 %5043 }
0x11ee   : > { %v11600_v35 = vpop.eup %11599  ;;  %v5350_v9 = vrot.slane %v5349_v59, 4  ;;  %v5244_v38 = vrot.slane %v5243_v22, 1  ;;  %v5258_v4 = vrot.slane %v15745_v33, 4  ;;  %v5184_v47 = vmul.f32 1.442695, %v5159_v54  ;;  %10877 = vmatmul.msk.f32.gmra.mxu3 %vm546_vm0, %v15650_v48 }
0x11ef   : > { %v15761_v58 = vpop.eup %11601  ;;  %v5310_v2 = vmul.f32 %v11600_v35, %v15696_v36  ;;  %v5221_v19 = vadd.f32 %v5220_v27, %v5219_v41  ;;  %v5192_v0 = vmul.f32 1.442695, %v5163_v39  ;;  %v5088_v6 = vrot.slane %v5087_v56, 1 }
0x11f0   : > { %v11604_v46 = vpop.eup %11603  ;;  %v5351_v52 = vadd.f32 %v5350_v9, %v5349_v59  ;;  %v5245_v7 = vadd.f32 %v5244_v38, %v5243_v22  ;;  %v5259_v30 = vadd.f32 %v15745_v33, %v5258_v4  ;;  %v5234_v62 = vrot.slane %v15761_v58, 4 }
0x11f1   : > { %v15766_v34 = vpop.eup %11605  ;;  %v5314_v45 = vmul.f32 %v11604_v46, %v15705_v23  ;;  %v5326_v61 = vmul.f32 %v5310_v2, %v16791_v24  ;;  %11607 = vrcp.f32 %v5221_v19  ;;  %v5089_v51 = vmax.f32 %v5087_v56, %v5088_v6  ;;  %v16793_v24 = vld [vmem:[#allocation56_spill] sm:$0xff] }
0x11f2   : > { %11609 = vrcp.f32 %v5245_v7  ;;  %v5260_v36 = vrot.slane %v5259_v30, 2  ;;  %v5235_v32 = vadd.f32 %v15761_v58, %v5234_v62  ;;  %v9500_v3 = vsel %vm13224_vm11, %v9350_v12, 0.0  ;;  %v15793_v12 = vpop.xlane.xlu0 %5040 }
0x11f3   : > { %v5330_v44 = vmul.f32 %v5314_v45, %v16792_v42  ;;  %v5342_v37 = vsel %vm546_vm0, %v5326_v61, 0.0  ;;  %v5210_v40 = vrot.slane %v15766_v34, 4  ;;  %11611 = vpow2.f32 %v5192_v0 }
0x11f4   : > { %v5352_v60 = vrot.slane %v5351_v52, 2  ;;  %v5343_v23 = vrot.slane %v5342_v37, 4  ;;  %v5261_v16 = vadd.f32 %v5260_v36, %v5259_v30  ;;  %v5236_v41 = vrot.slane %v5235_v32, 2 }
0x11f5   : > { %v5211_v22 = vadd.f32 %v15766_v34, %v5210_v40  ;;  %11613 = vpow2.f32 %v5184_v47  ;;  %v5155_v54 = vsub.f32 %v15717_v63, %v5089_v51  ;;  %v15781_v56 = vadd.f32 %v9500_v3, %v15645_v25 }
0x11f6   : > { %v15784_v59 = vsel %vm546_vm0, %v5330_v44, 0.0  ;;  %v5344_v27 = vadd.f32 %v5343_v23, %v5342_v37  ;;  %v5262_v39 = vrot.slane %v5261_v16, 1  ;;  %v5237_v35 = vadd.f32 %v5236_v41, %v5235_v32  ;;  %10878 = vmatmul.msk.f32.gmra.mxu3 %vm546_vm0, %v15688_v49 }
0x11f7   : > { %v11608_v9 = vpop.eup %11607  ;;  %v5212_v38 = vrot.slane %v5211_v22, 2  ;;  %v5176_v4 = vmul.f32 1.442695, %v5155_v54  ;;  %v5126_v2 = vrot.slane %v15776_v5, 4  ;;  %v5102_v47 = vrot.slane %v15757_v50, 4 }
0x11f8   : > { %v11610_v63 = vpop.eup %11609  ;;  %v15790_v19 = vadd.f32 %v5352_v60, %v5351_v52  ;;  %v5313_v25 = vmul.f32 %v11608_v9, %v15723_v13  ;;  %v5263_v0 = vadd.f32 %v5262_v39, %v5261_v16  ;;  %v5238_v6 = vrot.slane %v5237_v35, 1 }
0x11f9   : > { %v15795_v46 = vpop.eup %11611  ;;  %v5371_v7 = vrot.slane %v15784_v59, 4  ;;  %v5213_v30 = vadd.f32 %v5212_v38, %v5211_v22  ;;  %11615 = vpow2.f32 %v5176_v4  ;;  %v5127_v62 = vmax.f32 %v15776_v5, %v5126_v2 }
0x11fa   : > { %v5345_v45 = vrot.slane %v5344_v27, 2  ;;  %v5329_v61 = vmul.f32 %v5313_v25, %v16793_v24  ;;  %11617 = vrcp.f32 %v5263_v0  ;;  %v5239_v52 = vadd.f32 %v5238_v6, %v5237_v35  ;;  %v15814_v35 = vpop.xlane.xlu1 %5052 }
0x11fb   : > { %v15800_v51 = vpop.eup %11613  ;;  %v5214_v13 = vrot.slane %v5213_v30, 1  ;;  %v5276_v36 = vrot.slane %v15795_v46, 4  ;;  %v5128_v32 = vrot.slane %v5127_v62, 2  ;;  %v5103_v3 = vmax.f32 %v15757_v50, %v5102_v47 }
0x11fc   : > { %v15805_v42 = vmul.f32 %v11610_v63, %v15726_v31  ;;  %v5363_v44 = vsel %vm546_vm0, %v5329_v61, 0.0  ;;  %11619 = vrcp.f32 %v5239_v52  ;;  %v5252_v37 = vrot.slane %v15800_v51, 4 }
0x11fd   : > { %v5364_v40 = vrot.slane %v5363_v44, 4  ;;  %v5215_v60 = vadd.f32 %v5214_v13, %v5213_v30  ;;  %v5277_v23 = vadd.f32 %v15795_v46, %v5276_v36  ;;  %v5129_v16 = vmax.f32 %v5127_v62, %v5128_v32  ;;  %v15827_v36 = vpop.xlane.xlu0 %5049  ;;  %v16794_v32 = vld [vmem:[#allocation33_spill] sm:$0xff] }
0x11fe   : > { %v15810_v41 = vadd.f32 %v5345_v45, %v5344_v27  ;;  %v5253_v22 = vadd.f32 %v15800_v51, %v5252_v37  ;;  %v5104_v54 = vrot.slane %v5103_v3, 2  ;;  %v5120_v39 = vrot.slane %v15793_v12, 4  ;;  %10879 = vmatmul.msk.f32.gmra.mxu3 %vm546_vm0, %v15682_v21 }
0x11ff   : > { %v15818_v31 = vpop.eup %11615  ;;  %v15820_v9 = vadd.f32 %v5364_v40, %v5363_v44  ;;  %11621 = vrcp.f32 %v5215_v60  ;;  %v5278_v38 = vrot.slane %v5277_v23, 2  ;;  %v5130_v4 = vrot.slane %v5129_v16, 1 }
0x1200   : > { %v11618_v2 = vpop.eup %11617  ;;  %v5254_v27 = vrot.slane %v5253_v22, 2  ;;  %v5228_v47 = vrot.slane %v15818_v31, 4  ;;  %v5105_v63 = vmax.f32 %v5103_v3, %v5104_v54  ;;  %v5121_v25 = vmax.f32 %v15793_v12, %v5120_v39 }
0x1201   : > { %v5320_v0 = vmul.f32 %v11618_v2, %v15745_v33  ;;  %v5279_v6 = vadd.f32 %v5278_v38, %v5277_v23  ;;  %v5131_v30 = vmax.f32 %v5129_v16, %v5130_v4  ;;  %v5144_v62 = vrot.slane %v15814_v35, 4 }
0x1202   : > { %v11620_v45 = vpop.eup %11619  ;;  %v5255_v24 = vadd.f32 %v5254_v27, %v5253_v22  ;;  %v5229_v61 = vadd.f32 %v15818_v31, %v5228_v47  ;;  %v5106_v52 = vrot.slane %v5105_v63, 1  ;;  %v5122_v13 = vrot.slane %v5121_v25, 2 }
0x1203   : > { %v15830_v44 = vmul.f32 %v5320_v0, %v16794_v32  ;;  %v5316_v3 = vmul.f32 %v11620_v45, %v15761_v58  ;;  %v5280_v37 = vrot.slane %v5279_v6, 1  ;;  %v5162_v33 = vsub.f32 %v15776_v5, %v5131_v30  ;;  %v16795_v0 = vld [vmem:[#allocation36_spill] sm:$0xff] }
0x1204   : > { %v5256_v40 = vrot.slane %v5255_v24, 1  ;;  %v5230_v60 = vrot.slane %v5229_v61, 2  ;;  %v5107_v23 = vmax.f32 %v5105_v63, %v5106_v52  ;;  %v5123_v16 = vmax.f32 %v5121_v25, %v5122_v13  ;;  %v16796_v13 = vld [vmem:[#allocation50_spill] sm:$0xff] }
0x1205   : > { %v11622_v54 = vpop.eup %11621  ;;  %v5281_v22 = vadd.f32 %v5280_v37, %v5279_v6  ;;  %v5190_v39 = vmul.f32 1.442695, %v5162_v33  ;;  %v5145_v38 = vmax.f32 %v15814_v35, %v5144_v62  ;;  %v5138_v4 = vrot.slane %v15827_v36, 4 }
0x1206   : > { %v5312_v2 = vmul.f32 %v11622_v54, %v15766_v34  ;;  %v5257_v27 = vadd.f32 %v5256_v40, %v5255_v24  ;;  %v5231_v47 = vadd.f32 %v5230_v60, %v5229_v61  ;;  %v5158_v58 = vsub.f32 %v15757_v50, %v5107_v23  ;;  %10880 = vmatmul.msk.f32.gmra.mxu3 %vm546_vm0, %v15753_v11  ;;  %v9526_v50 = vld [vmem:[%s16295_s9 + $0x18] sm:$0xff]  ;;  %v9525_v23 = vld [vmem:[%s16295_s9 + $0x10] sm:$0xff]  ;;  %v16797_v54 = vld [vmem:[#allocation58_spill] sm:$0xff] }
0x1207   : > { %11623 = vrcp.f32 %v5281_v22  ;;  %v5124_v5 = vrot.slane %v5123_v16, 1  ;;  %v5146_v63 = vrot.slane %v5145_v38, 2  ;;  %v5139_v25 = vmax.f32 %v15827_v36, %v5138_v4  ;;  %9584 = vmatpush.msrb.mxu2 %v9526_v50 }
0x1208   : > { %v5328_v6 = vmul.f32 %v5312_v2, %v16795_v0  ;;  %11625 = vrcp.f32 %v5257_v27  ;;  %v5232_v30 = vrot.slane %v5231_v47, 1  ;;  %v5182_v62 = vmul.f32 1.442695, %v5158_v58 }
0x1209   : > { %11627 = vpow2.f32 %v5190_v39  ;;  %v5125_v45 = vmax.f32 %v5123_v16, %v5124_v5  ;;  %v5147_v34 = vmax.f32 %v5145_v38, %v5146_v63  ;;  %v5140_v24 = vrot.slane %v5139_v25, 2  ;;  %v9524_v16 = vld [vmem:[%s16295_s9 + $0x8] sm:$0xff]  ;;  %9585 = vmatpush.msrb.mxu2 %v9525_v23 }
0x120a   : > { %v5356_v61 = vsel %vm546_vm0, %v5328_v6, 0.0  ;;  %v5233_v52 = vadd.f32 %v5232_v30, %v5231_v47  ;;  %11629 = vpow2.f32 %v5182_v62  ;;  %v15847_v32 = vmul.f32 %v5316_v3, %v16796_v13  ;;  %v9523_v47 = vld [vmem:[%s16295_s9] sm:$0xff] }
0x120b   : > { %v5357_v37 = vrot.slane %v5356_v61, 4  ;;  %v5161_v33 = vsub.f32 %v15793_v12, %v5125_v45  ;;  %v5148_v40 = vrot.slane %v5147_v34, 1  ;;  %v5141_v60 = vmax.f32 %v5139_v25, %v5140_v24  ;;  %9586 = vmatpush.msrb.mxu2 %v9524_v16  ;;  %v16798_v24 = vld [vmem:[#allocation59_spill] sm:$0xff] }
0x120c   : > { %11631 = vrcp.f32 %v5233_v52  ;;  %v15858_v22 = vmul.f32 %v15805_v42, %v16797_v54  ;;  %v5347_v3 = vrot.slane %v15810_v41, 1  ;;  %v5354_v12 = vrot.slane %v15790_v19, 1 }
0x120d   : > { %v11624_v39 = vpop.eup %11623  ;;  %v5358_v38 = vadd.f32 %v5357_v37, %v5356_v61  ;;  %v5188_v4 = vmul.f32 1.442695, %v5161_v33  ;;  %v5149_v2 = vmax.f32 %v5147_v34, %v5148_v40  ;;  %v5142_v27 = vrot.slane %v5141_v60, 1  ;;  %9587 = vmatpush.msrb.mxu2 %v9523_v47 }
0x120e   : > { %v11626_v58 = vpop.eup %11625  ;;  %v15866_v5 = vmul.f32 %v11624_v39, %v15795_v46  ;;  %10881 = vmatmul.msk.f32.gmra.mxu3 %vm546_vm0, %v15742_v28  ;;  %v15871_v42 = vadd.f32 %v5347_v3, %v15810_v41  ;;  %v15874_v63 = vadd.f32 %v5354_v12, %v15790_v19  ;;  %v5366_v25 = vrot.slane %v15820_v9, 2  ;;  %v16799_v12 = vld [vmem:[#allocation57_spill] sm:$0xff] }
0x120f   : > { %v15877_v0 = vpop.eup %11627  ;;  %v5359_v6 = vrot.slane %v5358_v38, 2  ;;  %v5319_v30 = vmul.f32 %v11626_v58, %v15800_v51  ;;  %11633 = vpow2.f32 %v5188_v4  ;;  %v5165_v46 = vsub.f32 %v15814_v35, %v5149_v2 }
0x1210   : > { %v15881_v62 = vpop.eup %11629  ;;  %v5270_v45 = vrot.slane %v15877_v0, 4  ;;  %v5143_v34 = vmax.f32 %v5141_v60, %v5142_v27  ;;  %v5367_v41 = vadd.f32 %v5366_v25, %v15820_v9  ;;  %v5372_v19 = vadd.f32 %v5371_v7, %v15784_v59 }
0x1211   : > { %v5335_v50 = vmul.f32 %v5319_v30, %v16798_v24  ;;  %v5246_v61 = vrot.slane %v15881_v62, 4  ;;  %v5196_v51 = vmul.f32 1.442695, %v5165_v46  ;;  %v5360_v52 = vadd.f32 %v5359_v6, %v5358_v38 }
0x1212   : > { %v11632_v13 = vpop.eup %11631  ;;  %v5271_v35 = vadd.f32 %v15877_v0, %v5270_v45  ;;  %v5164_v37 = vsub.f32 %v15827_v36, %v5143_v34  ;;  %v5368_v33 = vrot.slane %v5367_v41, 1  ;;  %v5373_v40 = vrot.slane %v5372_v19, 2 }
0x1213   : > { %v5405_v60 = vsel %vm546_vm0, %v5335_v50, 0.0  ;;  %v5315_v9 = vmul.f32 %v11632_v13, %v15818_v31  ;;  %v5247_v23 = vadd.f32 %v15881_v62, %v5246_v61  ;;  %11635 = vpow2.f32 %v5196_v51 }
0x1214   : > { %v5406_v59 = vrot.slane %v5405_v60, 4  ;;  %v5272_v7 = vrot.slane %v5271_v35, 2  ;;  %v5194_v16 = vmul.f32 1.442695, %v5164_v37  ;;  %v5361_v54 = vrot.slane %v5360_v52, 1 }
0x1215   : > { %v15895_v3 = vpop.eup %11633  ;;  %v5331_v39 = vmul.f32 %v5315_v9, %v16799_v12  ;;  %v5248_v38 = vrot.slane %v5247_v23, 2  ;;  %v5369_v4 = vadd.f32 %v5368_v33, %v5367_v41  ;;  %v5374_v36 = vadd.f32 %v5373_v40, %v5372_v19 }
0x1216   : > { %v15898_v2 = vadd.f32 %v5406_v59, %v5405_v60  ;;  %v5273_v27 = vadd.f32 %v5272_v7, %v5271_v35  ;;  %v5264_v47 = vrot.slane %v15895_v3, 4  ;;  %11637 = vpow2.f32 %v5194_v16  ;;  %10882 = vmatmul.msk.f32.gmra.mxu3 %vm546_vm0, %v15781_v56 }
0x1217   : > { %v5249_v31 = vadd.f32 %v5248_v38, %v5247_v23  ;;  %v5362_v58 = vadd.f32 %v5361_v54, %v5360_v52  ;;  %v5375_v25 = vrot.slane %v5374_v36, 1  ;;  %v5377_v6 = vsel %vm546_vm0, %v5331_v39, 0.0 }
0x1218   : > { %v5274_v30 = vrot.slane %v5273_v27, 1  ;;  %v5265_v46 = vadd.f32 %v15895_v3, %v5264_v47  ;;  %v5378_v45 = vrot.slane %v5377_v6, 4  ;;  %v5384_v34 = vsel %vm546_vm0, %v15847_v32, 0.0 }
0x1219   : > { %v15907_v41 = vpop.eup %11635  ;;  %v5250_v19 = vrot.slane %v5249_v31, 1  ;;  %v5376_v24 = vadd.f32 %v5375_v25, %v5374_v36  ;;  %v5385_v50 = vrot.slane %v5384_v34, 4  ;;  %v5391_v61 = vsel %vm546_vm0, %v15858_v22, 0.0 }
0x121a   : > { %v5275_v51 = vadd.f32 %v5274_v30, %v5273_v27  ;;  %v5266_v52 = vrot.slane %v5265_v46, 2  ;;  %v5288_v13 = vrot.slane %v15907_v41, 4  ;;  %v5379_v35 = vadd.f32 %v5378_v45, %v5377_v6 }
0x121b   : > { %v5251_v37 = vadd.f32 %v5250_v19, %v5249_v31  ;;  %v5386_v33 = vadd.f32 %v5385_v50, %v5384_v34  ;;  %v5392_v40 = vrot.slane %v5391_v61, 4  ;;  %v9548_v39 = vsel %vm9547_vm13, %v15874_v63, %v15871_v42 }
0x121c   : > { %v15912_v60 = vpop.eup %11637  ;;  %11639 = vrcp.f32 %v5275_v51  ;;  %v5267_v32 = vadd.f32 %v5266_v52, %v5265_v46  ;;  %v5289_v9 = vadd.f32 %v15907_v41, %v5288_v13  ;;  %v5380_v23 = vrot.slane %v5379_v35, 2 }
0x121d   : > { %11641 = vrcp.f32 %v5251_v37  ;;  %v5282_v59 = vrot.slane %v15912_v60, 4  ;;  %v5387_v22 = vrot.slane %v5386_v33, 2  ;;  %v5393_v7 = vadd.f32 %v5392_v40, %v5391_v61 }
0x121e   : > { %v5268_v16 = vrot.slane %v5267_v32, 1  ;;  %v5290_v54 = vrot.slane %v5289_v9, 2  ;;  %v5381_v12 = vadd.f32 %v5380_v23, %v5379_v35  ;;  %v9550_v6 = vsel %vm9549_vm14, %v5362_v58, %v9548_v39 }
0x121f   : > { %v5283_v38 = vadd.f32 %v15912_v60, %v5282_v59  ;;  %v5388_v36 = vadd.f32 %v5387_v22, %v5386_v33  ;;  %v5394_v27 = vrot.slane %v5393_v7, 2  ;;  %v9552_v42 = vsel %vm9551_vm15, %v5369_v4, %v9550_v6  ;;  %v16801_v59 = vld [vmem:[#allocation53_spill] sm:$0xff] }
0x1220   : > { %v5269_v47 = vadd.f32 %v5268_v16, %v5267_v32  ;;  %v5291_v31 = vadd.f32 %v5290_v54, %v5289_v9  ;;  %v5382_v25 = vrot.slane %v5381_v12, 1  ;;  %v9554_v40 = vsel %vm9553_vm2, %v5376_v24, %v9552_v42  ;;  %v16800_v32 = vld [vmem:[#allocation40_spill] sm:$0xff] }
0x1221   : > { %v5284_v30 = vrot.slane %v5283_v38, 2  ;;  %v5389_v46 = vrot.slane %v5388_v36, 1  ;;  %v5395_v45 = vadd.f32 %v5394_v27, %v5393_v7  ;;  %v5412_v39 = vsel %vm546_vm0, %v15830_v44, 0.0 }
0x1222   : > { %v11640_v34 = vpop.eup %11639  ;;  %11643 = vrcp.f32 %v5269_v47  ;;  %v5292_v19 = vrot.slane %v5291_v31, 1  ;;  %v5383_v50 = vadd.f32 %v5382_v25, %v5381_v12  ;;  %v5408_v12 = vrot.slane %v15898_v2, 2  ;;  %v16803_v25 = vld [vmem:[#allocation60_spill] sm:$0xff] }
0x1223   : > { %v11642_v63 = vpop.eup %11641  ;;  %v5322_v61 = vmul.f32 %v11640_v34, %v15877_v0  ;;  %v5285_v51 = vadd.f32 %v5284_v30, %v5283_v38  ;;  %v5390_v52 = vadd.f32 %v5389_v46, %v5388_v36  ;;  %v5396_v13 = vrot.slane %v5395_v45, 1 }
0x1224   : > { %v5318_v35 = vmul.f32 %v11642_v63, %v15881_v62  ;;  %v5293_v37 = vadd.f32 %v5292_v19, %v5291_v31  ;;  %v9556_v4 = vsel %vm9555_vm3, %v5383_v50, %v9554_v40  ;;  %v16802_v62 = vld [vmem:[#allocation62_spill] sm:$0xff]  ;;  %v5413_v27 = vrot.slane %v5412_v39, 4 }
0x1225   : > { %v5286_v58 = vrot.slane %v5285_v51, 1  ;;  %v5397_v33 = vadd.f32 %v5396_v13, %v5395_v45  ;;  %v9558_v23 = vsel %vm9557_vm5, %v5390_v52, %v9556_v4  ;;  %v5338_v22 = vmul.f32 %v5322_v61, %v16801_v59  ;;  %v16804_v13 = vld [vmem:[#allocation74_spill] sm:$0xff] }
0x1226   : > { %v5334_v9 = vmul.f32 %v5318_v35, %v16800_v32  ;;  %11645 = vrcp.f32 %v5293_v37  ;;  %v5339_v7 = vmul.f32 %v15866_v5, %v16802_v62  ;;  %v5414_v30 = vadd.f32 %v5413_v27, %v5412_v39  ;;  %v16805_v4 = vld [vmem:[#allocation38_spill] sm:$0xff] }
0x1227   : > { %v5287_v0 = vadd.f32 %v5286_v58, %v5285_v51  ;;  %v9560_v24 = vsel %vm9559_vm6, %v5397_v33, %v9558_v23  ;;  %v5426_v47 = vsel %vm546_vm0, %v5338_v22, 0.0  ;;  %v5409_v34 = vadd.f32 %v5408_v12, %v15898_v2 }
0x1228   : > { %v11644_v16 = vpop.eup %11643  ;;  %v5398_v54 = vsel %vm546_vm0, %v5334_v9, 0.0  ;;  %10871 = vmatmul.msk.f32.vlgmr.msrb.gmra.mxu2 %vm546_vm0, %v9560_v24  ;;  %v5433_v5 = vsel %vm546_vm0, %v5339_v7, 0.0  ;;  %v5427_v46 = vrot.slane %v5426_v47, 4  ;;  %v5415_v50 = vrot.slane %v5414_v30, 2 }
0x1229   : > { %v5399_v38 = vrot.slane %v5398_v54, 4  ;;  %v5321_v36 = vmul.f32 %v11644_v16, %v15895_v3  ;;  %11647 = vrcp.f32 %v5287_v0  ;;  %v5434_v44 = vrot.slane %v5433_v5, 4 }
0x122a   : > { %v5428_v61 = vadd.f32 %v5427_v46, %v5426_v47  ;;  %v5416_v58 = vadd.f32 %v5415_v50, %v5414_v30  ;;  %v5410_v40 = vrot.slane %v5409_v34, 1 }
0x122b   : > { %v5400_v31 = vadd.f32 %v5399_v38, %v5398_v54  ;;  %v5337_v6 = vmul.f32 %v5321_v36, %v16803_v25  ;;  %v5435_v51 = vadd.f32 %v5434_v44, %v5433_v5 }
0x122c   : > { %v11646_v45 = vpop.eup %11645  ;;  %v5429_v2 = vrot.slane %v5428_v61, 2  ;;  %v5417_v23 = vrot.slane %v5416_v58, 1  ;;  %v5411_v54 = vadd.f32 %v5410_v40, %v5409_v34  ;;  %v9396_v34 = vpop.f32.mrf.mxu1 }
0x122d   : > { %v5325_v19 = vmul.f32 %v11646_v45, %v15907_v41  ;;  %v5401_v3 = vrot.slane %v5400_v31, 2  ;;  %v5419_v42 = vsel %vm546_vm0, %v5337_v6, 0.0  ;;  %v5436_v22 = vrot.slane %v5435_v51, 2 }
0x122e   : > { %v5420_v63 = vrot.slane %v5419_v42, 4  ;;  %v5430_v7 = vadd.f32 %v5429_v2, %v5428_v61  ;;  %v5418_v27 = vadd.f32 %v5417_v23, %v5416_v58 }
0x122f   : > { %v11648_v52 = vpop.eup %11647  ;;  %v5341_v35 = vmul.f32 %v5325_v19, %v16804_v13  ;;  %v5402_v37 = vadd.f32 %v5401_v3, %v5400_v31  ;;  %v5437_v5 = vadd.f32 %v5436_v22, %v5435_v51  ;;  %v9502_v51 = vsel %vm13224_vm11, %v9396_v34, 0.0 }
0x1230   : > { %v5324_v33 = vmul.f32 %v11648_v52, %v15912_v60  ;;  %v5421_v32 = vadd.f32 %v5420_v63, %v5419_v42  ;;  %v5431_v25 = vrot.slane %v5430_v7, 1 }
0x1231   : > { %v5403_v9 = vrot.slane %v5402_v37, 1  ;;  %v5447_v41 = vsel %vm546_vm0, %v5341_v35, 0.0  ;;  %v5438_v50 = vrot.slane %v5437_v5, 1 }
0x1232   : > { %v5340_v0 = vmul.f32 %v5324_v33, %v16805_v4  ;;  %v5422_v59 = vrot.slane %v5421_v32, 2  ;;  %v5448_v16 = vrot.slane %v5447_v41, 4  ;;  %v5432_v63 = vadd.f32 %v5431_v25, %v5430_v7  ;;  %v16806_v4 = vld [vmem:[#allocation24_spill] sm:$0xff] }
0x1233   : > { %v5404_v62 = vadd.f32 %v5403_v9, %v5402_v37  ;;  %v5439_v35 = vadd.f32 %v5438_v50, %v5437_v5  ;;  %v15963_v37 = vadd.f32 %v9502_v51, %v15330_v15 }
0x1234   : > { %v5423_v24 = vadd.f32 %v5422_v59, %v5421_v32  ;;  %v5440_v12 = vsel %vm546_vm0, %v5340_v0, 0.0  ;;  %v9373_v39 = vpop.f32.mrf.mxu0  ;;  %v5449_v38 = vadd.f32 %v5448_v16, %v5447_v41  ;;  %v7584_v0 = vsel %vm12323_vm4, %v16806_v4, 0.0  ;;  %v16807_v59 = vld [vmem:[#allocation87_spill] sm:$0xff] }
0x1235   : > { %v5441_v60 = vrot.slane %v5440_v12, 4  ;;  %v9501_v36 = vsel %vm13224_vm11, %v9373_v39, 0.0  ;;  %v9561_v31 = vsel %vm9547_vm13, %v5411_v54, %v5404_v62  ;;  %v6640_v22 = vsel %vm876_vm1, %v16807_v59, 0.0 }
0x1236   : > { %v5424_v47 = vrot.slane %v5423_v24, 1  ;;  %v5450_v30 = vrot.slane %v5449_v38, 2  ;;  %v15953_v46 = vadd.f32 %v9501_v36, %v15314_v43  ;;  %v9562_v3 = vsel %vm9549_vm14, %v5418_v27, %v9561_v31  ;;  %v16012_v31 = vld [vmem:[%s16808_s19] ss:$0 sm:$0xff] }
0x1237   : > { %v5442_v6 = vadd.f32 %v5441_v60, %v5440_v12  ;;  %v8544_v62 = vsel %vm13005_vm8, %v15247_v29, 0.0  ;;  %v7600_v7 = vadd.f32 %v7584_v0, %v6640_v22 }
0x1238   : > { %v5425_v45 = vadd.f32 %v5424_v47, %v5423_v24  ;;  %v5451_v19 = vadd.f32 %v5450_v30, %v5449_v38  ;;  %10883 = vmatmul.msk.f32.gmra.mxu3 %vm546_vm0, %v15953_v46 }
0x1239   : > { %v5443_v44 = vrot.slane %v5442_v6, 2  ;;  %v8560_v16 = vadd.f32 %v8544_v62, %v7600_v7 }
0x123a   : > { %v9563_v42 = vsel %vm9551_vm15, %v5425_v45, %v9562_v3  ;;  %v5452_v52 = vrot.slane %v5451_v19, 1 }
0x123b   : > { %v5444_v61 = vadd.f32 %v5443_v44, %v5442_v6  ;;  %v9564_v13 = vsel %vm9553_vm2, %v5432_v63, %v9563_v42 }
0x123c   : > { %v5453_v33 = vadd.f32 %v5452_v52, %v5451_v19  ;;  %v9565_v40 = vsel %vm9555_vm3, %v5439_v35, %v9564_v13 }
0x123d   : > { %v5445_v43 = vrot.slane %v5444_v61, 1  ;;  %v9465_v57 = vpop.f32.mrf.mxu0 }
0x123e   : > { %v9505_v24 = vsel %vm13224_vm11, %v9465_v57, 0.0 }
0x123f   : > { %v5446_v58 = vadd.f32 %v5445_v43, %v5444_v61  ;;  %v15996_v26 = vadd.f32 %v9505_v24, %v15334_v17 }
0x1240   : > { %10884 = vmatmul.msk.f32.gmra.mxu3 %vm546_vm0, %v15963_v37 }
0x1241   : > { %v9566_v32 = vsel %vm9557_vm5, %v5446_v58, %v9565_v40 }
0x1242   : > { %v9567_v2 = vsel %vm9559_vm6, %v5453_v33, %v9566_v32  ;;  %v9419_v9 = vpop.f32.mrf.mxu2 }
0x1243   : > { %10872 = vmatmul.msk.f32.gmra.mxu2 %vm546_vm0, %v9567_v2  ;;  %v9503_v41 = vsel %vm13224_vm11, %v9419_v9, 0.0 }
0x1244   : > { %v15974_v15 = vadd.f32 %v9503_v41, %v15235_v10 }
0x1248   : > { %10885 = vmatmul.msk.f32.gmra.mxu3 %vm546_vm0, %v15974_v15 }
0x1249   : > { %v9442_v23 = vpop.f32.mrf.mxu3 }
0x124a   : > { %v9504_v10 = vsel %vm13224_vm11, %v9442_v23, 0.0 }
0x124b   : > { %v15989_v54 = vadd.f32 %v9504_v10, %v8560_v16 }
0x1250   : > { %10886 = vmatmul.msk.f32.gmra.mxu3 %vm546_vm0, %v15989_v54 }
0x1251   : > { %v9670_v8 = vpop.f32.mrf.mxu3 }
0x1252   : > { %v9671_v6 = vadd.f32 %v16012_v31, %v9670_v8 }
0x1254   : > { %v9488_v12 = vpop.f32.mrf.mxu1 }
0x1255   : > { %v9506_v29 = vsel %vm13224_vm11, %v9488_v12, 0.0 }
0x1256   : > { %v16003_v39 = vadd.f32 %v9506_v29, %v15344_v18 }
0x1258   : > { %10887 = vmatmul.msk.f32.gmra.mxu3 %vm546_vm0, %v15996_v26 }
0x1259   : > { %v9673_v60 = vpop.f32.mrf.mxu3 }
0x125a   : > { %v9674_v45 = vadd.f32 %v16012_v31, %v9673_v60 }
0x1260   : > { %10888 = vmatmul.msk.f32.gmra.mxu3 %vm546_vm0, %v16003_v39 }
0x1261   : > { %v9676_v38 = vpop.f32.mrf.mxu3 }
0x1262   : > { %v9677_v50 = vadd.f32 %v16012_v31, %v9676_v38 }
0x1269   : > { %v9679_v36 = vpop.f32.mrf.mxu3 }
0x126a   : > { %v9680_v44 = vadd.f32 %v16012_v31, %v9679_v36 }
0x1271   : > { %v9682_v27 = vpop.f32.mrf.mxu3 }
0x1272   : > { %v9683_v34 = vadd.f32 %v16012_v31, %v9682_v27 }
0x1279   : > { %v9685_v17 = vpop.f32.mrf.mxu3 }
0x127a   : > { %v9686_v7 = vadd.f32 %v16012_v31, %v9685_v17 }
0x1281   : > { %v9688_v47 = vpop.f32.mrf.mxu3 }
0x1282   : > { %v9689_v4 = vadd.f32 %v16012_v31, %v9688_v47 }
0x1289   : > { %v16007_v5 = vpop.f32.mrf.mxu3 }
0x1291   : > { %v9694_v18 = vpop.f32.mrf.mxu3 }
0x1292   : > { %v9695_v17 = vadd.f32 %v16012_v31, %v9694_v18 }
0x1299   : > { %v9697_v19 = vpop.f32.mrf.mxu3 }
0x12ab   : > { %v9589_v25 = vpop.f32.mrf.mxu2 }
0x12ac   : > { %v9590_v30 = vadd.f32 %v11040_v20, %v9589_v25 }
0x12ae   : > { %11649 = vtanh.f32 %v9590_v30 }
0x12af   : > { %11651 = vtanh.f32 %v9671_v6 }
0x12b0   : > { %11653 = vtanh.f32 %v9674_v45 }
0x12b1   : > { %11655 = vtanh.f32 %v9683_v34 }
0x12b2   : > { %11657 = vtanh.f32 %v9680_v44  ;;  %v9698_v44 = vadd.f32 %v16012_v31, %v9697_v19 }
0x12b3   : > { %11659 = vtanh.f32 %v9677_v50 }
0x12b4   : > { %v16021_v3 = vpop.eup %11649  ;;  %11661 = vtanh.f32 %v9689_v4 }
0x12b5   : > { %v9750_v42 = vperm.slane %v16021_v3, 0  ;;  %v9736_v63 = vrot.slane %v16021_v3, 1  ;;  %v9739_v61 = vrot.slane %v16021_v3, 4  ;;  %v9738_v51 = vrot.slane %v16021_v3, 3  ;;  %v11652_v52 = vpop.eup %11651 }
0x12b6   : > { %v11654_v43 = vpop.eup %11653  ;;  %v9737_v33 = vrot.slane %v16021_v3, 2  ;;  %v9741_v16 = vrot.slane %v16021_v3, 6  ;;  %v9740_v12 = vrot.slane %v16021_v3, 5  ;;  %11663 = vtanh.f32 %v9686_v7 }
0x12b7   : > { %v9782_v13 = vmul.f32 %v11652_v52, %v9750_v42  ;;  %v9751_v35 = vperm.slane %v9736_v63, 0  ;;  %v9754_v58 = vperm.slane %v9739_v61, 0  ;;  %v11656_v40 = vpop.eup %11655  ;;  %v9753_v41 = vperm.slane %v9738_v51, 0 }
0x12b8   : > { %v9752_v59 = vperm.slane %v9737_v33, 0  ;;  %v11658_v62 = vpop.eup %11657  ;;  %v9756_v29 = vperm.slane %v9741_v16, 0  ;;  %v9755_v38 = vperm.slane %v9740_v12, 0 }
0x12b9   : > { %v9798_v32 = vsel %vm5005_vm12, %v9782_v13, 0.0  ;;  %v9783_v2 = vmul.f32 %v11654_v43, %v9751_v35  ;;  %v9786_v9 = vmul.f32 %v11656_v40, %v9754_v58  ;;  %v9785_v10 = vmul.f32 %v11658_v62, %v9753_v41  ;;  %v11660_v57 = vpop.eup %11659 }
0x12ba   : > { %9799 = vadd.xlane.f32.xlu2 %v9798_v32  ;;  %v9784_v24 = vmul.f32 %v11660_v57, %v9752_v59  ;;  %v11662_v27 = vpop.eup %11661 }
0x12bb   : > { %v9801_v0 = vsel %vm5005_vm12, %v9783_v2, 0.0  ;;  %v9810_v23 = vsel %vm5005_vm12, %v9786_v9, 0.0  ;;  %v9700_v22 = vpop.f32.mrf.mxu3  ;;  %v9807_v8 = vsel %vm5005_vm12, %v9785_v10, 0.0  ;;  %v9788_v25 = vmul.f32 %v11662_v27, %v9756_v29 }
0x12bc   : > { %9802 = vadd.xlane.f32.xlu0 %v9801_v0  ;;  %9811 = vadd.xlane.f32.xlu1 %v9810_v23  ;;  %v9804_v60 = vsel %vm5005_vm12, %v9784_v24, 0.0  ;;  %v11664_v6 = vpop.eup %11663  ;;  %v9701_v50 = vadd.f32 %v16012_v31, %v9700_v22  ;;  %v9692_v27 = vadd.f32 %v16012_v31, %v16007_v5 }
0x12bd   : > { %v9787_v34 = vmul.f32 %v11664_v6, %v9755_v38  ;;  %v9816_v42 = vsel %vm5005_vm12, %v9788_v25, 0.0  ;;  %v9742_v6 = vrot.slane %v16021_v3, 7 }
0x12bf   : > { %v9813_v63 = vsel %vm5005_vm12, %v9787_v34, 0.0 }
0x12c2   : > { %9808 = vadd.xlane.f32.xlu2 %v9807_v8 }
0x12c3   : > { %v9703_v36 = vpop.f32.mrf.mxu3 }
0x12c4   : > { %9805 = vadd.xlane.f32.xlu0 %v9804_v60  ;;  %v9704_v45 = vadd.f32 %v16012_v31, %v9703_v36 }
0x12c6   : > { %v9592_v47 = vpop.f32.mrf.mxu2 }
0x12c7   : > { %v9593_v30 = vadd.f32 %v11040_v20, %v9592_v47 }
0x12c9   : > { %11665 = vtanh.f32 %v9593_v30 }
0x12ca   : > { %11667 = vtanh.f32 %v9695_v17  ;;  %9817 = vadd.xlane.f32.xlu2 %v9816_v42 }
0x12cb   : > { %11669 = vtanh.f32 %v9704_v45  ;;  %v9706_v18 = vpop.f32.mrf.mxu3 }
0x12cc   : > { %11671 = vtanh.f32 %v9698_v44  ;;  %9814 = vadd.xlane.f32.xlu0 %v9813_v63  ;;  %v9707_v20 = vadd.f32 %v16012_v31, %v9706_v18  ;;  %v9757_v44 = vperm.slane %v9742_v6, 0 }
0x12cd   : > { %11673 = vtanh.f32 %v9701_v50 }
0x12ce   : > { %11675 = vtanh.f32 %v9707_v20 }
0x12cf   : > { %v11666_v61 = vpop.eup %11665 }
0x12d0   : > { %v11668_v51 = vpop.eup %11667  ;;  %v9758_v19 = vperm.slane %v11666_v61, 0  ;;  %v9743_v52 = vrot.slane %v11666_v61, 1  ;;  %v9744_v43 = vrot.slane %v11666_v61, 2  ;;  %v9745_v13 = vrot.slane %v11666_v61, 3 }
0x12d1   : > { %v11670_v35 = vpop.eup %11669  ;;  %v9746_v32 = vrot.slane %v11666_v61, 4  ;;  %v9747_v12 = vrot.slane %v11666_v61, 5  ;;  %v9748_v25 = vrot.slane %v11666_v61, 6 }
0x12d2   : > { %v9790_v58 = vmul.f32 %v11668_v51, %v9758_v19  ;;  %v9759_v33 = vperm.slane %v9743_v52, 0  ;;  %v9761_v40 = vperm.slane %v9745_v13, 0  ;;  %v11672_v2 = vpop.eup %11671  ;;  %v9760_v0 = vperm.slane %v9744_v43, 0 }
0x12d3   : > { %v11674_v9 = vpop.eup %11673  ;;  %v9709_v59 = vpop.f32.mrf.mxu3  ;;  %v9762_v16 = vperm.slane %v9746_v32, 0  ;;  %v9763_v38 = vperm.slane %v9747_v12, 0  ;;  %v9764_v34 = vperm.slane %v9748_v25, 0  ;;  %v9749_v51 = vrot.slane %v11666_v61, 7 }
0x12d4   : > { %v9822_v41 = vsel %vm5005_vm12, %v9790_v58, 0.0  ;;  %v9791_v4 = vmul.f32 %v11672_v2, %v9759_v33  ;;  %v9793_v23 = vmul.f32 %v11670_v35, %v9761_v40  ;;  %v11676_v22 = vpop.eup %11675  ;;  %v9710_v62 = vadd.f32 %v16012_v31, %v9709_v59 }
0x12d5   : > { %9823 = vadd.xlane.f32.xlu1 %v9822_v41  ;;  %v9792_v57 = vmul.f32 %v11674_v9, %v9760_v0  ;;  %v9794_v24 = vmul.f32 %v11676_v22, %v9762_v16  ;;  %v9765_v19 = vperm.slane %v9749_v51, 0 }
0x12d6   : > { %v9825_v7 = vsel %vm5005_vm12, %v9791_v4, 0.0  ;;  %v9831_v10 = vsel %vm5005_vm12, %v9793_v23, 0.0  ;;  %11677 = vtanh.f32 %v9710_v62 }
0x12d7   : > { %9826 = vadd.xlane.f32.xlu2 %v9825_v7  ;;  %9832 = vadd.xlane.f32.xlu0 %v9831_v10  ;;  %v9828_v8 = vsel %vm5005_vm12, %v9792_v57, 0.0  ;;  %v9834_v29 = vsel %vm5005_vm12, %v9794_v24, 0.0 }
0x12db   : > { %v9712_v60 = vpop.f32.mrf.mxu3 }
0x12dc   : > { %v11678_v36 = vpop.eup %11677  ;;  %v9713_v17 = vadd.f32 %v16012_v31, %v9712_v60 }
0x12dd   : > { %9829 = vadd.xlane.f32.xlu1 %v9828_v8  ;;  %v9795_v47 = vmul.f32 %v11678_v36, %v9763_v38 }
0x12de   : > { %11679 = vtanh.f32 %v9713_v17 }
0x12df   : > { %9835 = vadd.xlane.f32.xlu2 %v9834_v29  ;;  %11681 = vtanh.f32 %v9692_v27  ;;  %v9837_v30 = vsel %vm5005_vm12, %v9795_v47, 0.0 }
0x12e3   : > { %v9715_v45 = vpop.f32.mrf.mxu3 }
0x12e4   : > { %v11680_v50 = vpop.eup %11679  ;;  %v9716_v42 = vadd.f32 %v16012_v31, %v9715_v45 }
0x12e5   : > { %9838 = vadd.xlane.f32.xlu1 %v9837_v30  ;;  %v9796_v5 = vmul.f32 %v11680_v50, %v9764_v34  ;;  %v11682_v63 = vpop.eup %11681 }
0x12e6   : > { %11683 = vtanh.f32 %v9716_v42  ;;  %v9789_v20 = vmul.f32 %v11682_v63, %v9757_v44 }
0x12e7   : > { %v9840_v18 = vsel %vm5005_vm12, %v9796_v5, 0.0 }
0x12e8   : > { %9841 = vadd.xlane.f32.xlu0 %v9840_v18  ;;  %v9819_v3 = vsel %vm5005_vm12, %v9789_v20, 0.0 }
0x12ec   : > { %v11684_v52 = vpop.eup %11683 }
0x12ed   : > { %9820 = vadd.xlane.f32.xlu1 %v9819_v3  ;;  %v9797_v43 = vmul.f32 %v11684_v52, %v9765_v19 }
0x12ef   : > { %v9843_v13 = vsel %vm5005_vm12, %v9797_v43, 0.0 }
0x12f0   : > { %9844 = vadd.xlane.f32.xlu2 %v9843_v13 }
0x132d   : > { %v9800_v35 = vpop.xlane.xlu2 %9799 }
0x132e   : > { %v9846_v58 = vrot.slane %v9800_v35, 4 }
0x132f   : > { %v9803_v31 = vpop.xlane.xlu0 %9802  ;;  %v9812_v33 = vpop.xlane.xlu1 %9811 }
0x1330   : > { %v9847_v40 = vmax.f32 %v9800_v35, %v9846_v58  ;;  %v9852_v32 = vrot.slane %v9803_v31, 4  ;;  %v9870_v2 = vrot.slane %v9812_v33, 4 }
0x1332   : > { %v9848_v9 = vrot.slane %v9847_v40, 2  ;;  %v9853_v41 = vmax.f32 %v9803_v31, %v9852_v32  ;;  %v9871_v61 = vmax.f32 %v9812_v33, %v9870_v2 }
0x1334   : > { %v9849_v4 = vmax.f32 %v9847_v40, %v9848_v9  ;;  %v9854_v0 = vrot.slane %v9853_v41, 2  ;;  %v9872_v23 = vrot.slane %v9871_v61, 2 }
0x1335   : > { %v9809_v59 = vpop.xlane.xlu2 %9808 }
0x1336   : > { %v9850_v22 = vrot.slane %v9849_v4, 1  ;;  %v9855_v62 = vmax.f32 %v9853_v41, %v9854_v0  ;;  %v9873_v7 = vmax.f32 %v9871_v61, %v9872_v23  ;;  %v9864_v10 = vrot.slane %v9809_v59, 4 }
0x1337   : > { %v9806_v16 = vpop.xlane.xlu0 %9805 }
0x1338   : > { %v9851_v57 = vmax.f32 %v9849_v4, %v9850_v22  ;;  %v9856_v24 = vrot.slane %v9855_v62, 1  ;;  %v9874_v12 = vrot.slane %v9873_v7, 1  ;;  %v9865_v8 = vmax.f32 %v9809_v59, %v9864_v10 }
0x1339   : > { %v9858_v29 = vrot.slane %v9806_v16, 4 }
0x133a   : > { %v9942_v60 = vsub.f32 %v9800_v35, %v9851_v57  ;;  %v9857_v38 = vmax.f32 %v9855_v62, %v9856_v24  ;;  %v9875_v36 = vmax.f32 %v9873_v7, %v9874_v12  ;;  %v9866_v27 = vrot.slane %v9865_v8, 2 }
0x133b   : > { %v9859_v17 = vmax.f32 %v9806_v16, %v9858_v29 }
0x133c   : > { %v9958_v47 = vmul.f32 1.442695, %v9942_v60  ;;  %v9943_v25 = vsub.f32 %v9803_v31, %v9857_v38  ;;  %v9946_v6 = vsub.f32 %v9812_v33, %v9875_v36  ;;  %v9867_v30 = vmax.f32 %v9865_v8, %v9866_v27 }
0x133d   : > { %v9860_v45 = vrot.slane %v9859_v17, 2  ;;  %v16060_v34 = vpop.xlane.xlu2 %9817 }
0x133e   : > { %11685 = vpow2.f32 %v9958_v47  ;;  %v9960_v44 = vmul.f32 1.442695, %v9943_v25  ;;  %v9868_v50 = vrot.slane %v9867_v30, 1  ;;  %v9882_v5 = vrot.slane %v16060_v34, 4 }
0x133f   : > { %v9861_v42 = vmax.f32 %v9859_v17, %v9860_v45  ;;  %v16063_v63 = vpop.xlane.xlu0 %9814  ;;  %v9966_v18 = vmul.f32 1.442695, %v9946_v6 }
0x1340   : > { %v9876_v20 = vrot.slane %v16063_v63, 4  ;;  %11687 = vpow2.f32 %v9960_v44  ;;  %v9869_v51 = vmax.f32 %v9867_v30, %v9868_v50  ;;  %v9883_v19 = vmax.f32 %v16060_v34, %v9882_v5 }
0x1341   : > { %v9862_v3 = vrot.slane %v9861_v42, 1  ;;  %11689 = vpow2.f32 %v9966_v18 }
0x1342   : > { %v9877_v52 = vmax.f32 %v16063_v63, %v9876_v20  ;;  %v9884_v43 = vrot.slane %v9883_v19, 2  ;;  %v9945_v33 = vsub.f32 %v9809_v59, %v9869_v51 }
0x1343   : > { %v9863_v35 = vmax.f32 %v9861_v42, %v9862_v3 }
0x1344   : > { %v16068_v13 = vpop.eup %11685  ;;  %v9878_v58 = vrot.slane %v9877_v52, 2  ;;  %v9885_v40 = vmax.f32 %v9883_v19, %v9884_v43  ;;  %v9964_v0 = vmul.f32 1.442695, %v9945_v33 }
0x1345   : > { %v9990_v31 = vrot.slane %v16068_v13, 4  ;;  %v9944_v61 = vsub.f32 %v9806_v16, %v9863_v35 }
0x1346   : > { %v16071_v32 = vpop.eup %11687  ;;  %v9879_v2 = vmax.f32 %v9877_v52, %v9878_v58  ;;  %v9886_v7 = vrot.slane %v9885_v40, 1  ;;  %11691 = vpow2.f32 %v9964_v0 }
0x1347   : > { %v9991_v41 = vadd.f32 %v16068_v13, %v9990_v31  ;;  %v16074_v22 = vpop.eup %11689  ;;  %v9996_v62 = vrot.slane %v16071_v32, 4  ;;  %v9962_v12 = vmul.f32 1.442695, %v9944_v61 }
0x1348   : > { %v9824_v9 = vpop.xlane.xlu1 %9823  ;;  %v9880_v24 = vrot.slane %v9879_v2, 1  ;;  %v10014_v60 = vrot.slane %v16074_v22, 4  ;;  %v9887_v38 = vmax.f32 %v9885_v40, %v9886_v7 }
0x1349   : > { %v9894_v4 = vrot.slane %v9824_v9, 4  ;;  %v9992_v59 = vrot.slane %v9991_v41, 2  ;;  %v9997_v16 = vadd.f32 %v16071_v32, %v9996_v62  ;;  %11693 = vpow2.f32 %v9962_v12 }
0x134a   : > { %v9827_v23 = vpop.xlane.xlu2 %9826  ;;  %v9881_v17 = vmax.f32 %v9879_v2, %v9880_v24  ;;  %v10015_v30 = vadd.f32 %v16074_v22, %v10014_v60  ;;  %v9948_v50 = vsub.f32 %v16060_v34, %v9887_v38  ;;  %v16088_v52 = vpop.xlane.xlu0 %9832 }
0x134b   : > { %v9895_v10 = vmax.f32 %v9824_v9, %v9894_v4  ;;  %v9900_v57 = vrot.slane %v9827_v23, 4  ;;  %v9993_v25 = vadd.f32 %v9992_v59, %v9991_v41  ;;  %v9998_v44 = vrot.slane %v9997_v16, 2 }
0x134c   : > { %v16084_v18 = vpop.eup %11691  ;;  %v9947_v20 = vsub.f32 %v16063_v63, %v9881_v17  ;;  %v10016_v33 = vrot.slane %v10015_v30, 2  ;;  %v9970_v34 = vmul.f32 1.442695, %v9948_v50  ;;  %v9912_v61 = vrot.slane %v16088_v52, 4 }
0x134d   : > { %v9896_v8 = vrot.slane %v9895_v10, 2  ;;  %v9901_v29 = vmax.f32 %v9827_v23, %v9900_v57  ;;  %v9994_v3 = vrot.slane %v9993_v25, 1  ;;  %v9999_v31 = vadd.f32 %v9998_v44, %v9997_v16 }
0x134e   : > { %v10008_v2 = vrot.slane %v16084_v18, 4  ;;  %v9968_v41 = vmul.f32 1.442695, %v9947_v20  ;;  %11695 = vpow2.f32 %v9970_v34  ;;  %v9913_v59 = vmax.f32 %v16088_v52, %v9912_v61 }
0x134f   : > { %v9897_v36 = vmax.f32 %v9895_v10, %v9896_v8  ;;  %v9902_v27 = vrot.slane %v9901_v29, 2  ;;  %v16090_v58 = vpop.eup %11693  ;;  %v9995_v63 = vadd.f32 %v9994_v3, %v9993_v25  ;;  %v10000_v10 = vrot.slane %v9999_v31, 1 }
0x1350   : > { %v16079_v47 = vpop.xlane.xlu1 %9829  ;;  %v10002_v4 = vrot.slane %v16090_v58, 4  ;;  %v10009_v57 = vadd.f32 %v16084_v18, %v10008_v2  ;;  %11697 = vpow2.f32 %v9968_v41 }
0x1351   : > { %v9898_v6 = vrot.slane %v9897_v36, 1  ;;  %v9903_v45 = vmax.f32 %v9901_v29, %v9902_v27  ;;  %v9906_v5 = vrot.slane %v16079_v47, 4  ;;  %11699 = vrcp.f32 %v9995_v63 }
0x1352   : > { %v10003_v12 = vadd.f32 %v16090_v58, %v10002_v4  ;;  %v10001_v29 = vadd.f32 %v10000_v10, %v9999_v31  ;;  %v10010_v38 = vrot.slane %v10009_v57, 2  ;;  %v16102_v25 = vpop.xlane.xlu2 %9835 }
0x1353   : > { %v9899_v42 = vmax.f32 %v9897_v36, %v9898_v6  ;;  %v9904_v51 = vrot.slane %v9903_v45, 1  ;;  %v9907_v19 = vmax.f32 %v16079_v47, %v9906_v5 }
0x1354   : > { %v16098_v36 = vpop.eup %11695  ;;  %v10004_v17 = vrot.slane %v10003_v12, 2  ;;  %v10011_v50 = vadd.f32 %v10010_v38, %v10009_v57 }
0x1355   : > { %v9950_v43 = vsub.f32 %v9824_v9, %v9899_v42  ;;  %v9905_v35 = vmax.f32 %v9903_v45, %v9904_v51  ;;  %v9908_v40 = vrot.slane %v9907_v19, 2  ;;  %v10017_v9 = vadd.f32 %v10016_v33, %v10015_v30 }
0x1356   : > { %v16100_v27 = vpop.eup %11697  ;;  %v10026_v42 = vrot.slane %v16098_v36, 4  ;;  %v9918_v51 = vrot.slane %v16102_v25, 4  ;;  %v10005_v3 = vadd.f32 %v10004_v17, %v10003_v12 }
0x1357   : > { %v9974_v0 = vmul.f32 1.442695, %v9950_v43  ;;  %v9951_v62 = vsub.f32 %v9827_v23, %v9905_v35  ;;  %v9909_v7 = vmax.f32 %v9907_v19, %v9908_v40  ;;  %v10018_v16 = vrot.slane %v10017_v9, 1  ;;  %v11700_v6 = vpop.eup %11699 }
0x1358   : > { %v9914_v23 = vrot.slane %v9913_v59, 2  ;;  %v10020_v20 = vrot.slane %v16100_v27, 4  ;;  %v10102_v19 = vmul.f32 %v11700_v6, %v16068_v13  ;;  %v10027_v33 = vadd.f32 %v16098_v36, %v10026_v42  ;;  %v16115_v40 = vpop.xlane.xlu1 %9838 }
0x1359   : > { %v9910_v24 = vrot.slane %v9909_v7, 1  ;;  %11701 = vpow2.f32 %v9974_v0  ;;  %v9976_v8 = vmul.f32 1.442695, %v9951_v62  ;;  %v10019_v44 = vadd.f32 %v10018_v16, %v10017_v9 }
0x135a   : > { %v9915_v5 = vmax.f32 %v9913_v59, %v9914_v23  ;;  %v10021_v41 = vadd.f32 %v16100_v27, %v10020_v20  ;;  %v9919_v61 = vmax.f32 %v16102_v25, %v9918_v51  ;;  %v10006_v63 = vrot.slane %v10005_v3, 1 }
0x135b   : > { %v9911_v60 = vmax.f32 %v9909_v7, %v9910_v24  ;;  %11703 = vpow2.f32 %v9976_v8  ;;  %v10118_v13 = vmul.f32 %v10102_v19, %v15618_v14  ;;  %v10028_v10 = vrot.slane %v10027_v33, 2  ;;  %v16126_v38 = vpop.xlane.xlu0 %9841 }
0x135c   : > { %11705 = vrcp.f32 %v10001_v29  ;;  %v9916_v34 = vrot.slane %v9915_v5, 1  ;;  %v10022_v57 = vrot.slane %v10021_v41, 2  ;;  %v9920_v24 = vrot.slane %v9919_v61, 2 }
0x135d   : > { %v9952_v30 = vsub.f32 %v16079_v47, %v9911_v60  ;;  %11707 = vrcp.f32 %v10019_v44  ;;  %v10012_v47 = vrot.slane %v10011_v50, 1  ;;  %v10007_v12 = vadd.f32 %v10006_v63, %v10005_v3 }
0x135e   : > { %v9917_v9 = vmax.f32 %v9915_v5, %v9916_v34  ;;  %v10134_v29 = vsel %vm546_vm0, %v10118_v13, 0.0  ;;  %v9921_v16 = vmax.f32 %v9919_v61, %v9920_v24  ;;  %v10029_v17 = vadd.f32 %v10028_v10, %v10027_v33 }
0x135f   : > { %v16105_v45 = vpop.eup %11701  ;;  %v9978_v35 = vmul.f32 1.442695, %v9952_v30  ;;  %v10013_v7 = vadd.f32 %v10012_v47, %v10011_v50  ;;  %v10023_v44 = vadd.f32 %v10022_v57, %v10021_v41  ;;  %v10135_v42 = vrot.slane %v10134_v29, 4 }
0x1360   : > { %v10038_v43 = vrot.slane %v16105_v45, 4  ;;  %v9953_v8 = vsub.f32 %v16088_v52, %v9917_v9  ;;  %v9922_v50 = vrot.slane %v9921_v16, 1  ;;  %v9924_v5 = vrot.slane %v16115_v40, 4  ;;  %v16135_v51 = vpop.xlane.xlu1 %9820 }
0x1361   : > { %v16112_v31 = vpop.eup %11703  ;;  %11709 = vpow2.f32 %v9978_v35  ;;  %v9930_v20 = vrot.slane %v16126_v38, 4  ;;  %v10024_v33 = vrot.slane %v10023_v44, 1  ;;  %v9888_v41 = vrot.slane %v16135_v51, 4 }
0x1362   : > { %v11706_v2 = vpop.eup %11705  ;;  %v10039_v4 = vadd.f32 %v16105_v45, %v10038_v43  ;;  %v10044_v0 = vrot.slane %v16112_v31, 4  ;;  %11711 = vrcp.f32 %v10013_v7  ;;  %v9980_v6 = vmul.f32 1.442695, %v9953_v8 }
0x1363   : > { %v10103_v62 = vmul.f32 %v11706_v2, %v16071_v32  ;;  %v11708_v59 = vpop.eup %11707  ;;  %11713 = vrcp.f32 %v10007_v12  ;;  %v9923_v35 = vmax.f32 %v9921_v16, %v9922_v50  ;;  %v9925_v47 = vmax.f32 %v16115_v40, %v9924_v5  ;;  %v16144_v61 = vpop.xlane.xlu2 %9844 }
0x1364   : > { %v10040_v60 = vrot.slane %v10039_v4, 2  ;;  %v10045_v14 = vadd.f32 %v16112_v31, %v10044_v0  ;;  %v10106_v30 = vmul.f32 %v11708_v59, %v16074_v22  ;;  %11715 = vpow2.f32 %v9980_v6 }
0x1365   : > { %v10119_v32 = vmul.f32 %v10103_v62, %v15647_v55  ;;  %v10030_v22 = vrot.slane %v10029_v17, 1  ;;  %v9931_v2 = vmax.f32 %v16126_v38, %v9930_v20  ;;  %v16146_v13 = vadd.f32 %v10135_v42, %v10134_v29 }
0x1366   : > { %v10041_v3 = vadd.f32 %v10040_v60, %v10039_v4  ;;  %v10046_v19 = vrot.slane %v10045_v14, 2  ;;  %v10122_v4 = vmul.f32 %v10106_v30, %v15650_v48  ;;  %v9954_v0 = vsub.f32 %v16102_v25, %v9923_v35 }
0x1367   : > { %v16128_v23 = vpop.eup %11709  ;;  %v16139_v43 = vsel %vm546_vm0, %v10119_v32, 0.0  ;;  %v9926_v62 = vrot.slane %v9925_v47, 2  ;;  %v9932_v9 = vrot.slane %v9931_v2, 2  ;;  %v9889_v57 = vmax.f32 %v16135_v51, %v9888_v41 }
0x1368   : > { %v10050_v52 = vrot.slane %v16128_v23, 4  ;;  %v11712_v63 = vpop.eup %11711  ;;  %v10042_v7 = vrot.slane %v10041_v3, 1  ;;  %v10047_v10 = vadd.f32 %v10046_v19, %v10045_v14  ;;  %v10142_v59 = vrot.slane %v16139_v43, 4 }
0x1369   : > { %v11714_v24 = vpop.eup %11713  ;;  %v9982_v12 = vmul.f32 1.442695, %v9954_v0  ;;  %v9927_v8 = vmax.f32 %v9925_v47, %v9926_v62  ;;  %v9936_v60 = vrot.slane %v16144_v61, 4  ;;  %v10031_v29 = vadd.f32 %v10030_v22, %v10029_v17 }
0x136a   : > { %v10051_v55 = vadd.f32 %v16128_v23, %v10050_v52  ;;  %v16153_v16 = vpop.eup %11715  ;;  %v10025_v32 = vadd.f32 %v10024_v33, %v10023_v44  ;;  %v9933_v6 = vmax.f32 %v9931_v2, %v9932_v9  ;;  %v9890_v30 = vrot.slane %v9889_v57, 2 }
0x136b   : > { %v10056_v25 = vrot.slane %v16153_v16, 4  ;;  %11717 = vpow2.f32 %v9982_v12  ;;  %v9928_v14 = vrot.slane %v9927_v8, 1  ;;  %v10162_v52 = vsel %vm546_vm0, %v10122_v4, 0.0 }
0x136c   : > { %v10052_v34 = vrot.slane %v10051_v55, 2  ;;  %v10043_v50 = vadd.f32 %v10042_v7, %v10041_v3  ;;  %v10048_v42 = vrot.slane %v10047_v10, 1  ;;  %v9934_v5 = vrot.slane %v9933_v6, 1 }
0x136d   : > { %v10057_v20 = vadd.f32 %v16153_v16, %v10056_v25  ;;  %v9929_v19 = vmax.f32 %v9927_v8, %v9928_v14  ;;  %v9891_v35 = vmax.f32 %v9889_v57, %v9890_v30  ;;  %v9937_v47 = vmax.f32 %v16144_v61, %v9936_v60 }
0x136e   : > { %v10053_v48 = vadd.f32 %v10052_v34, %v10051_v55  ;;  %v10104_v17 = vmul.f32 %v11714_v24, %v16090_v58  ;;  %11719 = vrcp.f32 %v10031_v29  ;;  %v9935_v55 = vmax.f32 %v9933_v6, %v9934_v5 }
0x136f   : > { %11721 = vrcp.f32 %v10025_v32  ;;  %v10058_v22 = vrot.slane %v10057_v20, 2  ;;  %v9955_v33 = vsub.f32 %v16115_v40, %v9929_v19  ;;  %v9892_v34 = vrot.slane %v9891_v35, 1 }
0x1370   : > { %v10054_v44 = vrot.slane %v10053_v48, 1  ;;  %v10163_v2 = vrot.slane %v10162_v52, 4  ;;  %11723 = vrcp.f32 %v10043_v50  ;;  %v9956_v3 = vsub.f32 %v16126_v38, %v9935_v55 }
0x1371   : > { %v9938_v41 = vrot.slane %v9937_v47, 2  ;;  %v16162_v4 = vpop.eup %11717  ;;  %v10049_v0 = vadd.f32 %v10048_v42, %v10047_v10  ;;  %v10059_v62 = vadd.f32 %v10058_v22, %v10057_v20  ;;  %v9984_v7 = vmul.f32 1.442695, %v9955_v33 }
0x1372   : > { %v9893_v9 = vmax.f32 %v9891_v35, %v9892_v34  ;;  %v10055_v58 = vadd.f32 %v10054_v44, %v10053_v48  ;;  %v10062_v57 = vrot.slane %v16162_v4, 4  ;;  %v9986_v24 = vmul.f32 1.442695, %v9956_v3 }
0x1373   : > { %v9939_v12 = vmax.f32 %v9937_v47, %v9938_v41  ;;  %v10120_v8 = vmul.f32 %v10104_v17, %v15654_v1  ;;  %v10060_v40 = vrot.slane %v10059_v62, 1  ;;  %11725 = vpow2.f32 %v9984_v7 }
0x1374   : > { %v9949_v60 = vsub.f32 %v16135_v51, %v9893_v9  ;;  %v11720_v29 = vpop.eup %11719  ;;  %v10105_v38 = vmul.f32 %v11712_v63, %v16084_v18  ;;  %v10063_v32 = vadd.f32 %v16162_v4, %v10062_v57  ;;  %11727 = vpow2.f32 %v9986_v24 }
0x1375   : > { %v9940_v10 = vrot.slane %v9939_v12, 1  ;;  %v11722_v6 = vpop.eup %11721  ;;  %v10137_v48 = vrot.slane %v16146_v13, 2  ;;  %11729 = vrcp.f32 %v10049_v0  ;;  %v10061_v25 = vadd.f32 %v10060_v40, %v10059_v62 }
0x1376   : > { %v9972_v14 = vmul.f32 1.442695, %v9949_v60  ;;  %v11724_v30 = vpop.eup %11723  ;;  %11731 = vrcp.f32 %v10055_v58  ;;  %v10064_v1 = vrot.slane %v10063_v32, 2  ;;  %v10143_v42 = vadd.f32 %v10142_v59, %v16139_v43 }
0x1377   : > { %v9941_v50 = vmax.f32 %v9939_v12, %v9940_v10  ;;  %v10148_v51 = vsel %vm546_vm0, %v10120_v8, 0.0  ;;  %11733 = vrcp.f32 %v10061_v25  ;;  %v10164_v18 = vadd.f32 %v10163_v2, %v10162_v52 }
0x1378   : > { %v10065_v63 = vadd.f32 %v10064_v1, %v10063_v32  ;;  %11735 = vpow2.f32 %v9972_v14  ;;  %v10138_v19 = vadd.f32 %v10137_v48, %v16146_v13  ;;  %v10121_v35 = vmul.f32 %v10105_v38, %v15657_v53 }
0x1379   : > { %v9957_v5 = vsub.f32 %v16144_v61, %v9941_v50  ;;  %v16173_v20 = vpop.eup %11725  ;;  %v10107_v47 = vmul.f32 %v11722_v6, %v16100_v27  ;;  %v10149_v44 = vrot.slane %v10148_v51, 4  ;;  %v10144_v22 = vrot.slane %v10143_v42, 2 }
0x137a   : > { %v16178_v17 = vpop.eup %11727  ;;  %v10066_v43 = vrot.slane %v10065_v63, 1  ;;  %v10068_v59 = vrot.slane %v16173_v20, 4  ;;  %v10165_v34 = vrot.slane %v10164_v18, 2  ;;  %v10139_v3 = vrot.slane %v10138_v19, 1 }
0x137b   : > { %v9988_v55 = vmul.f32 1.442695, %v9957_v5  ;;  %v11730_v52 = vpop.eup %11729  ;;  %v10074_v33 = vrot.slane %v16178_v17, 4  ;;  %v10155_v27 = vsel %vm546_vm0, %v10121_v35, 0.0  ;;  %v10123_v41 = vmul.f32 %v10107_v47, %v15688_v49 }
0x137c   : > { %v11732_v61 = vpop.eup %11731  ;;  %v10067_v2 = vadd.f32 %v10066_v43, %v10065_v63  ;;  %v10069_v13 = vadd.f32 %v16173_v20, %v10068_v59  ;;  %v10150_v7 = vadd.f32 %v10149_v44, %v10148_v51  ;;  %v10108_v9 = vmul.f32 %v11720_v29, %v16098_v36 }
0x137d   : > { %11737 = vpow2.f32 %v9988_v55  ;;  %v11734_v53 = vpop.eup %11733  ;;  %v10075_v0 = vadd.f32 %v16178_v17, %v10074_v33  ;;  %v16189_v57 = vadd.f32 %v10144_v22, %v10143_v42  ;;  %v10111_v24 = vmul.f32 %v11730_v52, %v16112_v31 }
0x137e   : > { %v16186_v62 = vpop.eup %11735  ;;  %11739 = vrcp.f32 %v10067_v2  ;;  %v10070_v58 = vrot.slane %v10069_v13, 2  ;;  %v10156_v40 = vrot.slane %v10155_v27, 4  ;;  %v10110_v60 = vmul.f32 %v11724_v30, %v16105_v45 }
0x137f   : > { %v10076_v12 = vrot.slane %v10075_v0, 2  ;;  %v10032_v8 = vrot.slane %v16186_v62, 4  ;;  %v10112_v49 = vmul.f32 %v11732_v61, %v16128_v23  ;;  %v10169_v32 = vsel %vm546_vm0, %v10123_v41, 0.0 }
0x1380   : > { %v10071_v38 = vadd.f32 %v10070_v58, %v10069_v13  ;;  %v10113_v10 = vmul.f32 %v11734_v53, %v16153_v16  ;;  %v16200_v48 = vadd.f32 %v10165_v34, %v10164_v18  ;;  %v10151_v31 = vrot.slane %v10150_v7, 2 }
0x1381   : > { %v10077_v36 = vadd.f32 %v10076_v12, %v10075_v0  ;;  %v10033_v29 = vadd.f32 %v16186_v62, %v10032_v8  ;;  %v10124_v25 = vmul.f32 %v10108_v9, %v15682_v21  ;;  %v10127_v45 = vmul.f32 %v10111_v24, %v15781_v56 }
0x1382   : > { %v10072_v14 = vrot.slane %v10071_v38, 1  ;;  %v10170_v42 = vrot.slane %v10169_v32, 4  ;;  %v10126_v16 = vmul.f32 %v10110_v60, %v15742_v28  ;;  %v10128_v51 = vmul.f32 %v10112_v49, %v15953_v46 }
0x1383   : > { %v16198_v6 = vpop.eup %11737  ;;  %v10078_v30 = vrot.slane %v10077_v36, 1  ;;  %v10034_v23 = vrot.slane %v10033_v29, 2  ;;  %v10129_v18 = vmul.f32 %v10113_v10, %v15963_v37  ;;  %v16209_v47 = vadd.f32 %v10139_v3, %v10138_v19 }
0x1384   : > { %v10080_v1 = vrot.slane %v16198_v6, 4  ;;  %v11740_v50 = vpop.eup %11739  ;;  %v10073_v63 = vadd.f32 %v10072_v14, %v10071_v38  ;;  %v10157_v56 = vadd.f32 %v10156_v40, %v10155_v27  ;;  %v10197_v43 = vsel %vm546_vm0, %v10127_v45, 0.0 }
0x1385   : > { %v10114_v5 = vmul.f32 %v11740_v50, %v16162_v4  ;;  %v10079_v35 = vadd.f32 %v10078_v30, %v10077_v36  ;;  %v10035_v21 = vadd.f32 %v10034_v23, %v10033_v29  ;;  %v10152_v46 = vadd.f32 %v10151_v31, %v10150_v7 }
0x1386   : > { %11741 = vrcp.f32 %v10073_v63  ;;  %v10081_v44 = vadd.f32 %v16198_v6, %v10080_v1  ;;  %v10176_v55 = vsel %vm546_vm0, %v10124_v25, 0.0  ;;  %v10204_v37 = vsel %vm546_vm0, %v10128_v51, 0.0 }
0x1387   : > { %v10130_v59 = vmul.f32 %v10114_v5, %v15974_v15  ;;  %11743 = vrcp.f32 %v10079_v35  ;;  %v10036_v28 = vrot.slane %v10035_v21, 1  ;;  %v10171_v52 = vadd.f32 %v10170_v42, %v10169_v32 }
0x1388   : > { %v10082_v4 = vrot.slane %v10081_v44, 2  ;;  %v10190_v19 = vsel %vm546_vm0, %v10126_v16, 0.0  ;;  %v10211_v22 = vsel %vm546_vm0, %v10129_v18, 0.0  ;;  %v10146_v61 = vrot.slane %v16189_v57, 1 }
0x1389   : > { %v10037_v33 = vadd.f32 %v10036_v28, %v10035_v21  ;;  %v10198_v34 = vrot.slane %v10197_v43, 4  ;;  %v10218_v2 = vsel %vm546_vm0, %v10130_v59, 0.0  ;;  %v10158_v13 = vrot.slane %v10157_v56, 2 }
0x138a   : > { %v10083_v15 = vadd.f32 %v10082_v4, %v10081_v44  ;;  %v10177_v53 = vrot.slane %v10176_v55, 4  ;;  %v10205_v3 = vrot.slane %v10204_v37, 4  ;;  %v10167_v41 = vrot.slane %v16200_v48, 1 }
0x138b   : > { %11745 = vrcp.f32 %v10037_v33  ;;  %v10191_v0 = vrot.slane %v10190_v19, 4  ;;  %v10212_v7 = vrot.slane %v10211_v22, 4  ;;  %v10153_v24 = vrot.slane %v10152_v46, 1 }
0x138c   : > { %v11742_v27 = vpop.eup %11741  ;;  %v10084_v9 = vrot.slane %v10083_v15, 1  ;;  %v10172_v12 = vrot.slane %v10171_v52, 2  ;;  %v10219_v8 = vrot.slane %v10218_v2, 4  ;;  %v10147_v60 = vadd.f32 %v10146_v61, %v16189_v57 }
0x138d   : > { %v11744_v58 = vpop.eup %11743  ;;  %v10115_v40 = vmul.f32 %v11742_v27, %v16173_v20  ;;  %v10199_v49 = vadd.f32 %v10198_v34, %v10197_v43  ;;  %v10159_v10 = vadd.f32 %v10158_v13, %v10157_v56  ;;  %v10178_v36 = vadd.f32 %v10177_v53, %v10176_v55 }
0x138e   : > { %v10116_v38 = vmul.f32 %v11744_v58, %v16178_v17  ;;  %v10085_v32 = vadd.f32 %v10084_v9, %v10083_v15  ;;  %v10206_v29 = vadd.f32 %v10205_v3, %v10204_v37  ;;  %v10192_v25 = vadd.f32 %v10191_v0, %v10190_v19 }
0x138f   : > { %v10131_v31 = vmul.f32 %v10115_v40, %v15989_v54  ;;  %v10213_v14 = vadd.f32 %v10212_v7, %v10211_v22  ;;  %v10154_v23 = vadd.f32 %v10153_v24, %v10152_v46  ;;  %v10173_v1 = vadd.f32 %v10172_v12, %v10171_v52 }
0x1390   : > { %v10132_v45 = vmul.f32 %v10116_v38, %v15996_v26  ;;  %11747 = vrcp.f32 %v10085_v32  ;;  %v10220_v20 = vadd.f32 %v10219_v8, %v10218_v2  ;;  %v10200_v50 = vrot.slane %v10199_v49, 2 }
0x1391   : > { %v11746_v30 = vpop.eup %11745  ;;  %v10225_v57 = vsel %vm546_vm0, %v10131_v31, 0.0  ;;  %v10160_v51 = vrot.slane %v10159_v10, 1  ;;  %v10179_v63 = vrot.slane %v10178_v36, 2  ;;  %v10207_v54 = vrot.slane %v10206_v29, 2 }
0x1392   : > { %v10226_v42 = vrot.slane %v10225_v57, 4  ;;  %v10232_v17 = vsel %vm546_vm0, %v10132_v45, 0.0  ;;  %v10109_v16 = vmul.f32 %v11746_v30, %v16186_v62  ;;  %v10193_v5 = vrot.slane %v10192_v25, 2 }
0x1393   : > { %v10233_v18 = vrot.slane %v10232_v17, 4  ;;  %v10214_v35 = vrot.slane %v10213_v14, 2  ;;  %v10174_v56 = vrot.slane %v10173_v1, 1  ;;  %v10221_v44 = vrot.slane %v10220_v20, 2 }
0x1394   : > { %v10227_v26 = vadd.f32 %v10226_v42, %v10225_v57  ;;  %v10125_v21 = vmul.f32 %v10109_v16, %v15753_v11  ;;  %v10262_v59 = vsel %vm9547_vm13, %v10147_v60, %v16209_v47  ;;  %v10201_v46 = vadd.f32 %v10200_v50, %v10199_v49 }
0x1395   : > { %v10234_v43 = vadd.f32 %v10233_v18, %v10232_v17  ;;  %v10263_v37 = vsel %vm9549_vm14, %v10154_v23, %v10262_v59  ;;  %v10208_v4 = vadd.f32 %v10207_v54, %v10206_v29  ;;  %v10161_v33 = vadd.f32 %v10160_v51, %v10159_v10 }
0x1396   : > { %v11748_v28 = vpop.eup %11747  ;;  %v10228_v55 = vrot.slane %v10227_v26, 2  ;;  %v10183_v62 = vsel %vm546_vm0, %v10125_v21, 0.0  ;;  %v10180_v11 = vadd.f32 %v10179_v63, %v10178_v36  ;;  %v10194_v61 = vadd.f32 %v10193_v5, %v10192_v25 }
0x1397   : > { %v10235_v52 = vrot.slane %v10234_v43, 2  ;;  %v10184_v19 = vrot.slane %v10183_v62, 4  ;;  %v10117_v22 = vmul.f32 %v11748_v28, %v16198_v6  ;;  %v10215_v34 = vadd.f32 %v10214_v35, %v10213_v14 }
0x1398   : > { %v10168_v2 = vadd.f32 %v10167_v41, %v16200_v48  ;;  %v10222_v15 = vadd.f32 %v10221_v44, %v10220_v20  ;;  %v10202_v53 = vrot.slane %v10201_v46, 1  ;;  %v10229_v3 = vadd.f32 %v10228_v55, %v10227_v26 }
0x1399   : > { %v10185_v47 = vadd.f32 %v10184_v19, %v10183_v62  ;;  %v10133_v13 = vmul.f32 %v10117_v22, %v16003_v39  ;;  %v10175_v27 = vadd.f32 %v10174_v56, %v10173_v1  ;;  %v10264_v0 = vsel %vm9551_vm15, %v10161_v33, %v10263_v37 }
0x139a   : > { %v10209_v7 = vrot.slane %v10208_v4, 1  ;;  %v10236_v9 = vadd.f32 %v10235_v52, %v10234_v43  ;;  %v10195_v24 = vrot.slane %v10194_v61, 1  ;;  %v10216_v12 = vrot.slane %v10215_v34, 1 }
0x139b   : > { %v10186_v6 = vrot.slane %v10185_v47, 2  ;;  %v10239_v58 = vsel %vm546_vm0, %v10133_v13, 0.0  ;;  %v10181_v48 = vrot.slane %v10180_v11, 1  ;;  %v10223_v41 = vrot.slane %v10222_v15, 1 }
0x139c   : > { %v10240_v8 = vrot.slane %v10239_v58, 4  ;;  %v10203_v60 = vadd.f32 %v10202_v53, %v10201_v46  ;;  %v10230_v39 = vrot.slane %v10229_v3, 1  ;;  %v10265_v38 = vsel %vm9553_vm2, %v10168_v2, %v10264_v0 }
0x139d   : > { %v10187_v40 = vadd.f32 %v10186_v6, %v10185_v47  ;;  %v10210_v32 = vadd.f32 %v10209_v7, %v10208_v4  ;;  %v10237_v36 = vrot.slane %v10236_v9, 1  ;;  %v10266_v29 = vsel %vm9555_vm3, %v10175_v27, %v10265_v38 }
0x139e   : > { %v10241_v49 = vadd.f32 %v10240_v8, %v10239_v58  ;;  %v10196_v31 = vadd.f32 %v10195_v24, %v10194_v61  ;;  %v10217_v25 = vadd.f32 %v10216_v12, %v10215_v34  ;;  %v10182_v45 = vadd.f32 %v10181_v48, %v10180_v11 }
0x139f   : > { %v10188_v10 = vrot.slane %v10187_v40, 1  ;;  %v10224_v30 = vadd.f32 %v10223_v41, %v10222_v15  ;;  %v10231_v1 = vadd.f32 %v10230_v39, %v10229_v3  ;;  %v10238_v42 = vadd.f32 %v10237_v36, %v10236_v9 }
0x13a0   : > { %v10242_v14 = vrot.slane %v10241_v49, 2  ;;  %v10267_v57 = vsel %vm9557_vm5, %v10182_v45, %v10266_v29  ;;  %v10269_v50 = vsel %vm9547_vm13, %v10203_v60, %v10196_v31 }
0x13a1   : > { %v10189_v23 = vadd.f32 %v10188_v10, %v10187_v40  ;;  %v10270_v16 = vsel %vm9549_vm14, %v10210_v32, %v10269_v50 }
0x13a2   : > { %v10243_v20 = vadd.f32 %v10242_v14, %v10241_v49  ;;  %v10271_v63 = vsel %vm9551_vm15, %v10217_v25, %v10270_v16 }
0x13a3   : > { %v10268_v17 = vsel %vm9559_vm6, %v10189_v23, %v10267_v57  ;;  %v10272_v18 = vsel %vm9553_vm2, %v10224_v30, %v10271_v63 }
0x13a4   : > { %v10244_v51 = vrot.slane %v10243_v20, 1  ;;  %v10278_v54 = vsel %vm546_vm0, %v10268_v17, 0.0  ;;  %v10273_v35 = vsel %vm9555_vm3, %v10231_v1, %v10272_v18 }
0x13a5   : > { %10280 = vst [vmem:[%s502_s27] sm:$0xff] %v10278_v54  ;;  %v10274_v26 = vsel %vm9557_vm5, %v10238_v42, %v10273_v35 }
0x13a6   : > { %v10245_v5 = vadd.f32 %v10244_v51, %v10243_v20 }
0x13a8   : > { %v10275_v21 = vsel %vm9559_vm6, %v10245_v5, %v10274_v26 }
0x13a9   : > { %v10279_v56 = vsel %vm546_vm0, %v10275_v21, 0.0 }
0x13aa   : > { %10281 = vst [vmem:[%s502_s27 + $0x8] sm:$0xff] %v10279_v56 }
0x13ab   : > { %11837 = shalt.err (!%p11834_p0)
}
0x13ac   : > { %s11886_s0 = smov 128   ;;  %s11887_s20 = smov 8  }
0x13ad   : > { %10913 = dma.vmem_to_hbm [thread:$0]  (%p12008_p11), %s10296_s12, 256, %s10298_s16, %s10283_s23, %s11886_s0, %s11886_s0, %s11887_s20  }
0x13ae PF: > { %s16813_s14 = sld [smem:[#allocation11_spill]]  ;;  %p16815_p1 = scmp.ge.s32.totalorder %s11880_s28, 2 }
0x13b0   : > { %p10923_p4 = pnand %p16815_p1, %p12012_p12 }
0x13b2   : > { %p10924_p7 = pneg %p10923_p4 }
0x13b4   : > { %s10312_s18 = sand.u32 1, %s16813_s14  }
0x13b5   : > { %s10313_s13 = scalar_lea.sflag [#allocation4], %s10312_s18 }
0x13b6   : > { %11863 = dma.done.wait (%p10924_p7), %s10313_s13, 256  }
0x13b7   : > { %11865 = vsyncadd (%p10924_p7), %s10313_s13, 4294967040  ;;  %s16816_s28 = sld [smem:[#allocation14_spill]]  ;;  %s16819_s25 = smov %s11872_s26 }
0x13b8   : > { %s16817_s27 = sld [smem:[#allocation12_spill]] }
0x13b9   : > { %s16818_s24 = sld [smem:[#allocation15_spill]] }
0x13bd   : > { %p29_p5 = scmp.ge.s32.totalorder %s16816_s28, 4  }
0x13be   : > { %s16820_s26 = smov %s16817_s27 }
0x13bf   : > { %s16821_s27 = smov %s16818_s24  ;;  %31 = sbr.rel (!%p29_p5) target bundleno = 12 (0xc), region = 130 }
0x13c4   :  { %10319 = vsyncpa [#allocation3], 1 }
0x13c5   :  { %10321 = vsyncpa [#allocation3 + $0x1], 1 }
0x13c6   :  { %10322 = vsyncpa [#allocation6], 1 }
0x13c7   :  { %10324 = vsyncpa [#allocation6 + $0x1], 1 }
0x13c8   :  { %10325 = vsyncpa [#allocation4], 1 }
0x13c9   :  { %10327 = vsyncpa [#allocation4 + $0x1], 1 }

</bundles_post_ra>
